<compile_context>
chip_gen: v5e
topology: v5e:2x2
jax: 0.10.0
libtpu: 0.0.40
codegen_flags: <defaults>
</compile_context>

<pallas_src>
import jax
import jax.numpy as jnp
from jax.experimental import pallas as pl
from jax.experimental.pallas import tpu as pltpu


_OH1, _WPAD = 26, 32            # conv1 output rows / padded row width
_NR1 = _OH1 * _WPAD             # 832 conv1 rows per image
_NR1_PAD = _NR1 + 8             # 840 scratch rows (conv2 reads up to row 833)
_OH2 = 24
_NR2 = _OH2 * _WPAD             # 768 conv2 rows per image (valid ow < 24)
_NPOOL = 12 * 12                # 144 pooled positions per image


# --------------------------- Pallas kernels ---------------------------

def _conv_pool_kernel(p1_ref, w1_ref, b1_ref, w2_ref, b2_ref, sel_ref,
                      o_ref, a1_ref):
    # conv1 + ReLU: (832, 9) @ (9, 32), bias/relu in f32, kept in VMEM scratch.
    a1 = jnp.dot(p1_ref[0], w1_ref[...], preferred_element_type=jnp.float32)
    a1 = jnp.maximum(a1 + b1_ref[...], 0.0)
    a1_ref[0:_NR1, :] = a1
    # Zero the tail rows so the (discarded) out-of-range conv2 rows stay finite.
    a1_ref[_NR1:_NR1_PAD, :] = jnp.zeros((_NR1_PAD - _NR1, 32), jnp.float32)

    # conv2 as 9 shifted matmuls straight out of VMEM (no im2col, no HBM).
    acc = None
    for i in range(3):
        for j in range(3):
            off = i * _WPAD + j
            lhs = a1_ref[off:off + _NR2, :].astype(jnp.bfloat16)   # (768, 32)
            d = jnp.dot(lhs, w2_ref[i * 3 + j],
                        preferred_element_type=jnp.float32)        # (768, 64)
            acc = d if acc is None else acc + d
    acc = acc + b2_ref[...]        # NOTE: no ReLU here (matches reference Net)

    # 2x2 max pool fused in the epilogue: row r holds (oh, ow) = (r//32, r%32).
    #   max over ow pair, then over oh pair, via sublane rolls (XLU, cheap).
    m = jnp.maximum(acc, pltpu.roll(acc, shift=_NR2 - 1, axis=0))      # ow,ow+1
    m = jnp.maximum(m, pltpu.roll(m, shift=_NR2 - _WPAD, axis=0))      # oh,oh+1
    # Compact the 144 pooled rows (r = 64*ph + 2*pw) with a 0/1 selection
    # matmul on the MXU -> lane-aligned dense output block.
    pooled = jnp.dot(sel_ref[...], m.astype(jnp.bfloat16),
                     preferred_element_type=jnp.float32)               # (144,64)
    o_ref[0] = pooled.astype(jnp.bfloat16)


def _fc_kernel(x_ref, w3_ref, b3_ref, w4_ref, b4_ref, o_ref):
    # fc1 + ReLU + fc2 + log_softmax, fully fused; bf16 MXU, f32 epilogue.
    h = jnp.dot(x_ref[...], w3_ref[...], preferred_element_type=jnp.float32)
    h = jnp.maximum(h + b3_ref[...], 0.0)
    logits = jnp.dot(h.astype(jnp.bfloat16), w4_ref[...],
                     preferred_element_type=jnp.float32) + b4_ref[...]
    m = jnp.max(logits, axis=-1, keepdims=True)
    lse = m + jnp.log(jnp.sum(jnp.exp(logits - m), axis=-1, keepdims=True))
    o_ref[...] = logits - lse


# --------------------------- Pallas wrappers ---------------------------

def conv_pool_forward(x, w1, b1, w2, b2):
    """x: (n, 28, 28) f32 -> pooled features (n, 144, 64) bf16, (ph,pw,c) order."""
    n = x.shape[0]
    # conv1 patches over a width-32-padded output domain (row = oh*32 + ow) so
    # every conv2 tap becomes a contiguous row window of the conv1 activation.
    # TODO(synk): patch extraction stays as a few tiny XLA slices (n*50 KB);
    # only conv1's input is amplified, never the conv2 activation.
    xp = jnp.pad(x, ((0, 0), (0, 0), (0, _WPAD + 2 - 28)))        # (n, 28, 34)
    cols = [xp[:, i:i + _OH1, j:j + _WPAD] for i in range(3) for j in range(3)]
    p1 = jnp.stack(cols, axis=-1).reshape(n, _NR1, 9).astype(jnp.bfloat16)

    # Constant 0/1 matrix selecting rows 64*ph + 2*pw (the pooled positions).
    p_idx = jnp.arange(_NPOOL)
    r_idx = jnp.arange(_NR2)
    tgt = 2 * _WPAD * (p_idx // 12) + 2 * (p_idx % 12)
    sel = (r_idx[None, :] == tgt[:, None]).astype(jnp.bfloat16)    # (144, 768)

    return pl.pallas_call(
        _conv_pool_kernel,
        out_shape=jax.ShapeDtypeStruct((n, _NPOOL, 64), jnp.bfloat16),
        grid_spec=pltpu.PrefetchScalarGridSpec(
            num_scalar_prefetch=0,
            grid=(n,),
            in_specs=[
                pl.BlockSpec((1, _NR1, 9), lambda b: (b, 0, 0)),
                pl.BlockSpec((9, 32), lambda b: (0, 0)),
                pl.BlockSpec((1, 32), lambda b: (0, 0)),
                pl.BlockSpec((9, 32, 64), lambda b: (0, 0, 0)),
                pl.BlockSpec((1, 64), lambda b: (0, 0)),
                pl.BlockSpec((_NPOOL, _NR2), lambda b: (0, 0)),
            ],
            out_specs=pl.BlockSpec((1, _NPOOL, 64), lambda b: (b, 0, 0)),
            scratch_shapes=[pltpu.VMEM((_NR1_PAD, 32), jnp.float32)],
        ),
        compiler_params=pltpu.CompilerParams(
            dimension_semantics=("parallel",)),
    )(p1, w1, b1, w2, b2, sel)


def fc_forward(x, w3, b3, w4, b4, *, tm=128):
    """log_softmax(relu(x @ w3 + b3) @ w4 + b4), tiled over rows."""
    M, K = x.shape
    N = w4.shape[1]
    tm = min(tm, ((M + 7) // 8) * 8)
    m_pad = pl.cdiv(M, tm) * tm
    if m_pad != M:
        x = jnp.pad(x, ((0, m_pad - M), (0, 0)))
    out = pl.pallas_call(
        _fc_kernel,
        out_shape=jax.ShapeDtypeStruct((m_pad, N), jnp.float32),
        grid_spec=pltpu.PrefetchScalarGridSpec(
            num_scalar_prefetch=0,
            grid=(m_pad // tm,),
            in_specs=[
                pl.BlockSpec((tm, K), lambda i: (i, 0)),
                pl.BlockSpec((K, 128), lambda i: (0, 0)),
                pl.BlockSpec((1, 128), lambda i: (0, 0)),
                pl.BlockSpec((128, N), lambda i: (0, 0)),
                pl.BlockSpec((1, N), lambda i: (0, 0)),
            ],
            out_specs=pl.BlockSpec((tm, N), lambda i: (i, 0)),
        ),
        compiler_params=pltpu.CompilerParams(
            dimension_semantics=("parallel",)),
    )(x, w3, b3, w4, b4)
    return out[:M]


# ------------------------------ glue ------------------------------

def init_params(key):
    """Torch-layout init, converted once to kernel-ready (bf16 weight) layouts."""
    ks = jax.random.split(key, 8)

    def uni(k, shape, fan_in):
        b = 1.0 / jnp.sqrt(fan_in)
        return jax.random.uniform(k, shape, jnp.float32, -b, b)

    w1_t = uni(ks[0], (32, 1, 3, 3), 9.0)      # conv1.weight
    b1_t = uni(ks[1], (32,), 9.0)
    w2_t = uni(ks[2], (64, 32, 3, 3), 288.0)   # conv2.weight
    b2_t = uni(ks[3], (64,), 288.0)
    w3_t = uni(ks[4], (128, 9216), 9216.0)     # fc1.weight (input = NCHW flatten)
    b3_t = uni(ks[5], (128,), 9216.0)
    w4_t = uni(ks[6], (10, 128), 128.0)        # fc2.weight
    b4_t = uni(ks[7], (10,), 128.0)

    # conv1: (cout,1,kh,kw) -> (tap=kh*3+kw, cout)
    w1 = w1_t.reshape(32, 9).T.astype(jnp.bfloat16)
    # conv2: (cout,cin,kh,kw) -> (tap, cin, cout)
    w2 = jnp.transpose(w2_t, (2, 3, 1, 0)).reshape(9, 32, 64).astype(jnp.bfloat16)
    # fc1: torch input index c*144+ph*12+pw  ->  kernel index (ph*12+pw)*64+c
    w3 = (w3_t.reshape(128, 64, 12, 12).transpose(2, 3, 1, 0)
          .reshape(9216, 128).astype(jnp.bfloat16))
    w4 = w4_t.T.astype(jnp.bfloat16)           # (128, 10)
    return dict(w1=w1, b1=b1_t.reshape(1, 32),
                w2=w2, b2=b2_t.reshape(1, 64),
                w3=w3, b3=b3_t.reshape(1, 128),
                w4=w4, b4=b4_t.reshape(1, 10))


@jax.jit
def net_forward(x_nchw, params):
    n = x_nchw.shape[0]
    x = x_nchw.reshape(n, 28, 28)                               # C == 1
    feat = conv_pool_forward(x, params["w1"], params["b1"],
                             params["w2"], params["b2"])        # (n,144,64) bf16
    feat = feat.reshape(n, _NPOOL * 64)                         # free reshape
    return fc_forward(feat, params["w3"], params["b3"],
                      params["w4"], params["b4"])


@jax.jit
def net_reference(x_nchw, params):
    """Pure-JAX f32 reference using the same (kernel-layout) parameters."""
    n = x_nchw.shape[0]
    x = x_nchw.reshape(n, 28, 28)
    w1 = params["w1"].astype(jnp.float32).reshape(3, 3, 32)
    a1 = jnp.zeros((n, 26, 26, 32), jnp.float32)
    for i in range(3):
        for j in range(3):
            a1 = a1 + x[:, i:i + 26, j:j + 26, None] * w1[i, j]
    a1 = jnp.maximum(a1 + params["b1"].astype(jnp.float32), 0.0)
    w2 = params["w2"].astype(jnp.float32).reshape(3, 3, 32, 64)
    a2 = jnp.zeros((n, 24, 24, 64), jnp.float32)
    for i in range(3):
        for j in range(3):
            a2 = a2 + jnp.einsum("nhwc,cd->nhwd",
                                 a1[:, i:i + 24, j:j + 24, :], w2[i, j])
    a2 = a2 + params["b2"].astype(jnp.float32)
    p = jnp.max(a2.reshape(n, 12, 2, 12, 2, 64), axis=(2, 4))
    feat = p.reshape(n, 9216)
    h = jnp.maximum(feat @ params["w3"].astype(jnp.float32) + params["b3"], 0.0)
    logits = h @ params["w4"].astype(jnp.float32) + params["b4"]
    return jax.nn.log_softmax(logits, axis=-1)


if __name__ == "__main__":
    key = jax.random.PRNGKey(0)
    k_params, k_x = jax.random.split(key)
    params = init_params(k_params)
    # MNIST-shaped input (fc1's 9216 = 64*12*12 fixes spatial = 28x28, C = 1)
    x = jax.random.normal(k_x, (2, 1, 28, 28), jnp.float32)

    out = jax.block_until_ready(net_forward(x, params))
    assert out.shape == (2, 10)
    # log_softmax rows must exp-sum to 1
    assert jnp.allclose(jnp.exp(out).sum(axis=1), 1.0, atol=1e-3)
    # loose check vs the f32 reference (kernels feed the MXU in bf16)
    ref = jax.block_until_ready(net_reference(x, params))
    assert float(jnp.max(jnp.abs(out - ref))) < 0.15
    print("KERNEL_OK")
</pallas_src>

<mosaic_0001>
module attributes {stable_mosaic.version = 11 : i64} {
  func.func @_conv_pool_kernel(%arg0: i32, %arg1: memref<1x832x9xbf16, #tpu.memory_space<vmem>>, %arg2: memref<9x32xbf16, #tpu.memory_space<vmem>>, %arg3: memref<1x32xf32, #tpu.memory_space<vmem>>, %arg4: memref<9x32x64xbf16, #tpu.memory_space<vmem>>, %arg5: memref<1x64xf32, #tpu.memory_space<vmem>>, %arg6: memref<144x768xbf16, #tpu.memory_space<vmem>>, %arg7: memref<1x144x64xbf16, #tpu.memory_space<vmem>>, %arg8: memref<840x32xf32, #tpu.memory_space<vmem>>) attributes {dimension_semantics = [#tpu.dimension_semantics<parallel>], iteration_bounds = array<i64: 2>, scalar_prefetch = 0 : i64, scratch_operands = 1 : i64, tpu.core_type = #tpu.core_type<tc>, window_params = [{transform_indices = @transform_0, window_bounds = array<i64: 1, 832, 9>}, {pipeline_mode = #tpu.pipeline_mode<synchronous>, transform_indices = @transform_1, window_bounds = array<i64: 9, 32>}, {pipeline_mode = #tpu.pipeline_mode<synchronous>, transform_indices = @transform_2, window_bounds = array<i64: 1, 32>}, {pipeline_mode = #tpu.pipeline_mode<synchronous>, transform_indices = @transform_3, window_bounds = array<i64: 9, 32, 64>}, {pipeline_mode = #tpu.pipeline_mode<synchronous>, transform_indices = @transform_4, window_bounds = array<i64: 1, 64>}, {pipeline_mode = #tpu.pipeline_mode<synchronous>, transform_indices = @transform_5, window_bounds = array<i64: 144, 768>}, {transform_indices = @transform_6, window_bounds = array<i64: 1, 144, 64>}]} {
    %c0 = arith.constant 0 : index
    %c0_0 = arith.constant 0 : index
    %c0_1 = arith.constant 0 : index
    %0 = vector.load %arg1[%c0, %c0_0, %c0_1] : memref<1x832x9xbf16, #tpu.memory_space<vmem>>, vector<1x832x9xbf16>
    %1 = vector.shape_cast %0 : vector<1x832x9xbf16> to vector<832x9xbf16>
    %c0_2 = arith.constant 0 : index
    %c0_3 = arith.constant 0 : index
    %2 = vector.load %arg2[%c0_2, %c0_3] : memref<9x32xbf16, #tpu.memory_space<vmem>>, vector<9x32xbf16>
    %cst = arith.constant dense<0.000000e+00> : vector<832x32xf32>
    %3 = tpu.matmul %1, %2, %cst {dimension_numbers = #tpu.dot_dimension_numbers<[1], [0], [0], [1], [0, 0, 1, 1], [], []>} : vector<832x9xbf16>, vector<9x32xbf16>, vector<832x32xf32> -> vector<832x32xf32>
    %c0_4 = arith.constant 0 : index
    %c0_5 = arith.constant 0 : index
    %4 = vector.load %arg3[%c0_4, %c0_5] : memref<1x32xf32, #tpu.memory_space<vmem>>, vector<1x32xf32>
    %5 = vector.broadcast %4 : vector<1x32xf32> to vector<832x32xf32>
    %6 = arith.addf %3, %5 : vector<832x32xf32>
    %cst_6 = arith.constant 0.000000e+00 : f32
    %7 = vector.broadcast %cst_6 : f32 to vector<832x32xf32>
    %8 = arith.maximumf %6, %7 : vector<832x32xf32>
    %c0_7 = arith.constant 0 : index
    %c0_8 = arith.constant 0 : index
    %9 = vector.load %arg8[%c0_7, %c0_8] : memref<840x32xf32, #tpu.memory_space<vmem>>, vector<832x32xf32>
    tpu.vector_store %arg8[%c0_7, %c0_8], %8 {strides = array<i32>} : memref<840x32xf32, #tpu.memory_space<vmem>>, vector<832x32xf32>,
    %cst_9 = arith.constant 0.000000e+00 : f32
    %10 = vector.broadcast %cst_9 : f32 to vector<8x32xf32>
    %c832 = arith.constant 832 : index
    %c0_10 = arith.constant 0 : index
    %11 = vector.load %arg8[%c832, %c0_10] : memref<840x32xf32, #tpu.memory_space<vmem>>, vector<8x32xf32>
    tpu.vector_store %arg8[%c832, %c0_10], %10 {strides = array<i32>} : memref<840x32xf32, #tpu.memory_space<vmem>>, vector<8x32xf32>,
    %c0_11 = arith.constant 0 : index
    %c0_12 = arith.constant 0 : index
    %12 = vector.load %arg8[%c0_11, %c0_12] : memref<840x32xf32, #tpu.memory_space<vmem>>, vector<768x32xf32>
    %13 = arith.truncf %12 : vector<768x32xf32> to vector<768x32xbf16>
    %c0_13 = arith.constant 0 : index
    %c0_14 = arith.constant 0 : index
    %c0_15 = arith.constant 0 : index
    %14 = vector.load %arg4[%c0_13, %c0_14, %c0_15] : memref<9x32x64xbf16, #tpu.memory_space<vmem>>, vector<1x32x64xbf16>
    %15 = vector.shape_cast %14 : vector<1x32x64xbf16> to vector<32x64xbf16>
    %cst_16 = arith.constant dense<0.000000e+00> : vector<768x64xf32>
    %16 = tpu.matmul %13, %15, %cst_16 {dimension_numbers = #tpu.dot_dimension_numbers<[1], [0], [0], [1], [0, 0, 1, 1], [], []>} : vector<768x32xbf16>, vector<32x64xbf16>, vector<768x64xf32> -> vector<768x64xf32>
    %c1 = arith.constant 1 : index
    %c0_17 = arith.constant 0 : index
    %17 = vector.load %arg8[%c1, %c0_17] : memref<840x32xf32, #tpu.memory_space<vmem>>, vector<768x32xf32>
    %18 = arith.truncf %17 : vector<768x32xf32> to vector<768x32xbf16>
    %c1_18 = arith.constant 1 : index
    %c0_19 = arith.constant 0 : index
    %c0_20 = arith.constant 0 : index
    %19 = vector.load %arg4[%c1_18, %c0_19, %c0_20] : memref<9x32x64xbf16, #tpu.memory_space<vmem>>, vector<1x32x64xbf16>
    %20 = vector.shape_cast %19 : vector<1x32x64xbf16> to vector<32x64xbf16>
    %cst_21 = arith.constant dense<0.000000e+00> : vector<768x64xf32>
    %21 = tpu.matmul %18, %20, %cst_21 {dimension_numbers = #tpu.dot_dimension_numbers<[1], [0], [0], [1], [0, 0, 1, 1], [], []>} : vector<768x32xbf16>, vector<32x64xbf16>, vector<768x64xf32> -> vector<768x64xf32>
    %22 = arith.addf %16, %21 : vector<768x64xf32>
    %c2 = arith.constant 2 : index
    %c0_22 = arith.constant 0 : index
    %23 = vector.load %arg8[%c2, %c0_22] : memref<840x32xf32, #tpu.memory_space<vmem>>, vector<768x32xf32>
    %24 = arith.truncf %23 : vector<768x32xf32> to vector<768x32xbf16>
    %c2_23 = arith.constant 2 : index
    %c0_24 = arith.constant 0 : index
    %c0_25 = arith.constant 0 : index
    %25 = vector.load %arg4[%c2_23, %c0_24, %c0_25] : memref<9x32x64xbf16, #tpu.memory_space<vmem>>, vector<1x32x64xbf16>
    %26 = vector.shape_cast %25 : vector<1x32x64xbf16> to vector<32x64xbf16>
    %cst_26 = arith.constant dense<0.000000e+00> : vector<768x64xf32>
    %27 = tpu.matmul %24, %26, %cst_26 {dimension_numbers = #tpu.dot_dimension_numbers<[1], [0], [0], [1], [0, 0, 1, 1], [], []>} : vector<768x32xbf16>, vector<32x64xbf16>, vector<768x64xf32> -> vector<768x64xf32>
    %28 = arith.addf %22, %27 : vector<768x64xf32>
    %c32 = arith.constant 32 : index
    %c0_27 = arith.constant 0 : index
    %29 = vector.load %arg8[%c32, %c0_27] : memref<840x32xf32, #tpu.memory_space<vmem>>, vector<768x32xf32>
    %30 = arith.truncf %29 : vector<768x32xf32> to vector<768x32xbf16>
    %c3 = arith.constant 3 : index
    %c0_28 = arith.constant 0 : index
    %c0_29 = arith.constant 0 : index
    %31 = vector.load %arg4[%c3, %c0_28, %c0_29] : memref<9x32x64xbf16, #tpu.memory_space<vmem>>, vector<1x32x64xbf16>
    %32 = vector.shape_cast %31 : vector<1x32x64xbf16> to vector<32x64xbf16>
    %cst_30 = arith.constant dense<0.000000e+00> : vector<768x64xf32>
    %33 = tpu.matmul %30, %32, %cst_30 {dimension_numbers = #tpu.dot_dimension_numbers<[1], [0], [0], [1], [0, 0, 1, 1], [], []>} : vector<768x32xbf16>, vector<32x64xbf16>, vector<768x64xf32> -> vector<768x64xf32>
    %34 = arith.addf %28, %33 : vector<768x64xf32>
    %c33 = arith.constant 33 : index
    %c0_31 = arith.constant 0 : index
    %35 = vector.load %arg8[%c33, %c0_31] : memref<840x32xf32, #tpu.memory_space<vmem>>, vector<768x32xf32>
    %36 = arith.truncf %35 : vector<768x32xf32> to vector<768x32xbf16>
    %c4 = arith.constant 4 : index
    %c0_32 = arith.constant 0 : index
    %c0_33 = arith.constant 0 : index
    %37 = vector.load %arg4[%c4, %c0_32, %c0_33] : memref<9x32x64xbf16, #tpu.memory_space<vmem>>, vector<1x32x64xbf16>
    %38 = vector.shape_cast %37 : vector<1x32x64xbf16> to vector<32x64xbf16>
    %cst_34 = arith.constant dense<0.000000e+00> : vector<768x64xf32>
    %39 = tpu.matmul %36, %38, %cst_34 {dimension_numbers = #tpu.dot_dimension_numbers<[1], [0], [0], [1], [0, 0, 1, 1], [], []>} : vector<768x32xbf16>, vector<32x64xbf16>, vector<768x64xf32> -> vector<768x64xf32>
    %40 = arith.addf %34, %39 : vector<768x64xf32>
    %c34 = arith.constant 34 : index
    %c0_35 = arith.constant 0 : index
    %41 = vector.load %arg8[%c34, %c0_35] : memref<840x32xf32, #tpu.memory_space<vmem>>, vector<768x32xf32>
    %42 = arith.truncf %41 : vector<768x32xf32> to vector<768x32xbf16>
    %c5 = arith.constant 5 : index
    %c0_36 = arith.constant 0 : index
    %c0_37 = arith.constant 0 : index
    %43 = vector.load %arg4[%c5, %c0_36, %c0_37] : memref<9x32x64xbf16, #tpu.memory_space<vmem>>, vector<1x32x64xbf16>
    %44 = vector.shape_cast %43 : vector<1x32x64xbf16> to vector<32x64xbf16>
    %cst_38 = arith.constant dense<0.000000e+00> : vector<768x64xf32>
    %45 = tpu.matmul %42, %44, %cst_38 {dimension_numbers = #tpu.dot_dimension_numbers<[1], [0], [0], [1], [0, 0, 1, 1], [], []>} : vector<768x32xbf16>, vector<32x64xbf16>, vector<768x64xf32> -> vector<768x64xf32>
    %46 = arith.addf %40, %45 : vector<768x64xf32>
    %c64 = arith.constant 64 : index
    %c0_39 = arith.constant 0 : index
    %47 = vector.load %arg8[%c64, %c0_39] : memref<840x32xf32, #tpu.memory_space<vmem>>, vector<768x32xf32>
    %48 = arith.truncf %47 : vector<768x32xf32> to vector<768x32xbf16>
    %c6 = arith.constant 6 : index
    %c0_40 = arith.constant 0 : index
    %c0_41 = arith.constant 0 : index
    %49 = vector.load %arg4[%c6, %c0_40, %c0_41] : memref<9x32x64xbf16, #tpu.memory_space<vmem>>, vector<1x32x64xbf16>
    %50 = vector.shape_cast %49 : vector<1x32x64xbf16> to vector<32x64xbf16>
    %cst_42 = arith.constant dense<0.000000e+00> : vector<768x64xf32>
    %51 = tpu.matmul %48, %50, %cst_42 {dimension_numbers = #tpu.dot_dimension_numbers<[1], [0], [0], [1], [0, 0, 1, 1], [], []>} : vector<768x32xbf16>, vector<32x64xbf16>, vector<768x64xf32> -> vector<768x64xf32>
    %52 = arith.addf %46, %51 : vector<768x64xf32>
    %c65 = arith.constant 65 : index
    %c0_43 = arith.constant 0 : index
    %53 = vector.load %arg8[%c65, %c0_43] : memref<840x32xf32, #tpu.memory_space<vmem>>, vector<768x32xf32>
    %54 = arith.truncf %53 : vector<768x32xf32> to vector<768x32xbf16>
    %c7 = arith.constant 7 : index
    %c0_44 = arith.constant 0 : index
    %c0_45 = arith.constant 0 : index
    %55 = vector.load %arg4[%c7, %c0_44, %c0_45] : memref<9x32x64xbf16, #tpu.memory_space<vmem>>, vector<1x32x64xbf16>
    %56 = vector.shape_cast %55 : vector<1x32x64xbf16> to vector<32x64xbf16>
    %cst_46 = arith.constant dense<0.000000e+00> : vector<768x64xf32>
    %57 = tpu.matmul %54, %56, %cst_46 {dimension_numbers = #tpu.dot_dimension_numbers<[1], [0], [0], [1], [0, 0, 1, 1], [], []>} : vector<768x32xbf16>, vector<32x64xbf16>, vector<768x64xf32> -> vector<768x64xf32>
    %58 = arith.addf %52, %57 : vector<768x64xf32>
    %c66 = arith.constant 66 : index
    %c0_47 = arith.constant 0 : index
    %59 = vector.load %arg8[%c66, %c0_47] : memref<840x32xf32, #tpu.memory_space<vmem>>, vector<768x32xf32>
    %60 = arith.truncf %59 : vector<768x32xf32> to vector<768x32xbf16>
    %c8 = arith.constant 8 : index
    %c0_48 = arith.constant 0 : index
    %c0_49 = arith.constant 0 : index
    %61 = vector.load %arg4[%c8, %c0_48, %c0_49] : memref<9x32x64xbf16, #tpu.memory_space<vmem>>, vector<1x32x64xbf16>
    %62 = vector.shape_cast %61 : vector<1x32x64xbf16> to vector<32x64xbf16>
    %cst_50 = arith.constant dense<0.000000e+00> : vector<768x64xf32>
    %63 = tpu.matmul %60, %62, %cst_50 {dimension_numbers = #tpu.dot_dimension_numbers<[1], [0], [0], [1], [0, 0, 1, 1], [], []>} : vector<768x32xbf16>, vector<32x64xbf16>, vector<768x64xf32> -> vector<768x64xf32>
    %64 = arith.addf %58, %63 : vector<768x64xf32>
    %c0_51 = arith.constant 0 : index
    %c0_52 = arith.constant 0 : index
    %65 = vector.load %arg5[%c0_51, %c0_52] : memref<1x64xf32, #tpu.memory_space<vmem>>, vector<1x64xf32>
    %66 = vector.broadcast %65 : vector<1x64xf32> to vector<768x64xf32>
    %67 = arith.addf %64, %66 : vector<768x64xf32>
    %c767_i32 = arith.constant 767 : i32
    %68 = tpu.dynamic_rotate %67 by %c767_i32 dim 0 : vector<768x64xf32>, i32 -> vector<768x64xf32>
    %69 = arith.maximumf %67, %68 : vector<768x64xf32>
    %c736_i32 = arith.constant 736 : i32
    %70 = tpu.dynamic_rotate %69 by %c736_i32 dim 0 : vector<768x64xf32>, i32 -> vector<768x64xf32>
    %71 = arith.maximumf %69, %70 : vector<768x64xf32>
    %c0_53 = arith.constant 0 : index
    %c0_54 = arith.constant 0 : index
    %72 = vector.load %arg6[%c0_53, %c0_54] : memref<144x768xbf16, #tpu.memory_space<vmem>>, vector<144x768xbf16>
    %73 = arith.truncf %71 : vector<768x64xf32> to vector<768x64xbf16>
    %cst_55 = arith.constant dense<0.000000e+00> : vector<144x64xf32>
    %74 = tpu.matmul %72, %73, %cst_55 {dimension_numbers = #tpu.dot_dimension_numbers<[1], [0], [0], [1], [0, 0, 1, 1], [], []>} : vector<144x768xbf16>, vector<768x64xbf16>, vector<144x64xf32> -> vector<144x64xf32>
    %75 = arith.truncf %74 : vector<144x64xf32> to vector<144x64xbf16>
    %c0_56 = arith.constant 0 : index
    %c0_57 = arith.constant 0 : index
    %c0_58 = arith.constant 0 : index
    %76 = vector.load %arg7[%c0_56, %c0_57, %c0_58] : memref<1x144x64xbf16, #tpu.memory_space<vmem>>, vector<1x144x64xbf16>
    %77 = vector.shape_cast %76 : vector<1x144x64xbf16> to vector<144x64xbf16>
    %78 = vector.shape_cast %75 : vector<144x64xbf16> to vector<1x144x64xbf16>
    tpu.vector_store %arg7[%c0_56, %c0_57, %c0_58], %78 {strides = array<i32>} : memref<1x144x64xbf16, #tpu.memory_space<vmem>>, vector<1x144x64xbf16>,
    return
  }
  func.func @transform_0(%arg0: i32) -> (i32, i32, i32) {
    %c0_i32 = arith.constant 0 : i32
    %c0_i32_0 = arith.constant 0 : i32
    %c0_i32_1 = arith.constant 0 : i32
    return %arg0, %c0_i32, %c0_i32_0 : i32, i32, i32
  }
  func.func @transform_1(%arg0: i32) -> (i32, i32) {
    %c0_i32 = arith.constant 0 : i32
    %c0_i32_0 = arith.constant 0 : i32
    %c0_i32_1 = arith.constant 0 : i32
    return %c0_i32, %c0_i32_0 : i32, i32
  }
  func.func @transform_2(%arg0: i32) -> (i32, i32) {
    %c0_i32 = arith.constant 0 : i32
    %c0_i32_0 = arith.constant 0 : i32
    %c0_i32_1 = arith.constant 0 : i32
    return %c0_i32, %c0_i32_0 : i32, i32
  }
  func.func @transform_3(%arg0: i32) -> (i32, i32, i32) {
    %c0_i32 = arith.constant 0 : i32
    %c0_i32_0 = arith.constant 0 : i32
    %c0_i32_1 = arith.constant 0 : i32
    %c0_i32_2 = arith.constant 0 : i32
    return %c0_i32, %c0_i32_0, %c0_i32_1 : i32, i32, i32
  }
  func.func @transform_4(%arg0: i32) -> (i32, i32) {
    %c0_i32 = arith.constant 0 : i32
    %c0_i32_0 = arith.constant 0 : i32
    %c0_i32_1 = arith.constant 0 : i32
    return %c0_i32, %c0_i32_0 : i32, i32
  }
  func.func @transform_5(%arg0: i32) -> (i32, i32) {
    %c0_i32 = arith.constant 0 : i32
    %c0_i32_0 = arith.constant 0 : i32
    %c0_i32_1 = arith.constant 0 : i32
    return %c0_i32, %c0_i32_0 : i32, i32
  }
  func.func @transform_6(%arg0: i32) -> (i32, i32, i32) {
    %c0_i32 = arith.constant 0 : i32
    %c0_i32_0 = arith.constant 0 : i32
    %c0_i32_1 = arith.constant 0 : i32
    return %arg0, %c0_i32, %c0_i32_0 : i32, i32, i32
  }
}

module attributes {stable_mosaic.version = 11 : i64} {
  func.func @_fc_kernel(%arg0: i32, %arg1: memref<8x9216xbf16, #tpu.memory_space<vmem>>, %arg2: memref<9216x128xbf16, #tpu.memory_space<vmem>>, %arg3: memref<1x128xf32, #tpu.memory_space<vmem>>, %arg4: memref<128x10xbf16, #tpu.memory_space<vmem>>, %arg5: memref<1x10xf32, #tpu.memory_space<vmem>>, %arg6: memref<8x10xf32, #tpu.memory_space<vmem>>) attributes {dimension_semantics = [#tpu.dimension_semantics<parallel>], iteration_bounds = array<i64: 1>, scalar_prefetch = 0 : i64, scratch_operands = 0 : i64, tpu.core_type = #tpu.core_type<tc>, window_params = [{transform_indices = @transform_0, window_bounds = array<i64: 8, 9216>}, {pipeline_mode = #tpu.pipeline_mode<synchronous>, transform_indices = @transform_1, window_bounds = array<i64: 9216, 128>}, {pipeline_mode = #tpu.pipeline_mode<synchronous>, transform_indices = @transform_2, window_bounds = array<i64: 1, 128>}, {pipeline_mode = #tpu.pipeline_mode<synchronous>, transform_indices = @transform_3, window_bounds = array<i64: 128, 10>}, {pipeline_mode = #tpu.pipeline_mode<synchronous>, transform_indices = @transform_4, window_bounds = array<i64: 1, 10>}, {transform_indices = @transform_5, window_bounds = array<i64: 8, 10>}]} {
    %c0 = arith.constant 0 : index
    %c0_0 = arith.constant 0 : index
    %0 = vector.load %arg1[%c0, %c0_0] : memref<8x9216xbf16, #tpu.memory_space<vmem>>, vector<8x9216xbf16>
    %c0_1 = arith.constant 0 : index
    %c0_2 = arith.constant 0 : index
    %1 = vector.load %arg2[%c0_1, %c0_2] : memref<9216x128xbf16, #tpu.memory_space<vmem>>, vector<9216x128xbf16>
    %cst = arith.constant dense<0.000000e+00> : vector<8x128xf32>
    %2 = tpu.matmul %0, %1, %cst {dimension_numbers = #tpu.dot_dimension_numbers<[1], [0], [0], [1], [0, 0, 1, 1], [], []>} : vector<8x9216xbf16>, vector<9216x128xbf16>, vector<8x128xf32> -> vector<8x128xf32>
    %c0_3 = arith.constant 0 : index
    %c0_4 = arith.constant 0 : index
    %3 = vector.load %arg3[%c0_3, %c0_4] : memref<1x128xf32, #tpu.memory_space<vmem>>, vector<1x128xf32>
    %4 = vector.broadcast %3 : vector<1x128xf32> to vector<8x128xf32>
    %5 = arith.addf %2, %4 : vector<8x128xf32>
    %cst_5 = arith.constant 0.000000e+00 : f32
    %6 = vector.broadcast %cst_5 : f32 to vector<8x128xf32>
    %7 = arith.maximumf %5, %6 : vector<8x128xf32>
    %8 = arith.truncf %7 : vector<8x128xf32> to vector<8x128xbf16>
    %c0_6 = arith.constant 0 : index
    %c0_7 = arith.constant 0 : index
    %9 = vector.load %arg4[%c0_6, %c0_7] : memref<128x10xbf16, #tpu.memory_space<vmem>>, vector<128x10xbf16>
    %cst_8 = arith.constant dense<0.000000e+00> : vector<8x10xf32>
    %10 = tpu.matmul %8, %9, %cst_8 {dimension_numbers = #tpu.dot_dimension_numbers<[1], [0], [0], [1], [0, 0, 1, 1], [], []>} : vector<8x128xbf16>, vector<128x10xbf16>, vector<8x10xf32> -> vector<8x10xf32>
    %c0_9 = arith.constant 0 : index
    %c0_10 = arith.constant 0 : index
    %11 = vector.load %arg5[%c0_9, %c0_10] : memref<1x10xf32, #tpu.memory_space<vmem>>, vector<1x10xf32>
    %12 = vector.broadcast %11 : vector<1x10xf32> to vector<8x10xf32>
    %13 = arith.addf %10, %12 : vector<8x10xf32>
    %cst_11 = arith.constant dense<0xFF800000> : vector<8xf32>
    %14 = vector.multi_reduction <maximumf>, %13, %cst_11 [1] : vector<8x10xf32> to vector<8xf32>
    %15 = vector.shape_cast %14 : vector<8xf32> to vector<8x1xf32>
    %16 = vector.broadcast %15 : vector<8x1xf32> to vector<8x10xf32>
    %17 = arith.subf %13, %16 : vector<8x10xf32>
    %18 = math.exp %17 : vector<8x10xf32>
    %cst_12 = arith.constant dense<0.000000e+00> : vector<8xf32>
    %19 = vector.multi_reduction <add>, %18, %cst_12 [1] : vector<8x10xf32> to vector<8xf32>
    %20 = vector.shape_cast %19 : vector<8xf32> to vector<8x1xf32>
    %21 = math.log %20 : vector<8x1xf32>
    %22 = arith.addf %15, %21 : vector<8x1xf32>
    %23 = vector.broadcast %22 : vector<8x1xf32> to vector<8x10xf32>
    %24 = arith.subf %13, %23 : vector<8x10xf32>
    %c0_13 = arith.constant 0 : index
    %c0_14 = arith.constant 0 : index
    %25 = vector.load %arg6[%c0_13, %c0_14] : memref<8x10xf32, #tpu.memory_space<vmem>>, vector<8x10xf32>
    tpu.vector_store %arg6[%c0_13, %c0_14], %24 {strides = array<i32>} : memref<8x10xf32, #tpu.memory_space<vmem>>, vector<8x10xf32>,
    return
  }
  func.func @transform_0(%arg0: i32) -> (i32, i32) {
    %c0_i32 = arith.constant 0 : i32
    %c0_i32_0 = arith.constant 0 : i32
    return %arg0, %c0_i32 : i32, i32
  }
  func.func @transform_1(%arg0: i32) -> (i32, i32) {
    %c0_i32 = arith.constant 0 : i32
    %c0_i32_0 = arith.constant 0 : i32
    %c0_i32_1 = arith.constant 0 : i32
    return %c0_i32, %c0_i32_0 : i32, i32
  }
  func.func @transform_2(%arg0: i32) -> (i32, i32) {
    %c0_i32 = arith.constant 0 : i32
    %c0_i32_0 = arith.constant 0 : i32
    %c0_i32_1 = arith.constant 0 : i32
    return %c0_i32, %c0_i32_0 : i32, i32
  }
  func.func @transform_3(%arg0: i32) -> (i32, i32) {
    %c0_i32 = arith.constant 0 : i32
    %c0_i32_0 = arith.constant 0 : i32
    %c0_i32_1 = arith.constant 0 : i32
    return %c0_i32, %c0_i32_0 : i32, i32
  }
  func.func @transform_4(%arg0: i32) -> (i32, i32) {
    %c0_i32 = arith.constant 0 : i32
    %c0_i32_0 = arith.constant 0 : i32
    %c0_i32_1 = arith.constant 0 : i32
    return %c0_i32, %c0_i32_0 : i32, i32
  }
  func.func @transform_5(%arg0: i32) -> (i32, i32) {
    %c0_i32 = arith.constant 0 : i32
    %c0_i32_0 = arith.constant 0 : i32
    return %arg0, %c0_i32 : i32, i32
  }
}

</mosaic_0001>

<bundles_post_ra>
// kernel: net_forward.2
= control target key start
LH: loop header
LB: loop body
LE: loop exit
PB: predicated region body
PF: predicated region fallthrough
CT: control target
= control target key end

     0   :  { %11 = vsyncpa [#allocation4], 0  ;;  %s13566_s0 = inlined_call_operand.vmem [shape: bf16[2,832,9], index: 0, kind: input, shape index: {}]   ;;  %s13567_s1 = inlined_call_operand.hbm [shape: bf16[9,32], index: 1, kind: input, shape index: {}]   ;;  %s13568_s2 = inlined_call_operand.hbm [shape: f32[1,32], index: 2, kind: input, shape index: {}]   ;;  %s13569_s3 = inlined_call_operand.hbm [shape: bf16[9,32,64], index: 3, kind: input, shape index: {}]   ;;  %s13570_s4 = inlined_call_operand.hbm [shape: f32[1,64], index: 4, kind: input, shape index: {}]   ;;  %s13571_s5 = inlined_call_operand.vmem [shape: bf16[144,768], index: 5, kind: input, shape index: {}]   ;;  %s13572_s6 = inlined_call_operand.vmem [shape: bf16[2,144,64], index: 6, kind: output, shape index: {}]  }
   0x1   :  { %12 = vsyncpa [#allocation6], 0 }
   0x2   :  { %13 = vsyncpa [#allocation9], 0  ;;  %s9683_s21 = smov 0  }
   0x3 LB: > { %s207_s24 = sshll.u32 %s13568_s2, 4  ;;  %s9692_s25 = sadd.s32 4294967295, %s9638_s21   ;;  %s9638_s21 = sphi %s9683_s21, %s19_s21   ;;  %s208_s24 = int_to_ptr.hbm [resolvable:$true] %s207_s24 }
   0x4   : > { %p8309_p0 = scmp.ge.s32.totalorder %s9638_s21, 1  ;;  %p181_p1 = scmp.lt.s32.totalorder %s9638_s21, 3 }
   0x5   : > { %p9469_p2 = scmp.eq.s32.totalorder %s9692_s25, 0  ;;  %s9640_s27 = smov [#allocation5]  }
   0x6   : > { %p9697_p3 = pnand %p8309_p0, %p181_p1  ;;  %s209_s28 = sshll.u32 %s9640_s27, 4  ;;  %s210_s28 = int_to_ptr.vmem [resolvable:$true] %s209_s28 }
   0x7   : > { %s192_s7 = sshll.u32 %s13567_s1, 4  ;;  %s9641_s9 = smov [#allocation3]   ;;  %s193_s7 = int_to_ptr.hbm [resolvable:$true] %s192_s7 }
   0x8   : > { %p9456_p4 = pneg %p9697_p3  ;;  %s194_s10 = sshll.u32 %s9641_s9, 4  ;;  %s195_s10 = int_to_ptr.vmem [resolvable:$true] %s194_s10 }
   0x9   : > { %s218_s13 = sshll.u32 %s13569_s3, 4  ;;  %s9642_s14 = smov 64   ;;  %s219_s13 = int_to_ptr.hbm [resolvable:$true] %s218_s13 }
   0xa   : > { %p9708_p5 = pnand %p9469_p2, %p9456_p4  ;;  %s9643_s15 = smov 4  }
   0xb   : > { %s9644_s16 = smov [#allocation7]   ;;  %s233_s20 = sshll.u32 %s13570_s4, 4  ;;  %s234_s20 = int_to_ptr.hbm [resolvable:$true] %s233_s20 }
   0xc   : > { %9462 = dma.hbm_to_vmem [thread:$0]  (!%p9708_p5), %s208_s24, 16, %s210_s28, [#allocation6]  }
   0xd   : > { %9459 = dma.hbm_to_vmem [thread:$0]  (!%p9708_p5), %s193_s7, 128, %s195_s10, [#allocation4], %s9642_s14, %s9642_s14, %s9643_s15  }
   0xe   : > { %s220_s17 = sshll.u32 %s9644_s16, 4  ;;  %s9645_s22 = smov [#allocation8]   ;;  %s221_s17 = int_to_ptr.vmem [resolvable:$true] %s220_s17 }
   0xf   : > { %9465 = dma.hbm_to_vmem [thread:$0]  (!%p9708_p5), %s219_s13, 2304, %s221_s17, [#allocation6], %s9642_s14, %s9642_s14, %s9643_s15  }
  0x10   : > { %s235_s23 = sshll.u32 %s9645_s22, 4  ;;  %259 = sbr.rel (%p9697_p3) target bundleno = 3058 (0xbf2), region = 44  ;;  %s236_s23 = int_to_ptr.vmem [resolvable:$true] %s235_s23 }
  0x11   : > { %9468 = dma.hbm_to_vmem [thread:$0]  (!%p9708_p5), %s234_s20, 16, %s236_s23, [#allocation9]  }
  0x15   : > { %9625 = dma.done.wait (%p9469_p2), [#allocation4], 128  }
  0x16   : > { %9627 = vsyncadd (%p9469_p2), [#allocation4], 4294967168 }
  0x17   : > { %9629 = dma.done.wait (%p9469_p2), [#allocation6], 2320  }
  0x18   : > { %9631 = vsyncadd (%p9469_p2), [#allocation6], 4294964976 }
  0x19   : > { %9633 = dma.done.wait (%p9469_p2), [#allocation9], 16  }
  0x1a   : > { %9635 = vsyncadd (%p9469_p2), [#allocation9], 4294967280  ;;  %p305_p6 = scmp.lt.s32.totalorder %s9692_s25, 1  ;;  %vm848_vm0 = vcmask 1043456   ;;  %vm849_vm1 = vcmask 1044480   ;;  %v9646_v0 = vmov 65535  }
  0x1b   : > { %v850_v1 = vsel %vm848_vm0, 4294967295, %v9646_v0  ;;  %v8532_v2 = vld [vmem:[#allocation3] sm:$0xf]  ;;  %v9360_v3 = vld [vmem:[#allocation3] sm:$0x10]  ;;  %vm691_vm2 = vcmask 72704  }
  0x1c   : > { %s14072_s25 = smov (!%p305_p6, %s9692_s25), 1  ;;  %v851_v4 = vsel %vm849_vm1, %v850_v1, 0  ;;  %v8533_v5 = vor.u32 %v9360_v3, %v8532_v2  ;;  %v9364_v15 = vld [vmem:[#allocation7 + $0x18] sm:$0xff]  ;;  %v9363_v16 = vld [vmem:[#allocation7 + $0x10] sm:$0xff]  ;;  %vm1228_vm3 = vcmask 261120   ;;  %vm8192_vm5 = vcmask 519168  }
  0x1d   : > { %s9438_s24 = smul.u32 416, %s14072_s25  ;;  %1793 = vmatpush.bf16.msra.mxu1 %v9364_v15  ;;  %v9766_v17 = vld [vmem:[#allocation5] ss:$0 sm:$0xff] }
  0x1e   : > { %v853_v6 = vand.u32 %v8533_v5, %v851_v4 }
  0x1f   : > { %s9748_s28 = scalar_lea.vmem %s13566_s0, %s9438_s24  ;;  %s9439_s24 = smul.u32 72, %s14072_s25 }
  0x20   : > { %v9308_v7 = vld [vmem:[%s9748_s28] sm:$0xff]  ;;  %862 = vmatpush.bf16.msra.mxu0 %v853_v6  ;;  %9433 = vmatpush.bf16.msra.mxu3 %v853_v6  ;;  %v9309_v8 = vld [vmem:[%s9748_s28 + $0x8] sm:$0xff]  ;;  %v9310_v9 = vld [vmem:[%s9748_s28 + $0x10] sm:$0xff] }
  0x21   : > { %v9311_v10 = vld [vmem:[%s9748_s28 + $0x18] sm:$0xff]  ;;  %v9312_v11 = vld [vmem:[%s9748_s28 + $0x20] sm:$0xff]  ;;  %v9313_v12 = vld [vmem:[%s9748_s28 + $0x28] sm:$0xff]  ;;  %1794 = vmatpush.bf16.msra.mxu1 %v9363_v16 }
  0x22   : > { %v9314_v13 = vld [vmem:[%s9748_s28 + $0x30] sm:$0xff]  ;;  %v9315_v14 = vld [vmem:[%s9748_s28 + $0x38] sm:$0xff]  ;;  %v9316_v18 = vld [vmem:[%s9748_s28 + $0x40] sm:$0xff] }
  0x23   : > { %8534 = vmatmul.msk.bf16.vlgmr.msra.gmra.mxu0 %vm691_vm2, %v9308_v7  ;;  %v9317_v25 = vld [vmem:[%s9748_s28 + $0x48] sm:$0xff]  ;;  %v9318_v35 = vld [vmem:[%s9748_s28 + $0x50] sm:$0xff]  ;;  %v9319_v45 = vld [vmem:[%s9748_s28 + $0x58] sm:$0xff] }
  0x24   : > { %9434 = vmatpush.bf16.msrb.mxu3 %v9364_v15  ;;  %v9320_v55 = vld [vmem:[%s9748_s28 + $0x60] sm:$0xff]  ;;  %v9321_v1 = vld [vmem:[%s9748_s28 + $0x68] sm:$0xff] }
  0x28   : > { %9435 = vmatpush.bf16.msrb.mxu3 %v9363_v16 }
  0x33   : > { %8535 = vmatmul.msk.bf16.gmra.mxu0 %vm691_vm2, %v9309_v8 }
  0x43   : > { %8536 = vmatmul.msk.bf16.gmra.mxu0 %vm691_vm2, %v9310_v9 }
  0x53   : > { %8537 = vmatmul.msk.bf16.gmra.mxu0 %vm691_vm2, %v9311_v10 }
  0x63   : > { %8538 = vmatmul.msk.bf16.gmra.mxu0 %vm691_vm2, %v9312_v11  ;;  %v9322_v11 = vld [vmem:[%s9748_s28 + $0x70] sm:$0xff] }
  0x73   : > { %8539 = vmatmul.msk.bf16.gmra.mxu0 %vm691_vm2, %v9313_v12 }
  0x83   : > { %8540 = vmatmul.msk.bf16.gmra.mxu0 %vm691_vm2, %v9314_v13 }
  0x93   : > { %8541 = vmatmul.msk.bf16.gmra.mxu0 %vm691_vm2, %v9315_v14 }
  0xa0   : > { %v864_v19 = vpop.f32.mrf.mxu0 }
  0xa1   : > { %v865_v20 = vadd.f32 %v9766_v17, %v864_v19 }
  0xa3   : > { %v1124_v21 = vmax.f32 %v865_v20, 0.0  ;;  %8542 = vmatmul.msk.bf16.gmra.mxu0 %vm691_vm2, %v9316_v18 }
  0xa5   : > { %1229 = vst.msk [vmem:[#allocation2] sm:$0xff] %vm1228_vm3, %v1124_v21 }
  0xa8   : > { %v866_v22 = vpop.f32.mrf.mxu0 }
  0xa9   : > { %v867_v23 = vadd.f32 %v9766_v17, %v866_v22  ;;  %v9323_v22 = vld [vmem:[%s9748_s28 + $0x78] sm:$0xff] }
  0xab   : > { %v1125_v24 = vmax.f32 %v867_v23, 0.0 }
  0xad   : > { %1230 = vst.msk [vmem:[#allocation2 + $0x8] sm:$0xff] %vm1228_vm3, %v1125_v24 }
  0xb0   : > { %v869_v26 = vpop.f32.mrf.mxu0 }
  0xb1   : > { %v870_v27 = vadd.f32 %v9766_v17, %v869_v26 }
  0xb3   : > { %v1126_v28 = vmax.f32 %v870_v27, 0.0  ;;  %8543 = vmatmul.msk.bf16.gmra.mxu0 %vm691_vm2, %v9317_v25 }
  0xb4   : > { %v1482_v32 = vld [vmem:[#allocation2 + $0x1] sm:$0xff] }
  0xb5   : > { %1231 = vst.msk [vmem:[#allocation2 + $0x10] sm:$0xff] %vm1228_vm3, %v1126_v28 }
  0xb8   : > { %v871_v29 = vpop.f32.mrf.mxu0 }
  0xb9   : > { %v872_v30 = vadd.f32 %v9766_v17, %v871_v29 }
  0xbb   : > { %v1127_v31 = vmax.f32 %v872_v30, 0.0 }
  0xbc   : > { %v1483_v33 = vld [vmem:[#allocation2 + $0x9] sm:$0xff] }
  0xbd   : > { %1232 = vst.msk [vmem:[#allocation2 + $0x18] sm:$0xff] %vm1228_vm3, %v1127_v31  ;;  %v1578_v34 = vpack.c.bf16 %v1483_v33, %v1482_v32  ;;  %v9362_v32 = vld [vmem:[#allocation7 + $0x8] sm:$0xff] }
  0xbe   : > { %v9324_v33 = vld [vmem:[%s9748_s28 + $0x80] sm:$0xff]  ;;  %9436 = vmatpush.bf16.msra.mxu2 %v9362_v32  ;;  %2198 = vmatpush.bf16.msrb.mxu0 %v9362_v32 }
  0xbf   : > { %8594 = vmatmul.msk.bf16.vlgmr.msra.gmra.mxu1 %vm1228_vm3, %v1578_v34 }
  0xc0   : > { %v874_v36 = vpop.f32.mrf.mxu0 }
  0xc1   : > { %v875_v37 = vadd.f32 %v9766_v17, %v874_v36  ;;  %v9361_v36 = vld [vmem:[#allocation7] sm:$0xff] }
  0xc2   : > { %9437 = vmatpush.bf16.msra.mxu2 %v9361_v36  ;;  %2199 = vmatpush.bf16.msrb.mxu0 %v9361_v36 }
  0xc3   : > { %v1128_v38 = vmax.f32 %v875_v37, 0.0  ;;  %8544 = vmatmul.msk.bf16.gmra.mxu0 %vm691_vm2, %v9318_v35 }
  0xc4   : > { %v1484_v42 = vld [vmem:[#allocation2 + $0x11] sm:$0xff] }
  0xc5   : > { %1233 = vst.msk [vmem:[#allocation2 + $0x20] sm:$0xff] %vm1228_vm3, %v1128_v38 }
  0xc8   : > { %v876_v39 = vpop.f32.mrf.mxu0 }
  0xc9   : > { %v877_v40 = vadd.f32 %v9766_v17, %v876_v39 }
  0xcb   : > { %v1129_v41 = vmax.f32 %v877_v40, 0.0 }
  0xcc   : > { %v1485_v43 = vld [vmem:[#allocation2 + $0x19] sm:$0xff] }
  0xcd   : > { %1234 = vst.msk [vmem:[#allocation2 + $0x28] sm:$0xff] %vm1228_vm3, %v1129_v41  ;;  %v1579_v44 = vpack.c.bf16 %v1485_v43, %v1484_v42 }
  0xcf   : > { %8595 = vmatmul.msk.bf16.gmra.mxu1 %vm1228_vm3, %v1579_v44  ;;  %v9325_v44 = vld [vmem:[%s9748_s28 + $0x88] sm:$0xff] }
  0xd0   : > { %v879_v46 = vpop.f32.mrf.mxu0 }
  0xd1   : > { %v880_v47 = vadd.f32 %v9766_v17, %v879_v46 }
  0xd3   : > { %v1130_v48 = vmax.f32 %v880_v47, 0.0  ;;  %8545 = vmatmul.msk.bf16.gmra.mxu0 %vm691_vm2, %v9319_v45 }
  0xd4   : > { %v1486_v52 = vld [vmem:[#allocation2 + $0x21] sm:$0xff] }
  0xd5   : > { %1235 = vst.msk [vmem:[#allocation2 + $0x30] sm:$0xff] %vm1228_vm3, %v1130_v48 }
  0xd8   : > { %v881_v49 = vpop.f32.mrf.mxu0 }
  0xd9   : > { %v882_v50 = vadd.f32 %v9766_v17, %v881_v49 }
  0xdb   : > { %v1131_v51 = vmax.f32 %v882_v50, 0.0 }
  0xdc   : > { %v1487_v53 = vld [vmem:[#allocation2 + $0x29] sm:$0xff] }
  0xdd   : > { %1236 = vst.msk [vmem:[#allocation2 + $0x38] sm:$0xff] %vm1228_vm3, %v1131_v51  ;;  %v1580_v54 = vpack.c.bf16 %v1487_v53, %v1486_v52 }
  0xdf   : > { %8596 = vmatmul.msk.bf16.gmra.mxu1 %vm1228_vm3, %v1580_v54 }
  0xe0   : > { %v884_v56 = vpop.f32.mrf.mxu0 }
  0xe1   : > { %v885_v57 = vadd.f32 %v9766_v17, %v884_v56 }
  0xe3   : > { %v1132_v58 = vmax.f32 %v885_v57, 0.0  ;;  %8546 = vmatmul.msk.bf16.gmra.mxu0 %vm691_vm2, %v9320_v55  ;;  %v9326_v55 = vld [vmem:[%s9748_s28 + $0x90] sm:$0xff] }
  0xe4   : > { %v1488_v62 = vld [vmem:[#allocation2 + $0x31] sm:$0xff] }
  0xe5   : > { %1237 = vst.msk [vmem:[#allocation2 + $0x40] sm:$0xff] %vm1228_vm3, %v1132_v58 }
  0xe8   : > { %v886_v59 = vpop.f32.mrf.mxu0 }
  0xe9   : > { %v887_v60 = vadd.f32 %v9766_v17, %v886_v59 }
  0xeb   : > { %v1133_v61 = vmax.f32 %v887_v60, 0.0 }
  0xec   : > { %v1489_v63 = vld [vmem:[#allocation2 + $0x39] sm:$0xff] }
  0xed   : > { %1238 = vst.msk [vmem:[#allocation2 + $0x48] sm:$0xff] %vm1228_vm3, %v1133_v61  ;;  %v1581_v0 = vpack.c.bf16 %v1489_v63, %v1488_v62 }
  0xef   : > { %8597 = vmatmul.msk.bf16.gmra.mxu1 %vm1228_vm3, %v1581_v0 }
  0xf0   : > { %v889_v2 = vpop.f32.mrf.mxu0 }
  0xf1   : > { %v890_v3 = vadd.f32 %v9766_v17, %v889_v2 }
  0xf3   : > { %v1134_v4 = vmax.f32 %v890_v3, 0.0  ;;  %8547 = vmatmul.msk.bf16.gmra.mxu0 %vm691_vm2, %v9321_v1 }
  0xf4   : > { %v1490_v8 = vld [vmem:[#allocation2 + $0x41] sm:$0xff] }
  0xf5   : > { %1239 = vst.msk [vmem:[#allocation2 + $0x50] sm:$0xff] %vm1228_vm3, %v1134_v4 }
  0xf8   : > { %v891_v5 = vpop.f32.mrf.mxu0 }
  0xf9   : > { %v892_v6 = vadd.f32 %v9766_v17, %v891_v5 }
  0xfb   : > { %v1135_v7 = vmax.f32 %v892_v6, 0.0  ;;  %v9327_v6 = vld [vmem:[%s9748_s28 + $0x98] sm:$0xff] }
  0xfc   : > { %v1491_v9 = vld [vmem:[#allocation2 + $0x49] sm:$0xff] }
  0xfd   : > { %1240 = vst.msk [vmem:[#allocation2 + $0x58] sm:$0xff] %vm1228_vm3, %v1135_v7  ;;  %v1582_v10 = vpack.c.bf16 %v1491_v9, %v1490_v8 }
  0xff   : > { %8598 = vmatmul.msk.bf16.gmra.mxu1 %vm1228_vm3, %v1582_v10 }
 0x100   : > { %v894_v12 = vpop.f32.mrf.mxu0 }
 0x101   : > { %v895_v13 = vadd.f32 %v9766_v17, %v894_v12 }
 0x103   : > { %v1136_v14 = vmax.f32 %v895_v13, 0.0  ;;  %8548 = vmatmul.msk.bf16.gmra.mxu0 %vm691_vm2, %v9322_v11 }
 0x104   : > { %v1492_v19 = vld [vmem:[#allocation2 + $0x51] sm:$0xff] }
 0x105   : > { %1241 = vst.msk [vmem:[#allocation2 + $0x60] sm:$0xff] %vm1228_vm3, %v1136_v14 }
 0x108   : > { %v896_v15 = vpop.f32.mrf.mxu0 }
 0x109   : > { %v897_v16 = vadd.f32 %v9766_v17, %v896_v15 }
 0x10b   : > { %v1137_v18 = vmax.f32 %v897_v16, 0.0 }
 0x10c   : > { %v1493_v20 = vld [vmem:[#allocation2 + $0x59] sm:$0xff] }
 0x10d   : > { %1242 = vst.msk [vmem:[#allocation2 + $0x68] sm:$0xff] %vm1228_vm3, %v1137_v18  ;;  %v1583_v21 = vpack.c.bf16 %v1493_v20, %v1492_v19 }
 0x10f   : > { %8599 = vmatmul.msk.bf16.gmra.mxu1 %vm1228_vm3, %v1583_v21 }
 0x110   : > { %v899_v23 = vpop.f32.mrf.mxu0 }
 0x111   : > { %v900_v24 = vadd.f32 %v9766_v17, %v899_v23 }
 0x113   : > { %v1138_v25 = vmax.f32 %v900_v24, 0.0  ;;  %8549 = vmatmul.msk.bf16.gmra.mxu0 %vm691_vm2, %v9323_v22  ;;  %v9328_v22 = vld [vmem:[%s9748_s28 + $0xa0] sm:$0xff] }
 0x114   : > { %v1494_v29 = vld [vmem:[#allocation2 + $0x61] sm:$0xff] }
 0x115   : > { %1243 = vst.msk [vmem:[#allocation2 + $0x70] sm:$0xff] %vm1228_vm3, %v1138_v25 }
 0x118   : > { %v901_v26 = vpop.f32.mrf.mxu0 }
 0x119   : > { %v902_v27 = vadd.f32 %v9766_v17, %v901_v26 }
 0x11b   : > { %v1139_v28 = vmax.f32 %v902_v27, 0.0 }
 0x11c   : > { %v1495_v30 = vld [vmem:[#allocation2 + $0x69] sm:$0xff] }
 0x11d   : > { %1244 = vst.msk [vmem:[#allocation2 + $0x78] sm:$0xff] %vm1228_vm3, %v1139_v28  ;;  %v1584_v31 = vpack.c.bf16 %v1495_v30, %v1494_v29 }
 0x11f   : > { %8600 = vmatmul.msk.bf16.gmra.mxu1 %vm1228_vm3, %v1584_v31 }
 0x120   : > { %v904_v34 = vpop.f32.mrf.mxu0 }
 0x121   : > { %v905_v35 = vadd.f32 %v9766_v17, %v904_v34 }
 0x123   : > { %v1140_v37 = vmax.f32 %v905_v35, 0.0  ;;  %8550 = vmatmul.msk.bf16.gmra.mxu0 %vm691_vm2, %v9324_v33 }
 0x124   : > { %v1496_v41 = vld [vmem:[#allocation2 + $0x71] sm:$0xff] }
 0x125   : > { %1245 = vst.msk [vmem:[#allocation2 + $0x80] sm:$0xff] %vm1228_vm3, %v1140_v37  ;;  %v9329_v37 = vld [vmem:[%s9748_s28 + $0xa8] sm:$0xff] }
 0x128   : > { %v906_v38 = vpop.f32.mrf.mxu0 }
 0x129   : > { %v907_v39 = vadd.f32 %v9766_v17, %v906_v38 }
 0x12b   : > { %v1141_v40 = vmax.f32 %v907_v39, 0.0 }
 0x12c   : > { %v1497_v42 = vld [vmem:[#allocation2 + $0x79] sm:$0xff] }
 0x12d   : > { %1246 = vst.msk [vmem:[#allocation2 + $0x88] sm:$0xff] %vm1228_vm3, %v1141_v40  ;;  %v1585_v43 = vpack.c.bf16 %v1497_v42, %v1496_v41 }
 0x12f   : > { %8601 = vmatmul.msk.bf16.gmra.mxu1 %vm1228_vm3, %v1585_v43 }
 0x130   : > { %v909_v45 = vpop.f32.mrf.mxu0 }
 0x131   : > { %v910_v46 = vadd.f32 %v9766_v17, %v909_v45 }
 0x133   : > { %v1142_v47 = vmax.f32 %v910_v46, 0.0  ;;  %8551 = vmatmul.msk.bf16.gmra.mxu0 %vm691_vm2, %v9325_v44 }
 0x134   : > { %v1498_v52 = vld [vmem:[#allocation2 + $0x81] sm:$0xff] }
 0x135   : > { %1247 = vst.msk [vmem:[#allocation2 + $0x90] sm:$0xff] %vm1228_vm3, %v1142_v47 }
 0x138   : > { %v911_v48 = vpop.f32.mrf.mxu0 }
 0x139   : > { %v912_v49 = vadd.f32 %v9766_v17, %v911_v48 }
 0x13b   : > { %v1143_v50 = vmax.f32 %v912_v49, 0.0 }
 0x13c   : > { %v9835_v51 = vpop.f32.mrf.mxu1  ;;  %v1499_v53 = vld [vmem:[#allocation2 + $0x89] sm:$0xff] }
 0x13d   : > { %1248 = vst.msk [vmem:[#allocation2 + $0x98] sm:$0xff] %vm1228_vm3, %v1143_v50  ;;  %v1586_v54 = vpack.c.bf16 %v1499_v53, %v1498_v52  ;;  %v1352_v60 = vld [vmem:[#allocation2 + $0x90] sm:$0xff] }
 0x13e   : > { %v9330_v53 = vld [vmem:[%s9748_s28 + $0xb0] sm:$0xff] }
 0x13f   : > { %8602 = vmatmul.msk.bf16.gmra.mxu1 %vm1228_vm3, %v1586_v54 }
 0x140   : > { %v914_v56 = vpop.f32.mrf.mxu0 }
 0x141   : > { %v915_v57 = vadd.f32 %v9766_v17, %v914_v56 }
 0x143   : > { %v1144_v58 = vmax.f32 %v915_v57, 0.0  ;;  %8552 = vmatmul.msk.bf16.gmra.mxu0 %vm691_vm2, %v9326_v55 }
 0x144   : > { %v9842_v59 = vpop.f32.mrf.mxu1  ;;  %v1353_v61 = vld [vmem:[#allocation2 + $0x98] sm:$0xff] }
 0x145   : > { %1249 = vst.msk [vmem:[#allocation2 + $0xa0] sm:$0xff] %vm1228_vm3, %v1144_v58  ;;  %v1439_v62 = vpack.c.bf16 %v1353_v61, %v1352_v60  ;;  %v1500_v3 = vld [vmem:[#allocation2 + $0x91] sm:$0xff] }
 0x147   : > { %8659 = vmatmul.msk.bf16.vlgmr.msra.gmra.mxu2 %vm1228_vm3, %v1439_v62 }
 0x148   : > { %v916_v63 = vpop.f32.mrf.mxu0 }
 0x149   : > { %v917_v0 = vadd.f32 %v9766_v17, %v916_v63 }
 0x14b   : > { %v1145_v1 = vmax.f32 %v917_v0, 0.0 }
 0x14c   : > { %v9847_v2 = vpop.f32.mrf.mxu1  ;;  %v1501_v4 = vld [vmem:[#allocation2 + $0x99] sm:$0xff] }
 0x14d   : > { %1250 = vst.msk [vmem:[#allocation2 + $0xa8] sm:$0xff] %vm1228_vm3, %v1145_v1  ;;  %v1587_v5 = vpack.c.bf16 %v1501_v4, %v1500_v3  ;;  %v1354_v11 = vld [vmem:[#allocation2 + $0xa0] sm:$0xff] }
 0x14f   : > { %8603 = vmatmul.msk.bf16.gmra.mxu1 %vm1228_vm3, %v1587_v5 }
 0x150   : > { %v919_v7 = vpop.f32.mrf.mxu0 }
 0x151   : > { %v920_v8 = vadd.f32 %v9766_v17, %v919_v7 }
 0x153   : > { %v1146_v9 = vmax.f32 %v920_v8, 0.0  ;;  %8553 = vmatmul.msk.bf16.gmra.mxu0 %vm691_vm2, %v9327_v6  ;;  %v9331_v6 = vld [vmem:[%s9748_s28 + $0xb8] sm:$0xff] }
 0x154   : > { %v9854_v10 = vpop.f32.mrf.mxu1  ;;  %v1355_v12 = vld [vmem:[#allocation2 + $0xa8] sm:$0xff] }
 0x155   : > { %1251 = vst.msk [vmem:[#allocation2 + $0xb0] sm:$0xff] %vm1228_vm3, %v1146_v9  ;;  %v1440_v13 = vpack.c.bf16 %v1355_v12, %v1354_v11  ;;  %v1502_v19 = vld [vmem:[#allocation2 + $0xa1] sm:$0xff] }
 0x157   : > { %8660 = vmatmul.msk.bf16.gmra.mxu2 %vm1228_vm3, %v1440_v13 }
 0x158   : > { %v921_v14 = vpop.f32.mrf.mxu0 }
 0x159   : > { %v922_v15 = vadd.f32 %v9766_v17, %v921_v14 }
 0x15b   : > { %v1147_v16 = vmax.f32 %v922_v15, 0.0 }
 0x15c   : > { %v9859_v18 = vpop.f32.mrf.mxu1  ;;  %v1503_v20 = vld [vmem:[#allocation2 + $0xa9] sm:$0xff] }
 0x15d   : > { %1252 = vst.msk [vmem:[#allocation2 + $0xb8] sm:$0xff] %vm1228_vm3, %v1147_v16  ;;  %v1588_v21 = vpack.c.bf16 %v1503_v20, %v1502_v19  ;;  %v1356_v27 = vld [vmem:[#allocation2 + $0xb0] sm:$0xff] }
 0x15f   : > { %8604 = vmatmul.msk.bf16.gmra.mxu1 %vm1228_vm3, %v1588_v21 }
 0x160   : > { %v924_v23 = vpop.f32.mrf.mxu0 }
 0x161   : > { %v925_v24 = vadd.f32 %v9766_v17, %v924_v23 }
 0x163   : > { %v1148_v25 = vmax.f32 %v925_v24, 0.0  ;;  %8554 = vmatmul.msk.bf16.gmra.mxu0 %vm691_vm2, %v9328_v22  ;;  %v9332_v24 = vld [vmem:[%s9748_s28 + $0xc0] sm:$0xff] }
 0x164   : > { %v9866_v26 = vpop.f32.mrf.mxu1  ;;  %v1357_v28 = vld [vmem:[#allocation2 + $0xb8] sm:$0xff] }
 0x165   : > { %1253 = vst.msk [vmem:[#allocation2 + $0xc0] sm:$0xff] %vm1228_vm3, %v1148_v25  ;;  %v1441_v29 = vpack.c.bf16 %v1357_v28, %v1356_v27  ;;  %v1504_v34 = vld [vmem:[#allocation2 + $0xb1] sm:$0xff] }
 0x167   : > { %8661 = vmatmul.msk.bf16.gmra.mxu2 %vm1228_vm3, %v1441_v29 }
 0x168   : > { %v926_v30 = vpop.f32.mrf.mxu0 }
 0x169   : > { %v927_v31 = vadd.f32 %v9766_v17, %v926_v30 }
 0x16b   : > { %v1149_v32 = vmax.f32 %v927_v31, 0.0 }
 0x16c   : > { %v9871_v33 = vpop.f32.mrf.mxu1  ;;  %v1505_v35 = vld [vmem:[#allocation2 + $0xb9] sm:$0xff] }
 0x16d   : > { %1254 = vst.msk [vmem:[#allocation2 + $0xc8] sm:$0xff] %vm1228_vm3, %v1149_v32  ;;  %v1589_v36 = vpack.c.bf16 %v1505_v35, %v1504_v34  ;;  %v1358_v42 = vld [vmem:[#allocation2 + $0xc0] sm:$0xff] }
 0x16f   : > { %8605 = vmatmul.msk.bf16.gmra.mxu1 %vm1228_vm3, %v1589_v36 }
 0x170   : > { %v929_v38 = vpop.f32.mrf.mxu0 }
 0x171   : > { %v930_v39 = vadd.f32 %v9766_v17, %v929_v38 }
 0x173   : > { %v1150_v40 = vmax.f32 %v930_v39, 0.0  ;;  %8555 = vmatmul.msk.bf16.gmra.mxu0 %vm691_vm2, %v9329_v37 }
 0x174   : > { %v9878_v41 = vpop.f32.mrf.mxu1  ;;  %v1359_v43 = vld [vmem:[#allocation2 + $0xc8] sm:$0xff] }
 0x175   : > { %1255 = vst.msk [vmem:[#allocation2 + $0xd0] sm:$0xff] %vm1228_vm3, %v1150_v40  ;;  %v1442_v44 = vpack.c.bf16 %v1359_v43, %v1358_v42  ;;  %v1506_v49 = vld [vmem:[#allocation2 + $0xc1] sm:$0xff] }
 0x176   : > { %v9333_v42 = vld [vmem:[%s9748_s28 + $0xc8] sm:$0xff] }
 0x177   : > { %8662 = vmatmul.msk.bf16.gmra.mxu2 %vm1228_vm3, %v1442_v44 }
 0x178   : > { %v931_v45 = vpop.f32.mrf.mxu0 }
 0x179   : > { %v932_v46 = vadd.f32 %v9766_v17, %v931_v45 }
 0x17b   : > { %v1151_v47 = vmax.f32 %v932_v46, 0.0 }
 0x17c   : > { %v9883_v48 = vpop.f32.mrf.mxu1  ;;  %v1507_v50 = vld [vmem:[#allocation2 + $0xc9] sm:$0xff] }
 0x17d   : > { %1256 = vst.msk [vmem:[#allocation2 + $0xd8] sm:$0xff] %vm1228_vm3, %v1151_v47  ;;  %v1590_v52 = vpack.c.bf16 %v1507_v50, %v1506_v49  ;;  %v1360_v58 = vld [vmem:[#allocation2 + $0xd0] sm:$0xff] }
 0x17f   : > { %8606 = vmatmul.msk.bf16.gmra.mxu1 %vm1228_vm3, %v1590_v52 }
 0x180   : > { %v934_v54 = vpop.f32.mrf.mxu0 }
 0x181   : > { %v935_v55 = vadd.f32 %v9766_v17, %v934_v54 }
 0x183   : > { %v1152_v56 = vmax.f32 %v935_v55, 0.0  ;;  %8556 = vmatmul.msk.bf16.gmra.mxu0 %vm691_vm2, %v9330_v53 }
 0x184   : > { %v9890_v57 = vpop.f32.mrf.mxu1  ;;  %v1361_v60 = vld [vmem:[#allocation2 + $0xd8] sm:$0xff] }
 0x185   : > { %1257 = vst.msk [vmem:[#allocation2 + $0xe0] sm:$0xff] %vm1228_vm3, %v1152_v56  ;;  %v1443_v61 = vpack.c.bf16 %v1361_v60, %v1360_v58  ;;  %v1508_v3 = vld [vmem:[#allocation2 + $0xd1] sm:$0xff] }
 0x187   : > { %8663 = vmatmul.msk.bf16.gmra.mxu2 %vm1228_vm3, %v1443_v61  ;;  %v9334_v61 = vld [vmem:[%s9748_s28 + $0xd0] sm:$0xff] }
 0x188   : > { %v936_v62 = vpop.f32.mrf.mxu0 }
 0x189   : > { %v937_v63 = vadd.f32 %v9766_v17, %v936_v62 }
 0x18b   : > { %v1153_v0 = vmax.f32 %v937_v63, 0.0 }
 0x18c   : > { %v9895_v1 = vpop.f32.mrf.mxu1  ;;  %v1509_v4 = vld [vmem:[#allocation2 + $0xd9] sm:$0xff] }
 0x18d   : > { %1258 = vst.msk [vmem:[#allocation2 + $0xe8] sm:$0xff] %vm1228_vm3, %v1153_v0  ;;  %v1591_v5 = vpack.c.bf16 %v1509_v4, %v1508_v3  ;;  %v1362_v12 = vld [vmem:[#allocation2 + $0xe0] sm:$0xff] }
 0x18f   : > { %8607 = vmatmul.msk.bf16.gmra.mxu1 %vm1228_vm3, %v1591_v5 }
 0x190   : > { %v939_v7 = vpop.f32.mrf.mxu0 }
 0x191   : > { %v940_v8 = vadd.f32 %v9766_v17, %v939_v7 }
 0x193   : > { %v1154_v9 = vmax.f32 %v940_v8, 0.0  ;;  %8557 = vmatmul.msk.bf16.gmra.mxu0 %vm691_vm2, %v9331_v6 }
 0x194   : > { %v9902_v11 = vpop.f32.mrf.mxu1  ;;  %v1363_v13 = vld [vmem:[#allocation2 + $0xe8] sm:$0xff] }
 0x195   : > { %1259 = vst.msk [vmem:[#allocation2 + $0xf0] sm:$0xff] %vm1228_vm3, %v1154_v9  ;;  %v1444_v14 = vpack.c.bf16 %v1363_v13, %v1362_v12  ;;  %v1510_v21 = vld [vmem:[#allocation2 + $0xe1] sm:$0xff] }
 0x197   : > { %8664 = vmatmul.msk.bf16.gmra.mxu2 %vm1228_vm3, %v1444_v14 }
 0x198   : > { %v941_v15 = vpop.f32.mrf.mxu0 }
 0x199   : > { %v942_v16 = vadd.f32 %v9766_v17, %v941_v15 }
 0x19b   : > { %v1155_v19 = vmax.f32 %v942_v16, 0.0 }
 0x19c   : > { %v9907_v20 = vpop.f32.mrf.mxu1  ;;  %v1511_v22 = vld [vmem:[#allocation2 + $0xe9] sm:$0xff] }
 0x19d   : > { %1260 = vst.msk [vmem:[#allocation2 + $0xf8] sm:$0xff] %vm1228_vm3, %v1155_v19  ;;  %v1592_v23 = vpack.c.bf16 %v1511_v22, %v1510_v21  ;;  %v1364_v30 = vld [vmem:[#allocation2 + $0xf0] sm:$0xff]  ;;  %v9335_v21 = vld [vmem:[%s9748_s28 + $0xd8] sm:$0xff] }
 0x19f   : > { %8608 = vmatmul.msk.bf16.gmra.mxu1 %vm1228_vm3, %v1592_v23 }
 0x1a0   : > { %v944_v25 = vpop.f32.mrf.mxu0 }
 0x1a1   : > { %v945_v27 = vadd.f32 %v9766_v17, %v944_v25 }
 0x1a3   : > { %v1156_v28 = vmax.f32 %v945_v27, 0.0  ;;  %8558 = vmatmul.msk.bf16.gmra.mxu0 %vm691_vm2, %v9332_v24 }
 0x1a4   : > { %v9914_v29 = vpop.f32.mrf.mxu1  ;;  %v1365_v31 = vld [vmem:[#allocation2 + $0xf8] sm:$0xff] }
 0x1a5   : > { %1261 = vst.msk [vmem:[#allocation2 + $0x100] sm:$0xff] %vm1228_vm3, %v1156_v28  ;;  %v1445_v32 = vpack.c.bf16 %v1365_v31, %v1364_v30  ;;  %v1512_v38 = vld [vmem:[#allocation2 + $0xf1] sm:$0xff] }
 0x1a7   : > { %8665 = vmatmul.msk.bf16.gmra.mxu2 %vm1228_vm3, %v1445_v32 }
 0x1a8   : > { %v946_v34 = vpop.f32.mrf.mxu0 }
 0x1a9   : > { %v947_v35 = vadd.f32 %v9766_v17, %v946_v34 }
 0x1ab   : > { %v1157_v36 = vmax.f32 %v947_v35, 0.0 }
 0x1ac   : > { %v9919_v37 = vpop.f32.mrf.mxu1  ;;  %v1513_v39 = vld [vmem:[#allocation2 + $0xf9] sm:$0xff] }
 0x1ad   : > { %13584 = vst [vmem:[#allocation13_spill] sm:$0xff] %v9919_v37  ;;  %v1593_v40 = vpack.c.bf16 %v1513_v39, %v1512_v38  ;;  %v1366_v47 = vld [vmem:[#allocation2 + $0x100] sm:$0xff] }
 0x1ae   : > { %1262 = vst.msk [vmem:[#allocation2 + $0x108] sm:$0xff] %vm1228_vm3, %v1157_v36 }
 0x1af   : > { %8609 = vmatmul.msk.bf16.gmra.mxu1 %vm1228_vm3, %v1593_v40 }
 0x1b0   : > { %v949_v43 = vpop.f32.mrf.mxu0 }
 0x1b1   : > { %v950_v44 = vadd.f32 %v9766_v17, %v949_v43 }
 0x1b3   : > { %v1158_v45 = vmax.f32 %v950_v44, 0.0  ;;  %8559 = vmatmul.msk.bf16.gmra.mxu0 %vm691_vm2, %v9333_v42 }
 0x1b4   : > { %v9926_v46 = vpop.f32.mrf.mxu1 }
 0x1b5   : > { %13585 = vst [vmem:[#allocation14_spill] sm:$0xff] %v9926_v46  ;;  %v1367_v49 = vld [vmem:[#allocation2 + $0x108] sm:$0xff] }
 0x1b6   : > { %1263 = vst.msk [vmem:[#allocation2 + $0x110] sm:$0xff] %vm1228_vm3, %v1158_v45  ;;  %v1446_v50 = vpack.c.bf16 %v1367_v49, %v1366_v47  ;;  %v1514_v56 = vld [vmem:[#allocation2 + $0x101] sm:$0xff] }
 0x1b7   : > { %v9336_v45 = vld [vmem:[%s9748_s28 + $0xe0] sm:$0xff] }
 0x1b8   : > { %8666 = vmatmul.msk.bf16.gmra.mxu2 %vm1228_vm3, %v1446_v50  ;;  %v951_v52 = vpop.f32.mrf.mxu0 }
 0x1b9   : > { %v952_v53 = vadd.f32 %v9766_v17, %v951_v52 }
 0x1bb   : > { %v1159_v54 = vmax.f32 %v952_v53, 0.0 }
 0x1bc   : > { %v9931_v55 = vpop.f32.mrf.mxu1 }
 0x1bd   : > { %13586 = vst [vmem:[#allocation15_spill] sm:$0xff] %v9931_v55  ;;  %v1515_v58 = vld [vmem:[#allocation2 + $0x109] sm:$0xff]  ;;  %v3756_v55 = vld [vmem:[#allocation2 + $0x99] sm:$0xff] }
 0x1be   : > { %1264 = vst.msk [vmem:[#allocation2 + $0x118] sm:$0xff] %vm1228_vm3, %v1159_v54  ;;  %v1594_v60 = vpack.c.bf16 %v1515_v58, %v1514_v56  ;;  %v1368_v4 = vld [vmem:[#allocation2 + $0x110] sm:$0xff] }
 0x1c0   : > { %8610 = vmatmul.msk.bf16.gmra.mxu1 %vm1228_vm3, %v1594_v60  ;;  %v954_v62 = vpop.f32.mrf.mxu0 }
 0x1c1   : > { %v955_v63 = vadd.f32 %v9766_v17, %v954_v62 }
 0x1c3   : > { %v1160_v0 = vmax.f32 %v955_v63, 0.0  ;;  %8560 = vmatmul.msk.bf16.gmra.mxu0 %vm691_vm2, %v9334_v61 }
 0x1c4   : > { %v9938_v3 = vpop.f32.mrf.mxu1 }
 0x1c5   : > { %13587 = vst [vmem:[#allocation16_spill] sm:$0xff] %v9938_v3  ;;  %v1369_v5 = vld [vmem:[#allocation2 + $0x118] sm:$0xff] }
 0x1c6   : > { %1265 = vst.msk [vmem:[#allocation2 + $0x120] sm:$0xff] %vm1228_vm3, %v1160_v0  ;;  %v1447_v6 = vpack.c.bf16 %v1369_v5, %v1368_v4  ;;  %v1516_v14 = vld [vmem:[#allocation2 + $0x111] sm:$0xff] }
 0x1c8   : > { %8667 = vmatmul.msk.bf16.gmra.mxu2 %vm1228_vm3, %v1447_v6  ;;  %v956_v7 = vpop.f32.mrf.mxu0 }
 0x1c9   : > { %v957_v8 = vadd.f32 %v9766_v17, %v956_v7 }
 0x1ca   : > { %v2246_v9 = vpop.f32.mrf.mxu2 }
 0x1cb   : > { %v1161_v12 = vmax.f32 %v957_v8, 0.0 }
 0x1cc   : > { %v1841_v13 = vpop.f32.mrf.mxu1 }
 0x1cd   : > { %v1517_v15 = vld [vmem:[#allocation2 + $0x119] sm:$0xff]  ;;  %1266 = vst.msk [vmem:[#allocation2 + $0x128] sm:$0xff] %vm1228_vm3, %v1161_v12  ;;  %v9944_v16 = vadd.f32 %v2246_v9, %v1841_v13  ;;  %v9337_v9 = vld [vmem:[%s9748_s28 + $0xe8] sm:$0xff] }
 0x1ce   : > { %v1595_v19 = vpack.c.bf16 %v1517_v15, %v1516_v14  ;;  %v1370_v28 = vld [vmem:[#allocation2 + $0x120] sm:$0xff] }
 0x1cf   : > { %13588 = vst [vmem:[#allocation17_spill] sm:$0xff] %v9944_v16 }
 0x1d0   : > { %8611 = vmatmul.msk.bf16.gmra.mxu1 %vm1228_vm3, %v1595_v19  ;;  %v959_v22 = vpop.f32.mrf.mxu0 }
 0x1d1   : > { %v960_v23 = vadd.f32 %v9766_v17, %v959_v22 }
 0x1d2   : > { %v2248_v24 = vpop.f32.mrf.mxu2 }
 0x1d3   : > { %v1162_v25 = vmax.f32 %v960_v23, 0.0  ;;  %8561 = vmatmul.msk.bf16.gmra.mxu0 %vm691_vm2, %v9335_v21 }
 0x1d4   : > { %v1843_v27 = vpop.f32.mrf.mxu1  ;;  %v1371_v30 = vld [vmem:[#allocation2 + $0x128] sm:$0xff] }
 0x1d5   : > { %1267 = vst.msk [vmem:[#allocation2 + $0x130] sm:$0xff] %vm1228_vm3, %v1162_v25  ;;  %v9951_v31 = vadd.f32 %v2248_v24, %v1843_v27  ;;  %v1448_v32 = vpack.c.bf16 %v1371_v30, %v1370_v28  ;;  %v1518_v40 = vld [vmem:[#allocation2 + $0x121] sm:$0xff] }
 0x1d7   : > { %13589 = vst [vmem:[#allocation18_spill] sm:$0xff] %v9951_v31 }
 0x1d8   : > { %8668 = vmatmul.msk.bf16.gmra.mxu2 %vm1228_vm3, %v1448_v32  ;;  %v961_v34 = vpop.f32.mrf.mxu0 }
 0x1d9   : > { %v962_v35 = vadd.f32 %v9766_v17, %v961_v34 }
 0x1da   : > { %v2251_v36 = vpop.f32.mrf.mxu2 }
 0x1db   : > { %v1163_v38 = vmax.f32 %v962_v35, 0.0 }
 0x1dc   : > { %v1846_v39 = vpop.f32.mrf.mxu1  ;;  %v1519_v42 = vld [vmem:[#allocation2 + $0x129] sm:$0xff] }
 0x1dd   : > { %1268 = vst.msk [vmem:[#allocation2 + $0x138] sm:$0xff] %vm1228_vm3, %v1163_v38  ;;  %v9956_v43 = vadd.f32 %v2251_v36, %v1846_v39  ;;  %v1596_v44 = vpack.c.bf16 %v1519_v42, %v1518_v40  ;;  %v1372_v54 = vld [vmem:[#allocation2 + $0x130] sm:$0xff] }
 0x1de   : > { %v9338_v39 = vld [vmem:[%s9748_s28 + $0xf0] sm:$0xff] }
 0x1df   : > { %13590 = vst [vmem:[#allocation19_spill] sm:$0xff] %v9956_v43  ;;  %v3754_v43 = vld [vmem:[#allocation2 + $0x89] sm:$0xff] }
 0x1e0   : > { %8612 = vmatmul.msk.bf16.gmra.mxu1 %vm1228_vm3, %v1596_v44  ;;  %v964_v47 = vpop.f32.mrf.mxu0 }
 0x1e1   : > { %v965_v49 = vadd.f32 %v9766_v17, %v964_v47 }
 0x1e2   : > { %v2253_v50 = vpop.f32.mrf.mxu2 }
 0x1e3   : > { %v1164_v52 = vmax.f32 %v965_v49, 0.0  ;;  %8562 = vmatmul.msk.bf16.gmra.mxu0 %vm691_vm2, %v9336_v45 }
 0x1e4   : > { %v1848_v53 = vpop.f32.mrf.mxu1  ;;  %v1373_v56 = vld [vmem:[#allocation2 + $0x138] sm:$0xff] }
 0x1e5   : > { %1269 = vst.msk [vmem:[#allocation2 + $0x140] sm:$0xff] %vm1228_vm3, %v1164_v52  ;;  %v9963_v58 = vadd.f32 %v2253_v50, %v1848_v53  ;;  %v1449_v60 = vpack.c.bf16 %v1373_v56, %v1372_v54  ;;  %v1520_v5 = vld [vmem:[#allocation2 + $0x131] sm:$0xff] }
 0x1e7   : > { %13591 = vst [vmem:[#allocation20_spill] sm:$0xff] %v9963_v58 }
 0x1e8   : > { %8669 = vmatmul.msk.bf16.gmra.mxu2 %vm1228_vm3, %v1449_v60  ;;  %v966_v61 = vpop.f32.mrf.mxu0 }
 0x1e9   : > { %v967_v62 = vadd.f32 %v9766_v17, %v966_v61 }
 0x1ea   : > { %v2256_v63 = vpop.f32.mrf.mxu2 }
 0x1eb   : > { %v1165_v0 = vmax.f32 %v967_v62, 0.0 }
 0x1ec   : > { %v1851_v4 = vpop.f32.mrf.mxu1  ;;  %v1521_v6 = vld [vmem:[#allocation2 + $0x139] sm:$0xff] }
 0x1ed   : > { %1270 = vst.msk [vmem:[#allocation2 + $0x148] sm:$0xff] %vm1228_vm3, %v1165_v0  ;;  %v9968_v7 = vadd.f32 %v2256_v63, %v1851_v4  ;;  %v1597_v8 = vpack.c.bf16 %v1521_v6, %v1520_v5  ;;  %v1374_v21 = vld [vmem:[#allocation2 + $0x140] sm:$0xff]  ;;  %v9339_v6 = vld [vmem:[%s9748_s28 + $0xf8] sm:$0xff] }
 0x1ef   : > { %13592 = vst [vmem:[#allocation21_spill] sm:$0xff] %v9968_v7 }
 0x1f0   : > { %8613 = vmatmul.msk.bf16.gmra.mxu1 %vm1228_vm3, %v1597_v8  ;;  %v969_v12 = vpop.f32.mrf.mxu0 }
 0x1f1   : > { %v970_v13 = vadd.f32 %v9766_v17, %v969_v12 }
 0x1f2   : > { %v2258_v14 = vpop.f32.mrf.mxu2 }
 0x1f3   : > { %v1166_v15 = vmax.f32 %v970_v13, 0.0  ;;  %8563 = vmatmul.msk.bf16.gmra.mxu0 %vm691_vm2, %v9337_v9 }
 0x1f4   : > { %v1853_v19 = vpop.f32.mrf.mxu1  ;;  %v1375_v22 = vld [vmem:[#allocation2 + $0x148] sm:$0xff] }
 0x1f5   : > { %1271 = vst.msk [vmem:[#allocation2 + $0x150] sm:$0xff] %vm1228_vm3, %v1166_v15  ;;  %v9975_v23 = vadd.f32 %v2258_v14, %v1853_v19  ;;  %v1450_v24 = vpack.c.bf16 %v1375_v22, %v1374_v21  ;;  %v1522_v34 = vld [vmem:[#allocation2 + $0x141] sm:$0xff] }
 0x1f7   : > { %13593 = vst [vmem:[#allocation22_spill] sm:$0xff] %v9975_v23 }
 0x1f8   : > { %8670 = vmatmul.msk.bf16.gmra.mxu2 %vm1228_vm3, %v1450_v24  ;;  %v971_v25 = vpop.f32.mrf.mxu0 }
 0x1f9   : > { %v972_v27 = vadd.f32 %v9766_v17, %v971_v25 }
 0x1fa   : > { %v2261_v28 = vpop.f32.mrf.mxu2 }
 0x1fb   : > { %v1167_v30 = vmax.f32 %v972_v27, 0.0 }
 0x1fc   : > { %v1856_v32 = vpop.f32.mrf.mxu1  ;;  %v1523_v35 = vld [vmem:[#allocation2 + $0x149] sm:$0xff] }
 0x1fd   : > { %1272 = vst.msk [vmem:[#allocation2 + $0x158] sm:$0xff] %vm1228_vm3, %v1167_v30  ;;  %v9980_v36 = vadd.f32 %v2261_v28, %v1856_v32  ;;  %v1598_v38 = vpack.c.bf16 %v1523_v35, %v1522_v34  ;;  %v1376_v49 = vld [vmem:[#allocation2 + $0x150] sm:$0xff] }
 0x1ff   : > { %13594 = vst [vmem:[#allocation23_spill] sm:$0xff] %v9980_v36  ;;  %v3752_v36 = vld [vmem:[#allocation2 + $0x79] sm:$0xff] }
 0x200   : > { %8614 = vmatmul.msk.bf16.gmra.mxu1 %vm1228_vm3, %v1598_v38  ;;  %v974_v40 = vpop.f32.mrf.mxu0 }
 0x201   : > { %v975_v42 = vadd.f32 %v9766_v17, %v974_v40 }
 0x202   : > { %v2263_v44 = vpop.f32.mrf.mxu2 }
 0x203   : > { %v1168_v45 = vmax.f32 %v975_v42, 0.0  ;;  %8564 = vmatmul.msk.bf16.gmra.mxu0 %vm691_vm2, %v9338_v39  ;;  %v9340_v39 = vld [vmem:[%s9748_s28 + $0x100] sm:$0xff] }
 0x204   : > { %v1858_v47 = vpop.f32.mrf.mxu1  ;;  %v1377_v50 = vld [vmem:[#allocation2 + $0x158] sm:$0xff] }
 0x205   : > { %1273 = vst.msk [vmem:[#allocation2 + $0x160] sm:$0xff] %vm1228_vm3, %v1168_v45  ;;  %v9987_v52 = vadd.f32 %v2263_v44, %v1858_v47  ;;  %v1451_v53 = vpack.c.bf16 %v1377_v50, %v1376_v49  ;;  %v1524_v63 = vld [vmem:[#allocation2 + $0x151] sm:$0xff] }
 0x207   : > { %13595 = vst [vmem:[#allocation24_spill] sm:$0xff] %v9987_v52 }
 0x208   : > { %8671 = vmatmul.msk.bf16.gmra.mxu2 %vm1228_vm3, %v1451_v53  ;;  %v976_v54 = vpop.f32.mrf.mxu0 }
 0x209   : > { %v977_v56 = vadd.f32 %v9766_v17, %v976_v54 }
 0x20a   : > { %v2266_v60 = vpop.f32.mrf.mxu2 }
 0x20b   : > { %v1169_v61 = vmax.f32 %v977_v56, 0.0 }
 0x20c   : > { %v1861_v62 = vpop.f32.mrf.mxu1  ;;  %v1525_v0 = vld [vmem:[#allocation2 + $0x159] sm:$0xff] }
 0x20d   : > { %1274 = vst.msk [vmem:[#allocation2 + $0x168] sm:$0xff] %vm1228_vm3, %v1169_v61  ;;  %v9992_v4 = vadd.f32 %v2266_v60, %v1861_v62  ;;  %v1599_v5 = vpack.c.bf16 %v1525_v0, %v1524_v63  ;;  %v1378_v15 = vld [vmem:[#allocation2 + $0x160] sm:$0xff] }
 0x20f   : > { %13596 = vst [vmem:[#allocation25_spill] sm:$0xff] %v9992_v4 }
 0x210   : > { %8615 = vmatmul.msk.bf16.gmra.mxu1 %vm1228_vm3, %v1599_v5  ;;  %v979_v8 = vpop.f32.mrf.mxu0 }
 0x211   : > { %v980_v9 = vadd.f32 %v9766_v17, %v979_v8 }
 0x212   : > { %v2268_v12 = vpop.f32.mrf.mxu2 }
 0x213   : > { %v1170_v13 = vmax.f32 %v980_v9, 0.0  ;;  %8565 = vmatmul.msk.bf16.gmra.mxu0 %vm691_vm2, %v9339_v6  ;;  %v9341_v9 = vld [vmem:[%s9748_s28 + $0x108] sm:$0xff] }
 0x214   : > { %v1863_v14 = vpop.f32.mrf.mxu1  ;;  %v1379_v19 = vld [vmem:[#allocation2 + $0x168] sm:$0xff] }
 0x215   : > { %1275 = vst.msk [vmem:[#allocation2 + $0x170] sm:$0xff] %vm1228_vm3, %v1170_v13  ;;  %v9999_v21 = vadd.f32 %v2268_v12, %v1863_v14  ;;  %v1452_v22 = vpack.c.bf16 %v1379_v19, %v1378_v15  ;;  %v1526_v32 = vld [vmem:[#allocation2 + $0x161] sm:$0xff] }
 0x217   : > { %13597 = vst [vmem:[#allocation26_spill] sm:$0xff] %v9999_v21 }
 0x218   : > { %8672 = vmatmul.msk.bf16.gmra.mxu2 %vm1228_vm3, %v1452_v22  ;;  %v981_v24 = vpop.f32.mrf.mxu0 }
 0x219   : > { %v982_v25 = vadd.f32 %v9766_v17, %v981_v24 }
 0x21a   : > { %v2271_v27 = vpop.f32.mrf.mxu2 }
 0x21b   : > { %v1171_v28 = vmax.f32 %v982_v25, 0.0 }
 0x21c   : > { %v1866_v30 = vpop.f32.mrf.mxu1  ;;  %v1527_v34 = vld [vmem:[#allocation2 + $0x169] sm:$0xff] }
 0x21d   : > { %1276 = vst.msk [vmem:[#allocation2 + $0x178] sm:$0xff] %vm1228_vm3, %v1171_v28  ;;  %v10004_v35 = vadd.f32 %v2271_v27, %v1866_v30  ;;  %v1600_v38 = vpack.c.bf16 %v1527_v34, %v1526_v32  ;;  %v1380_v49 = vld [vmem:[#allocation2 + $0x170] sm:$0xff] }
 0x21f   : > { %13598 = vst [vmem:[#allocation27_spill] sm:$0xff] %v10004_v35  ;;  %v3750_v35 = vld [vmem:[#allocation2 + $0x69] sm:$0xff] }
 0x220   : > { %8616 = vmatmul.msk.bf16.gmra.mxu1 %vm1228_vm3, %v1600_v38  ;;  %v984_v40 = vpop.f32.mrf.mxu0 }
 0x221   : > { %v985_v42 = vadd.f32 %v9766_v17, %v984_v40 }
 0x222   : > { %v2273_v44 = vpop.f32.mrf.mxu2 }
 0x223   : > { %v1172_v45 = vmax.f32 %v985_v42, 0.0  ;;  %8566 = vmatmul.msk.bf16.gmra.mxu0 %vm691_vm2, %v9340_v39 }
 0x224   : > { %v1868_v47 = vpop.f32.mrf.mxu1  ;;  %v1381_v50 = vld [vmem:[#allocation2 + $0x178] sm:$0xff] }
 0x225   : > { %1277 = vst.msk [vmem:[#allocation2 + $0x180] sm:$0xff] %vm1228_vm3, %v1172_v45  ;;  %v10011_v53 = vadd.f32 %v2273_v44, %v1868_v47  ;;  %v1453_v54 = vpack.c.bf16 %v1381_v50, %v1380_v49  ;;  %v1528_v0 = vld [vmem:[#allocation2 + $0x171] sm:$0xff] }
 0x226   : > { %v9342_v45 = vld [vmem:[%s9748_s28 + $0x110] sm:$0xff] }
 0x227   : > { %13599 = vst [vmem:[#allocation28_spill] sm:$0xff] %v10011_v53 }
 0x228   : > { %8673 = vmatmul.msk.bf16.gmra.mxu2 %vm1228_vm3, %v1453_v54  ;;  %v986_v56 = vpop.f32.mrf.mxu0 }
 0x229   : > { %v987_v60 = vadd.f32 %v9766_v17, %v986_v56 }
 0x22a   : > { %v2276_v61 = vpop.f32.mrf.mxu2 }
 0x22b   : > { %v1173_v62 = vmax.f32 %v987_v60, 0.0 }
 0x22c   : > { %v1871_v63 = vpop.f32.mrf.mxu1  ;;  %v1529_v5 = vld [vmem:[#allocation2 + $0x179] sm:$0xff] }
 0x22d   : > { %1278 = vst.msk [vmem:[#allocation2 + $0x188] sm:$0xff] %vm1228_vm3, %v1173_v62  ;;  %v10016_v6 = vadd.f32 %v2276_v61, %v1871_v63  ;;  %v1601_v8 = vpack.c.bf16 %v1529_v5, %v1528_v0  ;;  %v1382_v22 = vld [vmem:[#allocation2 + $0x180] sm:$0xff] }
 0x22f   : > { %13600 = vst [vmem:[#allocation29_spill] sm:$0xff] %v10016_v6 }
 0x230   : > { %8617 = vmatmul.msk.bf16.gmra.mxu1 %vm1228_vm3, %v1601_v8  ;;  %v989_v12 = vpop.f32.mrf.mxu0 }
 0x231   : > { %v990_v13 = vadd.f32 %v9766_v17, %v989_v12 }
 0x232   : > { %v2278_v14 = vpop.f32.mrf.mxu2 }
 0x233   : > { %v1174_v15 = vmax.f32 %v990_v13, 0.0  ;;  %8567 = vmatmul.msk.bf16.gmra.mxu0 %vm691_vm2, %v9341_v9 }
 0x234   : > { %v1873_v19 = vpop.f32.mrf.mxu1  ;;  %v1383_v24 = vld [vmem:[#allocation2 + $0x188] sm:$0xff] }
 0x235   : > { %1279 = vst.msk [vmem:[#allocation2 + $0x190] sm:$0xff] %vm1228_vm3, %v1174_v15  ;;  %v10023_v25 = vadd.f32 %v2278_v14, %v1873_v19  ;;  %v1454_v27 = vpack.c.bf16 %v1383_v24, %v1382_v22  ;;  %v1530_v39 = vld [vmem:[#allocation2 + $0x181] sm:$0xff]  ;;  %v9343_v22 = vld [vmem:[%s9748_s28 + $0x118] sm:$0xff] }
 0x237   : > { %13601 = vst [vmem:[#allocation30_spill] sm:$0xff] %v10023_v25 }
 0x238   : > { %8674 = vmatmul.msk.bf16.gmra.mxu2 %vm1228_vm3, %v1454_v27  ;;  %v991_v28 = vpop.f32.mrf.mxu0  ;;  %v10044_v27 = vld [vmem:[#allocation5] ss:$0 sm:$0xff] }
 0x239   : > { %v992_v30 = vadd.f32 %v9766_v17, %v991_v28 }
 0x23b   : > { %v2281_v32 = vpop.f32.mrf.mxu2  ;;  %v1175_v34 = vmax.f32 %v992_v30, 0.0 }
 0x23c   : > { %v1531_v40 = vld [vmem:[#allocation2 + $0x189] sm:$0xff] }
 0x23d   : > { %v1876_v38 = vpop.f32.mrf.mxu1  ;;  %1280 = vst.msk [vmem:[#allocation2 + $0x198] sm:$0xff] %vm1228_vm3, %v1175_v34  ;;  %v1602_v44 = vpack.c.bf16 %v1531_v40, %v1530_v39  ;;  %v1384_v60 = vld [vmem:[#allocation2 + $0x190] sm:$0xff] }
 0x23e   : > { %v10028_v42 = vadd.f32 %v2281_v32, %v1876_v38 }
 0x240   : > { %13602 = vst [vmem:[#allocation31_spill] sm:$0xff] %v10028_v42  ;;  %8618 = vmatmul.msk.bf16.gmra.mxu1 %vm1228_vm3, %v1602_v44  ;;  %v994_v47 = vpop.f32.mrf.mxu0  ;;  %v3748_v42 = vld [vmem:[#allocation2 + $0x59] sm:$0xff] }
 0x241   : > { %v995_v49 = vadd.f32 %v9766_v17, %v994_v47 }
 0x243   : > { %v2283_v50 = vpop.f32.mrf.mxu2  ;;  %v1176_v54 = vmax.f32 %v995_v49, 0.0  ;;  %8568 = vmatmul.msk.bf16.gmra.mxu0 %vm691_vm2, %v9342_v45 }
 0x244   : > { %v1385_v61 = vld [vmem:[#allocation2 + $0x198] sm:$0xff] }
 0x245   : > { %v1878_v56 = vpop.f32.mrf.mxu1  ;;  %1281 = vst.msk [vmem:[#allocation2 + $0x1a0] sm:$0xff] %vm1228_vm3, %v1176_v54  ;;  %v1455_v63 = vpack.c.bf16 %v1385_v61, %v1384_v60  ;;  %v1532_v13 = vld [vmem:[#allocation2 + $0x191] sm:$0xff] }
 0x246   : > { %v10035_v62 = vadd.f32 %v2283_v50, %v1878_v56 }
 0x248   : > { %13603 = vst [vmem:[#allocation32_spill] sm:$0xff] %v10035_v62  ;;  %8675 = vmatmul.msk.bf16.gmra.mxu2 %vm1228_vm3, %v1455_v63  ;;  %v996_v0 = vpop.f32.mrf.mxu0  ;;  %v9344_v63 = vld [vmem:[%s9748_s28 + $0x120] sm:$0xff] }
 0x249   : > { %v997_v5 = vadd.f32 %v9766_v17, %v996_v0 }
 0x24b   : > { %v2286_v8 = vpop.f32.mrf.mxu2  ;;  %v1177_v9 = vmax.f32 %v997_v5, 0.0 }
 0x24c   : > { %v1533_v14 = vld [vmem:[#allocation2 + $0x199] sm:$0xff] }
 0x24d   : > { %v1881_v12 = vpop.f32.mrf.mxu1  ;;  %1282 = vst.msk [vmem:[#allocation2 + $0x1a8] sm:$0xff] %vm1228_vm3, %v1177_v9  ;;  %v1603_v19 = vpack.c.bf16 %v1533_v14, %v1532_v13  ;;  %v1386_v34 = vld [vmem:[#allocation2 + $0x1a0] sm:$0xff] }
 0x24e   : > { %v10040_v15 = vadd.f32 %v2286_v8, %v1881_v12 }
 0x250   : > { %13604 = vst [vmem:[#allocation33_spill] sm:$0xff] %v10040_v15  ;;  %8619 = vmatmul.msk.bf16.gmra.mxu1 %vm1228_vm3, %v1603_v19  ;;  %v999_v24 = vpop.f32.mrf.mxu0 }
 0x251   : > { %v1000_v28 = vadd.f32 %v10044_v27, %v999_v24 }
 0x253   : > { %v2288_v30 = vpop.f32.mrf.mxu2  ;;  %v1178_v17 = vmax.f32 %v1000_v28, 0.0  ;;  %8569 = vmatmul.msk.bf16.gmra.mxu0 %vm691_vm2, %v9343_v22 }
 0x254   : > { %v1387_v38 = vld [vmem:[#allocation2 + $0x1a8] sm:$0xff] }
 0x255   : > { %v1883_v32 = vpop.f32.mrf.mxu1  ;;  %1283 = vst.msk [vmem:[#allocation2 + $0x1b0] sm:$0xff] %vm1228_vm3, %v1178_v17  ;;  %v1456_v40 = vpack.c.bf16 %v1387_v38, %v1386_v34  ;;  %v1534_v54 = vld [vmem:[#allocation2 + $0x1a1] sm:$0xff] }
 0x256   : > { %v10049_v39 = vadd.f32 %v2288_v30, %v1883_v32 }
 0x258   : > { %13605 = vst [vmem:[#allocation34_spill] sm:$0xff] %v10049_v39  ;;  %8676 = vmatmul.msk.bf16.gmra.mxu2 %vm1228_vm3, %v1456_v40  ;;  %v1001_v44 = vpop.f32.mrf.mxu0  ;;  %v3111_v39 = vld [vmem:[#allocation2 + $0xc0] sm:$0xff] }
 0x259   : > { %v1002_v45 = vadd.f32 %v10044_v27, %v1001_v44 }
 0x25b   : > { %v2291_v47 = vpop.f32.mrf.mxu2  ;;  %v1179_v49 = vmax.f32 %v1002_v45, 0.0  ;;  %v9345_v45 = vld [vmem:[%s9748_s28 + $0x128] sm:$0xff] }
 0x25c   : > { %v1535_v56 = vld [vmem:[#allocation2 + $0x1a9] sm:$0xff] }
 0x25d   : > { %v1886_v50 = vpop.f32.mrf.mxu1  ;;  %1284 = vst.msk [vmem:[#allocation2 + $0x1b8] sm:$0xff] %vm1228_vm3, %v1179_v49  ;;  %v1604_v61 = vpack.c.bf16 %v1535_v56, %v1534_v54  ;;  %v1388_v13 = vld [vmem:[#allocation2 + $0x1b0] sm:$0xff] }
 0x25e   : > { %v10054_v60 = vadd.f32 %v2291_v47, %v1886_v50 }
 0x260   : > { %13606 = vst [vmem:[#allocation35_spill] sm:$0xff] %v10054_v60  ;;  %8620 = vmatmul.msk.bf16.gmra.mxu1 %vm1228_vm3, %v1604_v61  ;;  %v1004_v0 = vpop.f32.mrf.mxu0  ;;  %v2443_v60 = vld [vmem:[#allocation2 + $0x12] sm:$0xff] }
 0x261   : > { %v1005_v5 = vadd.f32 %v10044_v27, %v1004_v0 }
 0x263   : > { %v2293_v8 = vpop.f32.mrf.mxu2  ;;  %v1180_v9 = vmax.f32 %v1005_v5, 0.0  ;;  %8570 = vmatmul.msk.bf16.gmra.mxu0 %vm691_vm2, %v9344_v63 }
 0x264   : > { %v1389_v14 = vld [vmem:[#allocation2 + $0x1b8] sm:$0xff] }
 0x265   : > { %v1888_v12 = vpop.f32.mrf.mxu1  ;;  %1285 = vst.msk [vmem:[#allocation2 + $0x1c0] sm:$0xff] %vm1228_vm3, %v1180_v9  ;;  %v1457_v22 = vpack.c.bf16 %v1389_v14, %v1388_v13  ;;  %v1536_v34 = vld [vmem:[#allocation2 + $0x1b1] sm:$0xff] }
 0x266   : > { %v10061_v19 = vadd.f32 %v2293_v8, %v1888_v12 }
 0x268   : > { %13607 = vst [vmem:[#allocation36_spill] sm:$0xff] %v10061_v19  ;;  %8677 = vmatmul.msk.bf16.gmra.mxu2 %vm1228_vm3, %v1457_v22  ;;  %v1006_v24 = vpop.f32.mrf.mxu0  ;;  %v3109_v19 = vld [vmem:[#allocation2 + $0xb0] sm:$0xff] }
 0x269   : > { %v1007_v28 = vadd.f32 %v10044_v27, %v1006_v24 }
 0x26b   : > { %v2296_v30 = vpop.f32.mrf.mxu2  ;;  %v1181_v17 = vmax.f32 %v1007_v28, 0.0 }
 0x26c   : > { %v1537_v38 = vld [vmem:[#allocation2 + $0x1b9] sm:$0xff] }
 0x26d   : > { %v1891_v32 = vpop.f32.mrf.mxu1  ;;  %1286 = vst.msk [vmem:[#allocation2 + $0x1c8] sm:$0xff] %vm1228_vm3, %v1181_v17  ;;  %v1605_v44 = vpack.c.bf16 %v1537_v38, %v1536_v34  ;;  %v1390_v61 = vld [vmem:[#allocation2 + $0x1c0] sm:$0xff]  ;;  %v9346_v17 = vld [vmem:[%s9748_s28 + $0x130] sm:$0xff] }
 0x26e   : > { %v10066_v40 = vadd.f32 %v2296_v30, %v1891_v32 }
 0x270   : > { %13608 = vst [vmem:[#allocation37_spill] sm:$0xff] %v10066_v40  ;;  %8621 = vmatmul.msk.bf16.gmra.mxu1 %vm1228_vm3, %v1605_v44  ;;  %v1009_v47 = vpop.f32.mrf.mxu0  ;;  %v2441_v40 = vld [vmem:[#allocation2 + $0x2] sm:$0xff] }
 0x271   : > { %v1010_v49 = vadd.f32 %v10044_v27, %v1009_v47 }
 0x273   : > { %v2298_v50 = vpop.f32.mrf.mxu2  ;;  %v1182_v54 = vmax.f32 %v1010_v49, 0.0  ;;  %8571 = vmatmul.msk.bf16.gmra.mxu0 %vm691_vm2, %v9345_v45 }
 0x274   : > { %v1391_v63 = vld [vmem:[#allocation2 + $0x1c8] sm:$0xff] }
 0x275   : > { %v1893_v56 = vpop.f32.mrf.mxu1  ;;  %1287 = vst.msk [vmem:[#allocation2 + $0x1d0] sm:$0xff] %vm1228_vm3, %v1182_v54  ;;  %v1458_v5 = vpack.c.bf16 %v1391_v63, %v1390_v61  ;;  %v1538_v22 = vld [vmem:[#allocation2 + $0x1c1] sm:$0xff] }
 0x276   : > { %v10073_v0 = vadd.f32 %v2298_v50, %v1893_v56 }
 0x278   : > { %13609 = vst [vmem:[#allocation38_spill] sm:$0xff] %v10073_v0  ;;  %8678 = vmatmul.msk.bf16.gmra.mxu2 %vm1228_vm3, %v1458_v5  ;;  %v1011_v8 = vpop.f32.mrf.mxu0 }
 0x279   : > { %v1012_v9 = vadd.f32 %v10044_v27, %v1011_v8 }
 0x27b   : > { %v2301_v12 = vpop.f32.mrf.mxu2  ;;  %v1183_v13 = vmax.f32 %v1012_v9, 0.0 }
 0x27c   : > { %v1539_v24 = vld [vmem:[#allocation2 + $0x1c9] sm:$0xff] }
 0x27d   : > { %v1896_v14 = vpop.f32.mrf.mxu1  ;;  %1288 = vst.msk [vmem:[#allocation2 + $0x1d8] sm:$0xff] %vm1228_vm3, %v1183_v13  ;;  %v1606_v30 = vpack.c.bf16 %v1539_v24, %v1538_v22  ;;  %v1392_v47 = vld [vmem:[#allocation2 + $0x1d0] sm:$0xff]  ;;  %v9347_v22 = vld [vmem:[%s9748_s28 + $0x138] sm:$0xff] }
 0x27e   : > { %v10078_v28 = vadd.f32 %v2301_v12, %v1896_v14 }
 0x280   : > { %13610 = vst [vmem:[#allocation39_spill] sm:$0xff] %v10078_v28  ;;  %8622 = vmatmul.msk.bf16.gmra.mxu1 %vm1228_vm3, %v1606_v30  ;;  %v1014_v32 = vpop.f32.mrf.mxu0 }
 0x281   : > { %v1015_v34 = vadd.f32 %v10044_v27, %v1014_v32 }
 0x283   : > { %v2303_v38 = vpop.f32.mrf.mxu2  ;;  %v1184_v44 = vmax.f32 %v1015_v34, 0.0  ;;  %8572 = vmatmul.msk.bf16.gmra.mxu0 %vm691_vm2, %v9346_v17 }
 0x284   : > { %v1393_v49 = vld [vmem:[#allocation2 + $0x1d8] sm:$0xff] }
 0x285   : > { %v1898_v45 = vpop.f32.mrf.mxu1  ;;  %1289 = vst.msk [vmem:[#allocation2 + $0x1e0] sm:$0xff] %vm1228_vm3, %v1184_v44  ;;  %v1459_v54 = vpack.c.bf16 %v1393_v49, %v1392_v47  ;;  %v1540_v9 = vld [vmem:[#allocation2 + $0x1d1] sm:$0xff] }
 0x286   : > { %v10085_v50 = vadd.f32 %v2303_v38, %v1898_v45 }
 0x288   : > { %13611 = vst [vmem:[#allocation40_spill] sm:$0xff] %v10085_v50  ;;  %8679 = vmatmul.msk.bf16.gmra.mxu2 %vm1228_vm3, %v1459_v54  ;;  %v1016_v56 = vpop.f32.mrf.mxu0 }
 0x289   : > { %v1017_v61 = vadd.f32 %v10044_v27, %v1016_v56 }
 0x28b   : > { %v2306_v63 = vpop.f32.mrf.mxu2  ;;  %v1185_v5 = vmax.f32 %v1017_v61, 0.0 }
 0x28c   : > { %v1541_v12 = vld [vmem:[#allocation2 + $0x1d9] sm:$0xff] }
 0x28d   : > { %v1901_v8 = vpop.f32.mrf.mxu1  ;;  %1290 = vst.msk [vmem:[#allocation2 + $0x1e8] sm:$0xff] %vm1228_vm3, %v1185_v5  ;;  %v1607_v14 = vpack.c.bf16 %v1541_v12, %v1540_v9  ;;  %v1394_v38 = vld [vmem:[#allocation2 + $0x1e0] sm:$0xff] }
 0x28e   : > { %v10090_v13 = vadd.f32 %v2306_v63, %v1901_v8 }
 0x290   : > { %13612 = vst [vmem:[#allocation41_spill] sm:$0xff] %v10090_v13  ;;  %8623 = vmatmul.msk.bf16.gmra.mxu1 %vm1228_vm3, %v1607_v14  ;;  %v1019_v24 = vpop.f32.mrf.mxu0  ;;  %v9348_v14 = vld [vmem:[%s9748_s28 + $0x140] sm:$0xff] }
 0x291   : > { %v1020_v30 = vadd.f32 %v10044_v27, %v1019_v24 }
 0x293   : > { %v2308_v17 = vpop.f32.mrf.mxu2  ;;  %v1186_v32 = vmax.f32 %v1020_v30, 0.0  ;;  %8573 = vmatmul.msk.bf16.gmra.mxu0 %vm691_vm2, %v9347_v22 }
 0x294   : > { %v1395_v44 = vld [vmem:[#allocation2 + $0x1e8] sm:$0xff] }
 0x295   : > { %v1903_v34 = vpop.f32.mrf.mxu1  ;;  %1291 = vst.msk [vmem:[#allocation2 + $0x1f0] sm:$0xff] %vm1228_vm3, %v1186_v32  ;;  %v1460_v47 = vpack.c.bf16 %v1395_v44, %v1394_v38  ;;  %v1542_v5 = vld [vmem:[#allocation2 + $0x1e1] sm:$0xff] }
 0x296   : > { %v10097_v45 = vadd.f32 %v2308_v17, %v1903_v34 }
 0x298   : > { %13613 = vst [vmem:[#allocation42_spill] sm:$0xff] %v10097_v45  ;;  %8680 = vmatmul.msk.bf16.gmra.mxu2 %vm1228_vm3, %v1460_v47  ;;  %v1021_v49 = vpop.f32.mrf.mxu0 }
 0x299   : > { %v1022_v54 = vadd.f32 %v10044_v27, %v1021_v49 }
 0x29b   : > { %v2311_v56 = vpop.f32.mrf.mxu2  ;;  %v1187_v61 = vmax.f32 %v1022_v54, 0.0 }
 0x29c   : > { %v1543_v8 = vld [vmem:[#allocation2 + $0x1e9] sm:$0xff] }
 0x29d   : > { %v1906_v63 = vpop.f32.mrf.mxu1  ;;  %1292 = vst.msk [vmem:[#allocation2 + $0x1f8] sm:$0xff] %vm1228_vm3, %v1187_v61  ;;  %v1608_v12 = vpack.c.bf16 %v1543_v8, %v1542_v5  ;;  %v1396_v34 = vld [vmem:[#allocation2 + $0x1f0] sm:$0xff] }
 0x29e   : > { %v10102_v9 = vadd.f32 %v2311_v56, %v1906_v63 }
 0x2a0   : > { %13614 = vst [vmem:[#allocation43_spill] sm:$0xff] %v10102_v9  ;;  %8624 = vmatmul.msk.bf16.gmra.mxu1 %vm1228_vm3, %v1608_v12  ;;  %v1024_v22 = vpop.f32.mrf.mxu0 }
 0x2a1   : > { %v1025_v24 = vadd.f32 %v10044_v27, %v1024_v22  ;;  %v9349_v22 = vld [vmem:[%s9748_s28 + $0x148] sm:$0xff] }
 0x2a3   : > { %v2313_v30 = vpop.f32.mrf.mxu2  ;;  %v1188_v17 = vmax.f32 %v1025_v24, 0.0  ;;  %8574 = vmatmul.msk.bf16.gmra.mxu0 %vm691_vm2, %v9348_v14 }
 0x2a4   : > { %v1397_v38 = vld [vmem:[#allocation2 + $0x1f8] sm:$0xff] }
 0x2a5   : > { %v1908_v32 = vpop.f32.mrf.mxu1  ;;  %1293 = vst.msk [vmem:[#allocation2 + $0x200] sm:$0xff] %vm1228_vm3, %v1188_v17  ;;  %v1461_v47 = vpack.c.bf16 %v1397_v38, %v1396_v34  ;;  %v1544_v5 = vld [vmem:[#allocation2 + $0x1f1] sm:$0xff] }
 0x2a6   : > { %v10109_v44 = vadd.f32 %v2313_v30, %v1908_v32 }
 0x2a8   : > { %13615 = vst [vmem:[#allocation44_spill] sm:$0xff] %v10109_v44  ;;  %8681 = vmatmul.msk.bf16.gmra.mxu2 %vm1228_vm3, %v1461_v47  ;;  %v1026_v49 = vpop.f32.mrf.mxu0 }
 0x2a9   : > { %v1027_v54 = vadd.f32 %v10044_v27, %v1026_v49 }
 0x2ab   : > { %v2316_v56 = vpop.f32.mrf.mxu2  ;;  %v1189_v61 = vmax.f32 %v1027_v54, 0.0 }
 0x2ac   : > { %v1545_v8 = vld [vmem:[#allocation2 + $0x1f9] sm:$0xff] }
 0x2ad   : > { %v1911_v63 = vpop.f32.mrf.mxu1  ;;  %1294 = vst.msk [vmem:[#allocation2 + $0x208] sm:$0xff] %vm1228_vm3, %v1189_v61  ;;  %v1609_v14 = vpack.c.bf16 %v1545_v8, %v1544_v5  ;;  %v1398_v38 = vld [vmem:[#allocation2 + $0x200] sm:$0xff] }
 0x2ae   : > { %v10114_v12 = vadd.f32 %v2316_v56, %v1911_v63 }
 0x2b0   : > { %13616 = vst [vmem:[#allocation45_spill] sm:$0xff] %v10114_v12  ;;  %8625 = vmatmul.msk.bf16.gmra.mxu1 %vm1228_vm3, %v1609_v14  ;;  %v1029_v24 = vpop.f32.mrf.mxu0 }
 0x2b1   : > { %v1030_v30 = vadd.f32 %v10044_v27, %v1029_v24 }
 0x2b3   : > { %v2318_v17 = vpop.f32.mrf.mxu2  ;;  %v1190_v32 = vmax.f32 %v1030_v30, 0.0  ;;  %8575 = vmatmul.msk.bf16.gmra.mxu0 %vm691_vm2, %v9349_v22 }
 0x2b4   : > { %v1399_v47 = vld [vmem:[#allocation2 + $0x208] sm:$0xff] }
 0x2b5   : > { %v1913_v34 = vpop.f32.mrf.mxu1  ;;  %1295 = vst.msk [vmem:[#allocation2 + $0x210] sm:$0xff] %vm1228_vm3, %v1190_v32  ;;  %v1462_v54 = vpack.c.bf16 %v1399_v47, %v1398_v38  ;;  %v1546_v14 = vld [vmem:[#allocation2 + $0x201] sm:$0xff] }
 0x2b6   : > { %v10121_v49 = vadd.f32 %v2318_v17, %v1913_v34  ;;  %v9350_v17 = vld [vmem:[%s9748_s28 + $0x150] sm:$0xff] }
 0x2b8   : > { %13617 = vst [vmem:[#allocation46_spill] sm:$0xff] %v10121_v49  ;;  %8682 = vmatmul.msk.bf16.gmra.mxu2 %vm1228_vm3, %v1462_v54  ;;  %v1031_v56 = vpop.f32.mrf.mxu0 }
 0x2b9   : > { %v1032_v61 = vadd.f32 %v10044_v27, %v1031_v56 }
 0x2bb   : > { %v2321_v63 = vpop.f32.mrf.mxu2  ;;  %v1191_v5 = vmax.f32 %v1032_v61, 0.0 }
 0x2bc   : > { %v1547_v24 = vld [vmem:[#allocation2 + $0x209] sm:$0xff] }
 0x2bd   : > { %v1916_v8 = vpop.f32.mrf.mxu1  ;;  %1296 = vst.msk [vmem:[#allocation2 + $0x218] sm:$0xff] %vm1228_vm3, %v1191_v5  ;;  %v1610_v30 = vpack.c.bf16 %v1547_v24, %v1546_v14  ;;  %v1400_v56 = vld [vmem:[#allocation2 + $0x210] sm:$0xff] }
 0x2be   : > { %v10126_v22 = vadd.f32 %v2321_v63, %v1916_v8 }
 0x2c0   : > { %13618 = vst [vmem:[#allocation47_spill] sm:$0xff] %v10126_v22  ;;  %8626 = vmatmul.msk.bf16.gmra.mxu1 %vm1228_vm3, %v1610_v30  ;;  %v1034_v32 = vpop.f32.mrf.mxu0 }
 0x2c1   : > { %v1035_v34 = vadd.f32 %v10044_v27, %v1034_v32 }
 0x2c3   : > { %v2323_v38 = vpop.f32.mrf.mxu2  ;;  %v1192_v47 = vmax.f32 %v1035_v34, 0.0  ;;  %8576 = vmatmul.msk.bf16.gmra.mxu0 %vm691_vm2, %v9350_v17 }
 0x2c4   : > { %v1401_v61 = vld [vmem:[#allocation2 + $0x218] sm:$0xff] }
 0x2c5   : > { %v1918_v54 = vpop.f32.mrf.mxu1  ;;  %1297 = vst.msk [vmem:[#allocation2 + $0x220] sm:$0xff] %vm1228_vm3, %v1192_v47  ;;  %v1463_v63 = vpack.c.bf16 %v1401_v61, %v1400_v56  ;;  %v1548_v34 = vld [vmem:[#allocation2 + $0x211] sm:$0xff] }
 0x2c6   : > { %v10133_v5 = vadd.f32 %v2323_v38, %v1918_v54  ;;  %v9351_v38 = vld [vmem:[%s9748_s28 + $0x158] sm:$0xff] }
 0x2c8   : > { %13619 = vst [vmem:[#allocation48_spill] sm:$0xff] %v10133_v5  ;;  %8683 = vmatmul.msk.bf16.gmra.mxu2 %vm1228_vm3, %v1463_v63  ;;  %v1036_v8 = vpop.f32.mrf.mxu0 }
 0x2c9   : > { %v1037_v14 = vadd.f32 %v10044_v27, %v1036_v8 }
 0x2cb   : > { %v2326_v24 = vpop.f32.mrf.mxu2  ;;  %v1193_v30 = vmax.f32 %v1037_v14, 0.0 }
 0x2cc   : > { %v1549_v22 = vld [vmem:[#allocation2 + $0x219] sm:$0xff] }
 0x2cd   : > { %v1921_v32 = vpop.f32.mrf.mxu1  ;;  %1298 = vst.msk [vmem:[#allocation2 + $0x228] sm:$0xff] %vm1228_vm3, %v1193_v30  ;;  %v1611_v49 = vpack.c.bf16 %v1549_v22, %v1548_v34  ;;  %v1402_v8 = vld [vmem:[#allocation2 + $0x220] sm:$0xff] }
 0x2ce   : > { %v10138_v17 = vadd.f32 %v2326_v24, %v1921_v32 }
 0x2d0   : > { %13620 = vst [vmem:[#allocation49_spill] sm:$0xff] %v10138_v17  ;;  %8627 = vmatmul.msk.bf16.gmra.mxu1 %vm1228_vm3, %v1611_v49  ;;  %v1039_v47 = vpop.f32.mrf.mxu0 }
 0x2d1   : > { %v1040_v54 = vadd.f32 %v10044_v27, %v1039_v47 }
 0x2d3   : > { %v2328_v56 = vpop.f32.mrf.mxu2  ;;  %v1194_v61 = vmax.f32 %v1040_v54, 0.0  ;;  %8577 = vmatmul.msk.bf16.gmra.mxu0 %vm691_vm2, %v9351_v38 }
 0x2d4   : > { %v1403_v14 = vld [vmem:[#allocation2 + $0x228] sm:$0xff] }
 0x2d5   : > { %v1923_v63 = vpop.f32.mrf.mxu1  ;;  %1299 = vst.msk [vmem:[#allocation2 + $0x230] sm:$0xff] %vm1228_vm3, %v1194_v61  ;;  %v1464_v24 = vpack.c.bf16 %v1403_v14, %v1402_v8  ;;  %v1550_v54 = vld [vmem:[#allocation2 + $0x221] sm:$0xff] }
 0x2d6   : > { %v10145_v30 = vadd.f32 %v2328_v56, %v1923_v63  ;;  %v9352_v56 = vld [vmem:[%s9748_s28 + $0x160] sm:$0xff] }
 0x2d8   : > { %13621 = vst [vmem:[#allocation50_spill] sm:$0xff] %v10145_v30  ;;  %8684 = vmatmul.msk.bf16.gmra.mxu2 %vm1228_vm3, %v1464_v24  ;;  %v1041_v49 = vpop.f32.mrf.mxu0 }
 0x2d9   : > { %v1042_v22 = vadd.f32 %v10044_v27, %v1041_v49 }
 0x2db   : > { %v2331_v32 = vpop.f32.mrf.mxu2  ;;  %v1195_v34 = vmax.f32 %v1042_v22, 0.0 }
 0x2dc   : > { %v1551_v17 = vld [vmem:[#allocation2 + $0x229] sm:$0xff] }
 0x2dd   : > { %v1926_v47 = vpop.f32.mrf.mxu1  ;;  %1300 = vst.msk [vmem:[#allocation2 + $0x238] sm:$0xff] %vm1228_vm3, %v1195_v34  ;;  %v1612_v5 = vpack.c.bf16 %v1551_v17, %v1550_v54  ;;  %v1404_v49 = vld [vmem:[#allocation2 + $0x230] sm:$0xff] }
 0x2de   : > { %v10150_v38 = vadd.f32 %v2331_v32, %v1926_v47 }
 0x2e0   : > { %13622 = vst [vmem:[#allocation51_spill] sm:$0xff] %v10150_v38  ;;  %8628 = vmatmul.msk.bf16.gmra.mxu1 %vm1228_vm3, %v1612_v5  ;;  %v1044_v61 = vpop.f32.mrf.mxu0 }
 0x2e1   : > { %v1045_v63 = vadd.f32 %v10044_v27, %v1044_v61 }
 0x2e3   : > { %v2333_v8 = vpop.f32.mrf.mxu2  ;;  %v1196_v14 = vmax.f32 %v1045_v63, 0.0  ;;  %8578 = vmatmul.msk.bf16.gmra.mxu0 %vm691_vm2, %v9352_v56 }
 0x2e4   : > { %v1405_v22 = vld [vmem:[#allocation2 + $0x238] sm:$0xff] }
 0x2e5   : > { %v1928_v24 = vpop.f32.mrf.mxu1  ;;  %1301 = vst.msk [vmem:[#allocation2 + $0x240] sm:$0xff] %vm1228_vm3, %v1196_v14  ;;  %v1465_v32 = vpack.c.bf16 %v1405_v22, %v1404_v49  ;;  %v1552_v63 = vld [vmem:[#allocation2 + $0x231] sm:$0xff] }
 0x2e6   : > { %v10157_v34 = vadd.f32 %v2333_v8, %v1928_v24  ;;  %v9353_v8 = vld [vmem:[%s9748_s28 + $0x168] sm:$0xff] }
 0x2e8   : > { %13623 = vst [vmem:[#allocation52_spill] sm:$0xff] %v10157_v34  ;;  %8685 = vmatmul.msk.bf16.gmra.mxu2 %vm1228_vm3, %v1465_v32  ;;  %v1046_v5 = vpop.f32.mrf.mxu0 }
 0x2e9   : > { %v1047_v17 = vadd.f32 %v10044_v27, %v1046_v5 }
 0x2eb   : > { %v2336_v47 = vpop.f32.mrf.mxu2  ;;  %v1197_v54 = vmax.f32 %v1047_v17, 0.0 }
 0x2ec   : > { %v1553_v38 = vld [vmem:[#allocation2 + $0x239] sm:$0xff] }
 0x2ed   : > { %v1931_v61 = vpop.f32.mrf.mxu1  ;;  %1302 = vst.msk [vmem:[#allocation2 + $0x248] sm:$0xff] %vm1228_vm3, %v1197_v54  ;;  %v1613_v30 = vpack.c.bf16 %v1553_v38, %v1552_v63  ;;  %v1406_v5 = vld [vmem:[#allocation2 + $0x240] sm:$0xff]  ;;  %v9359_v38 = vld [vmem:[%s9748_s28 + $0x198] sm:$0xff] }
 0x2ee   : > { %v10162_v56 = vadd.f32 %v2336_v47, %v1931_v61  ;;  %8585 = vmatmul.msk.bf16.vlgmr.msra.gmra.mxu3 %vm691_vm2, %v9359_v38 }
 0x2f0   : > { %13624 = vst [vmem:[#allocation53_spill] sm:$0xff] %v10162_v56  ;;  %8629 = vmatmul.msk.bf16.gmra.mxu1 %vm1228_vm3, %v1613_v30  ;;  %v1049_v14 = vpop.f32.mrf.mxu0 }
 0x2f1   : > { %v1050_v24 = vadd.f32 %v10044_v27, %v1049_v14 }
 0x2f3   : > { %v2338_v49 = vpop.f32.mrf.mxu2  ;;  %v1198_v22 = vmax.f32 %v1050_v24, 0.0  ;;  %8579 = vmatmul.msk.bf16.gmra.mxu0 %vm691_vm2, %v9353_v8 }
 0x2f4   : > { %v1407_v17 = vld [vmem:[#allocation2 + $0x248] sm:$0xff] }
 0x2f5   : > { %v1933_v32 = vpop.f32.mrf.mxu1  ;;  %1303 = vst.msk [vmem:[#allocation2 + $0x250] sm:$0xff] %vm1228_vm3, %v1198_v22  ;;  %v1466_v47 = vpack.c.bf16 %v1407_v17, %v1406_v5  ;;  %v1554_v24 = vld [vmem:[#allocation2 + $0x241] sm:$0xff] }
 0x2f6   : > { %v10169_v54 = vadd.f32 %v2338_v49, %v1933_v32  ;;  %v9354_v32 = vld [vmem:[%s9748_s28 + $0x170] sm:$0xff] }
 0x2f8   : > { %13625 = vst [vmem:[#allocation54_spill] sm:$0xff] %v10169_v54  ;;  %8686 = vmatmul.msk.bf16.gmra.mxu2 %vm1228_vm3, %v1466_v47  ;;  %v1051_v30 = vpop.f32.mrf.mxu0 }
 0x2f9   : > { %v1052_v61 = vadd.f32 %v10044_v27, %v1051_v30 }
 0x2fb   : > { %v2341_v63 = vpop.f32.mrf.mxu2  ;;  %v1199_v14 = vmax.f32 %v1052_v61, 0.0 }
 0x2fc   : > { %v1555_v56 = vld [vmem:[#allocation2 + $0x249] sm:$0xff] }
 0x2fd   : > { %v1936_v8 = vpop.f32.mrf.mxu1  ;;  %1304 = vst.msk [vmem:[#allocation2 + $0x258] sm:$0xff] %vm1228_vm3, %v1199_v14  ;;  %v1614_v49 = vpack.c.bf16 %v1555_v56, %v1554_v24  ;;  %v1408_v61 = vld [vmem:[#allocation2 + $0x250] sm:$0xff] }
 0x2fe   : > { %v10176_v22 = vadd.f32 %v2341_v63, %v1936_v8  ;;  %v9368_v14 = vld [vmem:[#allocation7 + $0x38] sm:$0xff] }
 0x2ff   : > { %3402 = vmatpush.bf16.msrb.mxu1 %v9368_v14 }
 0x300   : > { %13626 = vst [vmem:[#allocation55_spill] sm:$0xff] %v10176_v22  ;;  %8630 = vmatmul.msk.bf16.gmra.mxu1 %vm1228_vm3, %v1614_v49  ;;  %v1054_v5 = vpop.f32.mrf.mxu0  ;;  %v9367_v49 = vld [vmem:[#allocation7 + $0x30] sm:$0xff] }
 0x301   : > { %v1055_v17 = vadd.f32 %v10044_v27, %v1054_v5 }
 0x303   : > { %v2343_v47 = vpop.f32.mrf.mxu2  ;;  %v1200_v38 = vmax.f32 %v1055_v17, 0.0  ;;  %8580 = vmatmul.msk.bf16.gmra.mxu0 %vm691_vm2, %v9354_v32  ;;  %3403 = vmatpush.bf16.msrb.mxu1 %v9367_v49 }
 0x304   : > { %v1409_v54 = vld [vmem:[#allocation2 + $0x258] sm:$0xff] }
 0x305   : > { %v1938_v30 = vpop.f32.mrf.mxu1  ;;  %1305 = vst.msk [vmem:[#allocation2 + $0x260] sm:$0xff] %vm1228_vm3, %v1200_v38  ;;  %v1467_v63 = vpack.c.bf16 %v1409_v54, %v1408_v61  ;;  %v1556_v17 = vld [vmem:[#allocation2 + $0x251] sm:$0xff] }
 0x306   : > { %v10183_v34 = vadd.f32 %v2343_v47, %v1938_v30  ;;  %v9355_v38 = vld [vmem:[%s9748_s28 + $0x178] sm:$0xff] }
 0x308   : > { %13627 = vst [vmem:[#allocation56_spill] sm:$0xff] %v10183_v34  ;;  %8687 = vmatmul.msk.bf16.gmra.mxu2 %vm1228_vm3, %v1467_v63  ;;  %v1056_v56 = vpop.f32.mrf.mxu0 }
 0x309   : > { %v1057_v8 = vadd.f32 %v10044_v27, %v1056_v56 }
 0x30b   : > { %v2346_v24 = vpop.f32.mrf.mxu2  ;;  %v1201_v5 = vmax.f32 %v1057_v8, 0.0 }
 0x30c   : > { %v1557_v22 = vld [vmem:[#allocation2 + $0x259] sm:$0xff] }
 0x30d   : > { %v1941_v32 = vpop.f32.mrf.mxu1  ;;  %1306 = vst.msk [vmem:[#allocation2 + $0x268] sm:$0xff] %vm1228_vm3, %v1201_v5  ;;  %v1615_v54 = vpack.c.bf16 %v1557_v22, %v1556_v17  ;;  %v1410_v8 = vld [vmem:[#allocation2 + $0x260] sm:$0xff] }
 0x30e   : > { %v10188_v47 = vadd.f32 %v2346_v24, %v1941_v32 }
 0x310   : > { %13628 = vst [vmem:[#allocation57_spill] sm:$0xff] %v10188_v47  ;;  %8631 = vmatmul.msk.bf16.gmra.mxu1 %vm1228_vm3, %v1615_v54  ;;  %v1059_v30 = vpop.f32.mrf.mxu0 }
 0x311   : > { %v1060_v61 = vadd.f32 %v10044_v27, %v1059_v30 }
 0x313   : > { %v2348_v63 = vpop.f32.mrf.mxu2  ;;  %v1202_v14 = vmax.f32 %v1060_v61, 0.0  ;;  %8581 = vmatmul.msk.bf16.gmra.mxu0 %vm691_vm2, %v9355_v38 }
 0x314   : > { %v1411_v34 = vld [vmem:[#allocation2 + $0x268] sm:$0xff] }
 0x315   : > { %v1943_v56 = vpop.f32.mrf.mxu1  ;;  %1307 = vst.msk [vmem:[#allocation2 + $0x270] sm:$0xff] %vm1228_vm3, %v1202_v14  ;;  %v1468_v24 = vpack.c.bf16 %v1411_v34, %v1410_v8  ;;  %v1558_v30 = vld [vmem:[#allocation2 + $0x261] sm:$0xff] }
 0x316   : > { %v10195_v49 = vadd.f32 %v2348_v63, %v1943_v56  ;;  %v9356_v63 = vld [vmem:[%s9748_s28 + $0x180] sm:$0xff] }
 0x318   : > { %13629 = vst [vmem:[#allocation58_spill] sm:$0xff] %v10195_v49  ;;  %8688 = vmatmul.msk.bf16.gmra.mxu2 %vm1228_vm3, %v1468_v24  ;;  %v1061_v22 = vpop.f32.mrf.mxu0 }
 0x319   : > { %v1062_v5 = vadd.f32 %v10044_v27, %v1061_v22 }
 0x31b   : > { %v2351_v32 = vpop.f32.mrf.mxu2  ;;  %v1203_v17 = vmax.f32 %v1062_v5, 0.0 }
 0x31c   : > { %v1559_v61 = vld [vmem:[#allocation2 + $0x269] sm:$0xff] }
 0x31d   : > { %v1946_v54 = vpop.f32.mrf.mxu1  ;;  %1308 = vst.msk [vmem:[#allocation2 + $0x278] sm:$0xff] %vm1228_vm3, %v1203_v17  ;;  %v1616_v47 = vpack.c.bf16 %v1559_v61, %v1558_v30  ;;  %v1412_v22 = vld [vmem:[#allocation2 + $0x270] sm:$0xff]  ;;  %v3092_v30 = vld [vmem:[#allocation2 + $0x28] sm:$0xff] }
 0x31e   : > { %v10200_v38 = vadd.f32 %v2351_v32, %v1946_v54 }
 0x320   : > { %13630 = vst [vmem:[#allocation59_spill] sm:$0xff] %v10200_v38  ;;  %8632 = vmatmul.msk.bf16.gmra.mxu1 %vm1228_vm3, %v1616_v47  ;;  %v1064_v14 = vpop.f32.mrf.mxu0  ;;  %v3091_v38 = vld [vmem:[#allocation2 + $0x20] sm:$0xff] }
 0x321   : > { %v1065_v34 = vadd.f32 %v10044_v27, %v1064_v14 }
 0x323   : > { %v2353_v56 = vpop.f32.mrf.mxu2  ;;  %v1204_v8 = vmax.f32 %v1065_v34, 0.0  ;;  %8582 = vmatmul.msk.bf16.gmra.mxu0 %vm691_vm2, %v9356_v63 }
 0x324   : > { %v1413_v5 = vld [vmem:[#allocation2 + $0x278] sm:$0xff] }
 0x325   : > { %v1948_v24 = vpop.f32.mrf.mxu1  ;;  %1309 = vst.msk [vmem:[#allocation2 + $0x280] sm:$0xff] %vm1228_vm3, %v1204_v8  ;;  %v1469_v32 = vpack.c.bf16 %v1413_v5, %v1412_v22  ;;  %v1560_v34 = vld [vmem:[#allocation2 + $0x271] sm:$0xff]  ;;  %v10214_v8 = vpack.c.bf16 %v3092_v30, %v3091_v38 }
 0x326   : > { %v10207_v49 = vadd.f32 %v2353_v56, %v1948_v24  ;;  %v9357_v24 = vld [vmem:[%s9748_s28 + $0x188] sm:$0xff] }
 0x328   : > { %13631 = vst [vmem:[#allocation60_spill] sm:$0xff] %v10207_v49  ;;  %8689 = vmatmul.msk.bf16.gmra.mxu2 %vm1228_vm3, %v1469_v32  ;;  %v1066_v47 = vpop.f32.mrf.mxu0  ;;  %v3093_v49 = vld [vmem:[#allocation2 + $0x30] sm:$0xff] }
 0x329   : > { %v1067_v17 = vadd.f32 %v10044_v27, %v1066_v47 }
 0x32b   : > { %v2356_v54 = vpop.f32.mrf.mxu2  ;;  %v1205_v61 = vmax.f32 %v1067_v17, 0.0 }
 0x32c   : > { %v1561_v63 = vld [vmem:[#allocation2 + $0x279] sm:$0xff] }
 0x32d   : > { %v1951_v14 = vpop.f32.mrf.mxu1  ;;  %1310 = vst.msk [vmem:[#allocation2 + $0x288] sm:$0xff] %vm1228_vm3, %v1205_v61  ;;  %v1617_v56 = vpack.c.bf16 %v1561_v63, %v1560_v34  ;;  %v1414_v61 = vld [vmem:[#allocation2 + $0x280] sm:$0xff] }
 0x32e   : > { %v10212_v12 = vadd.f32 %v2356_v54, %v1951_v14 }
 0x32f   : > { %8633 = vmatmul.msk.bf16.vlgmr.msrb.gmra.mxu3 %vm1228_vm3, %v1617_v56  ;;  %v3094_v56 = vld [vmem:[#allocation2 + $0x38] sm:$0xff] }
 0x330   : > { %13632 = vst [vmem:[#allocation61_spill] sm:$0xff] %v10212_v12  ;;  %8762 = vmatmul.msk.bf16.vlgmr.msrb.gmra.mxu1 %vm1228_vm3, %v10214_v8  ;;  %v1069_v22 = vpop.f32.mrf.mxu0 }
 0x331   : > { %v1070_v5 = vadd.f32 %v10044_v27, %v1069_v22 }
 0x333   : > { %v2358_v32 = vpop.f32.mrf.mxu2  ;;  %v1206_v47 = vmax.f32 %v1070_v5, 0.0  ;;  %8583 = vmatmul.msk.bf16.gmra.mxu0 %vm691_vm2, %v9357_v24 }
 0x334   : > { %v1415_v54 = vld [vmem:[#allocation2 + $0x288] sm:$0xff] }
 0x335   : > { %v1953_v17 = vpop.f32.mrf.mxu1  ;;  %1311 = vst.msk [vmem:[#allocation2 + $0x290] sm:$0xff] %vm1228_vm3, %v1206_v47  ;;  %v1470_v30 = vpack.c.bf16 %v1415_v54, %v1414_v61  ;;  %v1562_v12 = vld [vmem:[#allocation2 + $0x281] sm:$0xff]  ;;  %v10230_v47 = vpack.c.bf16 %v3094_v56, %v3093_v49 }
 0x336   : > { %v10223_v38 = vadd.f32 %v2358_v32, %v1953_v17  ;;  %v9358_v17 = vld [vmem:[%s9748_s28 + $0x190] sm:$0xff]  ;;  %s13508_s28 = scalar_lea.vmem %s13572_s6, %s9439_s24 }
 0x338   : > { %13633 = vst [vmem:[#allocation62_spill] sm:$0xff] %v10223_v38  ;;  %8690 = vmatmul.msk.bf16.gmra.mxu2 %vm1228_vm3, %v1470_v30  ;;  %v1071_v14 = vpop.f32.mrf.mxu0 }
 0x339   : > { %v1072_v34 = vadd.f32 %v10044_v27, %v1071_v14 }
 0x33b   : > { %v2361_v63 = vpop.f32.mrf.mxu2  ;;  %v1207_v22 = vmax.f32 %v1072_v34, 0.0 }
 0x33c   : > { %v1563_v24 = vld [vmem:[#allocation2 + $0x289] sm:$0xff] }
 0x33d   : > { %v1956_v5 = vpop.f32.mrf.mxu1  ;;  %1312 = vst.msk [vmem:[#allocation2 + $0x298] sm:$0xff] %vm1228_vm3, %v1207_v22  ;;  %v1618_v32 = vpack.c.bf16 %v1563_v24, %v1562_v12  ;;  %v1416_v22 = vld [vmem:[#allocation2 + $0x290] sm:$0xff] }
 0x33e   : > { %v10228_v44 = vadd.f32 %v2361_v63, %v1956_v5 }
 0x33f   : > { %8634 = vmatmul.msk.bf16.gmra.mxu3 %vm1228_vm3, %v1618_v32  ;;  %v3096_v32 = vld [vmem:[#allocation2 + $0x48] sm:$0xff] }
 0x340   : > { %13634 = vst [vmem:[#allocation63_spill] sm:$0xff] %v10228_v44  ;;  %8763 = vmatmul.msk.bf16.gmra.mxu1 %vm1228_vm3, %v10230_v47  ;;  %v1074_v61 = vpop.f32.mrf.mxu0 }
 0x341   : > { %v1075_v54 = vadd.f32 %v10044_v27, %v1074_v61 }
 0x343   : > { %v2363_v30 = vpop.f32.mrf.mxu2  ;;  %v1208_v14 = vmax.f32 %v1075_v54, 0.0  ;;  %8584 = vmatmul.msk.bf16.gmra.mxu0 %vm691_vm2, %v9358_v17  ;;  %v3095_v17 = vld [vmem:[#allocation2 + $0x40] sm:$0xff] }
 0x344   : > { %v1417_v63 = vld [vmem:[#allocation2 + $0x298] sm:$0xff] }
 0x345   : > { %v1958_v34 = vpop.f32.mrf.mxu1  ;;  %1313 = vst.msk [vmem:[#allocation2 + $0x2a0] sm:$0xff] %vm1228_vm3, %v1208_v14  ;;  %v1471_v49 = vpack.c.bf16 %v1417_v63, %v1416_v22  ;;  %v1564_v54 = vld [vmem:[#allocation2 + $0x291] sm:$0xff]  ;;  %v1334_v63 = vld [vmem:[#allocation2] sm:$0xff] }
 0x346   : > { %v10239_v12 = vadd.f32 %v2363_v30, %v1958_v34  ;;  %v10246_v30 = vpack.c.bf16 %v3096_v32, %v3095_v17  ;;  %v1335_v34 = vld [vmem:[#allocation2 + $0x8] sm:$0xff] }
 0x348   : > { %13635 = vst [vmem:[#allocation64_spill] sm:$0xff] %v10239_v12  ;;  %8691 = vmatmul.msk.bf16.gmra.mxu2 %vm1228_vm3, %v1471_v49  ;;  %v1076_v56 = vpop.f32.mrf.mxu0 }
 0x349   : > { %v1077_v5 = vadd.f32 %v10044_v27, %v1076_v56  ;;  %v1430_v56 = vpack.c.bf16 %v1335_v34, %v1334_v63 }
 0x34b   : > { %v2366_v24 = vpop.f32.mrf.mxu2  ;;  %v1209_v61 = vmax.f32 %v1077_v5, 0.0 }
 0x34c   : > { %v1565_v38 = vld [vmem:[#allocation2 + $0x299] sm:$0xff] }
 0x34d   : > { %v1961_v44 = vpop.f32.mrf.mxu1  ;;  %1314 = vst.msk [vmem:[#allocation2 + $0x2a8] sm:$0xff] %vm1228_vm3, %v1209_v61  ;;  %v1619_v14 = vpack.c.bf16 %v1565_v38, %v1564_v54 }
 0x34e   : > { %v10244_v9 = vadd.f32 %v2366_v24, %v1961_v44  ;;  %v1418_v24 = vld [vmem:[#allocation2 + $0x2a0] sm:$0xff] }
 0x34f   : > { %8635 = vmatmul.msk.bf16.gmra.mxu3 %vm1228_vm3, %v1619_v14 }
 0x350   : > { %13636 = vst [vmem:[#allocation65_spill] sm:$0xff] %v10244_v9  ;;  %8764 = vmatmul.msk.bf16.gmra.mxu1 %vm1228_vm3, %v10246_v30  ;;  %v1079_v22 = vpop.f32.mrf.mxu0 }
 0x351   : > { %v1080_v49 = vadd.f32 %v10044_v27, %v1079_v22  ;;  %v3098_v22 = vld [vmem:[#allocation2 + $0x58] sm:$0xff] }
 0x353   : > { %v2368_v5 = vpop.f32.mrf.mxu2  ;;  %v1210_v12 = vmax.f32 %v1080_v49, 0.0  ;;  %8650 = vmatmul.msk.bf16.vlgmr.msrb.gmra.mxu0 %vm1228_vm3, %v1430_v56  ;;  %v3097_v56 = vld [vmem:[#allocation2 + $0x50] sm:$0xff] }
 0x354   : > { %v1419_v38 = vld [vmem:[#allocation2 + $0x2a8] sm:$0xff] }
 0x355   : > { %v1963_v44 = vpop.f32.mrf.mxu1  ;;  %1315 = vst.msk [vmem:[#allocation2 + $0x2b0] sm:$0xff] %vm1228_vm3, %v1210_v12  ;;  %v1472_v61 = vpack.c.bf16 %v1419_v38, %v1418_v24  ;;  %v1566_v49 = vld [vmem:[#allocation2 + $0x2a1] sm:$0xff]  ;;  %v1337_v24 = vld [vmem:[#allocation2 + $0x18] sm:$0xff] }
 0x356   : > { %v10254_v32 = vadd.f32 %v2368_v5, %v1963_v44  ;;  %v10261_v5 = vpack.c.bf16 %v3098_v22, %v3097_v56  ;;  %v9370_v44 = vld [vmem:[#allocation7 + $0x48] sm:$0xff] }
 0x357   : > { %4052 = vmatpush.bf16.msrb.mxu2 %v9370_v44 }
 0x358   : > { %13637 = vst [vmem:[#allocation66_spill] sm:$0xff] %v10254_v32  ;;  %8692 = vmatmul.msk.bf16.gmra.mxu2 %vm1228_vm3, %v1472_v61  ;;  %v1081_v54 = vpop.f32.mrf.mxu0  ;;  %v1336_v61 = vld [vmem:[#allocation2 + $0x10] sm:$0xff] }
 0x359   : > { %v1082_v17 = vadd.f32 %v10044_v27, %v1081_v54 }
 0x35b   : > { %v2371_v14 = vpop.f32.mrf.mxu2  ;;  %v1211_v34 = vmax.f32 %v1082_v17, 0.0  ;;  %v1431_v17 = vpack.c.bf16 %v1337_v24, %v1336_v61 }
 0x35c   : > { %v1567_v9 = vld [vmem:[#allocation2 + $0x2a9] sm:$0xff] }
 0x35d   : > { %v1966_v63 = vpop.f32.mrf.mxu1  ;;  %1316 = vst.msk [vmem:[#allocation2 + $0x2b8] sm:$0xff] %vm1228_vm3, %v1211_v34  ;;  %v1620_v12 = vpack.c.bf16 %v1567_v9, %v1566_v49 }
 0x35e   : > { %v10259_v45 = vadd.f32 %v2371_v14, %v1966_v63  ;;  %v1420_v14 = vld [vmem:[#allocation2 + $0x2b0] sm:$0xff] }
 0x35f   : > { %8636 = vmatmul.msk.bf16.gmra.mxu3 %vm1228_vm3, %v1620_v12 }
 0x360   : > { %13638 = vst [vmem:[#allocation67_spill] sm:$0xff] %v10259_v45  ;;  %8765 = vmatmul.msk.bf16.gmra.mxu1 %vm1228_vm3, %v10261_v5  ;;  %v1084_v38 = vpop.f32.mrf.mxu0 }
 0x361   : > { %v1085_v54 = vadd.f32 %v10044_v27, %v1084_v38  ;;  %v3100_v38 = vld [vmem:[#allocation2 + $0x68] sm:$0xff] }
 0x363   : > { %v2373_v32 = vpop.f32.mrf.mxu2  ;;  %v1212_v34 = vmax.f32 %v1085_v54, 0.0  ;;  %8651 = vmatmul.msk.bf16.gmra.mxu0 %vm1228_vm3, %v1431_v17  ;;  %v3099_v17 = vld [vmem:[#allocation2 + $0x60] sm:$0xff] }
 0x364   : > { %v1421_v22 = vld [vmem:[#allocation2 + $0x2b8] sm:$0xff] }
 0x365   : > { %v1968_v9 = vpop.f32.mrf.mxu1  ;;  %1317 = vst.msk [vmem:[#allocation2 + $0x2c0] sm:$0xff] %vm1228_vm3, %v1212_v34  ;;  %v1473_v49 = vpack.c.bf16 %v1421_v22, %v1420_v14  ;;  %v1568_v54 = vld [vmem:[#allocation2 + $0x2b1] sm:$0xff] }
 0x366   : > { %v10269_v63 = vadd.f32 %v2373_v32, %v1968_v9  ;;  %v10276_v32 = vpack.c.bf16 %v3100_v38, %v3099_v17  ;;  %v3102_v17 = vld [vmem:[#allocation2 + $0x78] sm:$0xff] }
 0x368   : > { %13639 = vst [vmem:[#allocation68_spill] sm:$0xff] %v10269_v63  ;;  %8693 = vmatmul.msk.bf16.gmra.mxu2 %vm1228_vm3, %v1473_v49  ;;  %v1086_v56 = vpop.f32.mrf.mxu0  ;;  %v3101_v63 = vld [vmem:[#allocation2 + $0x70] sm:$0xff] }
 0x369   : > { %v1087_v12 = vadd.f32 %v10044_v27, %v1086_v56 }
 0x36b   : > { %v2376_v44 = vpop.f32.mrf.mxu2  ;;  %v1213_v24 = vmax.f32 %v1087_v12, 0.0 }
 0x36c   : > { %v1569_v45 = vld [vmem:[#allocation2 + $0x2b9] sm:$0xff] }
 0x36d   : > { %v1971_v61 = vpop.f32.mrf.mxu1  ;;  %1318 = vst.msk [vmem:[#allocation2 + $0x2c8] sm:$0xff] %vm1228_vm3, %v1213_v24  ;;  %v1621_v34 = vpack.c.bf16 %v1569_v45, %v1568_v54  ;;  %v1422_v12 = vld [vmem:[#allocation2 + $0x2c0] sm:$0xff] }
 0x36e   : > { %v10274_v13 = vadd.f32 %v2376_v44, %v1971_v61 }
 0x36f   : > { %8637 = vmatmul.msk.bf16.gmra.mxu3 %vm1228_vm3, %v1621_v34 }
 0x370   : > { %13640 = vst [vmem:[#allocation69_spill] sm:$0xff] %v10274_v13  ;;  %8766 = vmatmul.msk.bf16.gmra.mxu1 %vm1228_vm3, %v10276_v32  ;;  %v1089_v9 = vpop.f32.mrf.mxu0 }
 0x371   : > { %v1090_v14 = vadd.f32 %v10044_v27, %v1089_v9  ;;  %v1119_v34 = vpop.f32.mrf.mxu3 }
 0x373   : > { %v2378_v22 = vpop.f32.mrf.mxu2  ;;  %v1214_v49 = vmax.f32 %v1090_v14, 0.0  ;;  %8652 = vmatmul.msk.bf16.gmra.mxu0 %vm1228_vm3, %v10214_v8 }
 0x374   : > { %v1423_v44 = vld [vmem:[#allocation2 + $0x2c8] sm:$0xff] }
 0x375   : > { %v1973_v56 = vpop.f32.mrf.mxu1  ;;  %1319 = vst.msk [vmem:[#allocation2 + $0x2d0] sm:$0xff] %vm1228_vm3, %v1214_v49  ;;  %v1474_v38 = vpack.c.bf16 %v1423_v44, %v1422_v12  ;;  %v1570_v13 = vld [vmem:[#allocation2 + $0x2c1] sm:$0xff]  ;;  %v10292_v49 = vpack.c.bf16 %v3102_v17, %v3101_v63 }
 0x376   : > { %v10285_v45 = vadd.f32 %v2378_v22, %v1973_v56  ;;  %v1120_v56 = vadd.f32 %v10044_v27, %v1119_v34 }
 0x378   : > { %13641 = vst [vmem:[#allocation70_spill] sm:$0xff] %v10285_v45  ;;  %8694 = vmatmul.msk.bf16.gmra.mxu2 %vm1228_vm3, %v1474_v38  ;;  %v1091_v24 = vpop.f32.mrf.mxu0  ;;  %v1226_v12 = vmax.f32 %v1120_v56, 0.0 }
 0x379   : > { %v1092_v61 = vadd.f32 %v10044_v27, %v1091_v24 }
 0x37a   : > { %1331 = vst.msk [vmem:[#allocation2 + $0x330] sm:$0xff] %vm1228_vm3, %v1226_v12  ;;  %v9647_v12 = vmov 0.0  }
 0x37b   : > { %v2381_v54 = vpop.f32.mrf.mxu2  ;;  %v1215_v9 = vmax.f32 %v1092_v61, 0.0  ;;  %v1121_v61 = vpop.f32.mrf.mxu3  ;;  %1333 = vst.msk [vmem:[#allocation2 + $0x340] sm:$0xff] %vm1228_vm3, %v9647_v12 }
 0x37c   : > { %v1571_v8 = vld [vmem:[#allocation2 + $0x2c9] sm:$0xff] }
 0x37d   : > { %v1976_v14 = vpop.f32.mrf.mxu1  ;;  %1320 = vst.msk [vmem:[#allocation2 + $0x2d8] sm:$0xff] %vm1228_vm3, %v1215_v9  ;;  %v1622_v22 = vpack.c.bf16 %v1571_v8, %v1570_v13  ;;  %v1122_v13 = vadd.f32 %v10044_v27, %v1121_v61  ;;  %v1424_v17 = vld [vmem:[#allocation2 + $0x2d0] sm:$0xff] }
 0x37e   : > { %v10290_v50 = vadd.f32 %v2381_v54, %v1976_v14 }
 0x37f   : > { %8638 = vmatmul.msk.bf16.gmra.mxu3 %vm1228_vm3, %v1622_v22  ;;  %v1227_v8 = vmax.f32 %v1122_v13, 0.0 }
 0x380   : > { %13642 = vst [vmem:[#allocation71_spill] sm:$0xff] %v10290_v50  ;;  %8767 = vmatmul.msk.bf16.gmra.mxu1 %vm1228_vm3, %v10292_v49  ;;  %v1094_v44 = vpop.f32.mrf.mxu0 }
 0x381   : > { %v1095_v38 = vadd.f32 %v10044_v27, %v1094_v44  ;;  %1332 = vst.msk [vmem:[#allocation2 + $0x338] sm:$0xff] %vm1228_vm3, %v1227_v8  ;;  %v3104_v44 = vld [vmem:[#allocation2 + $0x88] sm:$0xff] }
 0x383   : > { %v2383_v24 = vpop.f32.mrf.mxu2  ;;  %v1216_v54 = vmax.f32 %v1095_v38, 0.0  ;;  %8653 = vmatmul.msk.bf16.gmra.mxu0 %vm1228_vm3, %v10230_v47 }
 0x384   : > { %v1425_v34 = vld [vmem:[#allocation2 + $0x2d8] sm:$0xff] }
 0x385   : > { %v1978_v63 = vpop.f32.mrf.mxu1  ;;  %1321 = vst.msk [vmem:[#allocation2 + $0x2e0] sm:$0xff] %vm1228_vm3, %v1216_v54  ;;  %v1475_v14 = vpack.c.bf16 %v1425_v34, %v1424_v17  ;;  %v1572_v50 = vld [vmem:[#allocation2 + $0x2d1] sm:$0xff]  ;;  %v10318_v34 = vld [vmem:[#allocation5] ss:$0 sm:$0xff] }
 0x386   : > { %v10304_v9 = vadd.f32 %v2383_v24, %v1978_v63  ;;  %v3103_v24 = vld [vmem:[#allocation2 + $0x80] sm:$0xff] }
 0x387   : > { %v10313_v17 = vpack.c.bf16 %v3104_v44, %v3103_v24 }
 0x388   : > { %13643 = vst [vmem:[#allocation72_spill] sm:$0xff] %v10304_v9  ;;  %8695 = vmatmul.msk.bf16.gmra.mxu2 %vm1228_vm3, %v1475_v14  ;;  %v1096_v22 = vpop.f32.mrf.mxu0 }
 0x389   : > { %v1097_v56 = vadd.f32 %v10044_v27, %v1096_v22  ;;  %v9369_v22 = vld [vmem:[#allocation7 + $0x40] sm:$0xff] }
 0x38a   : > { %4053 = vmatpush.bf16.msrb.mxu2 %v9369_v22  ;;  %v3105_v22 = vld [vmem:[#allocation2 + $0x90] sm:$0xff] }
 0x38b   : > { %v2386_v47 = vpop.f32.mrf.mxu2  ;;  %v1217_v38 = vmax.f32 %v1097_v56, 0.0 }
 0x38c   : > { %v1573_v54 = vld [vmem:[#allocation2 + $0x2d9] sm:$0xff] }
 0x38d   : > { %v1981_v61 = vpop.f32.mrf.mxu1  ;;  %1322 = vst.msk [vmem:[#allocation2 + $0x2e8] sm:$0xff] %vm1228_vm3, %v1217_v38  ;;  %v1623_v63 = vpack.c.bf16 %v1573_v54, %v1572_v50  ;;  %v1426_v50 = vld [vmem:[#allocation2 + $0x2e0] sm:$0xff] }
 0x38e   : > { %v10311_v13 = vadd.f32 %v2386_v47, %v1981_v61  ;;  %v9366_v61 = vld [vmem:[#allocation7 + $0x28] sm:$0xff] }
 0x38f   : > { %8639 = vmatmul.msk.bf16.gmra.mxu3 %vm1228_vm3, %v1623_v63 }
 0x390   : > { %13644 = vst [vmem:[#allocation73_spill] sm:$0xff] %v10311_v13  ;;  %8768 = vmatmul.msk.bf16.gmra.mxu1 %vm1228_vm3, %v10313_v17  ;;  %v1099_v27 = vpop.f32.mrf.mxu0  ;;  %2752 = vmatpush.bf16.msra.mxu3 %v9366_v61 }
 0x391   : > { %v1100_v14 = vadd.f32 %v10318_v34, %v1099_v27  ;;  %v3106_v27 = vld [vmem:[#allocation2 + $0x98] sm:$0xff] }
 0x393   : > { %v2388_v8 = vpop.f32.mrf.mxu2  ;;  %v1218_v56 = vmax.f32 %v1100_v14, 0.0  ;;  %8654 = vmatmul.msk.bf16.gmra.mxu0 %vm1228_vm3, %v10246_v30  ;;  %v9365_v14 = vld [vmem:[#allocation7 + $0x20] sm:$0xff] }
 0x394   : > { %v1427_v47 = vld [vmem:[#allocation2 + $0x2e8] sm:$0xff]  ;;  %2753 = vmatpush.bf16.msra.mxu3 %v9365_v14 }
 0x395   : > { %v1983_v12 = vpop.f32.mrf.mxu1  ;;  %1323 = vst.msk [vmem:[#allocation2 + $0x2f0] sm:$0xff] %vm1228_vm3, %v1218_v56  ;;  %v1476_v38 = vpack.c.bf16 %v1427_v47, %v1426_v50  ;;  %v1574_v45 = vld [vmem:[#allocation2 + $0x2e1] sm:$0xff] }
 0x396   : > { %v10324_v44 = vadd.f32 %v2388_v8, %v1983_v12  ;;  %v10331_v12 = vpack.c.bf16 %v3106_v27, %v3105_v22  ;;  %v3108_v14 = vld [vmem:[#allocation2 + $0xa8] sm:$0xff] }
 0x398   : > { %13645 = vst [vmem:[#allocation74_spill] sm:$0xff] %v10324_v44  ;;  %8696 = vmatmul.msk.bf16.gmra.mxu2 %vm1228_vm3, %v1476_v38  ;;  %v1101_v54 = vpop.f32.mrf.mxu0 }
 0x399   : > { %v1102_v24 = vadd.f32 %v10318_v34, %v1101_v54 }
 0x39b   : > { %v2391_v63 = vpop.f32.mrf.mxu2  ;;  %v1219_v13 = vmax.f32 %v1102_v24, 0.0 }
 0x39c   : > { %v1575_v28 = vld [vmem:[#allocation2 + $0x2e9] sm:$0xff] }
 0x39d   : > { %v1986_v9 = vpop.f32.mrf.mxu1  ;;  %1324 = vst.msk [vmem:[#allocation2 + $0x2f8] sm:$0xff] %vm1228_vm3, %v1219_v13  ;;  %v1624_v56 = vpack.c.bf16 %v1575_v28, %v1574_v45  ;;  %v1428_v13 = vld [vmem:[#allocation2 + $0x2f0] sm:$0xff] }
 0x39e   : > { %v10329_v8 = vadd.f32 %v2391_v63, %v1986_v9 }
 0x39f   : > { %8640 = vmatmul.msk.bf16.gmra.mxu3 %vm1228_vm3, %v1624_v56 }
 0x3a0   : > { %13646 = vst [vmem:[#allocation75_spill] sm:$0xff] %v10329_v8  ;;  %8769 = vmatmul.msk.bf16.gmra.mxu1 %vm1228_vm3, %v10331_v12  ;;  %v1104_v50 = vpop.f32.mrf.mxu0  ;;  %v3107_v8 = vld [vmem:[#allocation2 + $0xa0] sm:$0xff] }
 0x3a1   : > { %v1105_v47 = vadd.f32 %v10318_v34, %v1104_v50 }
 0x3a3   : > { %v2393_v38 = vpop.f32.mrf.mxu2  ;;  %v1220_v61 = vmax.f32 %v1105_v47, 0.0  ;;  %8655 = vmatmul.msk.bf16.gmra.mxu0 %vm1228_vm3, %v10261_v5 }
 0x3a4   : > { %v1429_v9 = vld [vmem:[#allocation2 + $0x2f8] sm:$0xff] }
 0x3a5   : > { %v1988_v54 = vpop.f32.mrf.mxu1  ;;  %1325 = vst.msk [vmem:[#allocation2 + $0x300] sm:$0xff] %vm1228_vm3, %v1220_v61  ;;  %v1477_v45 = vpack.c.bf16 %v1429_v9, %v1428_v13  ;;  %v1576_v50 = vld [vmem:[#allocation2 + $0x2f1] sm:$0xff]  ;;  %v10347_v61 = vpack.c.bf16 %v3108_v14, %v3107_v8  ;;  %v3741_v8 = vld [vmem:[#allocation2 + $0x21] sm:$0xff] }
 0x3a6   : > { %v10340_v28 = vadd.f32 %v2393_v38, %v1988_v54 }
 0x3a8   : > { %13647 = vst [vmem:[#allocation76_spill] sm:$0xff] %v10340_v28  ;;  %8697 = vmatmul.msk.bf16.gmra.mxu2 %vm1228_vm3, %v1477_v45  ;;  %v1106_v24 = vpop.f32.mrf.mxu0  ;;  %v3742_v45 = vld [vmem:[#allocation2 + $0x29] sm:$0xff] }
 0x3a9   : > { %v1107_v63 = vadd.f32 %v10318_v34, %v1106_v24  ;;  %v2442_v28 = vld [vmem:[#allocation2 + $0xa] sm:$0xff] }
 0x3ab   : > { %v2396_v27 = vpop.f32.mrf.mxu2  ;;  %v1221_v22 = vmax.f32 %v1107_v63, 0.0 }
 0x3ac   : > { %v1577_v47 = vld [vmem:[#allocation2 + $0x2f9] sm:$0xff] }
 0x3ad   : > { %v10344_v56 = vpop.f32.mrf.mxu1  ;;  %1326 = vst.msk [vmem:[#allocation2 + $0x308] sm:$0xff] %vm1228_vm3, %v1221_v22  ;;  %v1625_v44 = vpack.c.bf16 %v1577_v47, %v1576_v50 }
 0x3af   : > { %8641 = vmatmul.msk.bf16.gmra.mxu3 %vm1228_vm3, %v1625_v44  ;;  %v3837_v44 = vpack.c.bf16 %v3742_v45, %v3741_v8  ;;  %v2537_v45 = vpack.c.bf16 %v2442_v28, %v2441_v40  ;;  %v9373_v8 = vld [vmem:[#allocation7 + $0x60] sm:$0xff] }
 0x3b0   : > { %8770 = vmatmul.msk.bf16.gmra.mxu1 %vm1228_vm3, %v10347_v61  ;;  %v1109_v38 = vpop.f32.mrf.mxu0  ;;  %v3743_v40 = vld [vmem:[#allocation2 + $0x31] sm:$0xff] }
 0x3b1   : > { %v1110_v54 = vadd.f32 %v10318_v34, %v1109_v38 }
 0x3b2   : > { %v1991_v13 = vpop.f32.mrf.mxu3 }
 0x3b3   : > { %v2398_v9 = vpop.f32.mrf.mxu2  ;;  %v1222_v24 = vmax.f32 %v1110_v54, 0.0  ;;  %v10353_v63 = vadd.f32 %v2396_v27, %v1991_v13  ;;  %8656 = vmatmul.msk.bf16.gmra.mxu0 %vm1228_vm3, %v10276_v32  ;;  %v3110_v54 = vld [vmem:[#allocation2 + $0xb8] sm:$0xff] }
 0x3b4   : > { %v9374_v27 = vld [vmem:[#allocation7 + $0x68] sm:$0xff] }
 0x3b5   : > { %13648 = vst [vmem:[#allocation77_spill] sm:$0xff] %v10353_v63  ;;  %v10357_v22 = vpop.f32.mrf.mxu1  ;;  %5352 = vmatpush.bf16.msra.mxu0 %v9374_v27 }
 0x3b6   : > { %1327 = vst.msk [vmem:[#allocation2 + $0x310] sm:$0xff] %vm1228_vm3, %v1222_v24  ;;  %v10367_v24 = vpack.c.bf16 %v3110_v54, %v3109_v19 }
 0x3b8   : > { %8818 = vmatmul.msk.bf16.vlgmr.msrb.gmra.mxu2 %vm1228_vm3, %v3837_v44  ;;  %v1111_v14 = vpop.f32.mrf.mxu0 }
 0x3b9   : > { %v1112_v50 = vadd.f32 %v10318_v34, %v1111_v14  ;;  %5353 = vmatpush.bf16.msra.mxu0 %v9373_v8 }
 0x3ba   : > { %v1993_v47 = vpop.f32.mrf.mxu3 }
 0x3bb   : > { %v2401_v38 = vpop.f32.mrf.mxu2  ;;  %v1223_v13 = vmax.f32 %v1112_v50, 0.0  ;;  %v10362_v63 = vadd.f32 %v2398_v9, %v1993_v47  ;;  %v3744_v47 = vld [vmem:[#allocation2 + $0x39] sm:$0xff] }
 0x3bc   : > { %v3838_v28 = vpack.c.bf16 %v3744_v47, %v3743_v40 }
 0x3bd   : > { %13649 = vst [vmem:[#allocation78_spill] sm:$0xff] %v10362_v63  ;;  %v10364_v0 = vpop.f32.mrf.mxu1 }
 0x3be   : > { %1328 = vst.msk [vmem:[#allocation2 + $0x318] sm:$0xff] %vm1228_vm3, %v1223_v13 }
 0x3bf   : > { %8706 = vmatmul.msk.bf16.vlgmr.msra.gmra.mxu3 %vm1228_vm3, %v2537_v45 }
 0x3c0   : > { %8771 = vmatmul.msk.bf16.gmra.mxu1 %vm1228_vm3, %v10367_v24  ;;  %v1114_v44 = vpop.f32.mrf.mxu0 }
 0x3c1   : > { %v1115_v9 = vadd.f32 %v10318_v34, %v1114_v44  ;;  %v2444_v44 = vld [vmem:[#allocation2 + $0x1a] sm:$0xff] }
 0x3c2   : > { %v1996_v14 = vpop.f32.mrf.mxu3 }
 0x3c3   : > { %v2403_v50 = vpop.f32.mrf.mxu2  ;;  %v1224_v63 = vmax.f32 %v1115_v9, 0.0  ;;  %v10373_v27 = vadd.f32 %v2401_v38, %v1996_v14  ;;  %8657 = vmatmul.msk.bf16.gmra.mxu0 %vm1228_vm3, %v10292_v49  ;;  %v3112_v9 = vld [vmem:[#allocation2 + $0xc8] sm:$0xff] }
 0x3c4   : > { %v10387_v47 = vpack.c.bf16 %v3112_v9, %v3111_v39 }
 0x3c5   : > { %13650 = vst [vmem:[#allocation79_spill] sm:$0xff] %v10373_v27  ;;  %v10377_v19 = vpop.f32.mrf.mxu1 }
 0x3c6   : > { %1329 = vst.msk [vmem:[#allocation2 + $0x320] sm:$0xff] %vm1228_vm3, %v1224_v63  ;;  %v2538_v63 = vpack.c.bf16 %v2444_v44, %v2443_v60  ;;  %v3745_v60 = vld [vmem:[#allocation2 + $0x41] sm:$0xff] }
 0x3c8   : > { %8819 = vmatmul.msk.bf16.gmra.mxu2 %vm1228_vm3, %v3838_v28  ;;  %v1116_v54 = vpop.f32.mrf.mxu0 }
 0x3c9   : > { %v1117_v13 = vadd.f32 %v10318_v34, %v1116_v54 }
 0x3ca   : > { %v1998_v45 = vpop.f32.mrf.mxu3 }
 0x3cb   : > { %v2406_v8 = vpop.f32.mrf.mxu2  ;;  %v1225_v38 = vmax.f32 %v1117_v13, 0.0  ;;  %v10382_v14 = vadd.f32 %v2403_v50, %v1998_v45  ;;  %v3746_v50 = vld [vmem:[#allocation2 + $0x49] sm:$0xff] }
 0x3cc   : > { %v3839_v39 = vpack.c.bf16 %v3746_v50, %v3745_v60 }
 0x3cd   : > { %13651 = vst [vmem:[#allocation80_spill] sm:$0xff] %v10382_v14  ;;  %v10384_v27 = vpop.f32.mrf.mxu1 }
 0x3ce   : > { %1330 = vst.msk [vmem:[#allocation2 + $0x328] sm:$0xff] %vm1228_vm3, %v1225_v38  ;;  %v2446_v38 = vld [vmem:[#allocation2 + $0x2a] sm:$0xff] }
 0x3cf   : > { %8707 = vmatmul.msk.bf16.gmra.mxu3 %vm1228_vm3, %v2538_v63  ;;  %v3114_v63 = vld [vmem:[#allocation2 + $0xd8] sm:$0xff] }
 0x3d0   : > { %8772 = vmatmul.msk.bf16.gmra.mxu1 %vm1228_vm3, %v10387_v47  ;;  %v10392_v34 = vpop.f32.mrf.mxu0 }
 0x3d2   : > { %v2001_v40 = vpop.f32.mrf.mxu3 }
 0x3d3   : > { %v2408_v28 = vpop.f32.mrf.mxu2  ;;  %v10394_v54 = vadd.f32 %v2406_v8, %v2001_v40  ;;  %8658 = vmatmul.msk.bf16.gmra.mxu0 %vm1228_vm3, %v10313_v17  ;;  %v2445_v8 = vld [vmem:[#allocation2 + $0x22] sm:$0xff]  ;;  %v3113_v40 = vld [vmem:[#allocation2 + $0xd0] sm:$0xff] }
 0x3d4   : > { %v10407_v62 = vpack.c.bf16 %v3114_v63, %v3113_v40  ;;  %v2448_v40 = vld [vmem:[#allocation2 + $0x3a] sm:$0xff] }
 0x3d5   : > { %13652 = vst [vmem:[#allocation81_spill] sm:$0xff] %v10394_v54  ;;  %v10398_v13 = vpop.f32.mrf.mxu1  ;;  %v2539_v54 = vpack.c.bf16 %v2446_v38, %v2445_v8 }
 0x3d8   : > { %8820 = vmatmul.msk.bf16.gmra.mxu2 %vm1228_vm3, %v3839_v39  ;;  %v10401_v45 = vpop.f32.mrf.mxu0 }
 0x3da   : > { %v2003_v44 = vpop.f32.mrf.mxu3 }
 0x3db   : > { %v2411_v9 = vpop.f32.mrf.mxu2  ;;  %v10403_v14 = vadd.f32 %v2408_v28, %v2003_v44  ;;  %v3747_v44 = vld [vmem:[#allocation2 + $0x51] sm:$0xff] }
 0x3dc   : > { %v3840_v38 = vpack.c.bf16 %v3748_v42, %v3747_v44 }
 0x3dd   : > { %13653 = vst [vmem:[#allocation82_spill] sm:$0xff] %v10403_v14  ;;  %v10405_v15 = vpop.f32.mrf.mxu1  ;;  %v3116_v14 = vld [vmem:[#allocation2 + $0xe8] sm:$0xff] }
 0x3df   : > { %8708 = vmatmul.msk.bf16.gmra.mxu3 %vm1228_vm3, %v2539_v54 }
 0x3e0   : > { %8773 = vmatmul.msk.bf16.gmra.mxu1 %vm1228_vm3, %v10407_v62  ;;  %v10412_v50 = vpop.f32.mrf.mxu0 }
 0x3e2   : > { %v2006_v60 = vpop.f32.mrf.mxu3 }
 0x3e3   : > { %v2413_v39 = vpop.f32.mrf.mxu2  ;;  %v10414_v25 = vadd.f32 %v2411_v9, %v2006_v60  ;;  %8930 = vmatmul.msk.bf16.vlgmr.msra.gmra.mxu0 %vm1228_vm3, %v10246_v30  ;;  %v2447_v9 = vld [vmem:[#allocation2 + $0x32] sm:$0xff]  ;;  %v3115_v60 = vld [vmem:[#allocation2 + $0xe0] sm:$0xff] }
 0x3e4   : > { %v10427_v30 = vpack.c.bf16 %v3116_v14, %v3115_v60  ;;  %v2450_v60 = vld [vmem:[#allocation2 + $0x4a] sm:$0xff] }
 0x3e5   : > { %13654 = vst [vmem:[#allocation83_spill] sm:$0xff] %v10414_v25  ;;  %v10418_v28 = vpop.f32.mrf.mxu1  ;;  %v2540_v25 = vpack.c.bf16 %v2448_v40, %v2447_v9 }
 0x3e8   : > { %8821 = vmatmul.msk.bf16.gmra.mxu2 %vm1228_vm3, %v3840_v38  ;;  %v10421_v54 = vpop.f32.mrf.mxu0 }
 0x3ea   : > { %v2008_v63 = vpop.f32.mrf.mxu3 }
 0x3eb   : > { %v2416_v8 = vpop.f32.mrf.mxu2  ;;  %v10423_v6 = vadd.f32 %v2413_v39, %v2008_v63  ;;  %v3749_v63 = vld [vmem:[#allocation2 + $0x61] sm:$0xff] }
 0x3ec   : > { %v3841_v14 = vpack.c.bf16 %v3750_v35, %v3749_v63 }
 0x3ed   : > { %13655 = vst [vmem:[#allocation84_spill] sm:$0xff] %v10423_v6  ;;  %v10425_v53 = vpop.f32.mrf.mxu1  ;;  %v3118_v6 = vld [vmem:[#allocation2 + $0xf8] sm:$0xff] }
 0x3ef   : > { %8709 = vmatmul.msk.bf16.gmra.mxu3 %vm1228_vm3, %v2540_v25 }
 0x3f0   : > { %8774 = vmatmul.msk.bf16.gmra.mxu1 %vm1228_vm3, %v10427_v30  ;;  %v10432_v42 = vpop.f32.mrf.mxu0 }
 0x3f2   : > { %v2011_v44 = vpop.f32.mrf.mxu3 }
 0x3f3   : > { %v2418_v38 = vpop.f32.mrf.mxu2  ;;  %v10434_v21 = vadd.f32 %v2416_v8, %v2011_v44  ;;  %8931 = vmatmul.msk.bf16.gmra.mxu0 %vm1228_vm3, %v10261_v5  ;;  %v2449_v8 = vld [vmem:[#allocation2 + $0x42] sm:$0xff]  ;;  %v3117_v44 = vld [vmem:[#allocation2 + $0xf0] sm:$0xff] }
 0x3f4   : > { %v10447_v5 = vpack.c.bf16 %v3118_v6, %v3117_v44  ;;  %v2452_v44 = vld [vmem:[#allocation2 + $0x5a] sm:$0xff] }
 0x3f5   : > { %13656 = vst [vmem:[#allocation85_spill] sm:$0xff] %v10434_v21  ;;  %v10438_v39 = vpop.f32.mrf.mxu1  ;;  %v2541_v21 = vpack.c.bf16 %v2450_v60, %v2449_v8 }
 0x3f8   : > { %8822 = vmatmul.msk.bf16.gmra.mxu2 %vm1228_vm3, %v3841_v14  ;;  %v10441_v25 = vpop.f32.mrf.mxu0 }
 0x3fa   : > { %v2013_v40 = vpop.f32.mrf.mxu3 }
 0x3fb   : > { %v2421_v9 = vpop.f32.mrf.mxu2  ;;  %v10443_v4 = vadd.f32 %v2418_v38, %v2013_v40  ;;  %v3751_v40 = vld [vmem:[#allocation2 + $0x71] sm:$0xff] }
 0x3fc   : > { %v3842_v6 = vpack.c.bf16 %v3752_v36, %v3751_v40 }
 0x3fd   : > { %13657 = vst [vmem:[#allocation86_spill] sm:$0xff] %v10443_v4  ;;  %v10445_v52 = vpop.f32.mrf.mxu1  ;;  %v3120_v4 = vld [vmem:[#allocation2 + $0x108] sm:$0xff] }
 0x3ff   : > { %8710 = vmatmul.msk.bf16.gmra.mxu3 %vm1228_vm3, %v2541_v21 }
 0x400   : > { %8775 = vmatmul.msk.bf16.gmra.mxu1 %vm1228_vm3, %v10447_v5  ;;  %v10452_v35 = vpop.f32.mrf.mxu0 }
 0x402   : > { %v2016_v63 = vpop.f32.mrf.mxu3 }
 0x403   : > { %v2423_v14 = vpop.f32.mrf.mxu2  ;;  %v10454_v23 = vadd.f32 %v2421_v9, %v2016_v63  ;;  %8932 = vmatmul.msk.bf16.gmra.mxu0 %vm1228_vm3, %v10276_v32  ;;  %v2451_v9 = vld [vmem:[#allocation2 + $0x52] sm:$0xff]  ;;  %v3119_v63 = vld [vmem:[#allocation2 + $0x100] sm:$0xff] }
 0x404   : > { %v10467_v32 = vpack.c.bf16 %v3120_v4, %v3119_v63  ;;  %v2454_v63 = vld [vmem:[#allocation2 + $0x6a] sm:$0xff] }
 0x405   : > { %13658 = vst [vmem:[#allocation87_spill] sm:$0xff] %v10454_v23  ;;  %v10458_v38 = vpop.f32.mrf.mxu1  ;;  %v2542_v23 = vpack.c.bf16 %v2452_v44, %v2451_v9 }
 0x408   : > { %8823 = vmatmul.msk.bf16.gmra.mxu2 %vm1228_vm3, %v3842_v6  ;;  %v10461_v21 = vpop.f32.mrf.mxu0 }
 0x40a   : > { %v2018_v60 = vpop.f32.mrf.mxu3 }
 0x40b   : > { %v2426_v8 = vpop.f32.mrf.mxu2  ;;  %v10463_v7 = vadd.f32 %v2423_v14, %v2018_v60  ;;  %v3753_v60 = vld [vmem:[#allocation2 + $0x81] sm:$0xff] }
 0x40c   : > { %v3843_v4 = vpack.c.bf16 %v3754_v43, %v3753_v60 }
 0x40d   : > { %13659 = vst [vmem:[#allocation88_spill] sm:$0xff] %v10463_v7  ;;  %v10465_v58 = vpop.f32.mrf.mxu1  ;;  %v3122_v7 = vld [vmem:[#allocation2 + $0x118] sm:$0xff] }
 0x40f   : > { %8711 = vmatmul.msk.bf16.gmra.mxu3 %vm1228_vm3, %v2542_v23 }
 0x410   : > { %8776 = vmatmul.msk.bf16.gmra.mxu1 %vm1228_vm3, %v10467_v32  ;;  %v10472_v36 = vpop.f32.mrf.mxu0 }
 0x412   : > { %v2021_v40 = vpop.f32.mrf.mxu3 }
 0x413   : > { %v2428_v6 = vpop.f32.mrf.mxu2  ;;  %v10474_v31 = vadd.f32 %v2426_v8, %v2021_v40  ;;  %8933 = vmatmul.msk.bf16.gmra.mxu0 %vm1228_vm3, %v10292_v49  ;;  %v2453_v8 = vld [vmem:[#allocation2 + $0x62] sm:$0xff]  ;;  %v3121_v40 = vld [vmem:[#allocation2 + $0x110] sm:$0xff] }
 0x414   : > { %v10487_v49 = vpack.c.bf16 %v3122_v7, %v3121_v40  ;;  %v2456_v40 = vld [vmem:[#allocation2 + $0x7a] sm:$0xff] }
 0x415   : > { %13660 = vst [vmem:[#allocation89_spill] sm:$0xff] %v10474_v31  ;;  %v10478_v14 = vpop.f32.mrf.mxu1  ;;  %v2543_v31 = vpack.c.bf16 %v2454_v63, %v2453_v8 }
 0x416   : > { %13663 = vst [vmem:[#allocation92_spill] sm:$0xff] %v10487_v49 }
 0x418   : > { %8824 = vmatmul.msk.bf16.gmra.mxu2 %vm1228_vm3, %v3843_v4  ;;  %v10481_v23 = vpop.f32.mrf.mxu0 }
 0x41a   : > { %v2023_v44 = vpop.f32.mrf.mxu3 }
 0x41b   : > { %v2431_v9 = vpop.f32.mrf.mxu2  ;;  %v10483_v16 = vadd.f32 %v2428_v6, %v2023_v44  ;;  %v3755_v44 = vld [vmem:[#allocation2 + $0x91] sm:$0xff] }
 0x41c   : > { %v3844_v7 = vpack.c.bf16 %v3756_v55, %v3755_v44 }
 0x41d   : > { %13661 = vst [vmem:[#allocation90_spill] sm:$0xff] %v10483_v16  ;;  %v10485_v3 = vpop.f32.mrf.mxu1  ;;  %v3124_v16 = vld [vmem:[#allocation2 + $0x128] sm:$0xff] }
 0x41e   : > { %13662 = vst [vmem:[#allocation91_spill] sm:$0xff] %v10485_v3 }
 0x41f   : > { %8712 = vmatmul.msk.bf16.gmra.mxu3 %vm1228_vm3, %v2543_v31 }
 0x420   : > { %8777 = vmatmul.msk.bf16.gmra.mxu1 %vm1228_vm3, %v10487_v49  ;;  %v10492_v43 = vpop.f32.mrf.mxu0 }
 0x422   : > { %v2026_v60 = vpop.f32.mrf.mxu3 }
 0x423   : > { %v2433_v4 = vpop.f32.mrf.mxu2  ;;  %v10494_v46 = vadd.f32 %v2431_v9, %v2026_v60  ;;  %8934 = vmatmul.msk.bf16.gmra.mxu0 %vm1228_vm3, %v10313_v17  ;;  %v2455_v9 = vld [vmem:[#allocation2 + $0x72] sm:$0xff]  ;;  %v3123_v60 = vld [vmem:[#allocation2 + $0x120] sm:$0xff] }
 0x424   : > { %v10507_v17 = vpack.c.bf16 %v3124_v16, %v3123_v60  ;;  %v2458_v60 = vld [vmem:[#allocation2 + $0x8a] sm:$0xff] }
 0x425   : > { %13664 = vst [vmem:[#allocation93_spill] sm:$0xff] %v10494_v46  ;;  %v10498_v6 = vpop.f32.mrf.mxu1  ;;  %v2544_v46 = vpack.c.bf16 %v2456_v40, %v2455_v9 }
 0x426   : > { %13665 = vst [vmem:[#allocation94_spill] sm:$0xff] %v10498_v6  ;;  %v3758_v6 = vld [vmem:[#allocation2 + $0xa9] sm:$0xff] }
 0x427   : > { %13668 = vst [vmem:[#allocation97_spill] sm:$0xff] %v10507_v17 }
 0x428   : > { %8825 = vmatmul.msk.bf16.gmra.mxu2 %vm1228_vm3, %v3844_v7  ;;  %v10501_v31 = vpop.f32.mrf.mxu0 }
 0x42a   : > { %v2028_v63 = vpop.f32.mrf.mxu3 }
 0x42b   : > { %v2436_v8 = vpop.f32.mrf.mxu2  ;;  %v10503_v3 = vadd.f32 %v2433_v4, %v2028_v63  ;;  %v3757_v63 = vld [vmem:[#allocation2 + $0xa1] sm:$0xff] }
 0x42c   : > { %v3845_v16 = vpack.c.bf16 %v3758_v6, %v3757_v63  ;;  %v2202_v63 = vadd.f32 %v10392_v34, %v9835_v51  ;;  %v2204_v51 = vadd.f32 %v10401_v45, %v9842_v59 }
 0x42d   : > { %13666 = vst [vmem:[#allocation95_spill] sm:$0xff] %v10503_v3  ;;  %v10505_v49 = vpop.f32.mrf.mxu1  ;;  %v3126_v3 = vld [vmem:[#allocation2 + $0x138] sm:$0xff] }
 0x42e   : > { %13667 = vst [vmem:[#allocation96_spill] sm:$0xff] %v10505_v49 }
 0x42f   : > { %8713 = vmatmul.msk.bf16.gmra.mxu3 %vm1228_vm3, %v2544_v46 }
 0x430   : > { %8778 = vmatmul.msk.bf16.gmra.mxu1 %vm1228_vm3, %v10507_v17  ;;  %v10512_v55 = vpop.f32.mrf.mxu0 }
 0x432   : > { %v2031_v44 = vpop.f32.mrf.mxu3 }
 0x433   : > { %v2438_v7 = vpop.f32.mrf.mxu2  ;;  %v10514_v37 = vadd.f32 %v2436_v8, %v2031_v44  ;;  %8935 = vmatmul.msk.bf16.gmra.mxu0 %vm1228_vm3, %v10331_v12  ;;  %v2457_v8 = vld [vmem:[#allocation2 + $0x82] sm:$0xff]  ;;  %v3125_v44 = vld [vmem:[#allocation2 + $0x130] sm:$0xff] }
 0x434   : > { %v10527_v12 = vpack.c.bf16 %v3126_v3, %v3125_v44  ;;  %v3759_v3 = vld [vmem:[#allocation2 + $0xb1] sm:$0xff] }
 0x435   : > { %13669 = vst [vmem:[#allocation98_spill] sm:$0xff] %v10514_v37  ;;  %v10518_v4 = vpop.f32.mrf.mxu1  ;;  %v2545_v37 = vpack.c.bf16 %v2458_v60, %v2457_v8 }
 0x436   : > { %13670 = vst [vmem:[#allocation99_spill] sm:$0xff] %v10518_v4 }
 0x437   : > { %13673 = vst [vmem:[#allocation102_spill] sm:$0xff] %v10527_v12 }
 0x438   : > { %8826 = vmatmul.msk.bf16.gmra.mxu2 %vm1228_vm3, %v3845_v16  ;;  %v10521_v46 = vpop.f32.mrf.mxu0 }
 0x43a   : > { %v2033_v40 = vpop.f32.mrf.mxu3 }
 0x43b   : > { %v4055_v9 = vpop.f32.mrf.mxu2  ;;  %v10523_v49 = vadd.f32 %v2438_v7, %v2033_v40  ;;  %v3760_v40 = vld [vmem:[#allocation2 + $0xb9] sm:$0xff] }
 0x43c   : > { %v3846_v8 = vpack.c.bf16 %v3760_v40, %v3759_v3 }
 0x43d   : > { %13671 = vst [vmem:[#allocation100_spill] sm:$0xff] %v10523_v49  ;;  %v10525_v17 = vpop.f32.mrf.mxu1 }
 0x43e   : > { %13672 = vst [vmem:[#allocation101_spill] sm:$0xff] %v10525_v17 }
 0x43f   : > { %8714 = vmatmul.msk.bf16.gmra.mxu3 %vm1228_vm3, %v2545_v37 }
 0x440   : > { %8779 = vmatmul.msk.bf16.gmra.mxu1 %vm1228_vm3, %v10527_v12  ;;  %v10532_v6 = vpop.f32.mrf.mxu0  ;;  %v3128_v12 = vld [vmem:[#allocation2 + $0x148] sm:$0xff] }
 0x441   : > { %13674 = vst [vmem:[#allocation103_spill] sm:$0xff] %v10532_v6  ;;  %v3127_v6 = vld [vmem:[#allocation2 + $0x140] sm:$0xff] }
 0x442   : > { %v2755_v16 = vpop.f32.mrf.mxu3  ;;  %v10551_v40 = vpack.c.bf16 %v3128_v12, %v3127_v6  ;;  %v3761_v12 = vld [vmem:[#allocation2 + $0xc1] sm:$0xff] }
 0x443   : > { %v4057_v7 = vpop.f32.mrf.mxu2  ;;  %v2995_v49 = vadd.f32 %v2755_v16, %v2202_v63  ;;  %8936 = vmatmul.msk.bf16.gmra.mxu0 %vm1228_vm3, %v10347_v61  ;;  %v2460_v16 = vld [vmem:[#allocation2 + $0x9a] sm:$0xff] }
 0x445   : > { %v10538_v60 = vpop.f32.mrf.mxu1  ;;  %v3645_v37 = vadd.f32 %v10344_v56, %v2995_v49 }
 0x446   : > { %13675 = vst [vmem:[#allocation104_spill] sm:$0xff] %v10538_v60  ;;  %v2459_v60 = vld [vmem:[#allocation2 + $0x92] sm:$0xff] }
 0x447   : > { %v10542_v44 = vadd.f32 %v4055_v9, %v3645_v37  ;;  %v2546_v49 = vpack.c.bf16 %v2460_v16, %v2459_v60  ;;  %v2207_v9 = vadd.f32 %v10412_v50, %v9847_v2  ;;  %v2209_v2 = vadd.f32 %v10421_v54, %v9854_v10 }
 0x448   : > { %8827 = vmatmul.msk.bf16.gmra.mxu2 %vm1228_vm3, %v3846_v8  ;;  %v10544_v17 = vpop.f32.mrf.mxu0  ;;  %v3762_v8 = vld [vmem:[#allocation2 + $0xc9] sm:$0xff] }
 0x449   : > { %v3847_v60 = vpack.c.bf16 %v3762_v8, %v3761_v12 }
 0x44a   : > { %v2757_v34 = vpop.f32.mrf.mxu3 }
 0x44b   : > { %v4060_v63 = vpop.f32.mrf.mxu2  ;;  %v2996_v61 = vadd.f32 %v2757_v34, %v2204_v51 }
 0x44d   : > { %v10548_v4 = vpop.f32.mrf.mxu1  ;;  %v3646_v56 = vadd.f32 %v10357_v22, %v2996_v61  ;;  %v2462_v61 = vld [vmem:[#allocation2 + $0xaa] sm:$0xff] }
 0x44f   : > { %8715 = vmatmul.msk.bf16.gmra.mxu3 %vm1228_vm3, %v2546_v49  ;;  %v10556_v59 = vadd.f32 %v4057_v7, %v3646_v56  ;;  %v3130_v56 = vld [vmem:[#allocation2 + $0x158] sm:$0xff] }
 0x450   : > { %8780 = vmatmul.msk.bf16.gmra.mxu1 %vm1228_vm3, %v10551_v40  ;;  %v10558_v45 = vpop.f32.mrf.mxu0 }
 0x452   : > { %v2760_v3 = vpop.f32.mrf.mxu3 }
 0x453   : > { %v4062_v37 = vpop.f32.mrf.mxu2  ;;  %v2997_v51 = vadd.f32 %v2760_v3, %v2207_v9  ;;  %8937 = vmatmul.msk.bf16.gmra.mxu0 %vm1228_vm3, %v10367_v24  ;;  %v2461_v9 = vld [vmem:[#allocation2 + $0xa2] sm:$0xff]  ;;  %v3129_v3 = vld [vmem:[#allocation2 + $0x150] sm:$0xff] }
 0x454   : > { %v2547_v8 = vpack.c.bf16 %v2462_v61, %v2461_v9 }
 0x455   : > { %v10564_v22 = vpop.f32.mrf.mxu1  ;;  %v3647_v6 = vadd.f32 %v10364_v0, %v2997_v51  ;;  %v10577_v51 = vpack.c.bf16 %v3130_v56, %v3129_v3  ;;  %v2464_v3 = vld [vmem:[#allocation2 + $0xba] sm:$0xff] }
 0x457   : > { %v10568_v7 = vadd.f32 %v4060_v63, %v3647_v6  ;;  %v2212_v63 = vadd.f32 %v10432_v42, %v9859_v18  ;;  %v2214_v18 = vadd.f32 %v10441_v25, %v9866_v26 }
 0x458   : > { %8828 = vmatmul.msk.bf16.gmra.mxu2 %vm1228_vm3, %v3847_v60  ;;  %v10570_v34 = vpop.f32.mrf.mxu0  ;;  %v3764_v60 = vld [vmem:[#allocation2 + $0xd9] sm:$0xff] }
 0x45a   : > { %v2762_v50 = vpop.f32.mrf.mxu3 }
 0x45b   : > { %v4065_v16 = vpop.f32.mrf.mxu2  ;;  %v2998_v24 = vadd.f32 %v2762_v50, %v2209_v2  ;;  %v3763_v50 = vld [vmem:[#allocation2 + $0xd1] sm:$0xff] }
 0x45c   : > { %v3848_v56 = vpack.c.bf16 %v3764_v60, %v3763_v50 }
 0x45d   : > { %v10574_v49 = vpop.f32.mrf.mxu1  ;;  %v3648_v0 = vadd.f32 %v10377_v19, %v2998_v24 }
 0x45f   : > { %8716 = vmatmul.msk.bf16.gmra.mxu3 %vm1228_vm3, %v2547_v8  ;;  %v10582_v10 = vadd.f32 %v4062_v37, %v3648_v0  ;;  %v3132_v0 = vld [vmem:[#allocation2 + $0x168] sm:$0xff] }
 0x460   : > { %8781 = vmatmul.msk.bf16.gmra.mxu1 %vm1228_vm3, %v10577_v51  ;;  %v10584_v54 = vpop.f32.mrf.mxu0 }
 0x462   : > { %v2765_v12 = vpop.f32.mrf.mxu3 }
 0x463   : > { %v4067_v6 = vpop.f32.mrf.mxu2  ;;  %v2999_v2 = vadd.f32 %v2765_v12, %v2212_v63  ;;  %8938 = vmatmul.msk.bf16.gmra.mxu0 %vm1228_vm3, %v10387_v47  ;;  %v2463_v63 = vld [vmem:[#allocation2 + $0xb2] sm:$0xff]  ;;  %v3131_v12 = vld [vmem:[#allocation2 + $0x160] sm:$0xff] }
 0x464   : > { %v2548_v60 = vpack.c.bf16 %v2464_v3, %v2463_v63 }
 0x465   : > { %v10590_v19 = vpop.f32.mrf.mxu1  ;;  %v3649_v61 = vadd.f32 %v10384_v27, %v2999_v2  ;;  %v10603_v2 = vpack.c.bf16 %v3132_v0, %v3131_v12  ;;  %v2466_v12 = vld [vmem:[#allocation2 + $0xca] sm:$0xff] }
 0x467   : > { %v10594_v37 = vadd.f32 %v4065_v16, %v3649_v61  ;;  %v2217_v16 = vadd.f32 %v10452_v35, %v9871_v33  ;;  %v2219_v33 = vadd.f32 %v10461_v21, %v9878_v41 }
 0x468   : > { %8829 = vmatmul.msk.bf16.gmra.mxu2 %vm1228_vm3, %v3848_v56  ;;  %v10596_v24 = vpop.f32.mrf.mxu0  ;;  %v3766_v56 = vld [vmem:[#allocation2 + $0xe9] sm:$0xff] }
 0x46a   : > { %v2767_v42 = vpop.f32.mrf.mxu3 }
 0x46b   : > { %v4070_v9 = vpop.f32.mrf.mxu2  ;;  %v3000_v47 = vadd.f32 %v2767_v42, %v2214_v18  ;;  %v3765_v42 = vld [vmem:[#allocation2 + $0xe1] sm:$0xff] }
 0x46c   : > { %v3849_v0 = vpack.c.bf16 %v3766_v56, %v3765_v42 }
 0x46d   : > { %v10600_v8 = vpop.f32.mrf.mxu1  ;;  %v3650_v27 = vadd.f32 %v10398_v13, %v3000_v47 }
 0x46f   : > { %8717 = vmatmul.msk.bf16.gmra.mxu3 %vm1228_vm3, %v2548_v60  ;;  %v10608_v26 = vadd.f32 %v4067_v6, %v3650_v27  ;;  %v3134_v27 = vld [vmem:[#allocation2 + $0x178] sm:$0xff] }
 0x470   : > { %8782 = vmatmul.msk.bf16.gmra.mxu1 %vm1228_vm3, %v10603_v2  ;;  %v10610_v25 = vpop.f32.mrf.mxu0 }
 0x472   : > { %v2770_v50 = vpop.f32.mrf.mxu3 }
 0x473   : > { %v4072_v61 = vpop.f32.mrf.mxu2  ;;  %v3001_v18 = vadd.f32 %v2770_v50, %v2217_v16  ;;  %8939 = vmatmul.msk.bf16.gmra.mxu0 %vm1228_vm3, %v10407_v62  ;;  %v2465_v16 = vld [vmem:[#allocation2 + $0xc2] sm:$0xff]  ;;  %v3133_v50 = vld [vmem:[#allocation2 + $0x170] sm:$0xff] }
 0x474   : > { %v2549_v56 = vpack.c.bf16 %v2466_v12, %v2465_v16 }
 0x475   : > { %v10616_v13 = vpop.f32.mrf.mxu1  ;;  %v3651_v3 = vadd.f32 %v10405_v15, %v3001_v18  ;;  %v10629_v18 = vpack.c.bf16 %v3134_v27, %v3133_v50  ;;  %v2468_v50 = vld [vmem:[#allocation2 + $0xda] sm:$0xff] }
 0x477   : > { %v10620_v6 = vadd.f32 %v4070_v9, %v3651_v3  ;;  %v2222_v9 = vadd.f32 %v10472_v36, %v9883_v48  ;;  %v2224_v48 = vadd.f32 %v10481_v23, %v9890_v57 }
 0x478   : > { %8830 = vmatmul.msk.bf16.gmra.mxu2 %vm1228_vm3, %v3849_v0  ;;  %v10622_v47 = vpop.f32.mrf.mxu0  ;;  %v3768_v0 = vld [vmem:[#allocation2 + $0xf9] sm:$0xff] }
 0x47a   : > { %v2772_v35 = vpop.f32.mrf.mxu3 }
 0x47b   : > { %v4075_v63 = vpop.f32.mrf.mxu2  ;;  %v3002_v62 = vadd.f32 %v2772_v35, %v2219_v33  ;;  %v3767_v35 = vld [vmem:[#allocation2 + $0xf1] sm:$0xff] }
 0x47c   : > { %v3850_v27 = vpack.c.bf16 %v3768_v0, %v3767_v35 }
 0x47d   : > { %v10626_v60 = vpop.f32.mrf.mxu1  ;;  %v3652_v15 = vadd.f32 %v10418_v28, %v3002_v62 }
 0x47f   : > { %8718 = vmatmul.msk.bf16.gmra.mxu3 %vm1228_vm3, %v2549_v56  ;;  %v10634_v41 = vadd.f32 %v4072_v61, %v3652_v15  ;;  %v3136_v15 = vld [vmem:[#allocation2 + $0x188] sm:$0xff] }
 0x480   : > { %8783 = vmatmul.msk.bf16.gmra.mxu1 %vm1228_vm3, %v10629_v18  ;;  %v10636_v21 = vpop.f32.mrf.mxu0 }
 0x482   : > { %v2775_v42 = vpop.f32.mrf.mxu3 }
 0x483   : > { %v4077_v3 = vpop.f32.mrf.mxu2  ;;  %v3003_v33 = vadd.f32 %v2775_v42, %v2222_v9  ;;  %8940 = vmatmul.msk.bf16.gmra.mxu0 %vm1228_vm3, %v10427_v30  ;;  %v2467_v9 = vld [vmem:[#allocation2 + $0xd2] sm:$0xff]  ;;  %v3135_v42 = vld [vmem:[#allocation2 + $0x180] sm:$0xff] }
 0x484   : > { %v2550_v0 = vpack.c.bf16 %v2468_v50, %v2467_v9 }
 0x485   : > { %v10642_v28 = vpop.f32.mrf.mxu1  ;;  %v3653_v12 = vadd.f32 %v10425_v53, %v3003_v33  ;;  %v10655_v33 = vpack.c.bf16 %v3136_v15, %v3135_v42  ;;  %v2470_v42 = vld [vmem:[#allocation2 + $0xea] sm:$0xff] }
 0x487   : > { %v10646_v61 = vadd.f32 %v4075_v63, %v3653_v12  ;;  %v2227_v63 = vadd.f32 %v10492_v43, %v9895_v1  ;;  %v2229_v1 = vadd.f32 %v10501_v31, %v9902_v11 }
 0x488   : > { %8831 = vmatmul.msk.bf16.gmra.mxu2 %vm1228_vm3, %v3850_v27  ;;  %v10648_v62 = vpop.f32.mrf.mxu0  ;;  %v3770_v27 = vld [vmem:[#allocation2 + $0x109] sm:$0xff] }
 0x489   : > { %13676 = vst [vmem:[#allocation105_spill] sm:$0xff] %v10646_v61 }
 0x48a   : > { %v2777_v36 = vpop.f32.mrf.mxu3 }
 0x48b   : > { %v4080_v16 = vpop.f32.mrf.mxu2  ;;  %v3004_v30 = vadd.f32 %v2777_v36, %v2224_v48  ;;  %v3769_v36 = vld [vmem:[#allocation2 + $0x101] sm:$0xff] }
 0x48c   : > { %v3851_v15 = vpack.c.bf16 %v3770_v27, %v3769_v36 }
 0x48d   : > { %v10652_v56 = vpop.f32.mrf.mxu1  ;;  %v3654_v53 = vadd.f32 %v10438_v39, %v3004_v30 }
 0x48f   : > { %8719 = vmatmul.msk.bf16.gmra.mxu3 %vm1228_vm3, %v2550_v0  ;;  %v10660_v57 = vadd.f32 %v4077_v3, %v3654_v53  ;;  %v3138_v53 = vld [vmem:[#allocation2 + $0x198] sm:$0xff] }
 0x490   : > { %8784 = vmatmul.msk.bf16.gmra.mxu1 %vm1228_vm3, %v10655_v33  ;;  %v10662_v23 = vpop.f32.mrf.mxu0 }
 0x491   : > { %13677 = vst [vmem:[#allocation106_spill] sm:$0xff] %v10660_v57  ;;  %v3145_v57 = vld [vmem:[#allocation2 + $0x1d0] sm:$0xff] }
 0x492   : > { %v2780_v35 = vpop.f32.mrf.mxu3 }
 0x493   : > { %v4082_v12 = vpop.f32.mrf.mxu2  ;;  %v3005_v48 = vadd.f32 %v2780_v35, %v2227_v63  ;;  %8941 = vmatmul.msk.bf16.gmra.mxu0 %vm1228_vm3, %v10447_v5  ;;  %v2469_v63 = vld [vmem:[#allocation2 + $0xe2] sm:$0xff]  ;;  %v3137_v35 = vld [vmem:[#allocation2 + $0x190] sm:$0xff] }
 0x494   : > { %v2551_v27 = vpack.c.bf16 %v2470_v42, %v2469_v63 }
 0x495   : > { %v10668_v39 = vpop.f32.mrf.mxu1  ;;  %v3655_v50 = vadd.f32 %v10445_v52, %v3005_v48  ;;  %v10681_v48 = vpack.c.bf16 %v3138_v53, %v3137_v35  ;;  %v2472_v35 = vld [vmem:[#allocation2 + $0xfa] sm:$0xff] }
 0x497   : > { %v10672_v3 = vadd.f32 %v4080_v16, %v3655_v50  ;;  %v2232_v16 = vadd.f32 %v10512_v55, %v9907_v20  ;;  %v2234_v20 = vadd.f32 %v10521_v46, %v9914_v29 }
 0x498   : > { %8832 = vmatmul.msk.bf16.gmra.mxu2 %vm1228_vm3, %v3851_v15  ;;  %v10674_v30 = vpop.f32.mrf.mxu0  ;;  %v3772_v15 = vld [vmem:[#allocation2 + $0x119] sm:$0xff] }
 0x499   : > { %13678 = vst [vmem:[#allocation107_spill] sm:$0xff] %v10672_v3  ;;  %v3141_v3 = vld [vmem:[#allocation2 + $0x1b0] sm:$0xff] }
 0x49a   : > { %13679 = vst [vmem:[#allocation108_spill] sm:$0xff] %v10674_v30  ;;  %v2782_v43 = vpop.f32.mrf.mxu3 }
 0x49b   : > { %v4085_v9 = vpop.f32.mrf.mxu2  ;;  %v3006_v5 = vadd.f32 %v2782_v43, %v2229_v1  ;;  %v3771_v43 = vld [vmem:[#allocation2 + $0x111] sm:$0xff] }
 0x49c   : > { %v3852_v53 = vpack.c.bf16 %v3772_v15, %v3771_v43  ;;  %v13687_v43 = vld [vmem:[#allocation103_spill] sm:$0xff] }
 0x49d   : > { %v10678_v0 = vpop.f32.mrf.mxu1  ;;  %v3656_v52 = vadd.f32 %v10458_v38, %v3006_v5 }
 0x49f   : > { %8720 = vmatmul.msk.bf16.gmra.mxu3 %vm1228_vm3, %v2551_v27  ;;  %v10686_v11 = vadd.f32 %v4082_v12, %v3656_v52  ;;  %v3140_v52 = vld [vmem:[#allocation2 + $0x1a8] sm:$0xff] }
 0x4a0   : > { %8785 = vmatmul.msk.bf16.gmra.mxu1 %vm1228_vm3, %v10681_v48  ;;  %v10688_v31 = vpop.f32.mrf.mxu0 }
 0x4a1   : > { %13680 = vst [vmem:[#allocation109_spill] sm:$0xff] %v10686_v11 }
 0x4a2   : > { %13681 = vst [vmem:[#allocation110_spill] sm:$0xff] %v10688_v31  ;;  %v2785_v36 = vpop.f32.mrf.mxu3  ;;  %v13711_v31 = vld [vmem:[#allocation104_spill] sm:$0xff] }
 0x4a3   : > { %v4087_v50 = vpop.f32.mrf.mxu2  ;;  %v3007_v1 = vadd.f32 %v2785_v36, %v2232_v16  ;;  %8942 = vmatmul.msk.bf16.gmra.mxu0 %vm1228_vm3, %v10467_v32  ;;  %v2471_v16 = vld [vmem:[#allocation2 + $0xf2] sm:$0xff]  ;;  %v3139_v36 = vld [vmem:[#allocation2 + $0x1a0] sm:$0xff] }
 0x4a4   : > { %v2552_v15 = vpack.c.bf16 %v2472_v35, %v2471_v16 }
 0x4a5   : > { %v10694_v38 = vpop.f32.mrf.mxu1  ;;  %v3657_v42 = vadd.f32 %v10465_v58, %v3007_v1  ;;  %v10707_v1 = vpack.c.bf16 %v3140_v52, %v3139_v36  ;;  %v3773_v52 = vld [vmem:[#allocation2 + $0x121] sm:$0xff] }
 0x4a7   : > { %v10698_v12 = vadd.f32 %v4085_v9, %v3657_v42  ;;  %v13686_v9 = vld [vmem:[#allocation13_spill] sm:$0xff] }
 0x4a8   : > { %8833 = vmatmul.msk.bf16.gmra.mxu2 %vm1228_vm3, %v3852_v53  ;;  %v10700_v5 = vpop.f32.mrf.mxu0  ;;  %v2237_v42 = vadd.f32 %v13687_v43, %v13686_v9 }
 0x4a9   : > { %13682 = vst [vmem:[#allocation111_spill] sm:$0xff] %v10698_v12 }
 0x4aa   : > { %13683 = vst [vmem:[#allocation112_spill] sm:$0xff] %v10700_v5  ;;  %v2787_v55 = vpop.f32.mrf.mxu3  ;;  %v3143_v5 = vld [vmem:[#allocation2 + $0x1c0] sm:$0xff] }
 0x4ab   : > { %v4090_v63 = vpop.f32.mrf.mxu2  ;;  %v3008_v32 = vadd.f32 %v2787_v55, %v2234_v20  ;;  %v3774_v55 = vld [vmem:[#allocation2 + $0x129] sm:$0xff] }
 0x4ac   : > { %v3853_v36 = vpack.c.bf16 %v3774_v55, %v3773_v52 }
 0x4ad   : > { %v10704_v27 = vpop.f32.mrf.mxu1  ;;  %v3658_v58 = vadd.f32 %v10478_v14, %v3008_v32  ;;  %v13688_v14 = vld [vmem:[#allocation92_spill] sm:$0xff]  ;;  %v13689_v32 = vld [vmem:[#allocation91_spill] sm:$0xff] }
 0x4af   : > { %8721 = vmatmul.msk.bf16.gmra.mxu3 %vm1228_vm3, %v2552_v15  ;;  %v10712_v29 = vadd.f32 %v4087_v50, %v3658_v58  ;;  %v13692_v15 = vld [vmem:[#allocation14_spill] sm:$0xff] }
 0x4b0   : > { %8786 = vmatmul.msk.bf16.gmra.mxu1 %vm1228_vm3, %v10707_v1  ;;  %v10714_v46 = vpop.f32.mrf.mxu0  ;;  %v2239_v9 = vadd.f32 %v10544_v17, %v13692_v15 }
 0x4b1   : > { %13684 = vst [vmem:[#allocation113_spill] sm:$0xff] %v10712_v29  ;;  %v3142_v29 = vld [vmem:[#allocation2 + $0x1b8] sm:$0xff] }
 0x4b2   : > { %13685 = vst [vmem:[#allocation114_spill] sm:$0xff] %v10714_v46  ;;  %v2790_v53 = vpop.f32.mrf.mxu3  ;;  %v2473_v46 = vld [vmem:[#allocation2 + $0x102] sm:$0xff] }
 0x4b3   : > { %v4092_v20 = vpop.f32.mrf.mxu2  ;;  %v3009_v12 = vadd.f32 %v2790_v53, %v2237_v42  ;;  %8943 = vmatmul.msk.bf16.gmra.mxu0 %vm1228_vm3, %v13688_v14  ;;  %v2474_v53 = vld [vmem:[#allocation2 + $0x10a] sm:$0xff] }
 0x4b4   : > { %v2553_v52 = vpack.c.bf16 %v2474_v53, %v2473_v46  ;;  %v13698_v46 = vld [vmem:[#allocation96_spill] sm:$0xff] }
 0x4b5   : > { %v10720_v35 = vpop.f32.mrf.mxu1  ;;  %v3659_v16 = vadd.f32 %v13689_v32, %v3009_v12  ;;  %v13693_v12 = vld [vmem:[#allocation94_spill] sm:$0xff]  ;;  %v10733_v32 = vpack.c.bf16 %v3142_v29, %v3141_v3 }
 0x4b6   : > { %v3775_v29 = vld [vmem:[#allocation2 + $0x131] sm:$0xff] }
 0x4b7   : > { %v10724_v50 = vadd.f32 %v4090_v63, %v3659_v16  ;;  %v13696_v16 = vld [vmem:[#allocation15_spill] sm:$0xff] }
 0x4b8   : > { %8834 = vmatmul.msk.bf16.gmra.mxu2 %vm1228_vm3, %v3853_v36  ;;  %v10726_v58 = vpop.f32.mrf.mxu0  ;;  %v2242_v36 = vadd.f32 %v10558_v45, %v13696_v16  ;;  %v13701_v45 = vld [vmem:[#allocation16_spill] sm:$0xff] }
 0x4b9   : > { %13690 = vst [vmem:[#allocation13_spill] sm:$0xff] %v10724_v50 }
 0x4ba   : > { %13691 = vst [vmem:[#allocation103_spill] sm:$0xff] %v10726_v58  ;;  %v2792_v43 = vpop.f32.mrf.mxu3  ;;  %v2475_v58 = vld [vmem:[#allocation2 + $0x112] sm:$0xff] }
 0x4bb   : > { %v4095_v42 = vpop.f32.mrf.mxu2  ;;  %v3010_v14 = vadd.f32 %v2792_v43, %v2239_v9  ;;  %v3776_v43 = vld [vmem:[#allocation2 + $0x139] sm:$0xff] }
 0x4bd   : > { %v10730_v11 = vpop.f32.mrf.mxu1  ;;  %v3660_v55 = vadd.f32 %v13693_v12, %v3010_v14  ;;  %v13697_v14 = vld [vmem:[#allocation97_spill] sm:$0xff]  ;;  %v3854_v12 = vpack.c.bf16 %v3776_v43, %v3775_v29 }
 0x4bf   : > { %8722 = vmatmul.msk.bf16.gmra.mxu3 %vm1228_vm3, %v2553_v52  ;;  %v10738_v17 = vadd.f32 %v4092_v20, %v3660_v55  ;;  %v2244_v52 = vadd.f32 %v10570_v34, %v13701_v45  ;;  %v3778_v45 = vld [vmem:[#allocation2 + $0x149] sm:$0xff] }
 0x4c0   : > { %8787 = vmatmul.msk.bf16.gmra.mxu1 %vm1228_vm3, %v10733_v32  ;;  %v10740_v63 = vpop.f32.mrf.mxu0 }
 0x4c1   : > { %13694 = vst [vmem:[#allocation92_spill] sm:$0xff] %v10738_v17  ;;  %v3144_v17 = vld [vmem:[#allocation2 + $0x1c8] sm:$0xff] }
 0x4c2   : > { %13695 = vst [vmem:[#allocation91_spill] sm:$0xff] %v10740_v63  ;;  %v2795_v15 = vpop.f32.mrf.mxu3 }
 0x4c3   : > { %v4097_v9 = vpop.f32.mrf.mxu2  ;;  %v3011_v50 = vadd.f32 %v2795_v15, %v2242_v36  ;;  %8944 = vmatmul.msk.bf16.gmra.mxu0 %vm1228_vm3, %v13697_v14  ;;  %v2476_v15 = vld [vmem:[#allocation2 + $0x11a] sm:$0xff] }
 0x4c4   : > { %v2554_v29 = vpack.c.bf16 %v2476_v15, %v2475_v58 }
 0x4c5   : > { %v10746_v3 = vpop.f32.mrf.mxu1  ;;  %v3661_v53 = vadd.f32 %v13698_v46, %v3011_v50  ;;  %v13702_v50 = vld [vmem:[#allocation99_spill] sm:$0xff]  ;;  %v10759_v46 = vpack.c.bf16 %v3144_v17, %v3143_v5  ;;  %v3777_v5 = vld [vmem:[#allocation2 + $0x141] sm:$0xff] }
 0x4c6   : > { %v13707_v17 = vld [vmem:[#allocation101_spill] sm:$0xff] }
 0x4c7   : > { %v10750_v20 = vadd.f32 %v4095_v42, %v3661_v53 }
 0x4c8   : > { %8835 = vmatmul.msk.bf16.gmra.mxu2 %vm1228_vm3, %v3854_v12  ;;  %v10752_v55 = vpop.f32.mrf.mxu0 }
 0x4c9   : > { %13699 = vst [vmem:[#allocation14_spill] sm:$0xff] %v10750_v20  ;;  %v13706_v20 = vld [vmem:[#allocation102_spill] sm:$0xff] }
 0x4ca   : > { %13700 = vst [vmem:[#allocation94_spill] sm:$0xff] %v10752_v55  ;;  %v2797_v16 = vpop.f32.mrf.mxu3 }
 0x4cb   : > { %v4100_v36 = vpop.f32.mrf.mxu2  ;;  %v3012_v14 = vadd.f32 %v2797_v16, %v2244_v52  ;;  %v13705_v52 = vld [vmem:[#allocation17_spill] sm:$0xff] }
 0x4cd   : > { %v10756_v63 = vpop.f32.mrf.mxu1  ;;  %v3662_v43 = vadd.f32 %v13702_v50, %v3012_v14  ;;  %v3855_v14 = vpack.c.bf16 %v3778_v45, %v3777_v5 }
 0x4cf   : > { %8723 = vmatmul.msk.bf16.gmra.mxu3 %vm1228_vm3, %v2554_v29  ;;  %v10764_v34 = vadd.f32 %v4097_v9, %v3662_v43 }
 0x4d0   : > { %8788 = vmatmul.msk.bf16.gmra.mxu1 %vm1228_vm3, %v10759_v46  ;;  %v10766_v42 = vpop.f32.mrf.mxu0 }
 0x4d1   : > { %13703 = vst [vmem:[#allocation15_spill] sm:$0xff] %v10764_v34  ;;  %v2478_v34 = vld [vmem:[#allocation2 + $0x12a] sm:$0xff] }
 0x4d2   : > { %13704 = vst [vmem:[#allocation97_spill] sm:$0xff] %v10766_v42  ;;  %v2800_v53 = vpop.f32.mrf.mxu3  ;;  %v3146_v42 = vld [vmem:[#allocation2 + $0x1d8] sm:$0xff] }
 0x4d3   : > { %v4102_v12 = vpop.f32.mrf.mxu2  ;;  %v3013_v16 = vadd.f32 %v2800_v53, %v13705_v52  ;;  %8945 = vmatmul.msk.bf16.gmra.mxu0 %vm1228_vm3, %v13706_v20  ;;  %v13710_v53 = vld [vmem:[#allocation18_spill] sm:$0xff]  ;;  %v2477_v20 = vld [vmem:[#allocation2 + $0x122] sm:$0xff]  ;;  %v10783_v45 = vpack.c.bf16 %v3146_v42, %v3145_v57 }
 0x4d4   : > { %v3779_v57 = vld [vmem:[#allocation2 + $0x151] sm:$0xff] }
 0x4d5   : > { %v10771_v58 = vpop.f32.mrf.mxu1  ;;  %v3663_v15 = vadd.f32 %v13707_v17, %v3013_v16  ;;  %v2555_v16 = vpack.c.bf16 %v2478_v34, %v2477_v20 }
 0x4d7   : > { %v10775_v9 = vadd.f32 %v4100_v36, %v3663_v15 }
 0x4d8   : > { %8836 = vmatmul.msk.bf16.gmra.mxu2 %vm1228_vm3, %v3855_v14  ;;  %v10777_v50 = vpop.f32.mrf.mxu0  ;;  %v3780_v14 = vld [vmem:[#allocation2 + $0x159] sm:$0xff] }
 0x4d9   : > { %13708 = vst [vmem:[#allocation96_spill] sm:$0xff] %v10775_v9  ;;  %v3856_v42 = vpack.c.bf16 %v3780_v14, %v3779_v57 }
 0x4da   : > { %13709 = vst [vmem:[#allocation16_spill] sm:$0xff] %v10777_v50  ;;  %v2802_v43 = vpop.f32.mrf.mxu3 }
 0x4db   : > { %v4105_v29 = vpop.f32.mrf.mxu2  ;;  %v3014_v52 = vadd.f32 %v2802_v43, %v13710_v53  ;;  %v13714_v43 = vld [vmem:[#allocation19_spill] sm:$0xff] }
 0x4dd   : > { %v10780_v55 = vpop.f32.mrf.mxu1  ;;  %v3664_v61 = vadd.f32 %v13711_v31, %v3014_v52 }
 0x4df   : > { %8724 = vmatmul.msk.bf16.gmra.mxu3 %vm1228_vm3, %v2555_v16  ;;  %v10788_v36 = vadd.f32 %v4102_v12, %v3664_v61  ;;  %v2480_v16 = vld [vmem:[#allocation2 + $0x13a] sm:$0xff] }
 0x4e0   : > { %8789 = vmatmul.msk.bf16.gmra.mxu1 %vm1228_vm3, %v10783_v45  ;;  %v10790_v5 = vpop.f32.mrf.mxu0 }
 0x4e1   : > { %13712 = vst [vmem:[#allocation99_spill] sm:$0xff] %v10788_v36  ;;  %v3148_v36 = vld [vmem:[#allocation2 + $0x1e8] sm:$0xff] }
 0x4e2   : > { %13713 = vst [vmem:[#allocation17_spill] sm:$0xff] %v10790_v5  ;;  %v2805_v17 = vpop.f32.mrf.mxu3  ;;  %v3147_v5 = vld [vmem:[#allocation2 + $0x1e0] sm:$0xff] }
 0x4e3   : > { %v4107_v15 = vpop.f32.mrf.mxu2  ;;  %v3015_v53 = vadd.f32 %v2805_v17, %v13714_v43  ;;  %8946 = vmatmul.msk.bf16.gmra.mxu0 %vm1228_vm3, %v10551_v40  ;;  %v13717_v17 = vld [vmem:[#allocation20_spill] sm:$0xff]  ;;  %v2479_v40 = vld [vmem:[#allocation2 + $0x132] sm:$0xff]  ;;  %v10807_v14 = vpack.c.bf16 %v3148_v36, %v3147_v5 }
 0x4e4   : > { %v3781_v36 = vld [vmem:[#allocation2 + $0x161] sm:$0xff] }
 0x4e5   : > { %v10795_v31 = vpop.f32.mrf.mxu1  ;;  %v3665_v34 = vadd.f32 %v10548_v4, %v3015_v53  ;;  %v2556_v4 = vpack.c.bf16 %v2480_v16, %v2479_v40 }
 0x4e7   : > { %v10799_v61 = vadd.f32 %v4105_v29, %v3665_v34 }
 0x4e8   : > { %8837 = vmatmul.msk.bf16.gmra.mxu2 %vm1228_vm3, %v3856_v42  ;;  %v10801_v12 = vpop.f32.mrf.mxu0  ;;  %v3782_v42 = vld [vmem:[#allocation2 + $0x169] sm:$0xff] }
 0x4e9   : > { %13715 = vst [vmem:[#allocation102_spill] sm:$0xff] %v10799_v61  ;;  %v3857_v16 = vpack.c.bf16 %v3782_v42, %v3781_v36 }
 0x4ea   : > { %13716 = vst [vmem:[#allocation101_spill] sm:$0xff] %v10801_v12  ;;  %v2807_v52 = vpop.f32.mrf.mxu3 }
 0x4eb   : > { %v4110_v20 = vpop.f32.mrf.mxu2  ;;  %v3016_v43 = vadd.f32 %v2807_v52, %v13717_v17  ;;  %v13720_v52 = vld [vmem:[#allocation21_spill] sm:$0xff] }
 0x4ed   : > { %v10804_v9 = vpop.f32.mrf.mxu1  ;;  %v3666_v50 = vadd.f32 %v10564_v22, %v3016_v43 }
 0x4ef   : > { %8725 = vmatmul.msk.bf16.gmra.mxu3 %vm1228_vm3, %v2556_v4  ;;  %v10812_v29 = vadd.f32 %v4107_v15, %v3666_v50  ;;  %v2482_v4 = vld [vmem:[#allocation2 + $0x14a] sm:$0xff] }
 0x4f0   : > { %8790 = vmatmul.msk.bf16.gmra.mxu1 %vm1228_vm3, %v10807_v14  ;;  %v10814_v53 = vpop.f32.mrf.mxu0 }
 0x4f1   : > { %13718 = vst [vmem:[#allocation18_spill] sm:$0xff] %v10812_v29  ;;  %v3150_v29 = vld [vmem:[#allocation2 + $0x1f8] sm:$0xff] }
 0x4f2   : > { %13719 = vst [vmem:[#allocation104_spill] sm:$0xff] %v10814_v53  ;;  %v2810_v57 = vpop.f32.mrf.mxu3  ;;  %v3149_v53 = vld [vmem:[#allocation2 + $0x1f0] sm:$0xff] }
 0x4f3   : > { %v4112_v34 = vpop.f32.mrf.mxu2  ;;  %v3017_v17 = vadd.f32 %v2810_v57, %v13720_v52  ;;  %8947 = vmatmul.msk.bf16.gmra.mxu0 %vm1228_vm3, %v10577_v51  ;;  %v13723_v57 = vld [vmem:[#allocation22_spill] sm:$0xff]  ;;  %v2481_v51 = vld [vmem:[#allocation2 + $0x142] sm:$0xff]  ;;  %v10831_v42 = vpack.c.bf16 %v3150_v29, %v3149_v53 }
 0x4f4   : > { %v3783_v29 = vld [vmem:[#allocation2 + $0x171] sm:$0xff] }
 0x4f5   : > { %v10819_v22 = vpop.f32.mrf.mxu1  ;;  %v3667_v5 = vadd.f32 %v10574_v49, %v3017_v17  ;;  %v2557_v49 = vpack.c.bf16 %v2482_v4, %v2481_v51 }
 0x4f7   : > { %v10823_v50 = vadd.f32 %v4110_v20, %v3667_v5 }
 0x4f8   : > { %8838 = vmatmul.msk.bf16.gmra.mxu2 %vm1228_vm3, %v3857_v16  ;;  %v10825_v15 = vpop.f32.mrf.mxu0  ;;  %v3784_v16 = vld [vmem:[#allocation2 + $0x179] sm:$0xff] }
 0x4f9   : > { %13721 = vst [vmem:[#allocation19_spill] sm:$0xff] %v10823_v50  ;;  %v3858_v4 = vpack.c.bf16 %v3784_v16, %v3783_v29 }
 0x4fa   : > { %13722 = vst [vmem:[#allocation20_spill] sm:$0xff] %v10825_v15  ;;  %v2812_v43 = vpop.f32.mrf.mxu3 }
 0x4fb   : > { %v4115_v40 = vpop.f32.mrf.mxu2  ;;  %v3018_v52 = vadd.f32 %v2812_v43, %v13723_v57  ;;  %v13726_v43 = vld [vmem:[#allocation23_spill] sm:$0xff] }
 0x4fd   : > { %v10828_v61 = vpop.f32.mrf.mxu1  ;;  %v3668_v12 = vadd.f32 %v10590_v19, %v3018_v52 }
 0x4ff   : > { %8726 = vmatmul.msk.bf16.gmra.mxu3 %vm1228_vm3, %v2557_v49  ;;  %v10836_v20 = vadd.f32 %v4112_v34, %v3668_v12  ;;  %v2484_v49 = vld [vmem:[#allocation2 + $0x15a] sm:$0xff] }
 0x500   : > { %8791 = vmatmul.msk.bf16.gmra.mxu1 %vm1228_vm3, %v10831_v42  ;;  %v10838_v17 = vpop.f32.mrf.mxu0 }
 0x501   : > { %13724 = vst [vmem:[#allocation21_spill] sm:$0xff] %v10836_v20  ;;  %v3152_v20 = vld [vmem:[#allocation2 + $0x208] sm:$0xff] }
 0x502   : > { %13725 = vst [vmem:[#allocation22_spill] sm:$0xff] %v10838_v17  ;;  %v2815_v36 = vpop.f32.mrf.mxu3  ;;  %v3151_v17 = vld [vmem:[#allocation2 + $0x200] sm:$0xff] }
 0x503   : > { %v4117_v5 = vpop.f32.mrf.mxu2  ;;  %v3019_v57 = vadd.f32 %v2815_v36, %v13726_v43  ;;  %8948 = vmatmul.msk.bf16.gmra.mxu0 %vm1228_vm3, %v10603_v2  ;;  %v13729_v36 = vld [vmem:[#allocation24_spill] sm:$0xff]  ;;  %v2483_v2 = vld [vmem:[#allocation2 + $0x152] sm:$0xff]  ;;  %v10855_v16 = vpack.c.bf16 %v3152_v20, %v3151_v17 }
 0x504   : > { %v3785_v20 = vld [vmem:[#allocation2 + $0x181] sm:$0xff] }
 0x505   : > { %v10843_v19 = vpop.f32.mrf.mxu1  ;;  %v3669_v53 = vadd.f32 %v10600_v8, %v3019_v57  ;;  %v2558_v8 = vpack.c.bf16 %v2484_v49, %v2483_v2 }
 0x507   : > { %v10847_v12 = vadd.f32 %v4115_v40, %v3669_v53 }
 0x508   : > { %8839 = vmatmul.msk.bf16.gmra.mxu2 %vm1228_vm3, %v3858_v4  ;;  %v10849_v34 = vpop.f32.mrf.mxu0  ;;  %v3786_v4 = vld [vmem:[#allocation2 + $0x189] sm:$0xff] }
 0x509   : > { %13727 = vst [vmem:[#allocation23_spill] sm:$0xff] %v10847_v12  ;;  %v3859_v49 = vpack.c.bf16 %v3786_v4, %v3785_v20 }
 0x50a   : > { %13728 = vst [vmem:[#allocation115_spill] sm:$0xff] %v10849_v34  ;;  %v2817_v52 = vpop.f32.mrf.mxu3 }
 0x50b   : > { %v4120_v51 = vpop.f32.mrf.mxu2  ;;  %v3020_v43 = vadd.f32 %v2817_v52, %v13729_v36  ;;  %v13732_v52 = vld [vmem:[#allocation25_spill] sm:$0xff] }
 0x50d   : > { %v10852_v50 = vpop.f32.mrf.mxu1  ;;  %v3670_v15 = vadd.f32 %v10616_v13, %v3020_v43 }
 0x50f   : > { %8727 = vmatmul.msk.bf16.gmra.mxu3 %vm1228_vm3, %v2558_v8  ;;  %v10860_v40 = vadd.f32 %v4117_v5, %v3670_v15  ;;  %v2486_v8 = vld [vmem:[#allocation2 + $0x16a] sm:$0xff] }
 0x510   : > { %8792 = vmatmul.msk.bf16.gmra.mxu1 %vm1228_vm3, %v10855_v16  ;;  %v10862_v57 = vpop.f32.mrf.mxu0 }
 0x511   : > { %13730 = vst [vmem:[#allocation24_spill] sm:$0xff] %v10860_v40  ;;  %v3154_v40 = vld [vmem:[#allocation2 + $0x218] sm:$0xff] }
 0x512   : > { %13731 = vst [vmem:[#allocation116_spill] sm:$0xff] %v10862_v57  ;;  %v2820_v29 = vpop.f32.mrf.mxu3  ;;  %v3153_v57 = vld [vmem:[#allocation2 + $0x210] sm:$0xff] }
 0x513   : > { %v4122_v53 = vpop.f32.mrf.mxu2  ;;  %v3021_v36 = vadd.f32 %v2820_v29, %v13732_v52  ;;  %8949 = vmatmul.msk.bf16.gmra.mxu0 %vm1228_vm3, %v10629_v18  ;;  %v13735_v29 = vld [vmem:[#allocation26_spill] sm:$0xff]  ;;  %v2485_v18 = vld [vmem:[#allocation2 + $0x162] sm:$0xff]  ;;  %v10879_v4 = vpack.c.bf16 %v3154_v40, %v3153_v57 }
 0x514   : > { %v3787_v40 = vld [vmem:[#allocation2 + $0x191] sm:$0xff] }
 0x515   : > { %v10867_v13 = vpop.f32.mrf.mxu1  ;;  %v3671_v17 = vadd.f32 %v10626_v60, %v3021_v36  ;;  %v2559_v60 = vpack.c.bf16 %v2486_v8, %v2485_v18 }
 0x517   : > { %v10871_v15 = vadd.f32 %v4120_v51, %v3671_v17 }
 0x518   : > { %8840 = vmatmul.msk.bf16.gmra.mxu2 %vm1228_vm3, %v3859_v49  ;;  %v10873_v5 = vpop.f32.mrf.mxu0  ;;  %v3788_v49 = vld [vmem:[#allocation2 + $0x199] sm:$0xff] }
 0x519   : > { %13733 = vst [vmem:[#allocation25_spill] sm:$0xff] %v10871_v15  ;;  %v3860_v8 = vpack.c.bf16 %v3788_v49, %v3787_v40 }
 0x51a   : > { %13734 = vst [vmem:[#allocation117_spill] sm:$0xff] %v10873_v5  ;;  %v2822_v43 = vpop.f32.mrf.mxu3 }
 0x51b   : > { %v4125_v2 = vpop.f32.mrf.mxu2  ;;  %v3022_v52 = vadd.f32 %v2822_v43, %v13735_v29  ;;  %v13738_v43 = vld [vmem:[#allocation27_spill] sm:$0xff] }
 0x51d   : > { %v10876_v12 = vpop.f32.mrf.mxu1  ;;  %v3672_v34 = vadd.f32 %v10642_v28, %v3022_v52 }
 0x51f   : > { %8728 = vmatmul.msk.bf16.gmra.mxu3 %vm1228_vm3, %v2559_v60  ;;  %v10884_v51 = vadd.f32 %v4122_v53, %v3672_v34  ;;  %v2488_v60 = vld [vmem:[#allocation2 + $0x17a] sm:$0xff] }
 0x520   : > { %8793 = vmatmul.msk.bf16.gmra.mxu1 %vm1228_vm3, %v10879_v4  ;;  %v10886_v36 = vpop.f32.mrf.mxu0 }
 0x521   : > { %13736 = vst [vmem:[#allocation26_spill] sm:$0xff] %v10884_v51  ;;  %v3156_v51 = vld [vmem:[#allocation2 + $0x228] sm:$0xff] }
 0x522   : > { %13737 = vst [vmem:[#allocation118_spill] sm:$0xff] %v10886_v36  ;;  %v2825_v20 = vpop.f32.mrf.mxu3  ;;  %v3155_v36 = vld [vmem:[#allocation2 + $0x220] sm:$0xff] }
 0x523   : > { %v4127_v17 = vpop.f32.mrf.mxu2  ;;  %v3023_v29 = vadd.f32 %v2825_v20, %v13738_v43  ;;  %8950 = vmatmul.msk.bf16.gmra.mxu0 %vm1228_vm3, %v10655_v33  ;;  %v13741_v20 = vld [vmem:[#allocation28_spill] sm:$0xff]  ;;  %v2487_v33 = vld [vmem:[#allocation2 + $0x172] sm:$0xff]  ;;  %v10903_v49 = vpack.c.bf16 %v3156_v51, %v3155_v36 }
 0x524   : > { %v3789_v51 = vld [vmem:[#allocation2 + $0x1a1] sm:$0xff] }
 0x525   : > { %v10891_v28 = vpop.f32.mrf.mxu1  ;;  %v3673_v57 = vadd.f32 %v10652_v56, %v3023_v29  ;;  %v2560_v56 = vpack.c.bf16 %v2488_v60, %v2487_v33 }
 0x527   : > { %v10895_v34 = vadd.f32 %v4125_v2, %v3673_v57 }
 0x528   : > { %8841 = vmatmul.msk.bf16.gmra.mxu2 %vm1228_vm3, %v3860_v8  ;;  %v10897_v53 = vpop.f32.mrf.mxu0  ;;  %v3790_v8 = vld [vmem:[#allocation2 + $0x1a9] sm:$0xff] }
 0x529   : > { %13739 = vst [vmem:[#allocation27_spill] sm:$0xff] %v10895_v34  ;;  %v3861_v60 = vpack.c.bf16 %v3790_v8, %v3789_v51 }
 0x52a   : > { %13740 = vst [vmem:[#allocation119_spill] sm:$0xff] %v10897_v53  ;;  %v2827_v52 = vpop.f32.mrf.mxu3 }
 0x52b   : > { %v4130_v18 = vpop.f32.mrf.mxu2  ;;  %v3024_v43 = vadd.f32 %v2827_v52, %v13741_v20  ;;  %v13744_v52 = vld [vmem:[#allocation29_spill] sm:$0xff] }
 0x52d   : > { %v10900_v15 = vpop.f32.mrf.mxu1  ;;  %v3674_v5 = vadd.f32 %v10668_v39, %v3024_v43 }
 0x52f   : > { %8729 = vmatmul.msk.bf16.gmra.mxu3 %vm1228_vm3, %v2560_v56  ;;  %v10908_v2 = vadd.f32 %v4127_v17, %v3674_v5  ;;  %v2490_v56 = vld [vmem:[#allocation2 + $0x18a] sm:$0xff] }
 0x530   : > { %8794 = vmatmul.msk.bf16.gmra.mxu1 %vm1228_vm3, %v10903_v49  ;;  %v10910_v29 = vpop.f32.mrf.mxu0 }
 0x531   : > { %13742 = vst [vmem:[#allocation28_spill] sm:$0xff] %v10908_v2  ;;  %v3158_v2 = vld [vmem:[#allocation2 + $0x238] sm:$0xff] }
 0x532   : > { %13743 = vst [vmem:[#allocation120_spill] sm:$0xff] %v10910_v29  ;;  %v2830_v40 = vpop.f32.mrf.mxu3  ;;  %v3157_v29 = vld [vmem:[#allocation2 + $0x230] sm:$0xff] }
 0x533   : > { %v4132_v57 = vpop.f32.mrf.mxu2  ;;  %v3025_v20 = vadd.f32 %v2830_v40, %v13744_v52  ;;  %8951 = vmatmul.msk.bf16.gmra.mxu0 %vm1228_vm3, %v10681_v48  ;;  %v13747_v40 = vld [vmem:[#allocation30_spill] sm:$0xff]  ;;  %v2489_v48 = vld [vmem:[#allocation2 + $0x182] sm:$0xff]  ;;  %v10927_v8 = vpack.c.bf16 %v3158_v2, %v3157_v29 }
 0x534   : > { %v3791_v2 = vld [vmem:[#allocation2 + $0x1b1] sm:$0xff] }
 0x535   : > { %v10915_v39 = vpop.f32.mrf.mxu1  ;;  %v3675_v36 = vadd.f32 %v10678_v0, %v3025_v20  ;;  %v2561_v0 = vpack.c.bf16 %v2490_v56, %v2489_v48 }
 0x537   : > { %v10919_v5 = vadd.f32 %v4130_v18, %v3675_v36 }
 0x538   : > { %8842 = vmatmul.msk.bf16.gmra.mxu2 %vm1228_vm3, %v3861_v60  ;;  %v10921_v17 = vpop.f32.mrf.mxu0  ;;  %v3792_v60 = vld [vmem:[#allocation2 + $0x1b9] sm:$0xff] }
 0x539   : > { %13745 = vst [vmem:[#allocation29_spill] sm:$0xff] %v10919_v5  ;;  %v3862_v56 = vpack.c.bf16 %v3792_v60, %v3791_v2 }
 0x53a   : > { %13746 = vst [vmem:[#allocation121_spill] sm:$0xff] %v10921_v17  ;;  %v2832_v43 = vpop.f32.mrf.mxu3 }
 0x53b   : > { %v4135_v33 = vpop.f32.mrf.mxu2  ;;  %v3026_v52 = vadd.f32 %v2832_v43, %v13747_v40  ;;  %v13750_v43 = vld [vmem:[#allocation31_spill] sm:$0xff] }
 0x53d   : > { %v10924_v34 = vpop.f32.mrf.mxu1  ;;  %v3676_v53 = vadd.f32 %v10694_v38, %v3026_v52 }
 0x53f   : > { %8730 = vmatmul.msk.bf16.gmra.mxu3 %vm1228_vm3, %v2561_v0  ;;  %v10932_v18 = vadd.f32 %v4132_v57, %v3676_v53  ;;  %v2492_v0 = vld [vmem:[#allocation2 + $0x19a] sm:$0xff] }
 0x540   : > { %8795 = vmatmul.msk.bf16.gmra.mxu1 %vm1228_vm3, %v10927_v8  ;;  %v10934_v20 = vpop.f32.mrf.mxu0 }
 0x541   : > { %13748 = vst [vmem:[#allocation30_spill] sm:$0xff] %v10932_v18  ;;  %v3160_v18 = vld [vmem:[#allocation2 + $0x248] sm:$0xff] }
 0x542   : > { %13749 = vst [vmem:[#allocation122_spill] sm:$0xff] %v10934_v20  ;;  %v2835_v51 = vpop.f32.mrf.mxu3  ;;  %v3159_v20 = vld [vmem:[#allocation2 + $0x240] sm:$0xff] }
 0x543   : > { %v4137_v36 = vpop.f32.mrf.mxu2  ;;  %v3027_v40 = vadd.f32 %v2835_v51, %v13750_v43  ;;  %8952 = vmatmul.msk.bf16.gmra.mxu0 %vm1228_vm3, %v10707_v1  ;;  %v13753_v51 = vld [vmem:[#allocation32_spill] sm:$0xff]  ;;  %v2491_v1 = vld [vmem:[#allocation2 + $0x192] sm:$0xff]  ;;  %v10951_v60 = vpack.c.bf16 %v3160_v18, %v3159_v20 }
 0x544   : > { %v3793_v18 = vld [vmem:[#allocation2 + $0x1c1] sm:$0xff] }
 0x545   : > { %v10939_v38 = vpop.f32.mrf.mxu1  ;;  %v3677_v29 = vadd.f32 %v10704_v27, %v3027_v40  ;;  %v2562_v27 = vpack.c.bf16 %v2492_v0, %v2491_v1  ;;  %v9372_v40 = vld [vmem:[#allocation7 + $0x58] sm:$0xff] }
 0x546   : > { %4702 = vmatpush.bf16.msrb.mxu3 %v9372_v40  ;;  %v3162_v40 = vld [vmem:[#allocation2 + $0x258] sm:$0xff] }
 0x547   : > { %v10943_v53 = vadd.f32 %v4135_v33, %v3677_v29 }
 0x548   : > { %8843 = vmatmul.msk.bf16.gmra.mxu2 %vm1228_vm3, %v3862_v56  ;;  %v10945_v57 = vpop.f32.mrf.mxu0 }
 0x549   : > { %13751 = vst [vmem:[#allocation31_spill] sm:$0xff] %v10943_v53 }
 0x54a   : > { %13752 = vst [vmem:[#allocation123_spill] sm:$0xff] %v10945_v57  ;;  %v2837_v52 = vpop.f32.mrf.mxu3 }
 0x54b   : > { %v4140_v48 = vpop.f32.mrf.mxu2  ;;  %v3028_v43 = vadd.f32 %v2837_v52, %v13753_v51  ;;  %v3794_v52 = vld [vmem:[#allocation2 + $0x1c9] sm:$0xff] }
 0x54c   : > { %v13756_v51 = vld [vmem:[#allocation33_spill] sm:$0xff]  ;;  %v3863_v0 = vpack.c.bf16 %v3794_v52, %v3793_v18 }
 0x54d   : > { %v10948_v5 = vpop.f32.mrf.mxu1  ;;  %v3678_v17 = vadd.f32 %v10720_v35, %v3028_v43 }
 0x54f   : > { %8731 = vmatmul.msk.bf16.gmra.mxu3 %vm1228_vm3, %v2562_v27  ;;  %v10956_v33 = vadd.f32 %v4137_v36, %v3678_v17  ;;  %v2494_v27 = vld [vmem:[#allocation2 + $0x1aa] sm:$0xff] }
 0x550   : > { %8796 = vmatmul.msk.bf16.gmra.mxu1 %vm1228_vm3, %v10951_v60  ;;  %v10958_v2 = vpop.f32.mrf.mxu0 }
 0x551   : > { %13754 = vst [vmem:[#allocation32_spill] sm:$0xff] %v10956_v33 }
 0x552   : > { %13755 = vst [vmem:[#allocation124_spill] sm:$0xff] %v10958_v2  ;;  %v2840_v29 = vpop.f32.mrf.mxu3  ;;  %v3161_v2 = vld [vmem:[#allocation2 + $0x250] sm:$0xff] }
 0x553   : > { %v4142_v56 = vpop.f32.mrf.mxu2  ;;  %v3029_v53 = vadd.f32 %v2840_v29, %v13756_v51  ;;  %8953 = vmatmul.msk.bf16.gmra.mxu0 %vm1228_vm3, %v10733_v32  ;;  %v13759_v29 = vld [vmem:[#allocation34_spill] sm:$0xff]  ;;  %v2493_v32 = vld [vmem:[#allocation2 + $0x1a2] sm:$0xff] }
 0x555   : > { %v10963_v35 = vpop.f32.mrf.mxu1  ;;  %v3679_v20 = vadd.f32 %v10730_v11, %v3029_v53  ;;  %v2563_v11 = vpack.c.bf16 %v2494_v27, %v2493_v32  ;;  %v10975_v53 = vpack.c.bf16 %v3162_v40, %v3161_v2  ;;  %v3795_v2 = vld [vmem:[#allocation2 + $0x1d1] sm:$0xff] }
 0x557   : > { %v10967_v17 = vadd.f32 %v4140_v48, %v3679_v20 }
 0x558   : > { %8844 = vmatmul.msk.bf16.gmra.mxu2 %vm1228_vm3, %v3863_v0  ;;  %v10969_v36 = vpop.f32.mrf.mxu0  ;;  %v3796_v0 = vld [vmem:[#allocation2 + $0x1d9] sm:$0xff] }
 0x559   : > { %13757 = vst [vmem:[#allocation33_spill] sm:$0xff] %v10967_v17  ;;  %v3864_v40 = vpack.c.bf16 %v3796_v0, %v3795_v2 }
 0x55a   : > { %13758 = vst [vmem:[#allocation125_spill] sm:$0xff] %v10969_v36  ;;  %v2842_v43 = vpop.f32.mrf.mxu3 }
 0x55b   : > { %v4145_v1 = vpop.f32.mrf.mxu2  ;;  %v3030_v51 = vadd.f32 %v2842_v43, %v13759_v29  ;;  %v13762_v43 = vld [vmem:[#allocation35_spill] sm:$0xff] }
 0x55d   : > { %v10972_v33 = vpop.f32.mrf.mxu1  ;;  %v3680_v57 = vadd.f32 %v10746_v3, %v3030_v51 }
 0x55f   : > { %8732 = vmatmul.msk.bf16.gmra.mxu3 %vm1228_vm3, %v2563_v11  ;;  %v10980_v48 = vadd.f32 %v4142_v56, %v3680_v57  ;;  %v2496_v11 = vld [vmem:[#allocation2 + $0x1ba] sm:$0xff] }
 0x560   : > { %8797 = vmatmul.msk.bf16.gmra.mxu1 %vm1228_vm3, %v10975_v53  ;;  %v10982_v52 = vpop.f32.mrf.mxu0 }
 0x561   : > { %13760 = vst [vmem:[#allocation34_spill] sm:$0xff] %v10980_v48  ;;  %v3164_v48 = vld [vmem:[#allocation2 + $0x268] sm:$0xff] }
 0x562   : > { %13761 = vst [vmem:[#allocation126_spill] sm:$0xff] %v10982_v52  ;;  %v2845_v18 = vpop.f32.mrf.mxu3  ;;  %v3163_v52 = vld [vmem:[#allocation2 + $0x260] sm:$0xff] }
 0x563   : > { %v4147_v20 = vpop.f32.mrf.mxu2  ;;  %v3031_v29 = vadd.f32 %v2845_v18, %v13762_v43  ;;  %8954 = vmatmul.msk.bf16.gmra.mxu0 %vm1228_vm3, %v10759_v46  ;;  %v13765_v18 = vld [vmem:[#allocation36_spill] sm:$0xff]  ;;  %v2495_v46 = vld [vmem:[#allocation2 + $0x1b2] sm:$0xff]  ;;  %v10999_v0 = vpack.c.bf16 %v3164_v48, %v3163_v52 }
 0x564   : > { %v3797_v48 = vld [vmem:[#allocation2 + $0x1e1] sm:$0xff] }
 0x565   : > { %v10987_v3 = vpop.f32.mrf.mxu1  ;;  %v3681_v27 = vadd.f32 %v10756_v63, %v3031_v29  ;;  %v2564_v63 = vpack.c.bf16 %v2496_v11, %v2495_v46 }
 0x567   : > { %v10991_v57 = vadd.f32 %v4145_v1, %v3681_v27 }
 0x568   : > { %8845 = vmatmul.msk.bf16.gmra.mxu2 %vm1228_vm3, %v3864_v40  ;;  %v10993_v56 = vpop.f32.mrf.mxu0  ;;  %v3798_v40 = vld [vmem:[#allocation2 + $0x1e9] sm:$0xff] }
 0x569   : > { %13763 = vst [vmem:[#allocation35_spill] sm:$0xff] %v10991_v57  ;;  %v3865_v11 = vpack.c.bf16 %v3798_v40, %v3797_v48 }
 0x56a   : > { %13764 = vst [vmem:[#allocation127_spill] sm:$0xff] %v10993_v56  ;;  %v2847_v51 = vpop.f32.mrf.mxu3 }
 0x56b   : > { %v4150_v32 = vpop.f32.mrf.mxu2  ;;  %v3032_v43 = vadd.f32 %v2847_v51, %v13765_v18  ;;  %v13768_v51 = vld [vmem:[#allocation37_spill] sm:$0xff] }
 0x56d   : > { %v10996_v17 = vpop.f32.mrf.mxu1  ;;  %v3682_v36 = vadd.f32 %v10771_v58, %v3032_v43 }
 0x56f   : > { %8733 = vmatmul.msk.bf16.gmra.mxu3 %vm1228_vm3, %v2564_v63  ;;  %v11004_v1 = vadd.f32 %v4147_v20, %v3682_v36  ;;  %v2498_v63 = vld [vmem:[#allocation2 + $0x1ca] sm:$0xff] }
 0x570   : > { %8798 = vmatmul.msk.bf16.gmra.mxu1 %vm1228_vm3, %v10999_v0  ;;  %v11006_v29 = vpop.f32.mrf.mxu0 }
 0x571   : > { %13766 = vst [vmem:[#allocation36_spill] sm:$0xff] %v11004_v1  ;;  %v3166_v1 = vld [vmem:[#allocation2 + $0x278] sm:$0xff] }
 0x572   : > { %13767 = vst [vmem:[#allocation128_spill] sm:$0xff] %v11006_v29  ;;  %v2850_v2 = vpop.f32.mrf.mxu3  ;;  %v3165_v29 = vld [vmem:[#allocation2 + $0x270] sm:$0xff] }
 0x573   : > { %v4152_v27 = vpop.f32.mrf.mxu2  ;;  %v3033_v18 = vadd.f32 %v2850_v2, %v13768_v51  ;;  %8955 = vmatmul.msk.bf16.gmra.mxu0 %vm1228_vm3, %v10783_v45  ;;  %v13771_v2 = vld [vmem:[#allocation38_spill] sm:$0xff]  ;;  %v2497_v45 = vld [vmem:[#allocation2 + $0x1c2] sm:$0xff]  ;;  %v11023_v40 = vpack.c.bf16 %v3166_v1, %v3165_v29 }
 0x574   : > { %v3799_v1 = vld [vmem:[#allocation2 + $0x1f1] sm:$0xff] }
 0x575   : > { %v11011_v58 = vpop.f32.mrf.mxu1  ;;  %v3683_v52 = vadd.f32 %v10780_v55, %v3033_v18  ;;  %v2565_v55 = vpack.c.bf16 %v2498_v63, %v2497_v45 }
 0x577   : > { %v11015_v36 = vadd.f32 %v4150_v32, %v3683_v52 }
 0x578   : > { %8846 = vmatmul.msk.bf16.gmra.mxu2 %vm1228_vm3, %v3865_v11  ;;  %v11017_v20 = vpop.f32.mrf.mxu0  ;;  %v3800_v11 = vld [vmem:[#allocation2 + $0x1f9] sm:$0xff] }
 0x579   : > { %13769 = vst [vmem:[#allocation37_spill] sm:$0xff] %v11015_v36  ;;  %v3866_v63 = vpack.c.bf16 %v3800_v11, %v3799_v1 }
 0x57a   : > { %13770 = vst [vmem:[#allocation129_spill] sm:$0xff] %v11017_v20  ;;  %v2852_v43 = vpop.f32.mrf.mxu3 }
 0x57b   : > { %v4155_v46 = vpop.f32.mrf.mxu2  ;;  %v3034_v51 = vadd.f32 %v2852_v43, %v13771_v2  ;;  %v13774_v43 = vld [vmem:[#allocation39_spill] sm:$0xff] }
 0x57d   : > { %v11020_v57 = vpop.f32.mrf.mxu1  ;;  %v3684_v56 = vadd.f32 %v10795_v31, %v3034_v51 }
 0x57f   : > { %8734 = vmatmul.msk.bf16.gmra.mxu3 %vm1228_vm3, %v2565_v55  ;;  %v11028_v32 = vadd.f32 %v4152_v27, %v3684_v56  ;;  %v2500_v55 = vld [vmem:[#allocation2 + $0x1da] sm:$0xff] }
 0x580   : > { %8799 = vmatmul.msk.bf16.gmra.mxu1 %vm1228_vm3, %v11023_v40  ;;  %v11030_v18 = vpop.f32.mrf.mxu0 }
 0x581   : > { %13772 = vst [vmem:[#allocation38_spill] sm:$0xff] %v11028_v32  ;;  %v3168_v32 = vld [vmem:[#allocation2 + $0x288] sm:$0xff] }
 0x582   : > { %13773 = vst [vmem:[#allocation130_spill] sm:$0xff] %v11030_v18  ;;  %v2855_v48 = vpop.f32.mrf.mxu3  ;;  %v3167_v18 = vld [vmem:[#allocation2 + $0x280] sm:$0xff] }
 0x583   : > { %v4157_v52 = vpop.f32.mrf.mxu2  ;;  %v3035_v2 = vadd.f32 %v2855_v48, %v13774_v43  ;;  %8956 = vmatmul.msk.bf16.gmra.mxu0 %vm1228_vm3, %v10807_v14  ;;  %v13777_v48 = vld [vmem:[#allocation40_spill] sm:$0xff]  ;;  %v2499_v14 = vld [vmem:[#allocation2 + $0x1d2] sm:$0xff]  ;;  %v11047_v11 = vpack.c.bf16 %v3168_v32, %v3167_v18 }
 0x584   : > { %v3801_v32 = vld [vmem:[#allocation2 + $0x201] sm:$0xff] }
 0x585   : > { %v11035_v31 = vpop.f32.mrf.mxu1  ;;  %v3685_v29 = vadd.f32 %v10804_v9, %v3035_v2  ;;  %v2566_v9 = vpack.c.bf16 %v2500_v55, %v2499_v14 }
 0x587   : > { %v11039_v56 = vadd.f32 %v4155_v46, %v3685_v29 }
 0x588   : > { %8847 = vmatmul.msk.bf16.gmra.mxu2 %vm1228_vm3, %v3866_v63  ;;  %v11041_v27 = vpop.f32.mrf.mxu0  ;;  %v3802_v63 = vld [vmem:[#allocation2 + $0x209] sm:$0xff] }
 0x589   : > { %13775 = vst [vmem:[#allocation39_spill] sm:$0xff] %v11039_v56  ;;  %v3867_v55 = vpack.c.bf16 %v3802_v63, %v3801_v32 }
 0x58a   : > { %13776 = vst [vmem:[#allocation131_spill] sm:$0xff] %v11041_v27  ;;  %v2857_v51 = vpop.f32.mrf.mxu3 }
 0x58b   : > { %v4160_v45 = vpop.f32.mrf.mxu2  ;;  %v3036_v43 = vadd.f32 %v2857_v51, %v13777_v48  ;;  %v13780_v51 = vld [vmem:[#allocation41_spill] sm:$0xff] }
 0x58d   : > { %v11044_v36 = vpop.f32.mrf.mxu1  ;;  %v3686_v20 = vadd.f32 %v10819_v22, %v3036_v43 }
 0x58f   : > { %8735 = vmatmul.msk.bf16.gmra.mxu3 %vm1228_vm3, %v2566_v9  ;;  %v11052_v46 = vadd.f32 %v4157_v52, %v3686_v20  ;;  %v2502_v9 = vld [vmem:[#allocation2 + $0x1ea] sm:$0xff] }
 0x590   : > { %8800 = vmatmul.msk.bf16.gmra.mxu1 %vm1228_vm3, %v11047_v11  ;;  %v11054_v2 = vpop.f32.mrf.mxu0 }
 0x591   : > { %13778 = vst [vmem:[#allocation40_spill] sm:$0xff] %v11052_v46  ;;  %v3170_v46 = vld [vmem:[#allocation2 + $0x298] sm:$0xff] }
 0x592   : > { %13779 = vst [vmem:[#allocation132_spill] sm:$0xff] %v11054_v2  ;;  %v2860_v1 = vpop.f32.mrf.mxu3  ;;  %v3169_v2 = vld [vmem:[#allocation2 + $0x290] sm:$0xff] }
 0x593   : > { %v4162_v29 = vpop.f32.mrf.mxu2  ;;  %v3037_v48 = vadd.f32 %v2860_v1, %v13780_v51  ;;  %8957 = vmatmul.msk.bf16.gmra.mxu0 %vm1228_vm3, %v10831_v42  ;;  %v13783_v1 = vld [vmem:[#allocation42_spill] sm:$0xff]  ;;  %v2501_v42 = vld [vmem:[#allocation2 + $0x1e2] sm:$0xff]  ;;  %v11071_v63 = vpack.c.bf16 %v3170_v46, %v3169_v2 }
 0x594   : > { %v3803_v46 = vld [vmem:[#allocation2 + $0x211] sm:$0xff] }
 0x595   : > { %v11059_v22 = vpop.f32.mrf.mxu1  ;;  %v3687_v18 = vadd.f32 %v10828_v61, %v3037_v48  ;;  %v2567_v61 = vpack.c.bf16 %v2502_v9, %v2501_v42 }
 0x597   : > { %v11063_v20 = vadd.f32 %v4160_v45, %v3687_v18 }
 0x598   : > { %8848 = vmatmul.msk.bf16.gmra.mxu2 %vm1228_vm3, %v3867_v55  ;;  %v11065_v52 = vpop.f32.mrf.mxu0  ;;  %v3804_v55 = vld [vmem:[#allocation2 + $0x219] sm:$0xff] }
 0x599   : > { %13781 = vst [vmem:[#allocation41_spill] sm:$0xff] %v11063_v20  ;;  %v3868_v9 = vpack.c.bf16 %v3804_v55, %v3803_v46 }
 0x59a   : > { %13782 = vst [vmem:[#allocation133_spill] sm:$0xff] %v11065_v52  ;;  %v2862_v43 = vpop.f32.mrf.mxu3 }
 0x59b   : > { %v4165_v14 = vpop.f32.mrf.mxu2  ;;  %v3038_v51 = vadd.f32 %v2862_v43, %v13783_v1  ;;  %v13786_v43 = vld [vmem:[#allocation43_spill] sm:$0xff] }
 0x59d   : > { %v11068_v56 = vpop.f32.mrf.mxu1  ;;  %v3688_v27 = vadd.f32 %v10843_v19, %v3038_v51 }
 0x59f   : > { %8736 = vmatmul.msk.bf16.gmra.mxu3 %vm1228_vm3, %v2567_v61  ;;  %v11076_v45 = vadd.f32 %v4162_v29, %v3688_v27  ;;  %v2504_v61 = vld [vmem:[#allocation2 + $0x1fa] sm:$0xff] }
 0x5a0   : > { %8801 = vmatmul.msk.bf16.gmra.mxu1 %vm1228_vm3, %v11071_v63  ;;  %v11078_v48 = vpop.f32.mrf.mxu0 }
 0x5a1   : > { %13784 = vst [vmem:[#allocation42_spill] sm:$0xff] %v11076_v45  ;;  %v3172_v45 = vld [vmem:[#allocation2 + $0x2a8] sm:$0xff] }
 0x5a2   : > { %13785 = vst [vmem:[#allocation134_spill] sm:$0xff] %v11078_v48  ;;  %v2865_v32 = vpop.f32.mrf.mxu3  ;;  %v3171_v48 = vld [vmem:[#allocation2 + $0x2a0] sm:$0xff] }
 0x5a3   : > { %v4167_v18 = vpop.f32.mrf.mxu2  ;;  %v3039_v1 = vadd.f32 %v2865_v32, %v13786_v43  ;;  %8958 = vmatmul.msk.bf16.gmra.mxu0 %vm1228_vm3, %v10855_v16  ;;  %v13789_v32 = vld [vmem:[#allocation44_spill] sm:$0xff]  ;;  %v2503_v16 = vld [vmem:[#allocation2 + $0x1f2] sm:$0xff]  ;;  %v11095_v55 = vpack.c.bf16 %v3172_v45, %v3171_v48 }
 0x5a4   : > { %v3805_v45 = vld [vmem:[#allocation2 + $0x221] sm:$0xff] }
 0x5a5   : > { %v11083_v19 = vpop.f32.mrf.mxu1  ;;  %v3689_v2 = vadd.f32 %v10852_v50, %v3039_v1  ;;  %v2568_v50 = vpack.c.bf16 %v2504_v61, %v2503_v16  ;;  %v2506_v16 = vld [vmem:[#allocation2 + $0x20a] sm:$0xff] }
 0x5a7   : > { %v11087_v27 = vadd.f32 %v4165_v14, %v3689_v2 }
 0x5a8   : > { %8849 = vmatmul.msk.bf16.gmra.mxu2 %vm1228_vm3, %v3868_v9  ;;  %v11089_v29 = vpop.f32.mrf.mxu0  ;;  %v3806_v9 = vld [vmem:[#allocation2 + $0x229] sm:$0xff] }
 0x5a9   : > { %13787 = vst [vmem:[#allocation43_spill] sm:$0xff] %v11087_v27  ;;  %v3869_v61 = vpack.c.bf16 %v3806_v9, %v3805_v45 }
 0x5aa   : > { %13788 = vst [vmem:[#allocation135_spill] sm:$0xff] %v11089_v29  ;;  %v2867_v51 = vpop.f32.mrf.mxu3 }
 0x5ab   : > { %v4170_v42 = vpop.f32.mrf.mxu2  ;;  %v3040_v43 = vadd.f32 %v2867_v51, %v13789_v32  ;;  %v13792_v51 = vld [vmem:[#allocation45_spill] sm:$0xff] }
 0x5ad   : > { %v11092_v20 = vpop.f32.mrf.mxu1  ;;  %v3690_v52 = vadd.f32 %v10867_v13, %v3040_v43 }
 0x5af   : > { %8737 = vmatmul.msk.bf16.gmra.mxu3 %vm1228_vm3, %v2568_v50  ;;  %v11100_v14 = vadd.f32 %v4167_v18, %v3690_v52  ;;  %v3174_v50 = vld [vmem:[#allocation2 + $0x2b8] sm:$0xff] }
 0x5b0   : > { %8802 = vmatmul.msk.bf16.gmra.mxu1 %vm1228_vm3, %v11095_v55  ;;  %v11102_v1 = vpop.f32.mrf.mxu0 }
 0x5b1   : > { %13790 = vst [vmem:[#allocation44_spill] sm:$0xff] %v11100_v14 }
 0x5b2   : > { %13791 = vst [vmem:[#allocation136_spill] sm:$0xff] %v11102_v1  ;;  %v2870_v46 = vpop.f32.mrf.mxu3  ;;  %v3173_v1 = vld [vmem:[#allocation2 + $0x2b0] sm:$0xff] }
 0x5b3   : > { %v4172_v2 = vpop.f32.mrf.mxu2  ;;  %v3041_v32 = vadd.f32 %v2870_v46, %v13792_v51  ;;  %8959 = vmatmul.msk.bf16.gmra.mxu0 %vm1228_vm3, %v10879_v4  ;;  %v13795_v46 = vld [vmem:[#allocation46_spill] sm:$0xff]  ;;  %v2505_v4 = vld [vmem:[#allocation2 + $0x202] sm:$0xff]  ;;  %v11119_v9 = vpack.c.bf16 %v3174_v50, %v3173_v1 }
 0x5b5   : > { %v11107_v13 = vpop.f32.mrf.mxu1  ;;  %v3691_v48 = vadd.f32 %v10876_v12, %v3041_v32  ;;  %v2569_v12 = vpack.c.bf16 %v2506_v16, %v2505_v4  ;;  %v2508_v4 = vld [vmem:[#allocation2 + $0x21a] sm:$0xff] }
 0x5b7   : > { %v11111_v52 = vadd.f32 %v4170_v42, %v3691_v48  ;;  %v3808_v48 = vld [vmem:[#allocation2 + $0x239] sm:$0xff] }
 0x5b8   : > { %8850 = vmatmul.msk.bf16.gmra.mxu2 %vm1228_vm3, %v3869_v61  ;;  %v11113_v14 = vpop.f32.mrf.mxu0  ;;  %v13797_v61 = vld [vmem:[#allocation47_spill] sm:$0xff] }
 0x5b9   : > { %13793 = vst [vmem:[#allocation45_spill] sm:$0xff] %v11111_v52  ;;  %v3175_v52 = vld [vmem:[#allocation2 + $0x2c0] sm:$0xff] }
 0x5ba   : > { %v2872_v18 = vpop.f32.mrf.mxu3  ;;  %13794 = vst [vmem:[#allocation137_spill] sm:$0xff] %v11113_v14 }
 0x5bb   : > { %v4175_v43 = vpop.f32.mrf.mxu2  ;;  %v3042_v51 = vadd.f32 %v2872_v18, %v13795_v46 }
 0x5bd   : > { %v11116_v27 = vpop.f32.mrf.mxu1  ;;  %v3692_v29 = vadd.f32 %v10891_v28, %v3042_v51  ;;  %v3807_v28 = vld [vmem:[#allocation2 + $0x231] sm:$0xff] }
 0x5be   : > { %v3870_v50 = vpack.c.bf16 %v3808_v48, %v3807_v28 }
 0x5bf   : > { %8738 = vmatmul.msk.bf16.gmra.mxu3 %vm1228_vm3, %v2569_v12  ;;  %v11124_v42 = vadd.f32 %v4172_v2, %v3692_v29  ;;  %v3176_v12 = vld [vmem:[#allocation2 + $0x2c8] sm:$0xff] }
 0x5c0   : > { %8803 = vmatmul.msk.bf16.gmra.mxu1 %vm1228_vm3, %v11119_v9  ;;  %v11131_v1 = vpop.f32.mrf.mxu0  ;;  %v11141_v30 = vpack.c.bf16 %v3176_v12, %v3175_v52  ;;  %v3809_v52 = vld [vmem:[#allocation2 + $0x241] sm:$0xff]  ;;  %v9376_v12 = vld [vmem:[#allocation7 + $0x78] sm:$0xff] }
 0x5c1   : > { %13796 = vst [vmem:[#allocation46_spill] sm:$0xff] %v11124_v42  ;;  %6002 = vmatpush.bf16.msra.mxu1 %v9376_v12 }
 0x5c2   : > { %v2875_v32 = vpop.f32.mrf.mxu3  ;;  %13798 = vst [vmem:[#allocation47_spill] sm:$0xff] %v11131_v1 }
 0x5c3   : > { %v4177_v45 = vpop.f32.mrf.mxu2  ;;  %v3043_v18 = vadd.f32 %v2875_v32, %v13797_v61  ;;  %8960 = vmatmul.msk.bf16.gmra.mxu0 %vm1228_vm3, %v10903_v49  ;;  %v13800_v32 = vld [vmem:[#allocation48_spill] sm:$0xff]  ;;  %v2507_v49 = vld [vmem:[#allocation2 + $0x212] sm:$0xff] }
 0x5c4   : > { %v2570_v1 = vpack.c.bf16 %v2508_v4, %v2507_v49  ;;  %v2510_v49 = vld [vmem:[#allocation2 + $0x22a] sm:$0xff] }
 0x5c5   : > { %v11129_v46 = vpop.f32.mrf.mxu1  ;;  %v3693_v16 = vadd.f32 %v10900_v15, %v3043_v18  ;;  %v9378_v15 = vld [vmem:[#allocation7 + $0x88] sm:$0xff] }
 0x5c6   : > { %6652 = vmatpush.bf16.msra.mxu2 %v9378_v15  ;;  %v3178_v15 = vld [vmem:[#allocation2 + $0x2d8] sm:$0xff] }
 0x5c7   : > { %v11135_v29 = vadd.f32 %v4175_v43, %v3693_v16  ;;  %v3810_v16 = vld [vmem:[#allocation2 + $0x249] sm:$0xff] }
 0x5c8   : > { %8851 = vmatmul.msk.bf16.gmra.mxu2 %vm1228_vm3, %v3870_v50  ;;  %v11143_v48 = vpop.f32.mrf.mxu0  ;;  %v13802_v50 = vld [vmem:[#allocation49_spill] sm:$0xff] }
 0x5c9   : > { %13799 = vst [vmem:[#allocation138_spill] sm:$0xff] %v11135_v29  ;;  %v3177_v29 = vld [vmem:[#allocation2 + $0x2d0] sm:$0xff] }
 0x5ca   : > { %v2877_v2 = vpop.f32.mrf.mxu3 }
 0x5cb   : > { %v4180_v51 = vpop.f32.mrf.mxu2  ;;  %v3044_v61 = vadd.f32 %v2877_v2, %v13800_v32 }
 0x5cd   : > { %v11138_v42 = vpop.f32.mrf.mxu1  ;;  %v3694_v14 = vadd.f32 %v10915_v39, %v3044_v61 }
 0x5cf   : > { %8739 = vmatmul.msk.bf16.gmra.mxu3 %vm1228_vm3, %v2570_v1  ;;  %v11148_v43 = vadd.f32 %v4177_v45, %v3694_v14  ;;  %v3871_v1 = vpack.c.bf16 %v3810_v16, %v3809_v52 }
 0x5d0   : > { %8804 = vmatmul.msk.bf16.gmra.mxu1 %vm1228_vm3, %v11141_v30  ;;  %v11159_v45 = vpop.f32.mrf.mxu0 }
 0x5d1   : > { %13801 = vst [vmem:[#allocation48_spill] sm:$0xff] %v11148_v43  ;;  %v2509_v43 = vld [vmem:[#allocation2 + $0x222] sm:$0xff] }
 0x5d2   : > { %v2880_v18 = vpop.f32.mrf.mxu3  ;;  %13804 = vst [vmem:[#allocation139_spill] sm:$0xff] %v11159_v45  ;;  %v2571_v16 = vpack.c.bf16 %v2510_v49, %v2509_v43 }
 0x5d3   : > { %v4182_v28 = vpop.f32.mrf.mxu2  ;;  %v3045_v2 = vadd.f32 %v2880_v18, %v13802_v50  ;;  %8961 = vmatmul.msk.bf16.gmra.mxu0 %vm1228_vm3, %v10927_v8  ;;  %v13805_v18 = vld [vmem:[#allocation50_spill] sm:$0xff] }
 0x5d5   : > { %v11153_v39 = vpop.f32.mrf.mxu1  ;;  %v3695_v4 = vadd.f32 %v10924_v34, %v3045_v2  ;;  %v11165_v2 = vpack.c.bf16 %v3178_v15, %v3177_v29  ;;  %v3811_v29 = vld [vmem:[#allocation2 + $0x251] sm:$0xff] }
 0x5d7   : > { %v11157_v14 = vadd.f32 %v4180_v51, %v3695_v4 }
 0x5d8   : > { %8852 = vmatmul.msk.bf16.gmra.mxu2 %vm1228_vm3, %v3871_v1  ;;  %v3812_v1 = vld [vmem:[#allocation2 + $0x259] sm:$0xff]  ;;  %v11172_v12 = vpop.f32.mrf.mxu0 }
 0x5d9   : > { %13803 = vst [vmem:[#allocation49_spill] sm:$0xff] %v11157_v14  ;;  %v3872_v49 = vpack.c.bf16 %v3812_v1, %v3811_v29  ;;  %v3814_v29 = vld [vmem:[#allocation2 + $0x269] sm:$0xff] }
 0x5da   : > { %v2882_v32 = vpop.f32.mrf.mxu3  ;;  %13807 = vst [vmem:[#allocation140_spill] sm:$0xff] %v11172_v12 }
 0x5db   : > { %v4185_v61 = vpop.f32.mrf.mxu2  ;;  %v3046_v8 = vadd.f32 %v2882_v32, %v13805_v18  ;;  %v13808_v32 = vld [vmem:[#allocation51_spill] sm:$0xff] }
 0x5dd   : > { %v11162_v50 = vpop.f32.mrf.mxu1  ;;  %v3696_v34 = vadd.f32 %v10939_v38, %v3046_v8 }
 0x5df   : > { %8740 = vmatmul.msk.bf16.gmra.mxu3 %vm1228_vm3, %v2571_v16  ;;  %v11170_v51 = vadd.f32 %v4182_v28, %v3696_v34  ;;  %v2512_v34 = vld [vmem:[#allocation2 + $0x23a] sm:$0xff]  ;;  %v3180_v16 = vld [vmem:[#allocation2 + $0x2e8] sm:$0xff] }
 0x5e0   : > { %8805 = vmatmul.msk.bf16.gmra.mxu1 %vm1228_vm3, %v11165_v2  ;;  %v11186_v12 = vpop.f32.mrf.mxu0 }
 0x5e1   : > { %13806 = vst [vmem:[#allocation50_spill] sm:$0xff] %v11170_v51  ;;  %v13810_v51 = vld [vmem:[#allocation52_spill] sm:$0xff] }
 0x5e2   : > { %v2885_v52 = vpop.f32.mrf.mxu3  ;;  %13811 = vst [vmem:[#allocation52_spill] sm:$0xff] %v11186_v12 }
 0x5e3   : > { %v4187_v4 = vpop.f32.mrf.mxu2  ;;  %v3047_v18 = vadd.f32 %v2885_v52, %v13808_v32  ;;  %8962 = vmatmul.msk.bf16.gmra.mxu0 %vm1228_vm3, %v10951_v60  ;;  %v2511_v32 = vld [vmem:[#allocation2 + $0x232] sm:$0xff]  ;;  %v3179_v60 = vld [vmem:[#allocation2 + $0x2e0] sm:$0xff] }
 0x5e4   : > { %v11189_v1 = vpack.c.bf16 %v3180_v16, %v3179_v60  ;;  %v2514_v60 = vld [vmem:[#allocation2 + $0x24a] sm:$0xff] }
 0x5e5   : > { %v11177_v38 = vpop.f32.mrf.mxu1  ;;  %v3697_v43 = vadd.f32 %v10948_v5, %v3047_v18  ;;  %v2572_v5 = vpack.c.bf16 %v2512_v34, %v2511_v32 }
 0x5e7   : > { %v11181_v28 = vadd.f32 %v4185_v61, %v3697_v43  ;;  %v13813_v43 = vld [vmem:[#allocation53_spill] sm:$0xff] }
 0x5e8   : > { %8853 = vmatmul.msk.bf16.gmra.mxu2 %vm1228_vm3, %v3872_v49  ;;  %v11202_v16 = vpop.f32.mrf.mxu0 }
 0x5e9   : > { %13809 = vst [vmem:[#allocation51_spill] sm:$0xff] %v11181_v28  ;;  %v3181_v28 = vld [vmem:[#allocation2 + $0x2f0] sm:$0xff] }
 0x5ea   : > { %v2887_v15 = vpop.f32.mrf.mxu3  ;;  %13814 = vst [vmem:[#allocation53_spill] sm:$0xff] %v11202_v16  ;;  %v3183_v16 = vld [vmem:[#allocation2 + $0x300] sm:$0xff] }
 0x5eb   : > { %v4190_v8 = vpop.f32.mrf.mxu2  ;;  %v3048_v14 = vadd.f32 %v2887_v15, %v13810_v51 }
 0x5ed   : > { %v11184_v52 = vpop.f32.mrf.mxu1  ;;  %v3698_v45 = vadd.f32 %v10963_v35, %v3048_v14  ;;  %v3813_v35 = vld [vmem:[#allocation2 + $0x261] sm:$0xff] }
 0x5ee   : > { %v3873_v34 = vpack.c.bf16 %v3814_v29, %v3813_v35 }
 0x5ef   : > { %8741 = vmatmul.msk.bf16.gmra.mxu3 %vm1228_vm3, %v2572_v5  ;;  %v11194_v61 = vadd.f32 %v4187_v4, %v3698_v45  ;;  %v3182_v5 = vld [vmem:[#allocation2 + $0x2f8] sm:$0xff] }
 0x5f0   : > { %8806 = vmatmul.msk.bf16.gmra.mxu1 %vm1228_vm3, %v11189_v1  ;;  %v11211_v29 = vpack.c.bf16 %v3182_v5, %v3181_v28  ;;  %v3815_v28 = vld [vmem:[#allocation2 + $0x271] sm:$0xff] }
 0x5f1   : > { %13812 = vst [vmem:[#allocation141_spill] sm:$0xff] %v11194_v61 }
 0x5f2   : > { %v2890_v18 = vpop.f32.mrf.mxu3 }
 0x5f3   : > { %v4192_v51 = vpop.f32.mrf.mxu2  ;;  %v3049_v49 = vadd.f32 %v2890_v18, %v13813_v43  ;;  %8963 = vmatmul.msk.bf16.gmra.mxu0 %vm1228_vm3, %v10975_v53  ;;  %v13816_v18 = vld [vmem:[#allocation54_spill] sm:$0xff]  ;;  %v2513_v53 = vld [vmem:[#allocation2 + $0x242] sm:$0xff] }
 0x5f5   : > { %v11199_v15 = vpop.f32.mrf.mxu1  ;;  %v3699_v14 = vadd.f32 %v10972_v33, %v3049_v49  ;;  %v2573_v33 = vpack.c.bf16 %v2514_v60, %v2513_v53  ;;  %v11218_v49 = vpop.f32.mrf.mxu0  ;;  %v2516_v53 = vld [vmem:[#allocation2 + $0x25a] sm:$0xff] }
 0x5f6   : > { %13818 = vst [vmem:[#allocation143_spill] sm:$0xff] %v11218_v49  ;;  %v2515_v49 = vld [vmem:[#allocation2 + $0x252] sm:$0xff] }
 0x5f7   : > { %v11205_v45 = vadd.f32 %v4190_v8, %v3699_v14 }
 0x5f8   : > { %8854 = vmatmul.msk.bf16.gmra.mxu2 %vm1228_vm3, %v3873_v34  ;;  %v3816_v34 = vld [vmem:[#allocation2 + $0x279] sm:$0xff] }
 0x5f9   : > { %13815 = vst [vmem:[#allocation142_spill] sm:$0xff] %v11205_v45  ;;  %v3874_v5 = vpack.c.bf16 %v3816_v34, %v3815_v28  ;;  %v9375_v45 = vld [vmem:[#allocation7 + $0x70] sm:$0xff]  ;;  %v2574_v34 = vpack.c.bf16 %v2516_v53, %v2515_v49 }
 0x5fa   : > { %v2892_v4 = vpop.f32.mrf.mxu3  ;;  %6003 = vmatpush.bf16.msra.mxu1 %v9375_v45 }
 0x5fb   : > { %v4195_v32 = vpop.f32.mrf.mxu2  ;;  %v3050_v43 = vadd.f32 %v2892_v4, %v13816_v18  ;;  %v13819_v4 = vld [vmem:[#allocation55_spill] sm:$0xff] }
 0x5fd   : > { %v11208_v61 = vpop.f32.mrf.mxu1  ;;  %v3700_v12 = vadd.f32 %v10987_v3, %v3050_v43 }
 0x5ff   : > { %8742 = vmatmul.msk.bf16.gmra.mxu3 %vm1228_vm3, %v2573_v33  ;;  %v11216_v8 = vadd.f32 %v4192_v51, %v3700_v12  ;;  %v3184_v33 = vld [vmem:[#allocation2 + $0x308] sm:$0xff] }
 0x600   : > { %8807 = vmatmul.msk.bf16.gmra.mxu1 %vm1228_vm3, %v11211_v29 }
 0x601   : > { %13817 = vst [vmem:[#allocation54_spill] sm:$0xff] %v11216_v8  ;;  %v11229_v8 = vpop.f32.mrf.mxu0 }
 0x602   : > { %v2895_v35 = vpop.f32.mrf.mxu3  ;;  %13821 = vst [vmem:[#allocation144_spill] sm:$0xff] %v11229_v8  ;;  %v2517_v8 = vld [vmem:[#allocation2 + $0x262] sm:$0xff] }
 0x603   : > { %v4197_v14 = vpop.f32.mrf.mxu2  ;;  %v3051_v18 = vadd.f32 %v2895_v35, %v13819_v4  ;;  %8964 = vmatmul.msk.bf16.gmra.mxu0 %vm1228_vm3, %v10999_v0  ;;  %v13822_v35 = vld [vmem:[#allocation56_spill] sm:$0xff] }
 0x605   : > { %v11223_v3 = vpop.f32.mrf.mxu1  ;;  %v3701_v60 = vadd.f32 %v10996_v17, %v3051_v18  ;;  %v11235_v18 = vpack.c.bf16 %v3184_v33, %v3183_v16  ;;  %v3817_v16 = vld [vmem:[#allocation2 + $0x281] sm:$0xff]  ;;  %v3185_v33 = vld [vmem:[#allocation2 + $0x310] sm:$0xff] }
 0x607   : > { %v11227_v12 = vadd.f32 %v4195_v32, %v3701_v60 }
 0x608   : > { %8855 = vmatmul.msk.bf16.gmra.mxu2 %vm1228_vm3, %v3874_v5  ;;  %v3818_v5 = vld [vmem:[#allocation2 + $0x289] sm:$0xff] }
 0x609   : > { %13820 = vst [vmem:[#allocation55_spill] sm:$0xff] %v11227_v12  ;;  %v11247_v49 = vpop.f32.mrf.mxu0  ;;  %v3875_v53 = vpack.c.bf16 %v3818_v5, %v3817_v16 }
 0x60a   : > { %v2897_v51 = vpop.f32.mrf.mxu3 }
 0x60b   : > { %v4200_v43 = vpop.f32.mrf.mxu2  ;;  %v3052_v4 = vadd.f32 %v2897_v51, %v13822_v35  ;;  %v13824_v51 = vld [vmem:[#allocation57_spill] sm:$0xff] }
 0x60c   : > { %13825 = vst [vmem:[#allocation57_spill] sm:$0xff] %v11247_v49 }
 0x60d   : > { %v11232_v0 = vpop.f32.mrf.mxu1  ;;  %v3702_v17 = vadd.f32 %v11011_v58, %v3052_v4  ;;  %v3186_v4 = vld [vmem:[#allocation2 + $0x318] sm:$0xff] }
 0x60f   : > { %8743 = vmatmul.msk.bf16.gmra.mxu3 %vm1228_vm3, %v2574_v34  ;;  %v11240_v32 = vadd.f32 %v4197_v14, %v3702_v17 }
 0x610   : > { %8808 = vmatmul.msk.bf16.gmra.mxu1 %vm1228_vm3, %v11235_v18 }
 0x611   : > { %13823 = vst [vmem:[#allocation56_spill] sm:$0xff] %v11240_v32  ;;  %v11259_v5 = vpop.f32.mrf.mxu0 }
 0x612   : > { %v2900_v28 = vpop.f32.mrf.mxu3 }
 0x613   : > { %v4202_v60 = vpop.f32.mrf.mxu2  ;;  %v3053_v35 = vadd.f32 %v2900_v28, %v13824_v51  ;;  %8965 = vmatmul.msk.bf16.gmra.mxu0 %vm1228_vm3, %v11023_v40  ;;  %v2518_v28 = vld [vmem:[#allocation2 + $0x26a] sm:$0xff]  ;;  %v11254_v40 = vpack.c.bf16 %v3186_v4, %v3185_v33 }
 0x614   : > { %v13827_v51 = vld [vmem:[#allocation58_spill] sm:$0xff] }
 0x615   : > { %v11245_v58 = vpop.f32.mrf.mxu1  ;;  %v3703_v45 = vadd.f32 %v11020_v57, %v3053_v35  ;;  %v2575_v57 = vpack.c.bf16 %v2518_v28, %v2517_v8  ;;  %13828 = vst [vmem:[#allocation58_spill] sm:$0xff] %v11259_v5 }
 0x617   : > { %v11251_v14 = vadd.f32 %v4200_v43, %v3703_v45  ;;  %v3820_v45 = vld [vmem:[#allocation2 + $0x299] sm:$0xff] }
 0x618   : > { %8856 = vmatmul.msk.bf16.gmra.mxu2 %vm1228_vm3, %v3875_v53  ;;  %v13830_v53 = vld [vmem:[#allocation59_spill] sm:$0xff] }
 0x619   : > { %13826 = vst [vmem:[#allocation145_spill] sm:$0xff] %v11251_v14  ;;  %v5691_v14 = vld [vmem:[#allocation2 + $0x41] sm:$0xff] }
 0x61a   : > { %v2902_v17 = vpop.f32.mrf.mxu3 }
 0x61b   : > { %v4205_v34 = vpop.f32.mrf.mxu2  ;;  %v3054_v32 = vadd.f32 %v2902_v17, %v13827_v51  ;;  %v2520_v51 = vld [vmem:[#allocation2 + $0x27a] sm:$0xff] }
 0x61d   : > { %v11256_v12 = vpop.f32.mrf.mxu1  ;;  %v3704_v49 = vadd.f32 %v11035_v31, %v3054_v32  ;;  %v3819_v31 = vld [vmem:[#allocation2 + $0x291] sm:$0xff] }
 0x61e   : > { %v3876_v32 = vpack.c.bf16 %v3820_v45, %v3819_v31 }
 0x61f   : > { %8744 = vmatmul.msk.bf16.gmra.mxu3 %vm1228_vm3, %v2575_v57  ;;  %v11264_v43 = vadd.f32 %v4202_v60, %v3704_v49  ;;  %v11275_v60 = vpop.f32.mrf.mxu0  ;;  %v5692_v57 = vld [vmem:[#allocation2 + $0x49] sm:$0xff] }
 0x620   : > { %8809 = vmatmul.msk.bf16.gmra.mxu1 %vm1228_vm3, %v11254_v40  ;;  %v5787_v45 = vpack.c.bf16 %v5692_v57, %v5691_v14 }
 0x621   : > { %13829 = vst [vmem:[#allocation146_spill] sm:$0xff] %v11264_v43 }
 0x622   : > { %v2905_v35 = vpop.f32.mrf.mxu3 }
 0x623   : > { %v4207_v16 = vpop.f32.mrf.mxu2  ;;  %v3055_v33 = vadd.f32 %v2905_v35, %v13830_v53  ;;  %8966 = vmatmul.msk.bf16.gmra.mxu0 %vm1228_vm3, %v11047_v11  ;;  %v13832_v35 = vld [vmem:[#allocation60_spill] sm:$0xff]  ;;  %v2519_v11 = vld [vmem:[#allocation2 + $0x272] sm:$0xff] }
 0x625   : > { %v11269_v4 = vpop.f32.mrf.mxu1  ;;  %v3705_v8 = vadd.f32 %v11044_v36, %v3055_v33  ;;  %v2576_v36 = vpack.c.bf16 %v2520_v51, %v2519_v11  ;;  %v5694_v11 = vld [vmem:[#allocation2 + $0x59] sm:$0xff] }
 0x627   : > { %v11273_v17 = vadd.f32 %v4205_v34, %v3705_v8  ;;  %v3822_v8 = vld [vmem:[#allocation2 + $0x2a9] sm:$0xff] }
 0x628   : > { %8857 = vmatmul.msk.bf16.gmra.mxu2 %vm1228_vm3, %v3876_v32  ;;  %v11285_v32 = vpop.f32.mrf.mxu0 }
 0x629   : > { %13831 = vst [vmem:[#allocation59_spill] sm:$0xff] %v11273_v17 }
 0x62a   : > { %v2907_v49 = vpop.f32.mrf.mxu3  ;;  %13834 = vst [vmem:[#allocation147_spill] sm:$0xff] %v11285_v32 }
 0x62b   : > { %v4210_v28 = vpop.f32.mrf.mxu2  ;;  %v3056_v53 = vadd.f32 %v2907_v49, %v13832_v35  ;;  %v13835_v49 = vld [vmem:[#allocation61_spill] sm:$0xff] }
 0x62d   : > { %v11278_v43 = vpop.f32.mrf.mxu1  ;;  %v3706_v5 = vadd.f32 %v11059_v22, %v3056_v53  ;;  %v3821_v22 = vld [vmem:[#allocation2 + $0x2a1] sm:$0xff]  ;;  %v2522_v53 = vld [vmem:[#allocation2 + $0x28a] sm:$0xff] }
 0x62e   : > { %v3877_v51 = vpack.c.bf16 %v3822_v8, %v3821_v22 }
 0x62f   : > { %8745 = vmatmul.msk.bf16.gmra.mxu3 %vm1228_vm3, %v2576_v36  ;;  %v11283_v34 = vadd.f32 %v4207_v16, %v3706_v5  ;;  %v13837_v36 = vld [vmem:[#allocation62_spill] sm:$0xff] }
 0x630   : > { %8986 = vmatmul.msk.bf16.vlgmr.msra.gmra.mxu1 %vm1228_vm3, %v5787_v45 }
 0x631   : > { %13833 = vst [vmem:[#allocation60_spill] sm:$0xff] %v11283_v34  ;;  %v11299_v34 = vpop.f32.mrf.mxu0 }
 0x632   : > { %v2910_v33 = vpop.f32.mrf.mxu3 }
 0x633   : > { %v4212_v31 = vpop.f32.mrf.mxu2  ;;  %v3057_v35 = vadd.f32 %v2910_v33, %v13835_v49  ;;  %8967 = vmatmul.msk.bf16.gmra.mxu0 %vm1228_vm3, %v11071_v63  ;;  %v2521_v49 = vld [vmem:[#allocation2 + $0x282] sm:$0xff]  ;;  %v5693_v63 = vld [vmem:[#allocation2 + $0x51] sm:$0xff] }
 0x634   : > { %v5788_v8 = vpack.c.bf16 %v5694_v11, %v5693_v63  ;;  %v5696_v63 = vld [vmem:[#allocation2 + $0x69] sm:$0xff] }
 0x635   : > { %v11290_v17 = vpop.f32.mrf.mxu1  ;;  %v3707_v14 = vadd.f32 %v11068_v56, %v3057_v35  ;;  %v2577_v56 = vpack.c.bf16 %v2522_v53, %v2521_v49  ;;  %v2524_v49 = vld [vmem:[#allocation2 + $0x29a] sm:$0xff] }
 0x637   : > { %v11294_v5 = vadd.f32 %v4210_v28, %v3707_v14  ;;  %v3824_v14 = vld [vmem:[#allocation2 + $0x2b9] sm:$0xff] }
 0x638   : > { %8858 = vmatmul.msk.bf16.gmra.mxu2 %vm1228_vm3, %v3877_v51  ;;  %v13839_v51 = vld [vmem:[#allocation63_spill] sm:$0xff] }
 0x639   : > { %13836 = vst [vmem:[#allocation61_spill] sm:$0xff] %v11294_v5  ;;  %v3823_v5 = vld [vmem:[#allocation2 + $0x2b1] sm:$0xff]  ;;  %v11312_v11 = vpop.f32.mrf.mxu0 }
 0x63a   : > { %v2912_v16 = vpop.f32.mrf.mxu3  ;;  %v3878_v53 = vpack.c.bf16 %v3824_v14, %v3823_v5 }
 0x63b   : > { %v4215_v57 = vpop.f32.mrf.mxu2  ;;  %v3058_v45 = vadd.f32 %v2912_v16, %v13837_v36 }
 0x63d   : > { %v11297_v33 = vpop.f32.mrf.mxu1  ;;  %v3708_v32 = vadd.f32 %v11083_v19, %v3058_v45 }
 0x63f   : > { %8746 = vmatmul.msk.bf16.gmra.mxu3 %vm1228_vm3, %v2577_v56  ;;  %v11304_v28 = vadd.f32 %v4212_v31, %v3708_v32  ;;  %v13841_v56 = vld [vmem:[#allocation64_spill] sm:$0xff] }
 0x640   : > { %8987 = vmatmul.msk.bf16.gmra.mxu1 %vm1228_vm3, %v5788_v8 }
 0x641   : > { %13838 = vst [vmem:[#allocation62_spill] sm:$0xff] %v11304_v28  ;;  %v11325_v14 = vpop.f32.mrf.mxu0 }
 0x642   : > { %v2915_v35 = vpop.f32.mrf.mxu3  ;;  %13843 = vst [vmem:[#allocation148_spill] sm:$0xff] %v11325_v14 }
 0x643   : > { %v4217_v22 = vpop.f32.mrf.mxu2  ;;  %v3059_v16 = vadd.f32 %v2915_v35, %v13839_v51  ;;  %8968 = vmatmul.msk.bf16.gmra.mxu0 %vm1228_vm3, %v11095_v55  ;;  %v2523_v55 = vld [vmem:[#allocation2 + $0x292] sm:$0xff]  ;;  %v5695_v51 = vld [vmem:[#allocation2 + $0x61] sm:$0xff] }
 0x644   : > { %v5789_v5 = vpack.c.bf16 %v5696_v63, %v5695_v51  ;;  %v5698_v51 = vld [vmem:[#allocation2 + $0x79] sm:$0xff] }
 0x645   : > { %v11309_v36 = vpop.f32.mrf.mxu1  ;;  %v3709_v19 = vadd.f32 %v11092_v20, %v3059_v16  ;;  %v2578_v20 = vpack.c.bf16 %v2524_v49, %v2523_v55  ;;  %v2526_v55 = vld [vmem:[#allocation2 + $0x2aa] sm:$0xff] }
 0x647   : > { %v11315_v31 = vadd.f32 %v4215_v57, %v3709_v19 }
 0x648   : > { %8859 = vmatmul.msk.bf16.gmra.mxu2 %vm1228_vm3, %v3878_v53  ;;  %v3826_v53 = vld [vmem:[#allocation2 + $0x2c9] sm:$0xff] }
 0x649   : > { %13840 = vst [vmem:[#allocation63_spill] sm:$0xff] %v11315_v31 }
 0x64a   : > { %v2917_v32 = vpop.f32.mrf.mxu3 }
 0x64b   : > { %v4220_v45 = vpop.f32.mrf.mxu2  ;;  %v3060_v8 = vadd.f32 %v2917_v32, %v13841_v56  ;;  %v13844_v32 = vld [vmem:[#allocation65_spill] sm:$0xff] }
 0x64d   : > { %v11318_v35 = vpop.f32.mrf.mxu1  ;;  %v3710_v28 = vadd.f32 %v11107_v13, %v3060_v8  ;;  %v3825_v13 = vld [vmem:[#allocation2 + $0x2c1] sm:$0xff] }
 0x64e   : > { %v3879_v63 = vpack.c.bf16 %v3826_v53, %v3825_v13 }
 0x64f   : > { %8747 = vmatmul.msk.bf16.gmra.mxu3 %vm1228_vm3, %v2578_v20  ;;  %v11323_v57 = vadd.f32 %v4217_v22, %v3710_v28  ;;  %v11336_v20 = vpop.f32.mrf.mxu0 }
 0x650   : > { %8988 = vmatmul.msk.bf16.gmra.mxu1 %vm1228_vm3, %v5789_v5  ;;  %13846 = vst [vmem:[#allocation149_spill] sm:$0xff] %v11336_v20  ;;  %v13847_v5 = vld [vmem:[#allocation66_spill] sm:$0xff] }
 0x651   : > { %13842 = vst [vmem:[#allocation64_spill] sm:$0xff] %v11323_v57  ;;  %v5697_v57 = vld [vmem:[#allocation2 + $0x71] sm:$0xff] }
 0x652   : > { %v2920_v16 = vpop.f32.mrf.mxu3  ;;  %v5790_v53 = vpack.c.bf16 %v5698_v51, %v5697_v57 }
 0x653   : > { %v4222_v19 = vpop.f32.mrf.mxu2  ;;  %v3061_v56 = vadd.f32 %v2920_v16, %v13844_v32  ;;  %8969 = vmatmul.msk.bf16.gmra.mxu0 %vm1228_vm3, %v11119_v9  ;;  %v2525_v9 = vld [vmem:[#allocation2 + $0x2a2] sm:$0xff] }
 0x655   : > { %v11330_v31 = vpop.f32.mrf.mxu1  ;;  %v3711_v49 = vadd.f32 %v11116_v27, %v3061_v56  ;;  %v2579_v27 = vpack.c.bf16 %v2526_v55, %v2525_v9  ;;  %v5700_v9 = vld [vmem:[#allocation2 + $0x89] sm:$0xff] }
 0x657   : > { %v11334_v28 = vadd.f32 %v4220_v45, %v3711_v49  ;;  %v3828_v49 = vld [vmem:[#allocation2 + $0x2d9] sm:$0xff] }
 0x658   : > { %8860 = vmatmul.msk.bf16.gmra.mxu2 %vm1228_vm3, %v3879_v63  ;;  %v13849_v63 = vld [vmem:[#allocation67_spill] sm:$0xff] }
 0x659   : > { %13845 = vst [vmem:[#allocation65_spill] sm:$0xff] %v11334_v28 }
 0x65a   : > { %v2922_v22 = vpop.f32.mrf.mxu3 }
 0x65b   : > { %v4225_v8 = vpop.f32.mrf.mxu2  ;;  %v3062_v16 = vadd.f32 %v2922_v22, %v13847_v5  ;;  %v3827_v5 = vld [vmem:[#allocation2 + $0x2d1] sm:$0xff] }
 0x65c   : > { %v3880_v55 = vpack.c.bf16 %v3828_v49, %v3827_v5  ;;  %v3830_v5 = vld [vmem:[#allocation2 + $0x2e9] sm:$0xff] }
 0x65d   : > { %v11339_v32 = vpop.f32.mrf.mxu1  ;;  %v3712_v14 = vadd.f32 %v11129_v46, %v3062_v16  ;;  %v11351_v46 = vpop.f32.mrf.mxu0  ;;  %v2528_v16 = vld [vmem:[#allocation2 + $0x2ba] sm:$0xff] }
 0x65e   : > { %13850 = vst [vmem:[#allocation67_spill] sm:$0xff] %v11351_v46 }
 0x65f   : > { %8748 = vmatmul.msk.bf16.gmra.mxu3 %vm1228_vm3, %v2579_v27  ;;  %v11344_v45 = vadd.f32 %v4222_v19, %v3712_v14  ;;  %v13852_v27 = vld [vmem:[#allocation68_spill] sm:$0xff] }
 0x660   : > { %8989 = vmatmul.msk.bf16.gmra.mxu1 %vm1228_vm3, %v5790_v53 }
 0x661   : > { %13848 = vst [vmem:[#allocation66_spill] sm:$0xff] %v11344_v45 }
 0x662   : > { %v2925_v56 = vpop.f32.mrf.mxu3 }
 0x663   : > { %v4227_v13 = vpop.f32.mrf.mxu2  ;;  %v3063_v28 = vadd.f32 %v2925_v56, %v13849_v63  ;;  %8970 = vmatmul.msk.bf16.gmra.mxu0 %vm1228_vm3, %v11141_v30  ;;  %v2527_v30 = vld [vmem:[#allocation2 + $0x2b2] sm:$0xff]  ;;  %v5699_v63 = vld [vmem:[#allocation2 + $0x81] sm:$0xff] }
 0x664   : > { %v2580_v46 = vpack.c.bf16 %v2528_v16, %v2527_v30  ;;  %v5791_v20 = vpack.c.bf16 %v5700_v9, %v5699_v63  ;;  %v13856_v30 = vld [vmem:[#allocation70_spill] sm:$0xff] }
 0x665   : > { %v11349_v22 = vpop.f32.mrf.mxu1  ;;  %v3713_v57 = vadd.f32 %v11138_v42, %v3063_v28  ;;  %v11361_v42 = vpop.f32.mrf.mxu0 }
 0x667   : > { %v11355_v14 = vadd.f32 %v4225_v8, %v3713_v57  ;;  %v13854_v57 = vld [vmem:[#allocation69_spill] sm:$0xff] }
 0x668   : > { %8861 = vmatmul.msk.bf16.gmra.mxu2 %vm1228_vm3, %v3880_v55 }
 0x669   : > { %13851 = vst [vmem:[#allocation150_spill] sm:$0xff] %v11355_v14 }
 0x66a   : > { %v2927_v19 = vpop.f32.mrf.mxu3 }
 0x66b   : > { %v4230_v51 = vpop.f32.mrf.mxu2  ;;  %v3064_v53 = vadd.f32 %v2927_v19, %v13852_v27  ;;  %v2530_v27 = vld [vmem:[#allocation2 + $0x2ca] sm:$0xff] }
 0x66d   : > { %v11358_v56 = vpop.f32.mrf.mxu1  ;;  %v3714_v45 = vadd.f32 %v11153_v39, %v3064_v53  ;;  %v3829_v39 = vld [vmem:[#allocation2 + $0x2e1] sm:$0xff]  ;;  %v5702_v53 = vld [vmem:[#allocation2 + $0x99] sm:$0xff] }
 0x66e   : > { %v3881_v9 = vpack.c.bf16 %v3830_v5, %v3829_v39 }
 0x66f   : > { %8749 = vmatmul.msk.bf16.gmra.mxu3 %vm1228_vm3, %v2580_v46  ;;  %v11365_v28 = vadd.f32 %v4227_v13, %v3714_v45 }
 0x670   : > { %8990 = vmatmul.msk.bf16.gmra.mxu1 %vm1228_vm3, %v5791_v20  ;;  %v11376_v20 = vpop.f32.mrf.mxu0 }
 0x671   : > { %13853 = vst [vmem:[#allocation68_spill] sm:$0xff] %v11365_v28 }
 0x672   : > { %v2930_v8 = vpop.f32.mrf.mxu3 }
 0x673   : > { %v4232_v49 = vpop.f32.mrf.mxu2  ;;  %v3065_v55 = vadd.f32 %v2930_v8, %v13854_v57  ;;  %8971 = vmatmul.msk.bf16.gmra.mxu0 %vm1228_vm3, %v11165_v2  ;;  %v2529_v2 = vld [vmem:[#allocation2 + $0x2c2] sm:$0xff]  ;;  %v5701_v57 = vld [vmem:[#allocation2 + $0x91] sm:$0xff] }
 0x674   : > { %v5792_v5 = vpack.c.bf16 %v5702_v53, %v5701_v57  ;;  %v5704_v57 = vld [vmem:[#allocation2 + $0xa9] sm:$0xff] }
 0x675   : > { %v11370_v19 = vpop.f32.mrf.mxu1  ;;  %v3715_v16 = vadd.f32 %v11162_v50, %v3065_v55  ;;  %v2581_v50 = vpack.c.bf16 %v2530_v27, %v2529_v2  ;;  %v2532_v2 = vld [vmem:[#allocation2 + $0x2da] sm:$0xff] }
 0x677   : > { %v11374_v46 = vadd.f32 %v4230_v51, %v3715_v16  ;;  %v3832_v16 = vld [vmem:[#allocation2 + $0x2f9] sm:$0xff] }
 0x678   : > { %8862 = vmatmul.msk.bf16.gmra.mxu2 %vm1228_vm3, %v3881_v9  ;;  %v11386_v9 = vpop.f32.mrf.mxu0 }
 0x679   : > { %13855 = vst [vmem:[#allocation69_spill] sm:$0xff] %v11374_v46 }
 0x67a   : > { %v2932_v45 = vpop.f32.mrf.mxu3 }
 0x67b   : > { %v4235_v13 = vpop.f32.mrf.mxu2  ;;  %v3066_v63 = vadd.f32 %v2932_v45, %v13856_v30  ;;  %v13858_v45 = vld [vmem:[#allocation71_spill] sm:$0xff] }
 0x67d   : > { %v11379_v8 = vpop.f32.mrf.mxu1  ;;  %v3716_v28 = vadd.f32 %v11177_v38, %v3066_v63  ;;  %v3831_v38 = vld [vmem:[#allocation2 + $0x2f1] sm:$0xff] }
 0x67e   : > { %v3882_v53 = vpack.c.bf16 %v3832_v16, %v3831_v38 }
 0x67f   : > { %8750 = vmatmul.msk.bf16.gmra.mxu3 %vm1228_vm3, %v2581_v50  ;;  %v11384_v51 = vadd.f32 %v4232_v49, %v3716_v28  ;;  %v13860_v50 = vld [vmem:[#allocation72_spill] sm:$0xff] }
 0x680   : > { %8991 = vmatmul.msk.bf16.gmra.mxu1 %vm1228_vm3, %v5792_v5 }
 0x681   : > { %13857 = vst [vmem:[#allocation70_spill] sm:$0xff] %v11384_v51  ;;  %v11400_v51 = vpop.f32.mrf.mxu0 }
 0x682   : > { %v2935_v55 = vpop.f32.mrf.mxu3  ;;  %13861 = vst [vmem:[#allocation72_spill] sm:$0xff] %v11400_v51  ;;  %v5705_v51 = vld [vmem:[#allocation2 + $0xb1] sm:$0xff] }
 0x683   : > { %v4237_v39 = vpop.f32.mrf.mxu2  ;;  %v3067_v30 = vadd.f32 %v2935_v55, %v13858_v45  ;;  %8972 = vmatmul.msk.bf16.gmra.mxu0 %vm1228_vm3, %v11189_v1  ;;  %v2531_v45 = vld [vmem:[#allocation2 + $0x2d2] sm:$0xff]  ;;  %v5703_v1 = vld [vmem:[#allocation2 + $0xa1] sm:$0xff] }
 0x684   : > { %v5793_v16 = vpack.c.bf16 %v5704_v57, %v5703_v1  ;;  %v2534_v1 = vld [vmem:[#allocation2 + $0x2ea] sm:$0xff] }
 0x685   : > { %v11391_v46 = vpop.f32.mrf.mxu1  ;;  %v3717_v27 = vadd.f32 %v11184_v52, %v3067_v30  ;;  %v2582_v52 = vpack.c.bf16 %v2532_v2, %v2531_v45 }
 0x687   : > { %v11395_v28 = vadd.f32 %v4235_v13, %v3717_v27  ;;  %v3834_v27 = vld [vmem:[#allocation2 + $0x309] sm:$0xff] }
 0x688   : > { %8863 = vmatmul.msk.bf16.gmra.mxu2 %vm1228_vm3, %v3882_v53  ;;  %v13863_v53 = vld [vmem:[#allocation73_spill] sm:$0xff] }
 0x689   : > { %13859 = vst [vmem:[#allocation71_spill] sm:$0xff] %v11395_v28 }
 0x68a   : > { %v2937_v49 = vpop.f32.mrf.mxu3 }
 0x68b   : > { %v4240_v63 = vpop.f32.mrf.mxu2  ;;  %v3068_v5 = vadd.f32 %v2937_v49, %v13860_v50  ;;  %v9377_v50 = vld [vmem:[#allocation7 + $0x80] sm:$0xff] }
 0x68c   : > { %6653 = vmatpush.bf16.msra.mxu2 %v9377_v50 }
 0x68d   : > { %v11398_v55 = vpop.f32.mrf.mxu1  ;;  %v3718_v14 = vadd.f32 %v11199_v15, %v3068_v5  ;;  %v3833_v15 = vld [vmem:[#allocation2 + $0x301] sm:$0xff]  ;;  %v11413_v5 = vpop.f32.mrf.mxu0 }
 0x68e   : > { %v3883_v57 = vpack.c.bf16 %v3834_v27, %v3833_v15  ;;  %13864 = vst [vmem:[#allocation73_spill] sm:$0xff] %v11413_v5 }
 0x68f   : > { %8751 = vmatmul.msk.bf16.gmra.mxu3 %vm1228_vm3, %v2582_v52  ;;  %v11405_v13 = vadd.f32 %v4237_v39, %v3718_v14  ;;  %v5706_v52 = vld [vmem:[#allocation2 + $0xb9] sm:$0xff] }
 0x690   : > { %8992 = vmatmul.msk.bf16.gmra.mxu1 %vm1228_vm3, %v5793_v16  ;;  %v13866_v16 = vld [vmem:[#allocation74_spill] sm:$0xff] }
 0x691   : > { %13862 = vst [vmem:[#allocation151_spill] sm:$0xff] %v11405_v13  ;;  %v2533_v13 = vld [vmem:[#allocation2 + $0x2e2] sm:$0xff] }
 0x692   : > { %v2940_v30 = vpop.f32.mrf.mxu3  ;;  %v2583_v27 = vpack.c.bf16 %v2534_v1, %v2533_v13 }
 0x693   : > { %v4242_v38 = vpop.f32.mrf.mxu2  ;;  %v3069_v49 = vadd.f32 %v2940_v30, %v13863_v53  ;;  %8973 = vmatmul.msk.bf16.gmra.mxu0 %vm1228_vm3, %v11211_v29  ;;  %v9371_v30 = vld [vmem:[#allocation7 + $0x50] sm:$0xff] }
 0x694   : > { %4703 = vmatpush.bf16.msrb.mxu3 %v9371_v30  ;;  %v5708_v30 = vld [vmem:[#allocation2 + $0xc9] sm:$0xff] }
 0x695   : > { %v11410_v28 = vpop.f32.mrf.mxu1  ;;  %v3719_v2 = vadd.f32 %v11208_v61, %v3069_v49  ;;  %v5794_v49 = vpack.c.bf16 %v5706_v52, %v5705_v51  ;;  %v11426_v50 = vpop.f32.mrf.mxu0 }
 0x696   : > { %13868 = vst [vmem:[#allocation153_spill] sm:$0xff] %v11426_v50 }
 0x697   : > { %v11416_v14 = vadd.f32 %v4240_v63, %v3719_v2 }
 0x698   : > { %8864 = vmatmul.msk.bf16.gmra.mxu2 %vm1228_vm3, %v3883_v57  ;;  %v3835_v57 = vld [vmem:[#allocation2 + $0x311] sm:$0xff] }
 0x699   : > { %13865 = vst [vmem:[#allocation152_spill] sm:$0xff] %v11416_v14 }
 0x69a   : > { %v2942_v39 = vpop.f32.mrf.mxu3 }
 0x69b   : > { %v4245_v45 = vpop.f32.mrf.mxu2  ;;  %v3070_v29 = vadd.f32 %v2942_v39, %v13866_v16  ;;  %v3836_v39 = vld [vmem:[#allocation2 + $0x319] sm:$0xff] }
 0x69c   : > { %v13869_v16 = vld [vmem:[#allocation75_spill] sm:$0xff]  ;;  %v3884_v13 = vpack.c.bf16 %v3836_v39, %v3835_v57 }
 0x69d   : > { %v11419_v53 = vpop.f32.mrf.mxu1  ;;  %v3720_v61 = vadd.f32 %v11223_v3, %v3070_v29  ;;  %v2536_v29 = vld [vmem:[#allocation2 + $0x2fa] sm:$0xff] }
 0x69f   : > { %8752 = vmatmul.msk.bf16.gmra.mxu3 %vm1228_vm3, %v2583_v27  ;;  %v11424_v63 = vadd.f32 %v4242_v38, %v3720_v61  ;;  %v11437_v61 = vpop.f32.mrf.mxu0  ;;  %v13872_v27 = vld [vmem:[#allocation76_spill] sm:$0xff] }
 0x6a0   : > { %8993 = vmatmul.msk.bf16.gmra.mxu1 %vm1228_vm3, %v5794_v49  ;;  %13871 = vst [vmem:[#allocation154_spill] sm:$0xff] %v11437_v61  ;;  %v13880_v61 = vld [vmem:[#allocation79_spill] sm:$0xff] }
 0x6a1   : > { %13867 = vst [vmem:[#allocation74_spill] sm:$0xff] %v11424_v63 }
 0x6a2   : > { %v2945_v15 = vpop.f32.mrf.mxu3 }
 0x6a3   : > { %v4247_v2 = vpop.f32.mrf.mxu2  ;;  %v3071_v14 = vadd.f32 %v2945_v15, %v13869_v16  ;;  %8974 = vmatmul.msk.bf16.gmra.mxu0 %vm1228_vm3, %v11235_v18  ;;  %v2535_v18 = vld [vmem:[#allocation2 + $0x2f2] sm:$0xff]  ;;  %v5707_v16 = vld [vmem:[#allocation2 + $0xc1] sm:$0xff] }
 0x6a5   : > { %v11431_v3 = vpop.f32.mrf.mxu1  ;;  %v3721_v51 = vadd.f32 %v11232_v0, %v3071_v14  ;;  %v2584_v0 = vpack.c.bf16 %v2536_v29, %v2535_v18  ;;  %v5795_v14 = vpack.c.bf16 %v5708_v30, %v5707_v16  ;;  %v4392_v18 = vld [vmem:[#allocation2 + $0x2a] sm:$0xff]  ;;  %v5710_v16 = vld [vmem:[#allocation2 + $0xd9] sm:$0xff] }
 0x6a7   : > { %v11435_v38 = vadd.f32 %v4245_v45, %v3721_v51  ;;  %v6342_v51 = vld [vmem:[#allocation2 + $0x4a] sm:$0xff] }
 0x6a8   : > { %8865 = vmatmul.msk.bf16.gmra.mxu2 %vm1228_vm3, %v3884_v13  ;;  %v13874_v13 = vld [vmem:[#allocation77_spill] sm:$0xff] }
 0x6a9   : > { %13870 = vst [vmem:[#allocation75_spill] sm:$0xff] %v11435_v38 }
 0x6aa   : > { %v2947_v1 = vpop.f32.mrf.mxu3 }
 0x6ab   : > { %v4250_v52 = vpop.f32.mrf.mxu2  ;;  %v3072_v49 = vadd.f32 %v2947_v1, %v13872_v27  ;;  %v6341_v27 = vld [vmem:[#allocation2 + $0x42] sm:$0xff] }
 0x6ac   : > { %v11455_v30 = vpack.c.bf16 %v6342_v51, %v6341_v27  ;;  %v5133_v51 = vld [vmem:[#allocation2 + $0x320] sm:$0xff]  ;;  %v5134_v27 = vld [vmem:[#allocation2 + $0x328] sm:$0xff] }
 0x6ad   : > { %v11440_v15 = vpop.f32.mrf.mxu1  ;;  %v3722_v63 = vadd.f32 %v11245_v58, %v3072_v49  ;;  %v11452_v58 = vpop.f32.mrf.mxu0 }
 0x6ae   : > { %13875 = vst [vmem:[#allocation77_spill] sm:$0xff] %v11452_v58 }
 0x6af   : > { %8753 = vmatmul.msk.bf16.gmra.mxu3 %vm1228_vm3, %v2584_v0  ;;  %v11445_v45 = vadd.f32 %v4247_v2, %v3722_v63  ;;  %v13877_v0 = vld [vmem:[#allocation78_spill] sm:$0xff] }
 0x6b0   : > { %8994 = vmatmul.msk.bf16.gmra.mxu1 %vm1228_vm3, %v5795_v14 }
 0x6b1   : > { %13873 = vst [vmem:[#allocation76_spill] sm:$0xff] %v11445_v45 }
 0x6b2   : > { %v2950_v57 = vpop.f32.mrf.mxu3 }
 0x6b3   : > { %v4252_v39 = vpop.f32.mrf.mxu2  ;;  %v3073_v38 = vadd.f32 %v2950_v57, %v13874_v13  ;;  %8975 = vmatmul.msk.bf16.gmra.mxu0 %vm1228_vm3, %v11254_v40  ;;  %v4391_v57 = vld [vmem:[#allocation2 + $0x22] sm:$0xff]  ;;  %v5709_v13 = vld [vmem:[#allocation2 + $0xd1] sm:$0xff] }
 0x6b5   : > { %v11450_v1 = vpop.f32.mrf.mxu1  ;;  %v3723_v29 = vadd.f32 %v11256_v12, %v3073_v38  ;;  %v4487_v12 = vpack.c.bf16 %v4392_v18, %v4391_v57  ;;  %v5796_v38 = vpack.c.bf16 %v5710_v16, %v5709_v13  ;;  %v11465_v58 = vpop.f32.mrf.mxu0  ;;  %v6343_v18 = vld [vmem:[#allocation2 + $0x52] sm:$0xff] }
 0x6b6   : > { %13878 = vst [vmem:[#allocation78_spill] sm:$0xff] %v11465_v58  ;;  %v13886_v58 = vld [vmem:[#allocation81_spill] sm:$0xff] }
 0x6b7   : > { %v11459_v63 = vadd.f32 %v4250_v52, %v3723_v29  ;;  %v5183_v29 = vpack.c.bf16 %v5134_v27, %v5133_v51  ;;  %v13883_v51 = vld [vmem:[#allocation80_spill] sm:$0xff] }
 0x6b8   : > { %9042 = vmatmul.msk.bf16.vlgmr.msra.gmra.mxu2 %vm1228_vm3, %v11455_v30 }
 0x6b9   : > { %13876 = vst [vmem:[#allocation155_spill] sm:$0xff] %v11459_v63  ;;  %v6344_v63 = vld [vmem:[#allocation2 + $0x5a] sm:$0xff] }
 0x6ba   : > { %v2952_v2 = vpop.f32.mrf.mxu3 }
 0x6bb   : > { %v4255_v49 = vpop.f32.mrf.mxu2  ;;  %v3074_v40 = vadd.f32 %v2952_v2, %v13877_v0 }
 0x6bd   : > { %v11462_v14 = vpop.f32.mrf.mxu1  ;;  %v3724_v45 = vadd.f32 %v11269_v4, %v3074_v40  ;;  %v6438_v40 = vpack.c.bf16 %v6344_v63, %v6343_v18  ;;  %v5135_v63 = vld [vmem:[#allocation2 + $0x330] sm:$0xff]  ;;  %v5136_v18 = vld [vmem:[#allocation2 + $0x338] sm:$0xff] }
 0x6bf   : > { %8874 = vmatmul.msk.bf16.vlgmr.msrb.gmra.mxu3 %vm1228_vm3, %v4487_v12  ;;  %v11469_v52 = vadd.f32 %v4252_v39, %v3724_v45  ;;  %v11479_v45 = vpop.f32.mrf.mxu0  ;;  %v4394_v12 = vld [vmem:[#allocation2 + $0x3a] sm:$0xff] }
 0x6c0   : > { %8995 = vmatmul.msk.bf16.gmra.mxu1 %vm1228_vm3, %v5796_v38  ;;  %13882 = vst [vmem:[#allocation157_spill] sm:$0xff] %v11479_v45  ;;  %v5712_v38 = vld [vmem:[#allocation2 + $0xe9] sm:$0xff] }
 0x6c1   : > { %13879 = vst [vmem:[#allocation156_spill] sm:$0xff] %v11469_v52 }
 0x6c2   : > { %v2955_v2 = vpop.f32.mrf.mxu3 }
 0x6c3   : > { %v4257_v0 = vpop.f32.mrf.mxu2  ;;  %v3075_v50 = vadd.f32 %v2955_v2, %v13880_v61  ;;  %8976 = vmatmul.msk.bf16.gmra.mxu0 %vm1228_vm3, %v5183_v29  ;;  %v4393_v29 = vld [vmem:[#allocation2 + $0x32] sm:$0xff]  ;;  %v5711_v2 = vld [vmem:[#allocation2 + $0xe1] sm:$0xff] }
 0x6c5   : > { %v11473_v4 = vpop.f32.mrf.mxu1  ;;  %v3725_v16 = vadd.f32 %v11278_v43, %v3075_v50  ;;  %v4488_v43 = vpack.c.bf16 %v4394_v12, %v4393_v29  ;;  %v5797_v50 = vpack.c.bf16 %v5712_v38, %v5711_v2  ;;  %v6345_v12 = vld [vmem:[#allocation2 + $0x62] sm:$0xff]  ;;  %v5714_v2 = vld [vmem:[#allocation2 + $0xf9] sm:$0xff] }
 0x6c7   : > { %v11477_v57 = vadd.f32 %v4255_v49, %v3725_v16  ;;  %v5184_v16 = vpack.c.bf16 %v5136_v18, %v5135_v63 }
 0x6c8   : > { %9043 = vmatmul.msk.bf16.gmra.mxu2 %vm1228_vm3, %v6438_v40 }
 0x6c9   : > { %13881 = vst [vmem:[#allocation79_spill] sm:$0xff] %v11477_v57 }
 0x6ca   : > { %v2957_v39 = vpop.f32.mrf.mxu3 }
 0x6cb   : > { %v4260_v13 = vpop.f32.mrf.mxu2  ;;  %v3076_v61 = vadd.f32 %v2957_v39, %v13883_v51  ;;  %v6346_v39 = vld [vmem:[#allocation2 + $0x6a] sm:$0xff]  ;;  %v11489_v51 = vpop.f32.mrf.mxu0 }
 0x6cc   : > { %13885 = vst [vmem:[#allocation158_spill] sm:$0xff] %v11489_v51 }
 0x6cd   : > { %v11482_v27 = vpop.f32.mrf.mxu1  ;;  %v3726_v52 = vadd.f32 %v11290_v17, %v3076_v61  ;;  %v6439_v61 = vpack.c.bf16 %v6346_v39, %v6345_v12  ;;  %v13890_v39 = vld [vmem:[#allocation83_spill] sm:$0xff] }
 0x6cf   : > { %8875 = vmatmul.msk.bf16.gmra.mxu3 %vm1228_vm3, %v4488_v43  ;;  %v11487_v49 = vadd.f32 %v4257_v0, %v3726_v52  ;;  %v13888_v43 = vld [vmem:[#allocation82_spill] sm:$0xff] }
 0x6d0   : > { %8996 = vmatmul.msk.bf16.gmra.mxu1 %vm1228_vm3, %v5797_v50 }
 0x6d1   : > { %13884 = vst [vmem:[#allocation80_spill] sm:$0xff] %v11487_v49 }
 0x6d2   : > { %v2960_v57 = vpop.f32.mrf.mxu3 }
 0x6d3   : > { %v4262_v45 = vpop.f32.mrf.mxu2  ;;  %v3077_v5 = vadd.f32 %v2960_v57, %v13886_v58  ;;  %8977 = vmatmul.msk.bf16.gmra.mxu0 %vm1228_vm3, %v5184_v16  ;;  %v5713_v58 = vld [vmem:[#allocation2 + $0xf1] sm:$0xff]  ;;  %v6348_v16 = vld [vmem:[#allocation2 + $0x7a] sm:$0xff] }
 0x6d4   : > { %v5798_v18 = vpack.c.bf16 %v5714_v2, %v5713_v58 }
 0x6d5   : > { %v11493_v17 = vpop.f32.mrf.mxu1  ;;  %v3727_v38 = vadd.f32 %v11297_v33, %v3077_v5 }
 0x6d7   : > { %v11497_v52 = vadd.f32 %v4260_v13, %v3727_v38 }
 0x6d8   : > { %9044 = vmatmul.msk.bf16.gmra.mxu2 %vm1228_vm3, %v6439_v61 }
 0x6d9   : > { %13887 = vst [vmem:[#allocation81_spill] sm:$0xff] %v11497_v52 }
 0x6da   : > { %v2962_v0 = vpop.f32.mrf.mxu3 }
 0x6db   : > { %v4265_v29 = vpop.f32.mrf.mxu2  ;;  %v3078_v50 = vadd.f32 %v2962_v0, %v13888_v43  ;;  %v6347_v0 = vld [vmem:[#allocation2 + $0x72] sm:$0xff] }
 0x6dc   : > { %v6440_v52 = vpack.c.bf16 %v6348_v16, %v6347_v0  ;;  %v13894_v0 = vld [vmem:[#allocation85_spill] sm:$0xff] }
 0x6dd   : > { %v11500_v63 = vpop.f32.mrf.mxu1  ;;  %v3728_v57 = vadd.f32 %v11309_v36, %v3078_v50  ;;  %v5716_v50 = vld [vmem:[#allocation2 + $0x109] sm:$0xff] }
 0x6df   : > { %8876 = vmatmul.msk.bf16.gmra.mxu3 %vm1228_vm3, %v11455_v30  ;;  %v11506_v33 = vadd.f32 %v4262_v45, %v3728_v57  ;;  %v13892_v45 = vld [vmem:[#allocation84_spill] sm:$0xff] }
 0x6e0   : > { %8997 = vmatmul.msk.bf16.gmra.mxu1 %vm1228_vm3, %v5798_v18  ;;  %v5715_v18 = vld [vmem:[#allocation2 + $0x101] sm:$0xff] }
 0x6e1   : > { %13889 = vst [vmem:[#allocation82_spill] sm:$0xff] %v11506_v33 }
 0x6e2   : > { %v2965_v5 = vpop.f32.mrf.mxu3 }
 0x6e3   : > { %v4267_v13 = vpop.f32.mrf.mxu2  ;;  %v3079_v12 = vadd.f32 %v2965_v5, %v13890_v39  ;;  %v5799_v39 = vpack.c.bf16 %v5716_v50, %v5715_v18 }
 0x6e5   : > { %v11509_v38 = vpop.f32.mrf.mxu1  ;;  %v3729_v43 = vadd.f32 %v11318_v35, %v3079_v12  ;;  %v6350_v12 = vld [vmem:[#allocation2 + $0x8a] sm:$0xff] }
 0x6e7   : > { %v11513_v36 = vadd.f32 %v4265_v29, %v3729_v43 }
 0x6e8   : > { %9045 = vmatmul.msk.bf16.gmra.mxu2 %vm1228_vm3, %v6440_v52 }
 0x6e9   : > { %13891 = vst [vmem:[#allocation83_spill] sm:$0xff] %v11513_v36 }
 0x6ea   : > { %v2967_v30 = vpop.f32.mrf.mxu3 }
 0x6eb   : > { %v4270_v2 = vpop.f32.mrf.mxu2  ;;  %v3080_v58 = vadd.f32 %v2967_v30, %v13892_v45  ;;  %v6349_v30 = vld [vmem:[#allocation2 + $0x82] sm:$0xff] }
 0x6ec   : > { %v6441_v33 = vpack.c.bf16 %v6350_v12, %v6349_v30  ;;  %v13898_v30 = vld [vmem:[#allocation87_spill] sm:$0xff] }
 0x6ed   : > { %v11516_v57 = vpop.f32.mrf.mxu1  ;;  %v3730_v5 = vadd.f32 %v11330_v31, %v3080_v58  ;;  %v5718_v58 = vld [vmem:[#allocation2 + $0x119] sm:$0xff] }
 0x6ef   : > { %8877 = vmatmul.msk.bf16.gmra.mxu3 %vm1228_vm3, %v6438_v40  ;;  %v11521_v35 = vadd.f32 %v4267_v13, %v3730_v5  ;;  %v13896_v13 = vld [vmem:[#allocation86_spill] sm:$0xff] }
 0x6f0   : > { %8998 = vmatmul.msk.bf16.gmra.mxu1 %vm1228_vm3, %v5799_v39  ;;  %v5717_v39 = vld [vmem:[#allocation2 + $0x111] sm:$0xff] }
 0x6f1   : > { %13893 = vst [vmem:[#allocation84_spill] sm:$0xff] %v11521_v35 }
 0x6f2   : > { %v2970_v16 = vpop.f32.mrf.mxu3 }
 0x6f3   : > { %v4272_v29 = vpop.f32.mrf.mxu2  ;;  %v3081_v43 = vadd.f32 %v2970_v16, %v13894_v0  ;;  %v5800_v0 = vpack.c.bf16 %v5718_v58, %v5717_v39 }
 0x6f5   : > { %v11524_v36 = vpop.f32.mrf.mxu1  ;;  %v3731_v45 = vadd.f32 %v11339_v32, %v3081_v43  ;;  %v6352_v43 = vld [vmem:[#allocation2 + $0x9a] sm:$0xff] }
 0x6f7   : > { %v11528_v31 = vadd.f32 %v4270_v2, %v3731_v45 }
 0x6f8   : > { %9046 = vmatmul.msk.bf16.gmra.mxu2 %vm1228_vm3, %v6441_v33 }
 0x6f9   : > { %13895 = vst [vmem:[#allocation85_spill] sm:$0xff] %v11528_v31 }
 0x6fa   : > { %v2972_v40 = vpop.f32.mrf.mxu3 }
 0x6fb   : > { %v4275_v50 = vpop.f32.mrf.mxu2  ;;  %v3082_v18 = vadd.f32 %v2972_v40, %v13896_v13  ;;  %v6351_v40 = vld [vmem:[#allocation2 + $0x92] sm:$0xff] }
 0x6fc   : > { %v6442_v35 = vpack.c.bf16 %v6352_v43, %v6351_v40  ;;  %v13902_v40 = vld [vmem:[#allocation89_spill] sm:$0xff] }
 0x6fd   : > { %v11531_v5 = vpop.f32.mrf.mxu1  ;;  %v3732_v16 = vadd.f32 %v11349_v22, %v3082_v18  ;;  %v5720_v18 = vld [vmem:[#allocation2 + $0x129] sm:$0xff] }
 0x6ff   : > { %8878 = vmatmul.msk.bf16.gmra.mxu3 %vm1228_vm3, %v6439_v61  ;;  %v11536_v32 = vadd.f32 %v4272_v29, %v3732_v16  ;;  %v13900_v29 = vld [vmem:[#allocation88_spill] sm:$0xff] }
 0x700   : > { %8999 = vmatmul.msk.bf16.gmra.mxu1 %vm1228_vm3, %v5800_v0  ;;  %v5719_v0 = vld [vmem:[#allocation2 + $0x121] sm:$0xff] }
 0x701   : > { %13897 = vst [vmem:[#allocation86_spill] sm:$0xff] %v11536_v32 }
 0x702   : > { %v2975_v12 = vpop.f32.mrf.mxu3 }
 0x703   : > { %v4277_v2 = vpop.f32.mrf.mxu2  ;;  %v3083_v45 = vadd.f32 %v2975_v12, %v13898_v30  ;;  %v5801_v30 = vpack.c.bf16 %v5720_v18, %v5719_v0 }
 0x705   : > { %v11539_v31 = vpop.f32.mrf.mxu1  ;;  %v3733_v13 = vadd.f32 %v11358_v56, %v3083_v45  ;;  %v6354_v45 = vld [vmem:[#allocation2 + $0xaa] sm:$0xff] }
 0x707   : > { %v11543_v22 = vadd.f32 %v4275_v50, %v3733_v13 }
 0x708   : > { %9047 = vmatmul.msk.bf16.gmra.mxu2 %vm1228_vm3, %v6442_v35 }
 0x709   : > { %13899 = vst [vmem:[#allocation87_spill] sm:$0xff] %v11543_v22 }
 0x70a   : > { %v2977_v61 = vpop.f32.mrf.mxu3 }
 0x70b   : > { %v4280_v58 = vpop.f32.mrf.mxu2  ;;  %v3084_v39 = vadd.f32 %v2977_v61, %v13900_v29  ;;  %v6353_v61 = vld [vmem:[#allocation2 + $0xa2] sm:$0xff] }
 0x70c   : > { %v6443_v32 = vpack.c.bf16 %v6354_v45, %v6353_v61  ;;  %v13906_v61 = vld [vmem:[#allocation93_spill] sm:$0xff] }
 0x70d   : > { %v11546_v16 = vpop.f32.mrf.mxu1  ;;  %v3734_v12 = vadd.f32 %v11370_v19, %v3084_v39  ;;  %v5722_v39 = vld [vmem:[#allocation2 + $0x139] sm:$0xff] }
 0x70f   : > { %8879 = vmatmul.msk.bf16.gmra.mxu3 %vm1228_vm3, %v6440_v52  ;;  %v11551_v56 = vadd.f32 %v4277_v2, %v3734_v12  ;;  %v13904_v2 = vld [vmem:[#allocation90_spill] sm:$0xff] }
 0x710   : > { %9000 = vmatmul.msk.bf16.gmra.mxu1 %vm1228_vm3, %v5801_v30  ;;  %v5721_v30 = vld [vmem:[#allocation2 + $0x131] sm:$0xff] }
 0x711   : > { %13901 = vst [vmem:[#allocation88_spill] sm:$0xff] %v11551_v56 }
 0x712   : > { %v2980_v43 = vpop.f32.mrf.mxu3 }
 0x713   : > { %v4282_v50 = vpop.f32.mrf.mxu2  ;;  %v3085_v13 = vadd.f32 %v2980_v43, %v13902_v40  ;;  %v5802_v40 = vpack.c.bf16 %v5722_v39, %v5721_v30 }
 0x715   : > { %v11554_v22 = vpop.f32.mrf.mxu1  ;;  %v3735_v29 = vadd.f32 %v11379_v8, %v3085_v13  ;;  %v6356_v13 = vld [vmem:[#allocation2 + $0xba] sm:$0xff] }
 0x717   : > { %v11558_v19 = vadd.f32 %v4280_v58, %v3735_v29 }
 0x718   : > { %9048 = vmatmul.msk.bf16.gmra.mxu2 %vm1228_vm3, %v6443_v32 }
 0x719   : > { %13903 = vst [vmem:[#allocation89_spill] sm:$0xff] %v11558_v19 }
 0x71a   : > { %v2982_v52 = vpop.f32.mrf.mxu3 }
 0x71b   : > { %v4285_v18 = vpop.f32.mrf.mxu2  ;;  %v3086_v0 = vadd.f32 %v2982_v52, %v13904_v2  ;;  %v6355_v52 = vld [vmem:[#allocation2 + $0xb2] sm:$0xff] }
 0x71c   : > { %v6444_v56 = vpack.c.bf16 %v6356_v13, %v6355_v52  ;;  %v13910_v52 = vld [vmem:[#allocation98_spill] sm:$0xff] }
 0x71d   : > { %v11561_v12 = vpop.f32.mrf.mxu1  ;;  %v3736_v43 = vadd.f32 %v11391_v46, %v3086_v0  ;;  %v5724_v0 = vld [vmem:[#allocation2 + $0x149] sm:$0xff] }
 0x71f   : > { %8880 = vmatmul.msk.bf16.gmra.mxu3 %vm1228_vm3, %v6441_v33  ;;  %v11566_v8 = vadd.f32 %v4282_v50, %v3736_v43  ;;  %v13908_v50 = vld [vmem:[#allocation95_spill] sm:$0xff] }
 0x720   : > { %9001 = vmatmul.msk.bf16.gmra.mxu1 %vm1228_vm3, %v5802_v40  ;;  %v5723_v40 = vld [vmem:[#allocation2 + $0x141] sm:$0xff] }
 0x721   : > { %13905 = vst [vmem:[#allocation90_spill] sm:$0xff] %v11566_v8 }
 0x722   : > { %v2985_v45 = vpop.f32.mrf.mxu3 }
 0x723   : > { %v4287_v58 = vpop.f32.mrf.mxu2  ;;  %v3087_v29 = vadd.f32 %v2985_v45, %v13906_v61  ;;  %v5803_v61 = vpack.c.bf16 %v5724_v0, %v5723_v40  ;;  %v5726_v0 = vld [vmem:[#allocation2 + $0x159] sm:$0xff] }
 0x725   : > { %v11569_v19 = vpop.f32.mrf.mxu1  ;;  %v3737_v2 = vadd.f32 %v11398_v55, %v3087_v29  ;;  %v6358_v29 = vld [vmem:[#allocation2 + $0xca] sm:$0xff] }
 0x727   : > { %v11573_v46 = vadd.f32 %v4285_v18, %v3737_v2 }
 0x728   : > { %9049 = vmatmul.msk.bf16.gmra.mxu2 %vm1228_vm3, %v6444_v56 }
 0x729   : > { %13907 = vst [vmem:[#allocation93_spill] sm:$0xff] %v11573_v46 }
 0x72a   : > { %v2987_v33 = vpop.f32.mrf.mxu3 }
 0x72b   : > { %v4290_v39 = vpop.f32.mrf.mxu2  ;;  %v3088_v30 = vadd.f32 %v2987_v33, %v13908_v50  ;;  %v6357_v33 = vld [vmem:[#allocation2 + $0xc2] sm:$0xff] }
 0x72c   : > { %v11587_v8 = vpack.c.bf16 %v6358_v29, %v6357_v33 }
 0x72d   : > { %v11576_v43 = vpop.f32.mrf.mxu1  ;;  %v3738_v45 = vadd.f32 %v11410_v28, %v3088_v30  ;;  %v13912_v30 = vld [vmem:[#allocation100_spill] sm:$0xff] }
 0x72f   : > { %8881 = vmatmul.msk.bf16.gmra.mxu3 %vm1228_vm3, %v6442_v35  ;;  %v11581_v55 = vadd.f32 %v4287_v58, %v3738_v45 }
 0x730   : > { %9002 = vmatmul.msk.bf16.gmra.mxu1 %vm1228_vm3, %v5803_v61  ;;  %v5725_v61 = vld [vmem:[#allocation2 + $0x151] sm:$0xff] }
 0x731   : > { %13909 = vst [vmem:[#allocation95_spill] sm:$0xff] %v11581_v55 }
 0x732   : > { %v2990_v13 = vpop.f32.mrf.mxu3 }
 0x733   : > { %v4292_v18 = vpop.f32.mrf.mxu2  ;;  %v3089_v2 = vadd.f32 %v2990_v13, %v13910_v52  ;;  %v5804_v52 = vpack.c.bf16 %v5726_v0, %v5725_v61 }
 0x735   : > { %v11584_v46 = vpop.f32.mrf.mxu1  ;;  %v3739_v50 = vadd.f32 %v11419_v53, %v3089_v2  ;;  %v6360_v2 = vld [vmem:[#allocation2 + $0xda] sm:$0xff] }
 0x737   : > { %v11591_v28 = vadd.f32 %v4290_v39, %v3739_v50 }
 0x738   : > { %9050 = vmatmul.msk.bf16.gmra.mxu2 %vm1228_vm3, %v11587_v8 }
 0x739   : > { %13911 = vst [vmem:[#allocation98_spill] sm:$0xff] %v11591_v28 }
 0x73a   : > { %v2992_v35 = vpop.f32.mrf.mxu3 }
 0x73b   : > { %v6655_v58 = vpop.f32.mrf.mxu2  ;;  %v3090_v40 = vadd.f32 %v2992_v35, %v13912_v30  ;;  %v6359_v35 = vld [vmem:[#allocation2 + $0xd2] sm:$0xff] }
 0x73c   : > { %v11605_v28 = vpack.c.bf16 %v6360_v2, %v6359_v35 }
 0x73d   : > { %v11594_v45 = vpop.f32.mrf.mxu1  ;;  %v3740_v13 = vadd.f32 %v11431_v3, %v3090_v40  ;;  %v5728_v40 = vld [vmem:[#allocation2 + $0x169] sm:$0xff] }
 0x73f   : > { %8882 = vmatmul.msk.bf16.gmra.mxu3 %vm1228_vm3, %v6443_v32  ;;  %v11599_v53 = vadd.f32 %v4292_v18, %v3740_v13 }
 0x740   : > { %9003 = vmatmul.msk.bf16.gmra.mxu1 %vm1228_vm3, %v5804_v52  ;;  %v7187_v52 = vlaneseq }
 0x741   : > { %13913 = vst [vmem:[#allocation100_spill] sm:$0xff] %v11599_v53 }
 0x742   : > { %v4705_v29 = vpop.f32.mrf.mxu3 }
 0x743   : > { %v6657_v39 = vpop.f32.mrf.mxu2  ;;  %v4945_v33 = vadd.f32 %v4705_v29, %v10542_v44  ;;  %v5727_v44 = vld [vmem:[#allocation2 + $0x161] sm:$0xff] }
 0x744   : > { %v11613_v29 = vld [vmem:[#allocation8] ss:$0 sm:$0xff]  ;;  %v5805_v2 = vpack.c.bf16 %v5728_v40, %v5727_v44 }
 0x745   : > { %v11602_v50 = vpop.f32.mrf.mxu1  ;;  %v5595_v30 = vadd.f32 %v10584_v54, %v4945_v33 }
 0x747   : > { %v6245_v3 = vadd.f32 %v11440_v15, %v5595_v30 }
 0x748   : > { %9051 = vmatmul.msk.bf16.gmra.mxu2 %vm1228_vm3, %v11605_v28 }
 0x749   : > { %v6895_v32 = vadd.f32 %v6655_v58, %v6245_v3  ;;  %v11619_v58 = vshrl.u32 %v7187_v52, 7  ;;  %v6362_v3 = vld [vmem:[#allocation2 + $0xea] sm:$0xff] }
 0x74a   : > { %v4707_v18 = vpop.f32.mrf.mxu3 }
 0x74b   : > { %v6660_v0 = vpop.f32.mrf.mxu2  ;;  %v4946_v61 = vadd.f32 %v4707_v18, %v10556_v59  ;;  %v11622_v33 = vadd.f32 %v11613_v29, %v6895_v32  ;;  %vm7189_vm4 = vcmp.lt.s32.totalorder %v11619_v58, 7 }
 0x74d   : > { %v11611_v13 = vpop.f32.mrf.mxu1  ;;  %v5596_v54 = vadd.f32 %v10596_v24, %v4946_v61  ;;  %13914 = vst [vmem:[#allocation159_spill] sm:$0xff] %v11622_v33 }
 0x74f   : > { %v6246_v15 = vadd.f32 %v11450_v1, %v5596_v54  ;;  %8883 = vmatmul.msk.bf16.gmra.mxu3 %vm1228_vm3, %v6444_v56  ;;  %v6361_v1 = vld [vmem:[#allocation2 + $0xe2] sm:$0xff]  ;;  %v13576_v56 = vrot.slane %v11622_v33, 1 }
 0x750   : > { %9004 = vmatmul.msk.bf16.gmra.mxu1 %vm1228_vm3, %v5805_v2  ;;  %v11631_v32 = vpack.c.bf16 %v6362_v3, %v6361_v1  ;;  %v5729_v3 = vld [vmem:[#allocation2 + $0x171] sm:$0xff] }
 0x751   : > { %v6896_v59 = vadd.f32 %v6657_v39, %v6246_v15 }
 0x752   : > { %v4710_v35 = vpop.f32.mrf.mxu3 }
 0x753   : > { %v6662_v30 = vpop.f32.mrf.mxu2  ;;  %v6996_v18 = vadd.f32 %v11613_v29, %v6896_v59  ;;  %v4947_v24 = vadd.f32 %v4710_v35, %v10568_v7  ;;  %v5730_v59 = vld [vmem:[#allocation2 + $0x179] sm:$0xff] }
 0x755   : > { %v11626_v40 = vpop.f32.mrf.mxu1  ;;  %v7092_v61 = vrot.slane %v6996_v18, 1  ;;  %v5597_v44 = vadd.f32 %v10610_v25, %v4947_v24 }
 0x757   : > { %v6247_v39 = vadd.f32 %v11462_v14, %v5597_v44  ;;  %v7284_v7 = vsel %vm7189_vm4, %v13576_v56, %v7092_v61  ;;  %v5806_v44 = vpack.c.bf16 %v5730_v59, %v5729_v3 }
 0x758   : > { %9052 = vmatmul.msk.bf16.gmra.mxu2 %vm1228_vm3, %v11631_v32  ;;  %v11641_v52 = vmax.f32 %v11622_v33, %v7284_v7 }
 0x759   : > { %v6897_v54 = vadd.f32 %v6660_v0, %v6247_v39 }
 0x75a   : > { %13915 = vst [vmem:[#allocation160_spill] sm:$0xff] %v11641_v52  ;;  %v4712_v2 = vpop.f32.mrf.mxu3 }
 0x75b   : > { %v6665_v15 = vpop.f32.mrf.mxu2  ;;  %v6997_v25 = vadd.f32 %v11613_v29, %v6897_v54  ;;  %v4948_v35 = vadd.f32 %v4712_v2, %v10582_v10  ;;  %v6364_v2 = vld [vmem:[#allocation2 + $0xfa] sm:$0xff] }
 0x75d   : > { %v11645_v14 = vpop.f32.mrf.mxu1  ;;  %v7093_v24 = vrot.slane %v6997_v25, 1  ;;  %v5598_v1 = vadd.f32 %v10622_v47, %v4948_v35 }
 0x75f   : > { %v6248_v56 = vadd.f32 %v11473_v4, %v5598_v1  ;;  %8884 = vmatmul.msk.bf16.gmra.mxu3 %vm1228_vm3, %v11587_v8  ;;  %v7283_v0 = vsel %vm7189_vm4, %v7092_v61, %v7093_v24  ;;  %v6363_v4 = vld [vmem:[#allocation2 + $0xf2] sm:$0xff] }
 0x760   : > { %9005 = vmatmul.msk.bf16.gmra.mxu1 %vm1228_vm3, %v5806_v44  ;;  %v11654_v39 = vmax.f32 %v6996_v18, %v7283_v0  ;;  %v11661_v3 = vpack.c.bf16 %v6364_v2, %v6363_v4  ;;  %v5732_v44 = vld [vmem:[#allocation2 + $0x189] sm:$0xff] }
 0x761   : > { %v6898_v10 = vadd.f32 %v6662_v30, %v6248_v56 }
 0x762   : > { %13916 = vst [vmem:[#allocation161_spill] sm:$0xff] %v11654_v39  ;;  %v4715_v7 = vpop.f32.mrf.mxu3 }
 0x763   : > { %v6667_v54 = vpop.f32.mrf.mxu2  ;;  %v6998_v33 = vadd.f32 %v11613_v29, %v6898_v10  ;;  %v4949_v47 = vadd.f32 %v4715_v7, %v10594_v37  ;;  %v5731_v7 = vld [vmem:[#allocation2 + $0x181] sm:$0xff] }
 0x765   : > { %v11658_v59 = vpop.f32.mrf.mxu1  ;;  %v7094_v35 = vrot.slane %v6998_v33, 1  ;;  %v5599_v8 = vadd.f32 %v10636_v21, %v4949_v47  ;;  %v5807_v47 = vpack.c.bf16 %v5732_v44, %v5731_v7 }
 0x767   : > { %v6249_v61 = vadd.f32 %v11482_v27, %v5599_v8  ;;  %v7282_v30 = vsel %vm7189_vm4, %v7093_v24, %v7094_v35 }
 0x768   : > { %9053 = vmatmul.msk.bf16.gmra.mxu2 %vm1228_vm3, %v11661_v3  ;;  %v11668_v18 = vmax.f32 %v6997_v25, %v7282_v30 }
 0x769   : > { %v6899_v56 = vadd.f32 %v6665_v15, %v6249_v61  ;;  %v6366_v61 = vld [vmem:[#allocation2 + $0x10a] sm:$0xff] }
 0x76a   : > { %13917 = vst [vmem:[#allocation162_spill] sm:$0xff] %v11668_v18  ;;  %v4717_v37 = vpop.f32.mrf.mxu3 }
 0x76b   : > { %v6670_v1 = vpop.f32.mrf.mxu2  ;;  %v6999_v0 = vadd.f32 %v11613_v29, %v6899_v56  ;;  %v4950_v21 = vadd.f32 %v4717_v37, %v10608_v26 }
 0x76d   : > { %v11672_v10 = vpop.f32.mrf.mxu1  ;;  %v7095_v27 = vrot.slane %v6999_v0, 1  ;;  %v5600_v2 = vadd.f32 %v10648_v62, %v4950_v21 }
 0x76f   : > { %v6250_v4 = vadd.f32 %v11493_v17, %v5600_v2  ;;  %8885 = vmatmul.msk.bf16.gmra.mxu3 %vm1228_vm3, %v11605_v28  ;;  %v7281_v15 = vsel %vm7189_vm4, %v7094_v35, %v7095_v27  ;;  %v6365_v17 = vld [vmem:[#allocation2 + $0x102] sm:$0xff]  ;;  %v5734_v2 = vld [vmem:[#allocation2 + $0x199] sm:$0xff] }
 0x770   : > { %9006 = vmatmul.msk.bf16.gmra.mxu1 %vm1228_vm3, %v5807_v47  ;;  %v11681_v25 = vmax.f32 %v6998_v33, %v7281_v15  ;;  %v11688_v44 = vpack.c.bf16 %v6366_v61, %v6365_v17  ;;  %v5733_v15 = vld [vmem:[#allocation2 + $0x191] sm:$0xff] }
 0x771   : > { %v6900_v26 = vadd.f32 %v6667_v54, %v6250_v4  ;;  %v5808_v61 = vpack.c.bf16 %v5734_v2, %v5733_v15  ;;  %v6367_v2 = vld [vmem:[#allocation2 + $0x112] sm:$0xff] }
 0x772   : > { %13918 = vst [vmem:[#allocation163_spill] sm:$0xff] %v11681_v25  ;;  %v4720_v24 = vpop.f32.mrf.mxu3 }
 0x773   : > { %v6672_v8 = vpop.f32.mrf.mxu2  ;;  %v7000_v30 = vadd.f32 %v11613_v29, %v6900_v26  ;;  %v4951_v62 = vadd.f32 %v4720_v24, %v10620_v6  ;;  %v13919_v26 = vld [vmem:[#allocation108_spill] sm:$0xff] }
 0x775   : > { %v11685_v56 = vpop.f32.mrf.mxu1  ;;  %v7096_v37 = vrot.slane %v7000_v30, 1  ;;  %v5601_v28 = vadd.f32 %v10662_v23, %v4951_v62 }
 0x777   : > { %v6251_v35 = vadd.f32 %v11500_v63, %v5601_v28  ;;  %v7280_v33 = vsel %vm7189_vm4, %v7095_v27, %v7096_v37  ;;  %v6368_v28 = vld [vmem:[#allocation2 + $0x11a] sm:$0xff] }
 0x778   : > { %9054 = vmatmul.msk.bf16.gmra.mxu2 %vm1228_vm3, %v11688_v44  ;;  %v11695_v54 = vmax.f32 %v6999_v0, %v7280_v33  ;;  %v11721_v15 = vpack.c.bf16 %v6368_v28, %v6367_v2  ;;  %v13923_v2 = vld [vmem:[#allocation112_spill] sm:$0xff] }
 0x779   : > { %v6901_v21 = vadd.f32 %v6670_v1, %v6251_v35 }
 0x77a   : > { %v4722_v6 = vpop.f32.mrf.mxu3  ;;  %v7382_v35 = vmax.f32 %v11641_v52, %v11695_v54 }
 0x77b   : > { %v6675_v7 = vpop.f32.mrf.mxu2  ;;  %v7001_v47 = vadd.f32 %v11613_v29, %v6901_v21  ;;  %v4952_v23 = vadd.f32 %v4722_v6, %v10634_v41 }
 0x77d   : > { %v11699_v4 = vpop.f32.mrf.mxu1  ;;  %v7097_v63 = vrot.slane %v7001_v47, 1  ;;  %v5602_v24 = vadd.f32 %v13919_v26, %v4952_v23 }
 0x77f   : > { %v6252_v62 = vadd.f32 %v11509_v38, %v5602_v24  ;;  %8886 = vmatmul.msk.bf16.gmra.mxu3 %vm1228_vm3, %v11631_v32  ;;  %v7279_v1 = vsel %vm7189_vm4, %v7096_v37, %v7097_v63  ;;  %v13920_v32 = vld [vmem:[#allocation105_spill] sm:$0xff] }
 0x780   : > { %9007 = vmatmul.msk.bf16.gmra.mxu1 %vm1228_vm3, %v5808_v61  ;;  %v11708_v0 = vmax.f32 %v7000_v30, %v7279_v1 }
 0x781   : > { %v6902_v41 = vadd.f32 %v6672_v8, %v6252_v62  ;;  %v13921_v8 = vld [vmem:[#allocation110_spill] sm:$0xff] }
 0x782   : > { %v4725_v27 = vpop.f32.mrf.mxu3  ;;  %v7383_v38 = vmax.f32 %v11654_v39, %v11708_v0 }
 0x783   : > { %v6677_v17 = vpop.f32.mrf.mxu2  ;;  %v7002_v33 = vadd.f32 %v11613_v29, %v6902_v41  ;;  %v4953_v21 = vadd.f32 %v4725_v27, %v13920_v32  ;;  %v5736_v27 = vld [vmem:[#allocation2 + $0x1a9] sm:$0xff] }
 0x784   : > { %v11718_v37 = vpack.c.bf16 %v7383_v38, %v7382_v35  ;;  %v13922_v38 = vld [vmem:[#allocation106_spill] sm:$0xff] }
 0x785   : > { %v11716_v6 = vpop.f32.mrf.mxu1  ;;  %v7098_v30 = vrot.slane %v7002_v33, 1  ;;  %v5603_v23 = vadd.f32 %v13921_v8, %v4953_v21  ;;  %v5735_v21 = vld [vmem:[#allocation2 + $0x1a1] sm:$0xff] }
 0x787   : > { %v6253_v26 = vadd.f32 %v11516_v57, %v5603_v23  ;;  %v7278_v24 = vsel %vm7189_vm4, %v7097_v63, %v7098_v30  ;;  %v5809_v23 = vpack.c.bf16 %v5736_v27, %v5735_v21  ;;  %v6369_v21 = vld [vmem:[#allocation2 + $0x122] sm:$0xff] }
 0x788   : > { %9055 = vmatmul.msk.bf16.gmra.mxu2 %vm1228_vm3, %v11721_v15  ;;  %v11728_v61 = vmax.f32 %v7001_v47, %v7278_v24 }
 0x789   : > { %v6903_v62 = vadd.f32 %v6675_v7, %v6253_v26 }
 0x78a   : > { %v4727_v1 = vpop.f32.mrf.mxu3 }
 0x78b   : > { %v6680_v41 = vpop.f32.mrf.mxu2  ;;  %v7003_v35 = vadd.f32 %v11613_v29, %v6903_v62  ;;  %v4954_v32 = vadd.f32 %v4727_v1, %v13922_v38  ;;  %v6370_v62 = vld [vmem:[#allocation2 + $0x12a] sm:$0xff]  ;;  %v7384_v1 = vmax.f32 %v11668_v18, %v11728_v61 }
 0x78d   : > { %v11732_v28 = vpop.f32.mrf.mxu1  ;;  %v7099_v57 = vrot.slane %v7003_v35, 1  ;;  %v5604_v8 = vadd.f32 %v13923_v2, %v4954_v32  ;;  %v11754_v2 = vpack.c.bf16 %v6370_v62, %v6369_v21 }
 0x78f   : > { %v6254_v39 = vadd.f32 %v11524_v36, %v5604_v8  ;;  %8887 = vmatmul.msk.bf16.gmra.mxu3 %vm1228_vm3, %v11661_v3  ;;  %v7277_v7 = vsel %vm7189_vm4, %v7098_v30, %v7099_v57  ;;  %v13924_v3 = vld [vmem:[#allocation107_spill] sm:$0xff] }
 0x790   : > { %9008 = vmatmul.msk.bf16.gmra.mxu1 %vm1228_vm3, %v5809_v23  ;;  %v11741_v47 = vmax.f32 %v7002_v33, %v7277_v7 }
 0x791   : > { %v6904_v63 = vadd.f32 %v6677_v17, %v6254_v39  ;;  %v13925_v39 = vld [vmem:[#allocation114_spill] sm:$0xff] }
 0x792   : > { %v4730_v26 = vpop.f32.mrf.mxu3  ;;  %v7385_v36 = vmax.f32 %v11681_v25, %v11741_v47  ;;  %v13927_v25 = vld [vmem:[#allocation103_spill] sm:$0xff] }
 0x793   : > { %v6682_v24 = vpop.f32.mrf.mxu2  ;;  %v7004_v27 = vadd.f32 %v11613_v29, %v6904_v63  ;;  %v4955_v38 = vadd.f32 %v4730_v26, %v13924_v3 }
 0x794   : > { %v11751_v30 = vpack.c.bf16 %v7385_v36, %v7384_v1  ;;  %v5738_v1 = vld [vmem:[#allocation2 + $0x1b9] sm:$0xff] }
 0x795   : > { %v11749_v32 = vpop.f32.mrf.mxu1  ;;  %v7100_v33 = vrot.slane %v7004_v27, 1  ;;  %v5605_v17 = vadd.f32 %v13925_v39, %v4955_v38  ;;  %v13926_v38 = vld [vmem:[#allocation109_spill] sm:$0xff]  ;;  %v5737_v39 = vld [vmem:[#allocation2 + $0x1b1] sm:$0xff] }
 0x797   : > { %v6255_v8 = vadd.f32 %v11531_v5, %v5605_v17  ;;  %v7276_v23 = vsel %vm7189_vm4, %v7099_v57, %v7100_v33  ;;  %v5810_v57 = vpack.c.bf16 %v5738_v1, %v5737_v39 }
 0x798   : > { %9056 = vmatmul.msk.bf16.gmra.mxu2 %vm1228_vm3, %v11754_v2  ;;  %v11761_v7 = vmax.f32 %v7003_v35, %v7276_v23 }
 0x799   : > { %v6905_v63 = vadd.f32 %v6680_v41, %v6255_v8 }
 0x79a   : > { %v4732_v26 = vpop.f32.mrf.mxu3  ;;  %v7386_v36 = vmax.f32 %v11695_v54, %v11761_v7 }
 0x79b   : > { %v6685_v3 = vpop.f32.mrf.mxu2  ;;  %v7005_v62 = vadd.f32 %v11613_v29, %v6905_v63  ;;  %v4956_v21 = vadd.f32 %v4732_v26, %v13926_v38  ;;  %v6372_v26 = vld [vmem:[#allocation2 + $0x13a] sm:$0xff] }
 0x79d   : > { %v11767_v5 = vpop.f32.mrf.mxu1  ;;  %v7101_v17 = vrot.slane %v7005_v62, 1  ;;  %v5606_v18 = vadd.f32 %v13927_v25, %v4956_v21 }
 0x79f   : > { %v6256_v35 = vadd.f32 %v11539_v31, %v5606_v18  ;;  %8888 = vmatmul.msk.bf16.gmra.mxu3 %vm1228_vm3, %v11688_v44  ;;  %v7275_v54 = vsel %vm7189_vm4, %v7100_v33, %v7101_v17  ;;  %v13928_v31 = vld [vmem:[#allocation111_spill] sm:$0xff] }
 0x7a0   : > { %9009 = vmatmul.msk.bf16.gmra.mxu1 %vm1228_vm3, %v5810_v57  ;;  %v11776_v41 = vmax.f32 %v7004_v27, %v7275_v54  ;;  %v6371_v44 = vld [vmem:[#allocation2 + $0x132] sm:$0xff] }
 0x7a1   : > { %v6906_v8 = vadd.f32 %v6682_v24, %v6256_v35  ;;  %v13929_v33 = vld [vmem:[#allocation91_spill] sm:$0xff]  ;;  %v11787_v57 = vpack.c.bf16 %v6372_v26, %v6371_v44  ;;  %v5739_v44 = vld [vmem:[#allocation2 + $0x1c1] sm:$0xff] }
 0x7a2   : > { %v4735_v23 = vpop.f32.mrf.mxu3  ;;  %v7387_v25 = vmax.f32 %v11708_v0, %v11776_v41 }
 0x7a3   : > { %v6687_v63 = vpop.f32.mrf.mxu2  ;;  %v7006_v1 = vadd.f32 %v11613_v29, %v6906_v8  ;;  %v4957_v18 = vadd.f32 %v4735_v23, %v13928_v31  ;;  %v13930_v31 = vld [vmem:[#allocation113_spill] sm:$0xff] }
 0x7a4   : > { %v11784_v21 = vpack.c.bf16 %v7387_v25, %v7386_v36  ;;  %v5740_v36 = vld [vmem:[#allocation2 + $0x1c9] sm:$0xff] }
 0x7a5   : > { %v11782_v38 = vpop.f32.mrf.mxu1  ;;  %v7102_v39 = vrot.slane %v7006_v1, 1  ;;  %v5607_v27 = vadd.f32 %v13929_v33, %v4957_v18 }
 0x7a7   : > { %v6257_v24 = vadd.f32 %v11546_v16, %v5607_v27  ;;  %v7274_v0 = vsel %vm7189_vm4, %v7101_v17, %v7102_v39  ;;  %v13931_v27 = vld [vmem:[#allocation94_spill] sm:$0xff]  ;;  %v5811_v17 = vpack.c.bf16 %v5740_v36, %v5739_v44 }
 0x7a8   : > { %9057 = vmatmul.msk.bf16.gmra.mxu2 %vm1228_vm3, %v11787_v57  ;;  %v11794_v35 = vmax.f32 %v7005_v62, %v7274_v0 }
 0x7a9   : > { %v6907_v54 = vadd.f32 %v6685_v3, %v6257_v24 }
 0x7aa   : > { %v4737_v8 = vpop.f32.mrf.mxu3  ;;  %v7388_v25 = vmax.f32 %v11728_v61, %v11794_v35 }
 0x7ab   : > { %v6690_v23 = vpop.f32.mrf.mxu2  ;;  %v7007_v26 = vadd.f32 %v11613_v29, %v6907_v54  ;;  %v4958_v18 = vadd.f32 %v4737_v8, %v13930_v31  ;;  %v6374_v8 = vld [vmem:[#allocation2 + $0x14a] sm:$0xff] }
 0x7ad   : > { %v11800_v16 = vpop.f32.mrf.mxu1  ;;  %v7103_v33 = vrot.slane %v7007_v26, 1  ;;  %v5608_v52 = vadd.f32 %v13931_v27, %v4958_v18 }
 0x7af   : > { %v6258_v62 = vadd.f32 %v11554_v22, %v5608_v52  ;;  %8889 = vmatmul.msk.bf16.gmra.mxu3 %vm1228_vm3, %v11721_v15  ;;  %v7273_v61 = vsel %vm7189_vm4, %v7102_v39, %v7103_v33  ;;  %v13932_v22 = vld [vmem:[#allocation13_spill] sm:$0xff] }
 0x7b0   : > { %9010 = vmatmul.msk.bf16.gmra.mxu1 %vm1228_vm3, %v5811_v17  ;;  %v11809_v3 = vmax.f32 %v7006_v1, %v7273_v61  ;;  %v6373_v15 = vld [vmem:[#allocation2 + $0x142] sm:$0xff] }
 0x7b1   : > { %v6908_v24 = vadd.f32 %v6687_v63, %v6258_v62  ;;  %v13933_v39 = vld [vmem:[#allocation97_spill] sm:$0xff]  ;;  %v11820_v17 = vpack.c.bf16 %v6374_v8, %v6373_v15  ;;  %v5741_v15 = vld [vmem:[#allocation2 + $0x1d1] sm:$0xff] }
 0x7b2   : > { %v4740_v0 = vpop.f32.mrf.mxu3  ;;  %v7389_v31 = vmax.f32 %v11741_v47, %v11809_v3 }
 0x7b3   : > { %v6692_v54 = vpop.f32.mrf.mxu2  ;;  %v7008_v36 = vadd.f32 %v11613_v29, %v6908_v24  ;;  %v4959_v52 = vadd.f32 %v4740_v0, %v13932_v22  ;;  %v13934_v22 = vld [vmem:[#allocation92_spill] sm:$0xff] }
 0x7b4   : > { %v11817_v44 = vpack.c.bf16 %v7389_v31, %v7388_v25  ;;  %v5742_v25 = vld [vmem:[#allocation2 + $0x1d9] sm:$0xff] }
 0x7b5   : > { %v11815_v18 = vpop.f32.mrf.mxu1  ;;  %v7104_v27 = vrot.slane %v7008_v36, 1  ;;  %v5609_v1 = vadd.f32 %v13933_v39, %v4959_v52 }
 0x7b7   : > { %v6259_v63 = vadd.f32 %v11561_v12, %v5609_v1  ;;  %v7272_v47 = vsel %vm7189_vm4, %v7103_v33, %v7104_v27  ;;  %v13935_v1 = vld [vmem:[#allocation16_spill] sm:$0xff]  ;;  %v5812_v33 = vpack.c.bf16 %v5742_v25, %v5741_v15 }
 0x7b8   : > { %9058 = vmatmul.msk.bf16.gmra.mxu2 %vm1228_vm3, %v11820_v17  ;;  %v11827_v62 = vmax.f32 %v7007_v26, %v7272_v47 }
 0x7b9   : > { %v6909_v61 = vadd.f32 %v6690_v23, %v6259_v63 }
 0x7ba   : > { %v4742_v24 = vpop.f32.mrf.mxu3  ;;  %v7390_v31 = vmax.f32 %v11761_v7, %v11827_v62 }
 0x7bb   : > { %v6695_v0 = vpop.f32.mrf.mxu2  ;;  %v7009_v8 = vadd.f32 %v11613_v29, %v6909_v61  ;;  %v4960_v52 = vadd.f32 %v4742_v24, %v13934_v22  ;;  %v6376_v24 = vld [vmem:[#allocation2 + $0x15a] sm:$0xff] }
 0x7bd   : > { %v11833_v12 = vpop.f32.mrf.mxu1  ;;  %v7105_v39 = vrot.slane %v7009_v8, 1  ;;  %v5610_v53 = vadd.f32 %v13935_v1, %v4960_v52 }
 0x7bf   : > { %v6260_v26 = vadd.f32 %v11569_v19, %v5610_v53  ;;  %8890 = vmatmul.msk.bf16.gmra.mxu3 %vm1228_vm3, %v11754_v2  ;;  %v7271_v7 = vsel %vm7189_vm4, %v7104_v27, %v7105_v39  ;;  %v13936_v19 = vld [vmem:[#allocation14_spill] sm:$0xff]  ;;  %v13937_v27 = vld [vmem:[#allocation17_spill] sm:$0xff] }
 0x7c0   : > { %9011 = vmatmul.msk.bf16.gmra.mxu1 %vm1228_vm3, %v5812_v33  ;;  %v11842_v23 = vmax.f32 %v7008_v36, %v7271_v7  ;;  %v6375_v2 = vld [vmem:[#allocation2 + $0x152] sm:$0xff] }
 0x7c1   : > { %v6910_v63 = vadd.f32 %v6692_v54, %v6260_v26  ;;  %v11853_v33 = vpack.c.bf16 %v6376_v24, %v6375_v2  ;;  %v5743_v2 = vld [vmem:[#allocation2 + $0x1e1] sm:$0xff] }
 0x7c2   : > { %v4745_v47 = vpop.f32.mrf.mxu3  ;;  %v7391_v22 = vmax.f32 %v11776_v41, %v11842_v23 }
 0x7c3   : > { %v6697_v61 = vpop.f32.mrf.mxu2  ;;  %v7010_v25 = vadd.f32 %v11613_v29, %v6910_v63  ;;  %v4961_v53 = vadd.f32 %v4745_v47, %v13936_v19  ;;  %v13938_v19 = vld [vmem:[#allocation15_spill] sm:$0xff] }
 0x7c4   : > { %v11850_v15 = vpack.c.bf16 %v7391_v22, %v7390_v31  ;;  %v5744_v31 = vld [vmem:[#allocation2 + $0x1e9] sm:$0xff] }
 0x7c5   : > { %v11848_v52 = vpop.f32.mrf.mxu1  ;;  %v7106_v1 = vrot.slane %v7010_v25, 1  ;;  %v5611_v36 = vadd.f32 %v13937_v27, %v4961_v53 }
 0x7c7   : > { %v6261_v54 = vadd.f32 %v11576_v43, %v5611_v36  ;;  %v7270_v41 = vsel %vm7189_vm4, %v7105_v39, %v7106_v1  ;;  %v13939_v36 = vld [vmem:[#allocation101_spill] sm:$0xff]  ;;  %v5813_v39 = vpack.c.bf16 %v5744_v31, %v5743_v2 }
 0x7c8   : > { %9059 = vmatmul.msk.bf16.gmra.mxu2 %vm1228_vm3, %v11853_v33  ;;  %v11860_v26 = vmax.f32 %v7009_v8, %v7270_v41 }
 0x7c9   : > { %v6911_v7 = vadd.f32 %v6695_v0, %v6261_v54 }
 0x7ca   : > { %v4747_v63 = vpop.f32.mrf.mxu3  ;;  %v7392_v22 = vmax.f32 %v11794_v35, %v11860_v26 }
 0x7cb   : > { %v6700_v47 = vpop.f32.mrf.mxu2  ;;  %v7011_v24 = vadd.f32 %v11613_v29, %v6911_v7  ;;  %v4962_v53 = vadd.f32 %v4747_v63, %v13938_v19  ;;  %v6378_v63 = vld [vmem:[#allocation2 + $0x16a] sm:$0xff] }
 0x7cd   : > { %v11866_v43 = vpop.f32.mrf.mxu1  ;;  %v7107_v27 = vrot.slane %v7011_v24, 1  ;;  %v5612_v55 = vadd.f32 %v13939_v36, %v4962_v53 }
 0x7cf   : > { %v6262_v8 = vadd.f32 %v11584_v46, %v5612_v55  ;;  %8891 = vmatmul.msk.bf16.gmra.mxu3 %vm1228_vm3, %v11787_v57  ;;  %v7269_v35 = vsel %vm7189_vm4, %v7106_v1, %v7107_v27  ;;  %v13940_v46 = vld [vmem:[#allocation96_spill] sm:$0xff] }
 0x7d0   : > { %9012 = vmatmul.msk.bf16.gmra.mxu1 %vm1228_vm3, %v5813_v39  ;;  %v11875_v0 = vmax.f32 %v7010_v25, %v7269_v35  ;;  %v6377_v57 = vld [vmem:[#allocation2 + $0x162] sm:$0xff] }
 0x7d1   : > { %v6912_v54 = vadd.f32 %v6697_v61, %v6262_v8  ;;  %v13941_v1 = vld [vmem:[#allocation104_spill] sm:$0xff]  ;;  %v11886_v39 = vpack.c.bf16 %v6378_v63, %v6377_v57  ;;  %v5745_v57 = vld [vmem:[#allocation2 + $0x1f1] sm:$0xff] }
 0x7d2   : > { %v4750_v41 = vpop.f32.mrf.mxu3  ;;  %v7393_v19 = vmax.f32 %v11809_v3, %v11875_v0 }
 0x7d3   : > { %v6702_v7 = vpop.f32.mrf.mxu2  ;;  %v7012_v31 = vadd.f32 %v11613_v29, %v6912_v54  ;;  %v4963_v55 = vadd.f32 %v4750_v41, %v13940_v46  ;;  %v13942_v46 = vld [vmem:[#allocation99_spill] sm:$0xff] }
 0x7d4   : > { %v11883_v2 = vpack.c.bf16 %v7393_v19, %v7392_v22  ;;  %v5746_v22 = vld [vmem:[#allocation2 + $0x1f9] sm:$0xff] }
 0x7d5   : > { %v11881_v53 = vpop.f32.mrf.mxu1  ;;  %v7108_v36 = vrot.slane %v7012_v31, 1  ;;  %v5613_v25 = vadd.f32 %v13941_v1, %v4963_v55 }
 0x7d7   : > { %v6263_v61 = vadd.f32 %v11594_v45, %v5613_v25  ;;  %v7268_v3 = vsel %vm7189_vm4, %v7107_v27, %v7108_v36  ;;  %v13943_v25 = vld [vmem:[#allocation20_spill] sm:$0xff]  ;;  %v5814_v27 = vpack.c.bf16 %v5746_v22, %v5745_v57 }
 0x7d8   : > { %9060 = vmatmul.msk.bf16.gmra.mxu2 %vm1228_vm3, %v11886_v39  ;;  %v11893_v8 = vmax.f32 %v7011_v24, %v7268_v3 }
 0x7d9   : > { %v6913_v35 = vadd.f32 %v6700_v47, %v6263_v61 }
 0x7da   : > { %v4752_v54 = vpop.f32.mrf.mxu3  ;;  %v7394_v19 = vmax.f32 %v11827_v62, %v11893_v8 }
 0x7db   : > { %v6705_v41 = vpop.f32.mrf.mxu2  ;;  %v7013_v63 = vadd.f32 %v11613_v29, %v6913_v35  ;;  %v4964_v55 = vadd.f32 %v4752_v54, %v13942_v46  ;;  %v6380_v54 = vld [vmem:[#allocation2 + $0x17a] sm:$0xff] }
 0x7dd   : > { %v11899_v45 = vpop.f32.mrf.mxu1  ;;  %v7109_v1 = vrot.slane %v7013_v63, 1  ;;  %v5614_v49 = vadd.f32 %v13943_v25, %v4964_v55 }
 0x7df   : > { %v6264_v24 = vadd.f32 %v11602_v50, %v5614_v49  ;;  %8892 = vmatmul.msk.bf16.gmra.mxu3 %vm1228_vm3, %v11820_v17  ;;  %v7267_v62 = vsel %vm7189_vm4, %v7108_v36, %v7109_v1  ;;  %v13944_v49 = vld [vmem:[#allocation102_spill] sm:$0xff] }
 0x7e0   : > { %9013 = vmatmul.msk.bf16.gmra.mxu1 %vm1228_vm3, %v5814_v27  ;;  %v11908_v47 = vmax.f32 %v7012_v31, %v7267_v62  ;;  %v6379_v17 = vld [vmem:[#allocation2 + $0x172] sm:$0xff] }
 0x7e1   : > { %v6914_v61 = vadd.f32 %v6702_v7, %v6264_v24  ;;  %v13945_v27 = vld [vmem:[#allocation22_spill] sm:$0xff]  ;;  %v11917_v31 = vpack.c.bf16 %v6380_v54, %v6379_v17  ;;  %v5747_v17 = vld [vmem:[#allocation2 + $0x201] sm:$0xff] }
 0x7e2   : > { %v4755_v3 = vpop.f32.mrf.mxu3  ;;  %v7395_v46 = vmax.f32 %v11842_v23, %v11908_v47 }
 0x7e3   : > { %v6707_v35 = vpop.f32.mrf.mxu2  ;;  %v7014_v22 = vadd.f32 %v11613_v29, %v6914_v61  ;;  %v4965_v50 = vadd.f32 %v4755_v3, %v13944_v49  ;;  %v5748_v49 = vld [vmem:[#allocation2 + $0x209] sm:$0xff] }
 0x7e4   : > { %v7538_v57 = vpack.c.bf16 %v7395_v46, %v7394_v19  ;;  %v13946_v46 = vld [vmem:[#allocation18_spill] sm:$0xff] }
 0x7e5   : > { %v11914_v55 = vpop.f32.mrf.mxu1  ;;  %v7110_v25 = vrot.slane %v7014_v22, 1  ;;  %v5615_v36 = vadd.f32 %v13945_v27, %v4965_v50 }
 0x7e7   : > { %v6265_v7 = vadd.f32 %v11611_v13, %v5615_v36  ;;  %v7266_v23 = vsel %vm7189_vm4, %v7109_v1, %v7110_v25  ;;  %v13947_v36 = vld [vmem:[#allocation115_spill] sm:$0xff]  ;;  %v5815_v1 = vpack.c.bf16 %v5748_v49, %v5747_v17  ;;  %v6381_v17 = vld [vmem:[#allocation2 + $0x182] sm:$0xff] }
 0x7e8   : > { %9061 = vmatmul.msk.bf16.gmra.mxu2 %vm1228_vm3, %v11917_v31  ;;  %v11924_v24 = vmax.f32 %v7013_v63, %v7266_v23 }
 0x7e9   : > { %v6915_v62 = vadd.f32 %v6705_v41, %v6265_v7 }
 0x7ea   : > { %v4757_v61 = vpop.f32.mrf.mxu3  ;;  %v7396_v19 = vmax.f32 %v11860_v26, %v11924_v24 }
 0x7eb   : > { %v6710_v3 = vpop.f32.mrf.mxu2  ;;  %v7015_v54 = vadd.f32 %v11613_v29, %v6915_v62  ;;  %v4966_v50 = vadd.f32 %v4757_v61, %v13946_v46  ;;  %v6382_v46 = vld [vmem:[#allocation2 + $0x18a] sm:$0xff] }
 0x7ed   : > { %v11930_v13 = vpop.f32.mrf.mxu1  ;;  %v7111_v27 = vrot.slane %v7015_v54, 1  ;;  %v5616_v51 = vadd.f32 %v13947_v36, %v4966_v50 }
 0x7ef   : > { %v6266_v63 = vadd.f32 %v11626_v40, %v5616_v51  ;;  %8893 = vmatmul.msk.bf16.gmra.mxu3 %vm1228_vm3, %v11853_v33  ;;  %v7265_v26 = vsel %vm7189_vm4, %v7110_v25, %v7111_v27  ;;  %v13948_v51 = vld [vmem:[#allocation19_spill] sm:$0xff] }
 0x7f0   : > { %9014 = vmatmul.msk.bf16.gmra.mxu1 %vm1228_vm3, %v5815_v1  ;;  %v11939_v41 = vmax.f32 %v7014_v22, %v7265_v26  ;;  %v13949_v1 = vld [vmem:[#allocation116_spill] sm:$0xff]  ;;  %v11948_v22 = vpack.c.bf16 %v6382_v46, %v6381_v17  ;;  %v13951_v17 = vld [vmem:[#allocation117_spill] sm:$0xff] }
 0x7f1   : > { %v6916_v7 = vadd.f32 %v6707_v35, %v6266_v63 }
 0x7f2   : > { %v4760_v23 = vpop.f32.mrf.mxu3  ;;  %v7397_v61 = vmax.f32 %v11875_v0, %v11939_v41 }
 0x7f3   : > { %v6712_v62 = vpop.f32.mrf.mxu2  ;;  %v7016_v49 = vadd.f32 %v11613_v29, %v6916_v7  ;;  %v4967_v40 = vadd.f32 %v4760_v23, %v13948_v51  ;;  %v5750_v23 = vld [vmem:[#allocation2 + $0x219] sm:$0xff]  ;;  %v13950_v51 = vld [vmem:[#allocation21_spill] sm:$0xff] }
 0x7f4   : > { %v7539_v33 = vpack.c.bf16 %v7397_v61, %v7396_v19 }
 0x7f5   : > { %v11945_v50 = vpop.f32.mrf.mxu1  ;;  %v7112_v36 = vrot.slane %v7016_v49, 1  ;;  %v5617_v25 = vadd.f32 %v13949_v1, %v4967_v40  ;;  %v5749_v40 = vld [vmem:[#allocation2 + $0x211] sm:$0xff] }
 0x7f6   : > { %7850 = vmatpush.bf16.msra.mxu3 %v7539_v33 }
 0x7f7   : > { %v6267_v35 = vadd.f32 %v11645_v14, %v5617_v25  ;;  %v7264_v0 = vsel %vm7189_vm4, %v7111_v27, %v7112_v36 }
 0x7f8   : > { %9062 = vmatmul.msk.bf16.gmra.mxu2 %vm1228_vm3, %v11948_v22  ;;  %v11955_v63 = vmax.f32 %v7015_v54, %v7264_v0  ;;  %v5816_v54 = vpack.c.bf16 %v5750_v23, %v5749_v40  ;;  %v6383_v23 = vld [vmem:[#allocation2 + $0x192] sm:$0xff] }
 0x7f9   : > { %v6917_v26 = vadd.f32 %v6710_v3, %v6267_v35 }
 0x7fa   : > { %v4762_v7 = vpop.f32.mrf.mxu3  ;;  %7851 = vmatpush.bf16.msra.mxu3 %v7538_v57  ;;  %v7398_v61 = vmax.f32 %v11893_v8, %v11955_v63 }
 0x7fb   : > { %v6715_v19 = vpop.f32.mrf.mxu2  ;;  %v7017_v46 = vadd.f32 %v11613_v29, %v6917_v26  ;;  %v4968_v14 = vadd.f32 %v4762_v7, %v13950_v51  ;;  %v6384_v26 = vld [vmem:[#allocation2 + $0x19a] sm:$0xff] }
 0x7fc   : > { %v13952_v7 = vld [vmem:[#allocation23_spill] sm:$0xff]  ;;  %v11981_v40 = vpack.c.bf16 %v6384_v26, %v6383_v23 }
 0x7fd   : > { %v7113_v33 = vrot.slane %v7017_v46, 1  ;;  %v5618_v1 = vadd.f32 %v13951_v17, %v4968_v14  ;;  %v11962_v25 = vpop.f32.mrf.mxu1 }
 0x7fe   : > { %7852 = vmatpush.bf16.msra.mxu3 %v11883_v2 }
 0x7ff   : > { %v6268_v3 = vadd.f32 %v11658_v59, %v5618_v1  ;;  %8894 = vmatmul.msk.bf16.gmra.mxu3 %vm1228_vm3, %v11886_v39  ;;  %v7263_v8 = vsel %vm7189_vm4, %v7112_v36, %v7113_v33  ;;  %v13953_v36 = vld [vmem:[#allocation118_spill] sm:$0xff] }
 0x800   : > { %9015 = vmatmul.msk.bf16.gmra.mxu1 %vm1228_vm3, %v5816_v54  ;;  %v11971_v57 = vmax.f32 %v7016_v49, %v7263_v8  ;;  %v13954_v8 = vld [vmem:[#allocation24_spill] sm:$0xff] }
 0x801   : > { %v6918_v27 = vadd.f32 %v6712_v62, %v6268_v3  ;;  %v5752_v3 = vld [vmem:[#allocation2 + $0x229] sm:$0xff] }
 0x802   : > { %v4765_v35 = vpop.f32.mrf.mxu3  ;;  %7853 = vmatpush.bf16.msra.mxu3 %v11850_v15  ;;  %v7399_v2 = vmax.f32 %v11908_v47, %v11971_v57 }
 0x803   : > { %v6717_v0 = vpop.f32.mrf.mxu2  ;;  %v7018_v59 = vadd.f32 %v11613_v29, %v6918_v27  ;;  %v4969_v39 = vadd.f32 %v4765_v35, %v13952_v7  ;;  %v5751_v35 = vld [vmem:[#allocation2 + $0x221] sm:$0xff] }
 0x804   : > { %v11978_v51 = vpack.c.bf16 %v7399_v2, %v7398_v61  ;;  %v13955_v2 = vld [vmem:[#allocation119_spill] sm:$0xff] }
 0x805   : > { %v7114_v14 = vrot.slane %v7018_v59, 1  ;;  %v5619_v49 = vadd.f32 %v13953_v36, %v4969_v39  ;;  %v11985_v62 = vpop.f32.mrf.mxu1 }
 0x806   : > { %7854 = vmatpush.bf16.msra.mxu3 %v11817_v44 }
 0x807   : > { %v6269_v15 = vadd.f32 %v11672_v10, %v5619_v49  ;;  %v7262_v47 = vsel %vm7189_vm4, %v7113_v33, %v7114_v14  ;;  %v5817_v33 = vpack.c.bf16 %v5752_v3, %v5751_v35  ;;  %v13956_v49 = vld [vmem:[#allocation25_spill] sm:$0xff] }
 0x808   : > { %9063 = vmatmul.msk.bf16.gmra.mxu2 %vm1228_vm3, %v11981_v40  ;;  %v11991_v17 = vmax.f32 %v7017_v46, %v7262_v47  ;;  %v6385_v47 = vld [vmem:[#allocation2 + $0x1a2] sm:$0xff] }
 0x809   : > { %v6919_v61 = vadd.f32 %v6715_v19, %v6269_v15 }
 0x80a   : > { %v4767_v1 = vpop.f32.mrf.mxu3  ;;  %7855 = vmatpush.bf16.msra.mxu3 %v11784_v21  ;;  %v7400_v44 = vmax.f32 %v11924_v24, %v11991_v17 }
 0x80b   : > { %v6720_v54 = vpop.f32.mrf.mxu2  ;;  %v7019_v10 = vadd.f32 %v11613_v29, %v6919_v61  ;;  %v4970_v27 = vadd.f32 %v4767_v1, %v13954_v8 }
 0x80d   : > { %v7115_v26 = vrot.slane %v7019_v10, 1  ;;  %v5620_v7 = vadd.f32 %v13955_v2, %v4970_v27  ;;  %v12008_v39 = vpop.f32.mrf.mxu1 }
 0x80e   : > { %7856 = vmatpush.bf16.msra.mxu3 %v11751_v30  ;;  %v6386_v30 = vld [vmem:[#allocation2 + $0x1aa] sm:$0xff] }
 0x80f   : > { %v6270_v19 = vadd.f32 %v11685_v56, %v5620_v7  ;;  %8895 = vmatmul.msk.bf16.gmra.mxu3 %vm1228_vm3, %v11917_v31  ;;  %v7261_v21 = vsel %vm7189_vm4, %v7114_v14, %v7115_v26  ;;  %v13957_v14 = vld [vmem:[#allocation120_spill] sm:$0xff]  ;;  %v12018_v1 = vpack.c.bf16 %v6386_v30, %v6385_v47 }
 0x810   : > { %9016 = vmatmul.msk.bf16.gmra.mxu1 %vm1228_vm3, %v5817_v33  ;;  %v12006_v24 = vmax.f32 %v7018_v59, %v7261_v21  ;;  %v5753_v21 = vld [vmem:[#allocation2 + $0x231] sm:$0xff]  ;;  %v6388_v47 = vld [vmem:[#allocation2 + $0x1ba] sm:$0xff] }
 0x811   : > { %v6920_v46 = vadd.f32 %v6717_v0, %v6270_v19 }
 0x812   : > { %v4770_v23 = vpop.f32.mrf.mxu3  ;;  %7857 = vmatpush.bf16.msra.mxu3 %v11718_v37  ;;  %v7401_v56 = vmax.f32 %v11939_v41, %v12006_v24 }
 0x813   : > { %v6722_v36 = vpop.f32.mrf.mxu2  ;;  %v7020_v31 = vadd.f32 %v11613_v29, %v6920_v46  ;;  %v4971_v15 = vadd.f32 %v4770_v23, %v13956_v49  ;;  %v13959_v23 = vld [vmem:[#allocation121_spill] sm:$0xff] }
 0x814   : > { %v12015_v61 = vpack.c.bf16 %v7401_v56, %v7400_v44  ;;  %v5754_v44 = vld [vmem:[#allocation2 + $0x239] sm:$0xff] }
 0x815   : > { %v7116_v59 = vrot.slane %v7020_v31, 1  ;;  %v5621_v0 = vadd.f32 %v13957_v14, %v4971_v15  ;;  %v12030_v33 = vpop.f32.mrf.mxu1 }
 0x817   : > { %v6271_v3 = vadd.f32 %v11699_v4, %v5621_v0  ;;  %v7260_v37 = vsel %vm7189_vm4, %v7115_v26, %v7116_v59  ;;  %v13958_v4 = vld [vmem:[#allocation26_spill] sm:$0xff]  ;;  %v5818_v26 = vpack.c.bf16 %v5754_v44, %v5753_v21 }
 0x818   : > { %9064 = vmatmul.msk.bf16.gmra.mxu2 %vm1228_vm3, %v12018_v1  ;;  %v12025_v41 = vmax.f32 %v7019_v10, %v7260_v37  ;;  %v6387_v37 = vld [vmem:[#allocation2 + $0x1b2] sm:$0xff] }
 0x819   : > { %v6921_v8 = vadd.f32 %v6720_v54, %v6271_v3  ;;  %v12051_v44 = vpack.c.bf16 %v6388_v47, %v6387_v37 }
 0x81a   : > { %v4772_v27 = vpop.f32.mrf.mxu3  ;;  %v7402_v2 = vmax.f32 %v11955_v63, %v12025_v41 }
 0x81b   : > { %v6725_v35 = vpop.f32.mrf.mxu2  ;;  %v7021_v7 = vadd.f32 %v11613_v29, %v6921_v8  ;;  %v4972_v19 = vadd.f32 %v4772_v27, %v13958_v4 }
 0x81d   : > { %v7117_v46 = vrot.slane %v7021_v7, 1  ;;  %v5622_v30 = vadd.f32 %v13959_v23, %v4972_v19  ;;  %v12048_v27 = vpop.f32.mrf.mxu1  ;;  %v5756_v23 = vld [vmem:[#allocation2 + $0x249] sm:$0xff] }
 0x81f   : > { %v6272_v10 = vadd.f32 %v11716_v6, %v5622_v30  ;;  %8896 = vmatmul.msk.bf16.gmra.mxu3 %vm1228_vm3, %v11948_v22  ;;  %v7259_v63 = vsel %vm7189_vm4, %v7116_v59, %v7117_v46  ;;  %v13960_v6 = vld [vmem:[#allocation27_spill] sm:$0xff]  ;;  %v13961_v59 = vld [vmem:[#allocation122_spill] sm:$0xff] }
 0x820   : > { %9017 = vmatmul.msk.bf16.gmra.mxu1 %vm1228_vm3, %v5818_v26  ;;  %v12040_v54 = vmax.f32 %v7020_v31, %v7259_v63 }
 0x821   : > { %v6922_v56 = vadd.f32 %v6722_v36, %v6272_v10  ;;  %v13962_v10 = vld [vmem:[#allocation28_spill] sm:$0xff] }
 0x822   : > { %v4775_v49 = vpop.f32.mrf.mxu3  ;;  %v7403_v14 = vmax.f32 %v11971_v57, %v12040_v54 }
 0x823   : > { %v6727_v15 = vpop.f32.mrf.mxu2  ;;  %v7022_v0 = vadd.f32 %v11613_v29, %v6922_v56  ;;  %v4973_v3 = vadd.f32 %v4775_v49, %v13960_v6  ;;  %v13963_v49 = vld [vmem:[#allocation123_spill] sm:$0xff] }
 0x824   : > { %v12046_v22 = vpack.c.bf16 %v7403_v14, %v7402_v2 }
 0x825   : > { %v7118_v8 = vrot.slane %v7022_v0, 1  ;;  %v5623_v31 = vadd.f32 %v13961_v59, %v4973_v3  ;;  %v12065_v6 = vpop.f32.mrf.mxu1  ;;  %v6390_v59 = vld [vmem:[#allocation2 + $0x1ca] sm:$0xff] }
 0x827   : > { %v6273_v36 = vadd.f32 %v11732_v28, %v5623_v31  ;;  %v7258_v57 = vsel %vm7189_vm4, %v7117_v46, %v7118_v8  ;;  %v5755_v28 = vld [vmem:[#allocation2 + $0x241] sm:$0xff] }
 0x828   : > { %9065 = vmatmul.msk.bf16.gmra.mxu2 %vm1228_vm3, %v12051_v44  ;;  %v12058_v4 = vmax.f32 %v7021_v7, %v7258_v57  ;;  %v5819_v14 = vpack.c.bf16 %v5756_v23, %v5755_v28  ;;  %v13965_v23 = vld [vmem:[#allocation124_spill] sm:$0xff] }
 0x829   : > { %v6923_v19 = vadd.f32 %v6725_v35, %v6273_v36 }
 0x82a   : > { %v4777_v2 = vpop.f32.mrf.mxu3  ;;  %v7404_v30 = vmax.f32 %v11991_v17, %v12058_v4 }
 0x82b   : > { %v6730_v21 = vpop.f32.mrf.mxu2  ;;  %v7023_v26 = vadd.f32 %v11613_v29, %v6923_v19  ;;  %v4974_v63 = vadd.f32 %v4777_v2, %v13962_v10  ;;  %v6389_v19 = vld [vmem:[#allocation2 + $0x1c2] sm:$0xff] }
 0x82d   : > { %v7119_v56 = vrot.slane %v7023_v26, 1  ;;  %v5624_v47 = vadd.f32 %v13963_v49, %v4974_v63  ;;  %v12091_v63 = vpop.f32.mrf.mxu1 }
 0x82f   : > { %v6274_v7 = vadd.f32 %v11749_v32, %v5624_v47  ;;  %8897 = vmatmul.msk.bf16.gmra.mxu3 %vm1228_vm3, %v11981_v40  ;;  %v7257_v17 = vsel %vm7189_vm4, %v7118_v8, %v7119_v56  ;;  %v13964_v32 = vld [vmem:[#allocation29_spill] sm:$0xff]  ;;  %v12082_v8 = vpack.c.bf16 %v6390_v59, %v6389_v19  ;;  %v5758_v47 = vld [vmem:[#allocation2 + $0x259] sm:$0xff] }
 0x830   : > { %9018 = vmatmul.msk.bf16.gmra.mxu1 %vm1228_vm3, %v5819_v14  ;;  %v12073_v35 = vmax.f32 %v7022_v0, %v7257_v17  ;;  %v13967_v59 = vld [vmem:[#allocation125_spill] sm:$0xff]  ;;  %v6392_v19 = vld [vmem:[#allocation2 + $0x1da] sm:$0xff] }
 0x831   : > { %v6924_v46 = vadd.f32 %v6727_v15, %v6274_v7 }
 0x832   : > { %v4780_v3 = vpop.f32.mrf.mxu3  ;;  %v7405_v31 = vmax.f32 %v12006_v24, %v12073_v35 }
 0x833   : > { %v6732_v37 = vpop.f32.mrf.mxu2  ;;  %v7024_v36 = vadd.f32 %v11613_v29, %v6924_v46  ;;  %v4975_v57 = vadd.f32 %v4780_v3, %v13964_v32  ;;  %v5757_v46 = vld [vmem:[#allocation2 + $0x251] sm:$0xff] }
 0x834   : > { %v12079_v40 = vpack.c.bf16 %v7405_v31, %v7404_v30 }
 0x835   : > { %v7120_v2 = vrot.slane %v7024_v36, 1  ;;  %v5625_v10 = vadd.f32 %v13965_v23, %v4975_v57 }
 0x837   : > { %v6275_v15 = vadd.f32 %v11767_v5, %v5625_v10  ;;  %v7256_v24 = vsel %vm7189_vm4, %v7119_v56, %v7120_v2  ;;  %v13966_v5 = vld [vmem:[#allocation30_spill] sm:$0xff]  ;;  %v5820_v56 = vpack.c.bf16 %v5758_v47, %v5757_v46  ;;  %v12108_v10 = vpop.f32.mrf.mxu1 }
 0x838   : > { %9066 = vmatmul.msk.bf16.gmra.mxu2 %vm1228_vm3, %v12082_v8  ;;  %v12089_v0 = vmax.f32 %v7023_v26, %v7256_v24 }
 0x839   : > { %v6925_v28 = vadd.f32 %v6730_v21, %v6275_v15  ;;  %v13968_v15 = vld [vmem:[#allocation31_spill] sm:$0xff] }
 0x83a   : > { %v4782_v30 = vpop.f32.mrf.mxu3  ;;  %v7406_v14 = vmax.f32 %v12025_v41, %v12089_v0 }
 0x83b   : > { %v6735_v49 = vpop.f32.mrf.mxu2  ;;  %v7025_v7 = vadd.f32 %v11613_v29, %v6925_v28  ;;  %v4976_v17 = vadd.f32 %v4782_v30, %v13966_v5  ;;  %v6391_v28 = vld [vmem:[#allocation2 + $0x1d2] sm:$0xff] }
 0x83c   : > { %v12117_v47 = vpack.c.bf16 %v6392_v19, %v6391_v28 }
 0x83d   : > { %v7121_v3 = vrot.slane %v7025_v7, 1  ;;  %v5626_v31 = vadd.f32 %v13967_v59, %v4976_v17 }
 0x83f   : > { %v6276_v26 = vadd.f32 %v11782_v38, %v5626_v31  ;;  %8898 = vmatmul.msk.bf16.gmra.mxu3 %vm1228_vm3, %v12018_v1  ;;  %v7255_v21 = vsel %vm7189_vm4, %v7120_v2, %v7121_v3  ;;  %v12110_v38 = vld [vmem:[#allocation8] ss:$0 sm:$0xff]  ;;  %v13969_v2 = vld [vmem:[#allocation126_spill] sm:$0xff] }
 0x840   : > { %9019 = vmatmul.msk.bf16.gmra.mxu1 %vm1228_vm3, %v5820_v56  ;;  %v12104_v41 = vmax.f32 %v7024_v36, %v7255_v21  ;;  %v13970_v21 = vld [vmem:[#allocation32_spill] sm:$0xff] }
 0x841   : > { %v6926_v29 = vadd.f32 %v6732_v37, %v6276_v26 }
 0x842   : > { %v4785_v32 = vpop.f32.mrf.mxu3  ;;  %v7407_v23 = vmax.f32 %v12040_v54, %v12104_v41 }
 0x843   : > { %v6737_v57 = vpop.f32.mrf.mxu2  ;;  %v7026_v1 = vadd.f32 %v12110_v38, %v6926_v29  ;;  %v4977_v24 = vadd.f32 %v4785_v32, %v13968_v15  ;;  %v12130_v32 = vpop.f32.mrf.mxu1 }
 0x844   : > { %v12114_v30 = vpack.c.bf16 %v7407_v23, %v7406_v14  ;;  %v5760_v14 = vld [vmem:[#allocation2 + $0x269] sm:$0xff]  ;;  %v13971_v23 = vld [vmem:[#allocation127_spill] sm:$0xff] }
 0x845   : > { %v7122_v36 = vrot.slane %v7026_v1, 1  ;;  %v5627_v37 = vadd.f32 %v13969_v2, %v4977_v24 }
 0x847   : > { %v6277_v5 = vadd.f32 %v11800_v16, %v5627_v37  ;;  %v7254_v54 = vsel %vm7189_vm4, %v7121_v3, %v7122_v36  ;;  %v5759_v16 = vld [vmem:[#allocation2 + $0x261] sm:$0xff]  ;;  %v6394_v37 = vld [vmem:[#allocation2 + $0x1ea] sm:$0xff] }
 0x848   : > { %9067 = vmatmul.msk.bf16.gmra.mxu2 %vm1228_vm3, %v12117_v47  ;;  %v12124_v17 = vmax.f32 %v7025_v7, %v7254_v54  ;;  %v5821_v3 = vpack.c.bf16 %v5760_v14, %v5759_v16 }
 0x849   : > { %v6927_v46 = vadd.f32 %v6735_v49, %v6277_v5 }
 0x84a   : > { %v4787_v59 = vpop.f32.mrf.mxu3  ;;  %v7408_v56 = vmax.f32 %v12058_v4, %v12124_v17 }
 0x84b   : > { %v6740_v31 = vpop.f32.mrf.mxu2  ;;  %v7027_v26 = vadd.f32 %v12110_v38, %v6927_v46  ;;  %v4978_v29 = vadd.f32 %v4787_v59, %v13970_v21  ;;  %v6393_v59 = vld [vmem:[#allocation2 + $0x1e2] sm:$0xff] }
 0x84c   : > { %v13973_v21 = vld [vmem:[#allocation128_spill] sm:$0xff] }
 0x84d   : > { %v7123_v19 = vrot.slane %v7027_v26, 1  ;;  %v5628_v15 = vadd.f32 %v13971_v23, %v4978_v29 }
 0x84f   : > { %v6278_v7 = vadd.f32 %v11815_v18, %v5628_v15  ;;  %8899 = vmatmul.msk.bf16.gmra.mxu3 %vm1228_vm3, %v12051_v44  ;;  %v7253_v4 = vsel %vm7189_vm4, %v7122_v36, %v7123_v19  ;;  %v13972_v18 = vld [vmem:[#allocation33_spill] sm:$0xff]  ;;  %v12148_v36 = vpack.c.bf16 %v6394_v37, %v6393_v59 }
 0x850   : > { %9020 = vmatmul.msk.bf16.gmra.mxu1 %vm1228_vm3, %v5821_v3  ;;  %v12139_v49 = vmax.f32 %v7026_v1, %v7253_v4  ;;  %v12150_v1 = vpop.f32.mrf.mxu1  ;;  %v5762_v3 = vld [vmem:[#allocation2 + $0x279] sm:$0xff] }
 0x851   : > { %v6928_v24 = vadd.f32 %v6737_v57, %v6278_v7 }
 0x852   : > { %v4790_v28 = vpop.f32.mrf.mxu3  ;;  %v7409_v5 = vmax.f32 %v12073_v35, %v12139_v49 }
 0x853   : > { %v6742_v2 = vpop.f32.mrf.mxu2  ;;  %v7028_v54 = vadd.f32 %v12110_v38, %v6928_v24  ;;  %v4979_v46 = vadd.f32 %v4790_v28, %v13972_v18  ;;  %v13974_v24 = vld [vmem:[#allocation34_spill] sm:$0xff] }
 0x854   : > { %v12145_v44 = vpack.c.bf16 %v7409_v5, %v7408_v56  ;;  %v13975_v5 = vld [vmem:[#allocation129_spill] sm:$0xff] }
 0x855   : > { %v7124_v14 = vrot.slane %v7028_v54, 1  ;;  %v5629_v29 = vadd.f32 %v13973_v21, %v4979_v46 }
 0x857   : > { %v6279_v57 = vadd.f32 %v11833_v12, %v5629_v29  ;;  %v7252_v35 = vsel %vm7189_vm4, %v7123_v19, %v7124_v14  ;;  %v5761_v12 = vld [vmem:[#allocation2 + $0x271] sm:$0xff] }
 0x858   : > { %9068 = vmatmul.msk.bf16.gmra.mxu2 %vm1228_vm3, %v12148_v36  ;;  %v12157_v16 = vmax.f32 %v7027_v26, %v7252_v35  ;;  %v5822_v46 = vpack.c.bf16 %v5762_v3, %v5761_v12  ;;  %v12172_v26 = vpop.f32.mrf.mxu1 }
 0x859   : > { %v6929_v23 = vadd.f32 %v6740_v31, %v6279_v57  ;;  %v6396_v57 = vld [vmem:[#allocation2 + $0x1fa] sm:$0xff] }
 0x85a   : > { %v4792_v56 = vpop.f32.mrf.mxu3  ;;  %v7410_v7 = vmax.f32 %v12089_v0, %v12157_v16 }
 0x85b   : > { %v6745_v15 = vpop.f32.mrf.mxu2  ;;  %v7029_v4 = vadd.f32 %v12110_v38, %v6929_v23  ;;  %v4980_v28 = vadd.f32 %v4792_v56, %v13974_v24  ;;  %v13976_v23 = vld [vmem:[#allocation35_spill] sm:$0xff] }
 0x85c   : > { %v6395_v56 = vld [vmem:[#allocation2 + $0x1f2] sm:$0xff] }
 0x85d   : > { %v7125_v37 = vrot.slane %v7029_v4, 1  ;;  %v5630_v18 = vadd.f32 %v13975_v5, %v4980_v28  ;;  %v13977_v28 = vld [vmem:[#allocation130_spill] sm:$0xff] }
 0x85f   : > { %v6280_v19 = vadd.f32 %v11848_v52, %v5630_v18  ;;  %8900 = vmatmul.msk.bf16.gmra.mxu3 %vm1228_vm3, %v12082_v8  ;;  %v7251_v31 = vsel %vm7189_vm4, %v7124_v14, %v7125_v37 }
 0x860   : > { %9021 = vmatmul.msk.bf16.gmra.mxu1 %vm1228_vm3, %v5822_v46  ;;  %v12170_v0 = vmax.f32 %v7028_v54, %v7251_v31  ;;  %v12179_v54 = vpack.c.bf16 %v6396_v57, %v6395_v56  ;;  %v12190_v31 = vpop.f32.mrf.mxu1  ;;  %v5763_v57 = vld [vmem:[#allocation2 + $0x281] sm:$0xff] }
 0x861   : > { %v6930_v59 = vadd.f32 %v6742_v2, %v6280_v19  ;;  %v5764_v19 = vld [vmem:[#allocation2 + $0x289] sm:$0xff] }
 0x862   : > { %v4795_v21 = vpop.f32.mrf.mxu3  ;;  %v7411_v35 = vmax.f32 %v12104_v41, %v12170_v0 }
 0x863   : > { %v6747_v29 = vpop.f32.mrf.mxu2  ;;  %v7030_v52 = vadd.f32 %v12110_v38, %v6930_v59  ;;  %v4981_v8 = vadd.f32 %v4795_v21, %v13976_v23  ;;  %v13979_v23 = vld [vmem:[#allocation131_spill] sm:$0xff] }
 0x864   : > { %v7546_v3 = vpack.c.bf16 %v7411_v35, %v7410_v7 }
 0x865   : > { %v7126_v24 = vrot.slane %v7030_v52, 1  ;;  %v5631_v14 = vadd.f32 %v13977_v28, %v4981_v8 }
 0x867   : > { %v6281_v12 = vadd.f32 %v11866_v43, %v5631_v14  ;;  %v7250_v2 = vsel %vm7189_vm4, %v7125_v37, %v7126_v24  ;;  %v13978_v43 = vld [vmem:[#allocation36_spill] sm:$0xff]  ;;  %v5823_v37 = vpack.c.bf16 %v5764_v19, %v5763_v57 }
 0x868   : > { %9069 = vmatmul.msk.bf16.gmra.mxu2 %vm1228_vm3, %v12179_v54  ;;  %v12186_v41 = vmax.f32 %v7029_v4, %v7250_v2  ;;  %v6398_v2 = vld [vmem:[#allocation2 + $0x20a] sm:$0xff]  ;;  %v13981_v57 = vld [vmem:[#allocation132_spill] sm:$0xff] }
 0x869   : > { %v6931_v5 = vadd.f32 %v6745_v15, %v6281_v12 }
 0x86a   : > { %v4797_v18 = vpop.f32.mrf.mxu3  ;;  %v7412_v7 = vmax.f32 %v12124_v17, %v12186_v41 }
 0x86b   : > { %v6750_v46 = vpop.f32.mrf.mxu2  ;;  %v7031_v59 = vadd.f32 %v12110_v38, %v6931_v5  ;;  %v4982_v21 = vadd.f32 %v4797_v18, %v13978_v43  ;;  %v12207_v43 = vpop.f32.mrf.mxu1 }
 0x86d   : > { %v7127_v35 = vrot.slane %v7031_v59, 1  ;;  %v5632_v8 = vadd.f32 %v13979_v23, %v4982_v21 }
 0x86f   : > { %v6282_v4 = vadd.f32 %v11881_v53, %v5632_v8  ;;  %8901 = vmatmul.msk.bf16.gmra.mxu3 %vm1228_vm3, %v12117_v47  ;;  %v7249_v17 = vsel %vm7189_vm4, %v7126_v24, %v7127_v35  ;;  %v13980_v53 = vld [vmem:[#allocation37_spill] sm:$0xff] }
 0x870   : > { %9022 = vmatmul.msk.bf16.gmra.mxu1 %vm1228_vm3, %v5823_v37  ;;  %v12201_v15 = vmax.f32 %v7030_v52, %v7249_v17  ;;  %v6397_v47 = vld [vmem:[#allocation2 + $0x202] sm:$0xff] }
 0x871   : > { %v6932_v56 = vadd.f32 %v6747_v29, %v6282_v4  ;;  %v12210_v52 = vpack.c.bf16 %v6398_v2, %v6397_v47  ;;  %v5766_v4 = vld [vmem:[#allocation2 + $0x299] sm:$0xff] }
 0x872   : > { %v4800_v28 = vpop.f32.mrf.mxu3  ;;  %v7413_v12 = vmax.f32 %v12139_v49, %v12201_v15 }
 0x873   : > { %v6752_v14 = vpop.f32.mrf.mxu2  ;;  %v7032_v5 = vadd.f32 %v12110_v38, %v6932_v56  ;;  %v4983_v18 = vadd.f32 %v4800_v28, %v13980_v53  ;;  %v13982_v28 = vld [vmem:[#allocation38_spill] sm:$0xff]  ;;  %v13983_v53 = vld [vmem:[#allocation133_spill] sm:$0xff] }
 0x874   : > { %v7547_v19 = vpack.c.bf16 %v7413_v12, %v7412_v7  ;;  %v5765_v12 = vld [vmem:[#allocation2 + $0x291] sm:$0xff] }
 0x875   : > { %v7128_v21 = vrot.slane %v7032_v5, 1  ;;  %v5633_v24 = vadd.f32 %v13981_v57, %v4983_v18 }
 0x876   : > { %7904 = vmatpush.bf16.msrb.mxu0 %v7547_v19  ;;  %v5824_v19 = vpack.c.bf16 %v5766_v4, %v5765_v12 }
 0x877   : > { %v6283_v29 = vadd.f32 %v11899_v45, %v5633_v24  ;;  %v7248_v49 = vsel %vm7189_vm4, %v7127_v35, %v7128_v21 }
 0x878   : > { %9070 = vmatmul.msk.bf16.gmra.mxu2 %vm1228_vm3, %v12210_v52  ;;  %v12217_v23 = vmax.f32 %v7031_v59, %v7248_v49  ;;  %v12225_v59 = vpop.f32.mrf.mxu1  ;;  %v6399_v49 = vld [vmem:[#allocation2 + $0x212] sm:$0xff] }
 0x879   : > { %v6933_v7 = vadd.f32 %v6750_v46, %v6283_v29  ;;  %v13984_v29 = vld [vmem:[#allocation39_spill] sm:$0xff] }
 0x87a   : > { %v4802_v8 = vpop.f32.mrf.mxu3  ;;  %7905 = vmatpush.bf16.msrb.mxu0 %v7546_v3  ;;  %v7414_v17 = vmax.f32 %v12157_v16, %v12217_v23 }
 0x87b   : > { %v6755_v37 = vpop.f32.mrf.mxu2  ;;  %v7033_v56 = vadd.f32 %v12110_v38, %v6933_v7  ;;  %v4984_v45 = vadd.f32 %v4802_v8, %v13982_v28 }
 0x87d   : > { %v7129_v2 = vrot.slane %v7033_v56, 1  ;;  %v5634_v18 = vadd.f32 %v13983_v53, %v4984_v45  ;;  %v5768_v53 = vld [vmem:[#allocation2 + $0x2a9] sm:$0xff] }
 0x87e   : > { %7906 = vmatpush.bf16.msrb.mxu0 %v12145_v44  ;;  %v6400_v44 = vld [vmem:[#allocation2 + $0x21a] sm:$0xff] }
 0x87f   : > { %v6284_v46 = vadd.f32 %v11914_v55, %v5634_v18  ;;  %8902 = vmatmul.msk.bf16.gmra.mxu3 %vm1228_vm3, %v12148_v36  ;;  %v7247_v16 = vsel %vm7189_vm4, %v7128_v21, %v7129_v2  ;;  %v13985_v21 = vld [vmem:[#allocation134_spill] sm:$0xff]  ;;  %v12243_v4 = vpack.c.bf16 %v6400_v44, %v6399_v49  ;;  %v13986_v18 = vld [vmem:[#allocation40_spill] sm:$0xff] }
 0x880   : > { %9023 = vmatmul.msk.bf16.gmra.mxu1 %vm1228_vm3, %v5824_v19  ;;  %v12233_v3 = vmax.f32 %v7032_v5, %v7247_v16  ;;  %v12253_v28 = vpop.f32.mrf.mxu1 }
 0x881   : > { %v6934_v35 = vadd.f32 %v6752_v14, %v6284_v46  ;;  %v5767_v46 = vld [vmem:[#allocation2 + $0x2a1] sm:$0xff] }
 0x882   : > { %v4805_v47 = vpop.f32.mrf.mxu3  ;;  %7907 = vmatpush.bf16.msrb.mxu0 %v12114_v30  ;;  %v7415_v24 = vmax.f32 %v12170_v0, %v12233_v3 }
 0x883   : > { %v6757_v57 = vpop.f32.mrf.mxu2  ;;  %v7034_v55 = vadd.f32 %v12110_v38, %v6934_v35  ;;  %v4985_v36 = vadd.f32 %v4805_v47, %v13984_v29  ;;  %v5825_v35 = vpack.c.bf16 %v5768_v53, %v5767_v46  ;;  %v6402_v29 = vld [vmem:[#allocation2 + $0x22a] sm:$0xff] }
 0x884   : > { %v12240_v7 = vpack.c.bf16 %v7415_v24, %v7414_v17  ;;  %v13990_v46 = vld [vmem:[#allocation42_spill] sm:$0xff] }
 0x885   : > { %v7130_v8 = vrot.slane %v7034_v55, 1  ;;  %v5635_v5 = vadd.f32 %v13985_v21, %v4985_v36  ;;  %v13988_v36 = vld [vmem:[#allocation41_spill] sm:$0xff] }
 0x886   : > { %7908 = vmatpush.bf16.msrb.mxu0 %v12079_v40  ;;  %v6401_v21 = vld [vmem:[#allocation2 + $0x222] sm:$0xff] }
 0x887   : > { %v6285_v30 = vadd.f32 %v11930_v13, %v5635_v5  ;;  %v7246_v0 = vsel %vm7189_vm4, %v7129_v2, %v7130_v8  ;;  %v13987_v2 = vld [vmem:[#allocation135_spill] sm:$0xff] }
 0x888   : > { %9071 = vmatmul.msk.bf16.gmra.mxu2 %vm1228_vm3, %v12243_v4  ;;  %v12251_v14 = vmax.f32 %v7033_v56, %v7246_v0 }
 0x889   : > { %v6935_v17 = vadd.f32 %v6755_v37, %v6285_v30  ;;  %v12280_v30 = vpack.c.bf16 %v6402_v29, %v6401_v21 }
 0x88a   : > { %v4807_v45 = vpop.f32.mrf.mxu3  ;;  %7909 = vmatpush.bf16.msrb.mxu0 %v12046_v22  ;;  %v7416_v40 = vmax.f32 %v12186_v41, %v12251_v14 }
 0x88b   : > { %v6760_v12 = vpop.f32.mrf.mxu2  ;;  %v7035_v13 = vadd.f32 %v12110_v38, %v6935_v17  ;;  %v4986_v19 = vadd.f32 %v4807_v45, %v13986_v18 }
 0x88d   : > { %v7131_v16 = vrot.slane %v7035_v13, 1  ;;  %v5636_v56 = vadd.f32 %v13987_v2, %v4986_v19 }
 0x88e   : > { %7910 = vmatpush.bf16.msrb.mxu0 %v12015_v61 }
 0x88f   : > { %v6286_v37 = vadd.f32 %v11945_v50, %v5636_v56  ;;  %8903 = vmatmul.msk.bf16.gmra.mxu3 %vm1228_vm3, %v12179_v54  ;;  %v7245_v22 = vsel %vm7189_vm4, %v7130_v8, %v7131_v16  ;;  %v12273_v50 = vpop.f32.mrf.mxu1  ;;  %v13989_v8 = vld [vmem:[#allocation136_spill] sm:$0xff] }
 0x890   : > { %9024 = vmatmul.msk.bf16.gmra.mxu1 %vm1228_vm3, %v5825_v35  ;;  %v12268_v41 = vmax.f32 %v7034_v55, %v7245_v22 }
 0x891   : > { %v6936_v47 = vadd.f32 %v6757_v57, %v6286_v37  ;;  %v13991_v37 = vld [vmem:[#allocation137_spill] sm:$0xff] }
 0x892   : > { %v4810_v44 = vpop.f32.mrf.mxu3  ;;  %7911 = vmatpush.bf16.msrb.mxu0 %v11978_v51  ;;  %v7417_v61 = vmax.f32 %v12201_v15, %v12268_v41 }
 0x893   : > { %v6762_v24 = vpop.f32.mrf.mxu2  ;;  %v7036_v54 = vadd.f32 %v12110_v38, %v6936_v47  ;;  %v4987_v49 = vadd.f32 %v4810_v44, %v13988_v36 }
 0x894   : > { %v12277_v5 = vpack.c.bf16 %v7417_v61, %v7416_v40  ;;  %v5770_v40 = vld [vmem:[#allocation2 + $0x2b9] sm:$0xff] }
 0x895   : > { %v7132_v55 = vrot.slane %v7036_v54, 1  ;;  %v5637_v57 = vadd.f32 %v13989_v8, %v4987_v49  ;;  %v6404_v61 = vld [vmem:[#allocation2 + $0x23a] sm:$0xff]  ;;  %v6403_v8 = vld [vmem:[#allocation2 + $0x232] sm:$0xff] }
 0x897   : > { %v6287_v51 = vadd.f32 %v11962_v25, %v5637_v57  ;;  %v7244_v15 = vsel %vm7189_vm4, %v7131_v16, %v7132_v55  ;;  %v5769_v25 = vld [vmem:[#allocation2 + $0x2b1] sm:$0xff]  ;;  %v12293_v56 = vpop.f32.mrf.mxu1 }
 0x898   : > { %9072 = vmatmul.msk.bf16.gmra.mxu2 %vm1228_vm3, %v12280_v30  ;;  %v12287_v0 = vmax.f32 %v7035_v13, %v7244_v15  ;;  %v5826_v16 = vpack.c.bf16 %v5770_v40, %v5769_v25 }
 0x899   : > { %v6937_v17 = vadd.f32 %v6760_v12, %v6287_v51  ;;  %v13993_v51 = vld [vmem:[#allocation47_spill] sm:$0xff] }
 0x89a   : > { %v4812_v45 = vpop.f32.mrf.mxu3  ;;  %v7418_v18 = vmax.f32 %v12217_v23, %v12287_v0 }
 0x89b   : > { %v6765_v53 = vpop.f32.mrf.mxu2  ;;  %v7037_v19 = vadd.f32 %v12110_v38, %v6937_v17  ;;  %v4988_v2 = vadd.f32 %v4812_v45, %v13990_v46  ;;  %v5772_v46 = vld [vmem:[#allocation2 + $0x2c9] sm:$0xff] }
 0x89d   : > { %v7133_v35 = vrot.slane %v7037_v19, 1  ;;  %v5638_v22 = vadd.f32 %v13991_v37, %v4988_v2  ;;  %v13994_v37 = vld [vmem:[#allocation44_spill] sm:$0xff] }
 0x89f   : > { %v6288_v13 = vadd.f32 %v11985_v62, %v5638_v22  ;;  %8904 = vmatmul.msk.bf16.gmra.mxu3 %vm1228_vm3, %v12210_v52  ;;  %v7243_v23 = vsel %vm7189_vm4, %v7132_v55, %v7133_v35  ;;  %v13992_v62 = vld [vmem:[#allocation43_spill] sm:$0xff]  ;;  %v12311_v55 = vpack.c.bf16 %v6404_v61, %v6403_v8 }
 0x8a0   : > { %9025 = vmatmul.msk.bf16.gmra.mxu1 %vm1228_vm3, %v5826_v16  ;;  %v12302_v12 = vmax.f32 %v7036_v54, %v7243_v23  ;;  %v12313_v54 = vpop.f32.mrf.mxu1 }
 0x8a1   : > { %v6938_v47 = vadd.f32 %v6762_v24, %v6288_v13 }
 0x8a2   : > { %v4815_v44 = vpop.f32.mrf.mxu3  ;;  %v7419_v36 = vmax.f32 %v12233_v3, %v12302_v12 }
 0x8a3   : > { %v6767_v29 = vpop.f32.mrf.mxu2  ;;  %v7038_v49 = vadd.f32 %v12110_v38, %v6938_v47  ;;  %v4989_v21 = vadd.f32 %v4815_v44, %v13992_v62  ;;  %v13995_v62 = vld [vmem:[#allocation45_spill] sm:$0xff] }
 0x8a4   : > { %v12308_v52 = vpack.c.bf16 %v7419_v36, %v7418_v18  ;;  %v6406_v36 = vld [vmem:[#allocation2 + $0x24a] sm:$0xff] }
 0x8a5   : > { %v7134_v57 = vrot.slane %v7038_v49, 1  ;;  %v5639_v15 = vadd.f32 %v13993_v51, %v4989_v21  ;;  %v6405_v21 = vld [vmem:[#allocation2 + $0x242] sm:$0xff] }
 0x8a7   : > { %v6289_v24 = vadd.f32 %v12008_v39, %v5639_v15  ;;  %v7242_v3 = vsel %vm7189_vm4, %v7133_v35, %v7134_v57  ;;  %v5771_v39 = vld [vmem:[#allocation2 + $0x2c1] sm:$0xff]  ;;  %v12344_v15 = vpack.c.bf16 %v6406_v36, %v6405_v21 }
 0x8a8   : > { %9073 = vmatmul.msk.bf16.gmra.mxu2 %vm1228_vm3, %v12311_v55  ;;  %v12320_v17 = vmax.f32 %v7037_v19, %v7242_v3  ;;  %v5827_v23 = vpack.c.bf16 %v5772_v46, %v5771_v39  ;;  %v12335_v19 = vpop.f32.mrf.mxu1  ;;  %v5774_v46 = vld [vmem:[#allocation2 + $0x2d9] sm:$0xff] }
 0x8a9   : > { %v6939_v45 = vadd.f32 %v6765_v53, %v6289_v24 }
 0x8aa   : > { %v4817_v40 = vpop.f32.mrf.mxu3  ;;  %v7420_v2 = vmax.f32 %v12251_v14, %v12320_v17 }
 0x8ab   : > { %v6770_v18 = vpop.f32.mrf.mxu2  ;;  %v7039_v25 = vadd.f32 %v12110_v38, %v6939_v45  ;;  %v4990_v22 = vadd.f32 %v4817_v40, %v13994_v37 }
 0x8ad   : > { %v7135_v16 = vrot.slane %v7039_v25, 1  ;;  %v5640_v13 = vadd.f32 %v11143_v48, %v4990_v22 }
 0x8af   : > { %v6290_v35 = vadd.f32 %v12030_v33, %v5640_v13  ;;  %8905 = vmatmul.msk.bf16.gmra.mxu3 %vm1228_vm3, %v12243_v4  ;;  %v7241_v53 = vsel %vm7189_vm4, %v7134_v57, %v7135_v16  ;;  %v13996_v57 = vld [vmem:[#allocation139_spill] sm:$0xff] }
 0x8b0   : > { %9026 = vmatmul.msk.bf16.gmra.mxu1 %vm1228_vm3, %v5827_v23  ;;  %v12333_v14 = vmax.f32 %v7038_v49, %v7241_v53  ;;  %v12355_v37 = vpop.f32.mrf.mxu1  ;;  %v5773_v13 = vld [vmem:[#allocation2 + $0x2d1] sm:$0xff] }
 0x8b1   : > { %v6940_v47 = vadd.f32 %v6767_v29, %v6290_v35  ;;  %v13998_v35 = vld [vmem:[#allocation140_spill] sm:$0xff] }
 0x8b2   : > { %v4820_v44 = vpop.f32.mrf.mxu3  ;;  %v7421_v48 = vmax.f32 %v12268_v41, %v12333_v14 }
 0x8b3   : > { %v6772_v61 = vpop.f32.mrf.mxu2  ;;  %v7040_v33 = vadd.f32 %v12110_v38, %v6940_v47  ;;  %v4991_v4 = vadd.f32 %v4820_v44, %v13995_v62 }
 0x8b4   : > { %v12341_v8 = vpack.c.bf16 %v7421_v48, %v7420_v2  ;;  %v6408_v48 = vld [vmem:[#allocation2 + $0x25a] sm:$0xff] }
 0x8b5   : > { %v7136_v51 = vrot.slane %v7040_v33, 1  ;;  %v5641_v49 = vadd.f32 %v13996_v57, %v4991_v4  ;;  %v6407_v57 = vld [vmem:[#allocation2 + $0x252] sm:$0xff] }
 0x8b7   : > { %v6291_v29 = vadd.f32 %v12048_v27, %v5641_v49  ;;  %v7240_v41 = vsel %vm7189_vm4, %v7135_v16, %v7136_v51  ;;  %v13997_v27 = vld [vmem:[#allocation46_spill] sm:$0xff]  ;;  %v5828_v16 = vpack.c.bf16 %v5774_v46, %v5773_v13 }
 0x8b8   : > { %9074 = vmatmul.msk.bf16.gmra.mxu2 %vm1228_vm3, %v12344_v15  ;;  %v12351_v24 = vmax.f32 %v7039_v25, %v7240_v41  ;;  %v12374_v49 = vpop.f32.mrf.mxu1  ;;  %v12377_v41 = vpack.c.bf16 %v6408_v48, %v6407_v57 }
 0x8b9   : > { %v6941_v3 = vadd.f32 %v6770_v18, %v6291_v29 }
 0x8ba   : > { %v4822_v45 = vpop.f32.mrf.mxu3  ;;  %v7422_v2 = vmax.f32 %v12287_v0, %v12351_v24 }
 0x8bb   : > { %v6775_v40 = vpop.f32.mrf.mxu2  ;;  %v7041_v22 = vadd.f32 %v12110_v38, %v6941_v3  ;;  %v4992_v39 = vadd.f32 %v4822_v45, %v13997_v27  ;;  %v5776_v27 = vld [vmem:[#allocation2 + $0x2e9] sm:$0xff] }
 0x8bd   : > { %v7137_v23 = vrot.slane %v7041_v22, 1  ;;  %v5642_v53 = vadd.f32 %v13998_v35, %v4992_v39  ;;  %v14001_v35 = vld [vmem:[#allocation48_spill] sm:$0xff] }
 0x8bf   : > { %v6292_v25 = vadd.f32 %v12065_v6, %v5642_v53  ;;  %8906 = vmatmul.msk.bf16.gmra.mxu3 %vm1228_vm3, %v12280_v30  ;;  %v7239_v0 = vsel %vm7189_vm4, %v7136_v51, %v7137_v23  ;;  %v13999_v6 = vld [vmem:[#allocation138_spill] sm:$0xff]  ;;  %v14000_v51 = vld [vmem:[#allocation52_spill] sm:$0xff] }
 0x8c0   : > { %9027 = vmatmul.msk.bf16.gmra.mxu1 %vm1228_vm3, %v5828_v16  ;;  %v12366_v18 = vmax.f32 %v7040_v33, %v7239_v0 }
 0x8c1   : > { %v6942_v47 = vadd.f32 %v6772_v61, %v6292_v25  ;;  %v14002_v25 = vld [vmem:[#allocation53_spill] sm:$0xff] }
 0x8c2   : > { %v4825_v44 = vpop.f32.mrf.mxu3  ;;  %v7423_v62 = vmax.f32 %v12302_v12, %v12366_v18 }
 0x8c3   : > { %v6777_v36 = vpop.f32.mrf.mxu2  ;;  %v7042_v4 = vadd.f32 %v12110_v38, %v6942_v47  ;;  %v4993_v21 = vadd.f32 %v4825_v44, %v13999_v6  ;;  %v12391_v44 = vpop.f32.mrf.mxu1  ;;  %v6410_v6 = vld [vmem:[#allocation2 + $0x26a] sm:$0xff] }
 0x8c4   : > { %v12372_v30 = vpack.c.bf16 %v7423_v62, %v7422_v2 }
 0x8c5   : > { %v7138_v29 = vrot.slane %v7042_v4, 1  ;;  %v5643_v33 = vadd.f32 %v14000_v51, %v4993_v21 }
 0x8c7   : > { %v6293_v61 = vadd.f32 %v12091_v63, %v5643_v33  ;;  %v7238_v12 = vsel %vm7189_vm4, %v7137_v23, %v7138_v29  ;;  %v5775_v63 = vld [vmem:[#allocation2 + $0x2e1] sm:$0xff] }
 0x8c8   : > { %9075 = vmatmul.msk.bf16.gmra.mxu2 %vm1228_vm3, %v12377_v41  ;;  %v12384_v3 = vmax.f32 %v7041_v22, %v7238_v12  ;;  %v5829_v47 = vpack.c.bf16 %v5776_v27, %v5775_v63  ;;  %v6409_v33 = vld [vmem:[#allocation2 + $0x262] sm:$0xff]  ;;  %v14004_v12 = vld [vmem:[#allocation143_spill] sm:$0xff] }
 0x8c9   : > { %v6943_v45 = vadd.f32 %v6775_v40, %v6293_v61 }
 0x8ca   : > { %v4827_v46 = vpop.f32.mrf.mxu3  ;;  %v7424_v39 = vmax.f32 %v12320_v17, %v12384_v3 }
 0x8cb   : > { %v6780_v2 = vpop.f32.mrf.mxu2  ;;  %v7043_v13 = vadd.f32 %v12110_v38, %v6943_v45  ;;  %v4994_v53 = vadd.f32 %v4827_v46, %v14001_v35  ;;  %v12417_v46 = vpop.f32.mrf.mxu1 }
 0x8cd   : > { %v7139_v16 = vrot.slane %v7043_v13, 1  ;;  %v5644_v0 = vadd.f32 %v14002_v25, %v4994_v53  ;;  %v5778_v53 = vld [vmem:[#allocation2 + $0x2f9] sm:$0xff] }
 0x8cf   : > { %v6294_v22 = vadd.f32 %v12108_v10, %v5644_v0  ;;  %8907 = vmatmul.msk.bf16.gmra.mxu3 %vm1228_vm3, %v12311_v55  ;;  %v7237_v17 = vsel %vm7189_vm4, %v7138_v29, %v7139_v16  ;;  %v14003_v10 = vld [vmem:[#allocation49_spill] sm:$0xff]  ;;  %v12408_v29 = vpack.c.bf16 %v6410_v6, %v6409_v33 }
 0x8d0   : > { %9028 = vmatmul.msk.bf16.gmra.mxu1 %vm1228_vm3, %v5829_v47  ;;  %v12399_v40 = vmax.f32 %v7042_v4, %v7237_v17  ;;  %v5777_v47 = vld [vmem:[#allocation2 + $0x2f1] sm:$0xff]  ;;  %v14006_v17 = vld [vmem:[#allocation144_spill] sm:$0xff] }
 0x8d1   : > { %v6944_v23 = vadd.f32 %v6777_v36, %v6294_v22 }
 0x8d2   : > { %v4830_v48 = vpop.f32.mrf.mxu3  ;;  %v7425_v21 = vmax.f32 %v12333_v14, %v12399_v40 }
 0x8d3   : > { %v6782_v62 = vpop.f32.mrf.mxu2  ;;  %v7044_v57 = vadd.f32 %v12110_v38, %v6944_v23  ;;  %v4995_v51 = vadd.f32 %v4830_v48, %v14003_v10  ;;  %v6412_v10 = vld [vmem:[#allocation2 + $0x27a] sm:$0xff]  ;;  %v12434_v33 = vpop.f32.mrf.mxu1 }
 0x8d4   : > { %v12405_v55 = vpack.c.bf16 %v7425_v21, %v7424_v39 }
 0x8d5   : > { %v7140_v61 = vrot.slane %v7044_v57, 1  ;;  %v5645_v45 = vadd.f32 %v14004_v12, %v4995_v51  ;;  %v14007_v12 = vld [vmem:[#allocation51_spill] sm:$0xff] }
 0x8d7   : > { %v6295_v36 = vadd.f32 %v12130_v32, %v5645_v45  ;;  %v7236_v14 = vsel %vm7189_vm4, %v7139_v16, %v7140_v61  ;;  %v14005_v32 = vld [vmem:[#allocation50_spill] sm:$0xff]  ;;  %v5830_v16 = vpack.c.bf16 %v5778_v53, %v5777_v47 }
 0x8d8   : > { %9076 = vmatmul.msk.bf16.gmra.mxu2 %vm1228_vm3, %v12408_v29  ;;  %v12415_v4 = vmax.f32 %v7043_v13, %v7236_v14  ;;  %v6411_v45 = vld [vmem:[#allocation2 + $0x272] sm:$0xff]  ;;  %v5780_v47 = vld [vmem:[#allocation2 + $0x309] sm:$0xff] }
 0x8d9   : > { %v6945_v27 = vadd.f32 %v6780_v2, %v6295_v36 }
 0x8da   : > { %v4832_v39 = vpop.f32.mrf.mxu3  ;;  %v7426_v63 = vmax.f32 %v12351_v24, %v12415_v4 }
 0x8db   : > { %v6785_v35 = vpop.f32.mrf.mxu2  ;;  %v7045_v25 = vadd.f32 %v12110_v38, %v6945_v27  ;;  %v4996_v0 = vadd.f32 %v4832_v39, %v14005_v32  ;;  %v14008_v27 = vld [vmem:[#allocation57_spill] sm:$0xff] }
 0x8dd   : > { %v7141_v22 = vrot.slane %v7045_v25, 1  ;;  %v5646_v23 = vadd.f32 %v14006_v17, %v4996_v0 }
 0x8df   : > { %v6296_v13 = vadd.f32 %v12150_v1, %v5646_v23  ;;  %8908 = vmatmul.msk.bf16.gmra.mxu3 %vm1228_vm3, %v12344_v15  ;;  %v7235_v2 = vsel %vm7189_vm4, %v7140_v61, %v7141_v22  ;;  %v14009_v23 = vld [vmem:[#allocation141_spill] sm:$0xff] }
 0x8e0   : > { %9029 = vmatmul.msk.bf16.gmra.mxu1 %vm1228_vm3, %v5830_v16  ;;  %v12430_v24 = vmax.f32 %v7044_v57, %v7235_v2  ;;  %v12439_v57 = vpack.c.bf16 %v6412_v10, %v6411_v45  ;;  %v6414_v45 = vld [vmem:[#allocation2 + $0x28a] sm:$0xff] }
 0x8e1   : > { %v6946_v48 = vadd.f32 %v6782_v62, %v6296_v13  ;;  %v12452_v13 = vpop.f32.mrf.mxu1 }
 0x8e2   : > { %v4835_v6 = vpop.f32.mrf.mxu3  ;;  %v7427_v51 = vmax.f32 %v12366_v18, %v12430_v24 }
 0x8e3   : > { %v6787_v21 = vpop.f32.mrf.mxu2  ;;  %v7046_v1 = vadd.f32 %v12110_v38, %v6946_v48  ;;  %v4997_v15 = vadd.f32 %v4835_v6, %v14007_v12  ;;  %v14010_v48 = vld [vmem:[#allocation58_spill] sm:$0xff] }
 0x8e4   : > { %v7554_v36 = vpack.c.bf16 %v7427_v51, %v7426_v63 }
 0x8e5   : > { %v7142_v14 = vrot.slane %v7046_v1, 1  ;;  %v5647_v61 = vadd.f32 %v14008_v27, %v4997_v15 }
 0x8e7   : > { %v6297_v62 = vadd.f32 %v12172_v26, %v5647_v61  ;;  %v7234_v18 = vsel %vm7189_vm4, %v7141_v22, %v7142_v14  ;;  %v5779_v26 = vld [vmem:[#allocation2 + $0x301] sm:$0xff] }
 0x8e8   : > { %9077 = vmatmul.msk.bf16.gmra.mxu2 %vm1228_vm3, %v12439_v57  ;;  %v12446_v39 = vmax.f32 %v7045_v25, %v7234_v18  ;;  %v5831_v22 = vpack.c.bf16 %v5780_v47, %v5779_v26 }
 0x8e9   : > { %v6947_v53 = vadd.f32 %v6785_v35, %v6297_v62 }
 0x8ea   : > { %v4837_v32 = vpop.f32.mrf.mxu3  ;;  %v7428_v63 = vmax.f32 %v12384_v3, %v12446_v39 }
 0x8eb   : > { %v6790_v0 = vpop.f32.mrf.mxu2  ;;  %v7047_v17 = vadd.f32 %v12110_v38, %v6947_v53  ;;  %v4998_v16 = vadd.f32 %v4837_v32, %v14009_v23 }
 0x8ed   : > { %v7143_v2 = vrot.slane %v7047_v17, 1  ;;  %v5648_v6 = vadd.f32 %v14010_v48, %v4998_v16  ;;  %v5782_v16 = vld [vmem:[#allocation2 + $0x319] sm:$0xff] }
 0x8ef   : > { %v6298_v25 = vadd.f32 %v12190_v31, %v5648_v6  ;;  %8909 = vmatmul.msk.bf16.gmra.mxu3 %vm1228_vm3, %v12377_v41  ;;  %v7233_v3 = vsel %vm7189_vm4, %v7142_v14, %v7143_v2  ;;  %v14011_v31 = vld [vmem:[#allocation142_spill] sm:$0xff]  ;;  %v6413_v41 = vld [vmem:[#allocation2 + $0x282] sm:$0xff] }
 0x8f0   : > { %9030 = vmatmul.msk.bf16.gmra.mxu1 %vm1228_vm3, %v5831_v22  ;;  %v12461_v35 = vmax.f32 %v7046_v1, %v7233_v3  ;;  %v12468_v32 = vpack.c.bf16 %v6414_v45, %v6413_v41  ;;  %v12470_v1 = vpop.f32.mrf.mxu1  ;;  %v14014_v45 = vld [vmem:[#allocation55_spill] sm:$0xff] }
 0x8f1   : > { %v6948_v10 = vadd.f32 %v6787_v21, %v6298_v25  ;;  %v14013_v25 = vld [vmem:[#allocation147_spill] sm:$0xff] }
 0x8f2   : > { %v4840_v51 = vpop.f32.mrf.mxu3  ;;  %v7429_v15 = vmax.f32 %v12399_v40, %v12461_v35 }
 0x8f3   : > { %v6792_v12 = vpop.f32.mrf.mxu2  ;;  %v7048_v27 = vadd.f32 %v12110_v38, %v6948_v10  ;;  %v4999_v61 = vadd.f32 %v4840_v51, %v14011_v31 }
 0x8f4   : > { %v7555_v62 = vpack.c.bf16 %v7429_v15, %v7428_v63 }
 0x8f5   : > { %v7144_v18 = vrot.slane %v7048_v27, 1  ;;  %v5649_v53 = vadd.f32 %v11275_v60, %v4999_v61  ;;  %v5781_v60 = vld [vmem:[#allocation2 + $0x311] sm:$0xff] }
 0x8f6   : > { %7958 = vmatpush.bf16.msrb.mxu3 %v7555_v62  ;;  %v5832_v10 = vpack.c.bf16 %v5782_v16, %v5781_v60  ;;  %v6415_v61 = vld [vmem:[#allocation2 + $0x292] sm:$0xff]  ;;  %v14015_v60 = vld [vmem:[#allocation56_spill] sm:$0xff] }
 0x8f7   : > { %v6299_v21 = vadd.f32 %v12207_v43, %v5649_v53  ;;  %v7232_v40 = vsel %vm7189_vm4, %v7143_v2, %v7144_v18  ;;  %v14012_v43 = vld [vmem:[#allocation54_spill] sm:$0xff] }
 0x8f8   : > { %9078 = vmatmul.msk.bf16.gmra.mxu2 %vm1228_vm3, %v12468_v32  ;;  %v12477_v14 = vmax.f32 %v7047_v17, %v7232_v40  ;;  %v12493_v17 = vpop.f32.mrf.mxu1 }
 0x8f9   : > { %v6949_v47 = vadd.f32 %v6790_v0, %v6299_v21 }
 0x8fa   : > { %v4842_v63 = vpop.f32.mrf.mxu3  ;;  %7959 = vmatpush.bf16.msrb.mxu3 %v7554_v36  ;;  %v7430_v26 = vmax.f32 %v12415_v4, %v12477_v14 }
 0x8fb   : > { %v6795_v23 = vpop.f32.mrf.mxu2  ;;  %v7049_v48 = vadd.f32 %v12110_v38, %v6949_v47  ;;  %v5000_v6 = vadd.f32 %v4842_v63, %v14012_v43  ;;  %v5784_v47 = vld [vmem:[#allocation2 + $0x329] sm:$0xff] }
 0x8fd   : > { %v7145_v22 = vrot.slane %v7049_v48, 1  ;;  %v5650_v3 = vadd.f32 %v14013_v25, %v5000_v6 }
 0x8fe   : > { %7960 = vmatpush.bf16.msrb.mxu3 %v12405_v55  ;;  %v6416_v55 = vld [vmem:[#allocation2 + $0x29a] sm:$0xff] }
 0x8ff   : > { %v6300_v0 = vadd.f32 %v12225_v59, %v5650_v3  ;;  %8910 = vmatmul.msk.bf16.gmra.mxu3 %vm1228_vm3, %v12408_v29  ;;  %v7231_v4 = vsel %vm7189_vm4, %v7144_v18, %v7145_v22  ;;  %v12503_v18 = vpack.c.bf16 %v6416_v55, %v6415_v61  ;;  %v14016_v3 = vld [vmem:[#allocation145_spill] sm:$0xff]  ;;  %v5785_v61 = vld [vmem:[#allocation2 + $0x331] sm:$0xff] }
 0x900   : > { %9031 = vmatmul.msk.bf16.gmra.mxu1 %vm1228_vm3, %v5832_v10  ;;  %v12491_v36 = vmax.f32 %v7048_v27, %v7231_v4  ;;  %v12516_v63 = vpop.f32.mrf.mxu1  ;;  %v6417_v10 = vld [vmem:[#allocation2 + $0x2a2] sm:$0xff] }
 0x901   : > { %v6950_v2 = vadd.f32 %v6792_v12, %v6300_v0 }
 0x902   : > { %v4845_v51 = vpop.f32.mrf.mxu3  ;;  %7961 = vmatpush.bf16.msrb.mxu3 %v12372_v30  ;;  %v7431_v59 = vmax.f32 %v12430_v24, %v12491_v36 }
 0x903   : > { %v6797_v15 = vpop.f32.mrf.mxu2  ;;  %v7050_v29 = vadd.f32 %v12110_v38, %v6950_v2  ;;  %v5001_v31 = vadd.f32 %v4845_v51, %v14014_v45  ;;  %v14017_v51 = vld [vmem:[#allocation148_spill] sm:$0xff] }
 0x904   : > { %v12500_v62 = vpack.c.bf16 %v7431_v59, %v7430_v26 }
 0x905   : > { %v7146_v27 = vrot.slane %v7050_v29, 1  ;;  %v5651_v41 = vadd.f32 %v11299_v34, %v5001_v31  ;;  %v5783_v34 = vld [vmem:[#allocation2 + $0x321] sm:$0xff] }
 0x906   : > { %7962 = vmatpush.bf16.msrb.mxu3 %v12341_v8  ;;  %v5833_v43 = vpack.c.bf16 %v5784_v47, %v5783_v34 }
 0x907   : > { %v6301_v30 = vadd.f32 %v12253_v28, %v5651_v41  ;;  %v7230_v24 = vsel %vm7189_vm4, %v7145_v22, %v7146_v27 }
 0x908   : > { %9079 = vmatmul.msk.bf16.gmra.mxu2 %vm1228_vm3, %v12503_v18  ;;  %v12511_v12 = vmax.f32 %v7049_v48, %v7230_v24  ;;  %v12537_v4 = vpop.f32.mrf.mxu1  ;;  %v14018_v24 = vld [vmem:[#allocation146_spill] sm:$0xff] }
 0x909   : > { %v6951_v53 = vadd.f32 %v6795_v23, %v6301_v30 }
 0x90a   : > { %v4847_v21 = vpop.f32.mrf.mxu3  ;;  %7963 = vmatpush.bf16.msrb.mxu3 %v12308_v52  ;;  %v7432_v8 = vmax.f32 %v12446_v39, %v12511_v12 }
 0x90b   : > { %v6800_v40 = vpop.f32.mrf.mxu2  ;;  %v7051_v28 = vadd.f32 %v12110_v38, %v6951_v53  ;;  %v5002_v16 = vadd.f32 %v4847_v21, %v14015_v60  ;;  %v14019_v21 = vld [vmem:[#allocation149_spill] sm:$0xff] }
 0x90d   : > { %v7147_v26 = vrot.slane %v7051_v28, 1  ;;  %v5652_v48 = vadd.f32 %v11312_v11, %v5002_v16  ;;  %v6418_v11 = vld [vmem:[#allocation2 + $0x2aa] sm:$0xff] }
 0x90e   : > { %7964 = vmatpush.bf16.msrb.mxu3 %v12277_v5  ;;  %v12540_v55 = vpack.c.bf16 %v6418_v11, %v6417_v10  ;;  %v14021_v11 = vld [vmem:[#allocation67_spill] sm:$0xff] }
 0x90f   : > { %v6302_v23 = vadd.f32 %v12273_v50, %v5652_v48  ;;  %8911 = vmatmul.msk.bf16.gmra.mxu3 %vm1228_vm3, %v12439_v57  ;;  %v7229_v52 = vsel %vm7189_vm4, %v7146_v27, %v7147_v26  ;;  %v5786_v27 = vld [vmem:[#allocation2 + $0x339] sm:$0xff] }
 0x910   : > { %9032 = vmatmul.msk.bf16.gmra.mxu1 %vm1228_vm3, %v5833_v43  ;;  %v12528_v39 = vmax.f32 %v7050_v29, %v7229_v52  ;;  %v5834_v47 = vpack.c.bf16 %v5786_v27, %v5785_v61  ;;  %v6420_v48 = vld [vmem:[#allocation2 + $0x2ba] sm:$0xff]  ;;  %v12592_v27 = vpop.f32.mrf.mxu0 }
 0x911   : > { %v6952_v6 = vadd.f32 %v6797_v15, %v6302_v23 }
 0x912   : > { %v4850_v22 = vpop.f32.mrf.mxu3  ;;  %7965 = vmatpush.bf16.msrb.mxu3 %v12240_v7  ;;  %v7433_v5 = vmax.f32 %v12461_v35, %v12528_v39 }
 0x913   : > { %v6802_v25 = vpop.f32.mrf.mxu2  ;;  %v7052_v50 = vadd.f32 %v12110_v38, %v6952_v6  ;;  %v5003_v57 = vadd.f32 %v4850_v22, %v14016_v3  ;;  %v6419_v6 = vld [vmem:[#allocation2 + $0x2b2] sm:$0xff] }
 0x914   : > { %v12535_v0 = vpack.c.bf16 %v7433_v5, %v7432_v8  ;;  %v12554_v8 = vpop.f32.mrf.mxu1  ;;  %v12571_v3 = vpack.c.bf16 %v6420_v48, %v6419_v6 }
 0x915   : > { %v7148_v2 = vrot.slane %v7052_v50, 1  ;;  %v5653_v15 = vadd.f32 %v14017_v51, %v5003_v57 }
 0x917   : > { %v6303_v7 = vadd.f32 %v12293_v56, %v5653_v15  ;;  %v7228_v35 = vsel %vm7189_vm4, %v7147_v26, %v7148_v2 }
 0x918   : > { %9080 = vmatmul.msk.bf16.gmra.mxu2 %vm1228_vm3, %v12540_v55  ;;  %v12547_v59 = vmax.f32 %v7051_v28, %v7228_v35 }
 0x919   : > { %v6953_v29 = vadd.f32 %v6800_v40, %v6303_v7  ;;  %v14022_v7 = vld [vmem:[#allocation60_spill] sm:$0xff] }
 0x91a   : > { %v4852_v45 = vpop.f32.mrf.mxu3  ;;  %v7434_v41 = vmax.f32 %v12477_v14, %v12547_v59 }
 0x91b   : > { %v6805_v31 = vpop.f32.mrf.mxu2  ;;  %v7053_v30 = vadd.f32 %v12110_v38, %v6953_v29  ;;  %v5004_v56 = vadd.f32 %v4852_v45, %v14018_v24 }
 0x91d   : > { %v7149_v53 = vrot.slane %v7053_v30, 1  ;;  %v5654_v34 = vadd.f32 %v14019_v21, %v5004_v56  ;;  %v14023_v56 = vld [vmem:[#allocation61_spill] sm:$0xff] }
 0x91f   : > { %v6304_v28 = vadd.f32 %v12313_v54, %v5654_v34  ;;  %8912 = vmatmul.msk.bf16.gmra.mxu3 %vm1228_vm3, %v12468_v32  ;;  %v7227_v14 = vsel %vm7189_vm4, %v7148_v2, %v7149_v53  ;;  %v14020_v54 = vld [vmem:[#allocation59_spill] sm:$0xff] }
 0x920   : > { %9033 = vmatmul.msk.bf16.gmra.mxu1 %vm1228_vm3, %v5834_v47  ;;  %v12562_v40 = vmax.f32 %v7052_v50, %v7227_v14 }
 0x921   : > { %v6954_v60 = vadd.f32 %v6802_v25, %v6304_v28 }
 0x922   : > { %v4855_v16 = vpop.f32.mrf.mxu3  ;;  %v7435_v43 = vmax.f32 %v12491_v36, %v12562_v40 }
 0x923   : > { %v6807_v26 = vpop.f32.mrf.mxu2  ;;  %v7054_v23 = vadd.f32 %v12110_v38, %v6954_v60  ;;  %v5005_v52 = vadd.f32 %v4855_v16, %v14020_v54  ;;  %v14024_v54 = vld [vmem:[#allocation62_spill] sm:$0xff] }
 0x924   : > { %v12568_v32 = vpack.c.bf16 %v7435_v43, %v7434_v41 }
 0x925   : > { %v7150_v22 = vrot.slane %v7054_v23, 1  ;;  %v5655_v5 = vadd.f32 %v14021_v11, %v5005_v52 }
 0x927   : > { %v6305_v25 = vadd.f32 %v12335_v19, %v5655_v5  ;;  %v7226_v36 = vsel %vm7189_vm4, %v7149_v53, %v7150_v22  ;;  %v6421_v53 = vld [vmem:[#allocation2 + $0x2c2] sm:$0xff] }
 0x928   : > { %9081 = vmatmul.msk.bf16.gmra.mxu2 %vm1228_vm3, %v12571_v3  ;;  %v12578_v50 = vmax.f32 %v7053_v30, %v7226_v36  ;;  %v6422_v30 = vld [vmem:[#allocation2 + $0x2ca] sm:$0xff] }
 0x929   : > { %v6955_v57 = vadd.f32 %v6805_v31, %v6305_v25  ;;  %v12603_v28 = vpack.c.bf16 %v6422_v30, %v6421_v53 }
 0x92a   : > { %v4857_v10 = vpop.f32.mrf.mxu3  ;;  %v7436_v51 = vmax.f32 %v12511_v12, %v12578_v50 }
 0x92b   : > { %v6810_v2 = vpop.f32.mrf.mxu2  ;;  %v7055_v15 = vadd.f32 %v12110_v38, %v6955_v57  ;;  %v5006_v35 = vadd.f32 %v4857_v10, %v14022_v7  ;;  %v6424_v57 = vld [vmem:[#allocation2 + $0x2da] sm:$0xff] }
 0x92d   : > { %v7151_v29 = vrot.slane %v7055_v15, 1  ;;  %v5656_v19 = vadd.f32 %v11361_v42, %v5006_v35  ;;  %v12596_v42 = vld [vmem:[#allocation8] ss:$0 sm:$0xff] }
 0x92e   : > { %v14026_v35 = vld [vmem:[#allocation72_spill] sm:$0xff] }
 0x92f   : > { %v6306_v45 = vadd.f32 %v12355_v37, %v5656_v19  ;;  %8913 = vmatmul.msk.bf16.gmra.mxu3 %vm1228_vm3, %v12503_v18  ;;  %v7225_v31 = vsel %vm7189_vm4, %v7150_v22, %v7151_v29 }
 0x930   : > { %v12590_v61 = vmax.f32 %v7054_v23, %v7225_v31  ;;  %v12614_v23 = vpop.f32.mrf.mxu0 }
 0x931   : > { %v6956_v12 = vadd.f32 %v6807_v26, %v6306_v45 }
 0x932   : > { %v4860_v41 = vpop.f32.mrf.mxu3  ;;  %v7437_v24 = vmax.f32 %v12528_v39, %v12590_v61 }
 0x933   : > { %v6812_v38 = vpop.f32.mrf.mxu2  ;;  %v7056_v37 = vadd.f32 %v12596_v42, %v6956_v12  ;;  %v5007_v18 = vadd.f32 %v4860_v41, %v14023_v56 }
 0x934   : > { %v12600_v21 = vpack.c.bf16 %v7437_v24, %v7436_v51 }
 0x935   : > { %v7152_v34 = vrot.slane %v7056_v37, 1  ;;  %v5657_v47 = vadd.f32 %v11376_v20, %v5007_v18 }
 0x937   : > { %v6307_v14 = vadd.f32 %v12374_v49, %v5657_v47  ;;  %v7224_v39 = vsel %vm7189_vm4, %v7151_v29, %v7152_v34 }
 0x938   : > { %9082 = vmatmul.msk.bf16.gmra.mxu2 %vm1228_vm3, %v12603_v28  ;;  %v12610_v60 = vmax.f32 %v7055_v15, %v7224_v39 }
 0x939   : > { %v6957_v16 = vadd.f32 %v6810_v2, %v6307_v14 }
 0x93a   : > { %v4862_v26 = vpop.f32.mrf.mxu3  ;;  %v7438_v43 = vmax.f32 %v12547_v59, %v12610_v60 }
 0x93b   : > { %v6815_v48 = vpop.f32.mrf.mxu2  ;;  %v7057_v20 = vadd.f32 %v12596_v42, %v6957_v16  ;;  %v5008_v49 = vadd.f32 %v4862_v26, %v14024_v54  ;;  %v14029_v54 = vld [vmem:[#allocation65_spill] sm:$0xff] }
 0x93d   : > { %v7153_v52 = vrot.slane %v7057_v20, 1  ;;  %v5658_v6 = vadd.f32 %v11386_v9, %v5008_v49  ;;  %v14025_v9 = vld [vmem:[#allocation63_spill] sm:$0xff] }
 0x93f   : > { %v6308_v22 = vadd.f32 %v12391_v44, %v5658_v6  ;;  %8914 = vmatmul.msk.bf16.gmra.mxu3 %vm1228_vm3, %v12540_v55  ;;  %v7223_v11 = vsel %vm7189_vm4, %v7152_v34, %v7153_v52  ;;  %v6423_v44 = vld [vmem:[#allocation2 + $0x2d2] sm:$0xff]  ;;  %v12632_v55 = vpop.f32.mrf.mxu0  ;;  %v14030_v6 = vld [vmem:[#allocation153_spill] sm:$0xff] }
 0x940   : > { %v12624_v5 = vmax.f32 %v7056_v37, %v7223_v11  ;;  %v12635_v19 = vpack.c.bf16 %v6424_v57, %v6423_v44  ;;  %v14027_v37 = vld [vmem:[#allocation64_spill] sm:$0xff] }
 0x941   : > { %v6958_v59 = vadd.f32 %v6812_v38, %v6308_v22 }
 0x942   : > { %v4865_v25 = vpop.f32.mrf.mxu3  ;;  %v7439_v10 = vmax.f32 %v12562_v40, %v12624_v5 }
 0x943   : > { %v6817_v36 = vpop.f32.mrf.mxu2  ;;  %v7058_v2 = vadd.f32 %v12596_v42, %v6958_v59  ;;  %v5009_v51 = vadd.f32 %v4865_v25, %v14025_v9  ;;  %v12667_v59 = vpop.f32.mrf.mxu1 }
 0x944   : > { %v12630_v15 = vpack.c.bf16 %v7439_v10, %v7438_v43 }
 0x945   : > { %v7154_v7 = vrot.slane %v7058_v2, 1  ;;  %v5659_v29 = vadd.f32 %v14026_v35, %v5009_v51 }
 0x947   : > { %v6309_v45 = vadd.f32 %v12417_v46, %v5659_v29  ;;  %v7222_v40 = vsel %vm7189_vm4, %v7153_v52, %v7154_v7  ;;  %v14028_v46 = vld [vmem:[#allocation73_spill] sm:$0xff]  ;;  %v12649_v34 = vpop.f32.mrf.mxu0  ;;  %v14032_v29 = vld [vmem:[#allocation154_spill] sm:$0xff] }
 0x948   : > { %9083 = vmatmul.msk.bf16.gmra.mxu2 %vm1228_vm3, %v12635_v19  ;;  %v12642_v31 = vmax.f32 %v7057_v20, %v7222_v40 }
 0x949   : > { %v6959_v12 = vadd.f32 %v6815_v48, %v6309_v45  ;;  %v6426_v48 = vld [vmem:[#allocation2 + $0x2ea] sm:$0xff] }
 0x94a   : > { %v4867_v41 = vpop.f32.mrf.mxu3  ;;  %v7440_v30 = vmax.f32 %v12578_v50, %v12642_v31 }
 0x94b   : > { %v6820_v38 = vpop.f32.mrf.mxu2  ;;  %v7059_v24 = vadd.f32 %v12596_v42, %v6959_v12  ;;  %v5010_v56 = vadd.f32 %v4867_v41, %v14027_v37  ;;  %v6428_v37 = vld [vmem:[#allocation2 + $0x2fa] sm:$0xff] }
 0x94d   : > { %v7155_v18 = vrot.slane %v7059_v24, 1  ;;  %v5660_v53 = vadd.f32 %v14028_v46, %v5010_v56  ;;  %v14033_v46 = vld [vmem:[#allocation150_spill] sm:$0xff] }
 0x94f   : > { %v6310_v47 = vadd.f32 %v12434_v33, %v5660_v53  ;;  %8915 = vmatmul.msk.bf16.gmra.mxu3 %vm1228_vm3, %v12571_v3  ;;  %v7221_v14 = vsel %vm7189_vm4, %v7154_v7, %v7155_v18  ;;  %v6425_v33 = vld [vmem:[#allocation2 + $0x2e2] sm:$0xff]  ;;  %v12676_v57 = vpop.f32.mrf.mxu0  ;;  %v14031_v7 = vld [vmem:[#allocation66_spill] sm:$0xff] }
 0x950   : > { %v12656_v39 = vmax.f32 %v7058_v2, %v7221_v14  ;;  %v12665_v11 = vpack.c.bf16 %v6426_v48, %v6425_v33  ;;  %v6427_v53 = vld [vmem:[#allocation2 + $0x2f2] sm:$0xff] }
 0x951   : > { %v6960_v50 = vadd.f32 %v6817_v36, %v6310_v47  ;;  %v12699_v48 = vpack.c.bf16 %v6428_v37, %v6427_v53  ;;  %v14038_v37 = vld [vmem:[#allocation157_spill] sm:$0xff] }
 0x952   : > { %v4870_v16 = vpop.f32.mrf.mxu3  ;;  %v7441_v43 = vmax.f32 %v12590_v61, %v12656_v39 }
 0x953   : > { %v6822_v26 = vpop.f32.mrf.mxu2  ;;  %v7060_v20 = vadd.f32 %v12596_v42, %v6960_v50  ;;  %v5011_v49 = vadd.f32 %v4870_v16, %v14029_v54  ;;  %v14034_v50 = vld [vmem:[#allocation77_spill] sm:$0xff] }
 0x954   : > { %v12662_v52 = vpack.c.bf16 %v7441_v43, %v7440_v30 }
 0x955   : > { %v7156_v3 = vrot.slane %v7060_v20, 1  ;;  %v5661_v22 = vadd.f32 %v14030_v6, %v5011_v49 }
 0x957   : > { %v6311_v25 = vadd.f32 %v12452_v13, %v5661_v22  ;;  %v7220_v61 = vsel %vm7189_vm4, %v7155_v18, %v7156_v3  ;;  %v12694_v18 = vpop.f32.mrf.mxu0  ;;  %v14035_v22 = vld [vmem:[#allocation68_spill] sm:$0xff] }
 0x958   : > { %9084 = vmatmul.msk.bf16.gmra.mxu2 %vm1228_vm3, %v12665_v11  ;;  %v12674_v36 = vmax.f32 %v7059_v24, %v7220_v61 }
 0x959   : > { %v6961_v10 = vadd.f32 %v6820_v38, %v6311_v25  ;;  %v12690_v38 = vpop.f32.mrf.mxu1 }
 0x95a   : > { %v4872_v2 = vpop.f32.mrf.mxu3  ;;  %v7442_v51 = vmax.f32 %v12610_v60, %v12674_v36 }
 0x95b   : > { %v6825_v9 = vpop.f32.mrf.mxu2  ;;  %v7061_v44 = vadd.f32 %v12596_v42, %v6961_v10  ;;  %v5012_v13 = vadd.f32 %v4872_v2, %v14031_v7  ;;  %v14036_v10 = vld [vmem:[#allocation78_spill] sm:$0xff] }
 0x95d   : > { %v7157_v35 = vrot.slane %v7061_v44, 1  ;;  %v5662_v45 = vadd.f32 %v14032_v29, %v5012_v13  ;;  %v6430_v29 = vld [vmem:[#allocation2 + $0x30a] sm:$0xff] }
 0x95f   : > { %v6312_v40 = vadd.f32 %v12470_v1, %v5662_v45  ;;  %8916 = vmatmul.msk.bf16.gmra.mxu3 %vm1228_vm3, %v12603_v28  ;;  %v7219_v12 = vsel %vm7189_vm4, %v7156_v3, %v7157_v35  ;;  %v12714_v25 = vpop.f32.mrf.mxu0 }
 0x960   : > { %v12688_v41 = vmax.f32 %v7060_v20, %v7219_v12 }
 0x961   : > { %v6962_v60 = vadd.f32 %v6822_v26, %v6312_v40  ;;  %v12710_v3 = vpop.f32.mrf.mxu1  ;;  %v14037_v40 = vld [vmem:[#allocation69_spill] sm:$0xff] }
 0x962   : > { %v4875_v30 = vpop.f32.mrf.mxu3  ;;  %v7443_v56 = vmax.f32 %v12624_v5, %v12688_v41 }
 0x963   : > { %v6827_v24 = vpop.f32.mrf.mxu2  ;;  %v7062_v1 = vadd.f32 %v12596_v42, %v6962_v60  ;;  %v5013_v28 = vadd.f32 %v4875_v30, %v14033_v46  ;;  %v6429_v60 = vld [vmem:[#allocation2 + $0x302] sm:$0xff] }
 0x964   : > { %v7562_v47 = vpack.c.bf16 %v7443_v56, %v7442_v51 }
 0x965   : > { %v7158_v14 = vrot.slane %v7062_v1, 1  ;;  %v5663_v16 = vadd.f32 %v14034_v50, %v5013_v28 }
 0x967   : > { %v6313_v26 = vadd.f32 %v12493_v17, %v5663_v16  ;;  %v7218_v5 = vsel %vm7189_vm4, %v7157_v35, %v7158_v14 }
 0x968   : > { %9085 = vmatmul.msk.bf16.gmra.mxu2 %vm1228_vm3, %v12699_v48  ;;  %v12706_v43 = vmax.f32 %v7061_v44, %v7218_v5  ;;  %v14039_v5 = vld [vmem:[#allocation70_spill] sm:$0xff] }
 0x969   : > { %v6963_v20 = vadd.f32 %v6825_v9, %v6313_v26  ;;  %v12728_v30 = vpop.f32.mrf.mxu1 }
 0x96a   : > { %v4877_v54 = vpop.f32.mrf.mxu3  ;;  %v7444_v33 = vmax.f32 %v12642_v31, %v12706_v43 }
 0x96b   : > { %v6830_v49 = vpop.f32.mrf.mxu2  ;;  %v7063_v6 = vadd.f32 %v12596_v42, %v6963_v20  ;;  %v5014_v17 = vadd.f32 %v4877_v54, %v14035_v22  ;;  %v14040_v54 = vld [vmem:[#allocation158_spill] sm:$0xff] }
 0x96d   : > { %v7159_v61 = vrot.slane %v7063_v6, 1  ;;  %v5664_v2 = vadd.f32 %v14036_v10, %v5014_v17 }
 0x96f   : > { %v6314_v51 = vadd.f32 %v12516_v63, %v5664_v2  ;;  %8917 = vmatmul.msk.bf16.gmra.mxu3 %vm1228_vm3, %v12635_v19  ;;  %v7217_v9 = vsel %vm7189_vm4, %v7158_v14, %v7159_v61  ;;  %v6432_v2 = vld [vmem:[#allocation2 + $0x31a] sm:$0xff] }
 0x970   : > { %v12722_v31 = vmax.f32 %v7062_v1, %v7217_v9  ;;  %v12731_v1 = vpack.c.bf16 %v6430_v29, %v6429_v60  ;;  %v14042_v60 = vld [vmem:[#allocation151_spill] sm:$0xff] }
 0x971   : > { %v6964_v44 = vadd.f32 %v6827_v24, %v6314_v51  ;;  %v12733_v24 = vpop.f32.mrf.mxu0  ;;  %v12748_v22 = vpop.f32.mrf.mxu1 }
 0x972   : > { %v4880_v7 = vpop.f32.mrf.mxu3  ;;  %v7445_v35 = vmax.f32 %v12656_v39, %v12722_v31 }
 0x973   : > { %v6832_v13 = vpop.f32.mrf.mxu2  ;;  %v7064_v45 = vadd.f32 %v12596_v42, %v6964_v44  ;;  %v5015_v12 = vadd.f32 %v4880_v7, %v14037_v40 }
 0x974   : > { %v7563_v63 = vpack.c.bf16 %v7445_v35, %v7444_v33 }
 0x975   : > { %v7160_v19 = vrot.slane %v7064_v45, 1  ;;  %v5665_v56 = vadd.f32 %v14038_v37, %v5015_v12 }
 0x976   : > { %8012 = vmatpush.bf16.msra.mxu0 %v7563_v63 }
 0x977   : > { %v6315_v46 = vadd.f32 %v12537_v4, %v5665_v56  ;;  %v7216_v39 = vsel %vm7189_vm4, %v7159_v61, %v7160_v19 }
 0x978   : > { %9086 = vmatmul.msk.bf16.gmra.mxu2 %vm1228_vm3, %v12731_v1  ;;  %v12740_v28 = vmax.f32 %v7063_v6, %v7216_v39 }
 0x979   : > { %v6965_v53 = vadd.f32 %v6830_v49, %v6315_v46  ;;  %v12757_v49 = vpop.f32.mrf.mxu0 }
 0x97a   : > { %v4882_v14 = vpop.f32.mrf.mxu3  ;;  %8013 = vmatpush.bf16.msra.mxu0 %v7562_v47  ;;  %v7446_v16 = vmax.f32 %v12674_v36, %v12740_v28 }
 0x97b   : > { %v6835_v50 = vpop.f32.mrf.mxu2  ;;  %v7065_v26 = vadd.f32 %v12596_v42, %v6965_v53  ;;  %v5016_v20 = vadd.f32 %v4882_v14, %v14039_v5 }
 0x97d   : > { %v7161_v4 = vrot.slane %v7065_v26, 1  ;;  %v5666_v33 = vadd.f32 %v14040_v54, %v5016_v20 }
 0x97e   : > { %8014 = vmatpush.bf16.msra.mxu0 %v12662_v52  ;;  %v6431_v52 = vld [vmem:[#allocation2 + $0x312] sm:$0xff] }
 0x97f   : > { %v6316_v6 = vadd.f32 %v12554_v8, %v5666_v33  ;;  %8918 = vmatmul.msk.bf16.gmra.mxu3 %vm1228_vm3, %v12665_v11  ;;  %v7215_v47 = vsel %vm7189_vm4, %v7160_v19, %v7161_v4  ;;  %v14041_v11 = vld [vmem:[#allocation71_spill] sm:$0xff]  ;;  %v12767_v29 = vpack.c.bf16 %v6432_v2, %v6431_v52  ;;  %v14044_v2 = vld [vmem:[#allocation74_spill] sm:$0xff] }
 0x980   : > { %v12755_v36 = vmax.f32 %v7064_v45, %v7215_v47  ;;  %v12777_v45 = vpop.f32.mrf.mxu1 }
 0x981   : > { %v6966_v17 = vadd.f32 %v6832_v13, %v6316_v6 }
 0x982   : > { %v4885_v61 = vpop.f32.mrf.mxu3  ;;  %8015 = vmatpush.bf16.msra.mxu0 %v12630_v15  ;;  %v7447_v8 = vmax.f32 %v12688_v41, %v12755_v36 }
 0x983   : > { %v6837_v10 = vpop.f32.mrf.mxu2  ;;  %v7066_v51 = vadd.f32 %v12596_v42, %v6966_v17  ;;  %v5017_v9 = vadd.f32 %v4885_v61, %v14041_v11  ;;  %v9379_v11 = vld [vmem:[%s13571_s5 + $0x4] sm:$0xf] }
 0x984   : > { %v12764_v44 = vpack.c.bf16 %v7447_v8, %v7446_v16  ;;  %v6434_v16 = vld [vmem:[#allocation2 + $0x32a] sm:$0xff] }
 0x985   : > { %v7162_v7 = vrot.slane %v7066_v51, 1  ;;  %v5667_v35 = vadd.f32 %v12592_v27, %v5017_v9 }
 0x986   : > { %8016 = vmatpush.bf16.msra.mxu0 %v12600_v21  ;;  %v12782_v21 = vpop.f32.mrf.mxu0 }
 0x987   : > { %v6317_v15 = vadd.f32 %v12667_v59, %v5667_v35  ;;  %v7214_v41 = vsel %vm7189_vm4, %v7161_v4, %v7162_v7  ;;  %v9094_v35 = vld [vmem:[%s13571_s5 + $0x18] sm:$0xf0] }
 0x988   : > { %9087 = vmatmul.msk.bf16.gmra.mxu2 %vm1228_vm3, %v12767_v29  ;;  %v12775_v13 = vmax.f32 %v7065_v26, %v7214_v41 }
 0x989   : > { %v6967_v40 = vadd.f32 %v6835_v50, %v6317_v15  ;;  %v6433_v50 = vld [vmem:[#allocation2 + $0x322] sm:$0xff] }
 0x98a   : > { %v4887_v12 = vpop.f32.mrf.mxu3  ;;  %8017 = vmatpush.bf16.msra.mxu0 %v12568_v32  ;;  %v7448_v27 = vmax.f32 %v12706_v43, %v12775_v13  ;;  %v6483_v33 = vpack.c.bf16 %v6434_v16, %v6433_v50 }
 0x98b   : > { %v6840_v63 = vpop.f32.mrf.mxu2  ;;  %v7067_v59 = vadd.f32 %v12596_v42, %v6967_v40  ;;  %v5018_v19 = vadd.f32 %v4887_v12, %v14042_v60 }
 0x98d   : > { %v7163_v37 = vrot.slane %v7067_v59, 1  ;;  %v5668_v56 = vadd.f32 %v12614_v23, %v5018_v19  ;;  %v12798_v23 = vpop.f32.mrf.mxu1 }
 0x98e   : > { %8018 = vmatpush.bf16.msra.mxu0 %v12535_v0  ;;  %v12804_v20 = vpop.f32.mrf.mxu0 }
 0x98f   : > { %v6318_v46 = vadd.f32 %v12690_v38, %v5668_v56  ;;  %8919 = vmatmul.msk.bf16.gmra.mxu3 %vm1228_vm3, %v12699_v48  ;;  %v7213_v32 = vsel %vm7189_vm4, %v7162_v7, %v7163_v37  ;;  %v14043_v48 = vld [vmem:[#allocation152_spill] sm:$0xff] }
 0x990   : > { %v12793_v43 = vmax.f32 %v7066_v51, %v7213_v32 }
 0x991   : > { %v6968_v39 = vadd.f32 %v6837_v10, %v6318_v46 }
 0x992   : > { %v4890_v53 = vpop.f32.mrf.mxu3  ;;  %8019 = vmatpush.bf16.msra.mxu0 %v12500_v62  ;;  %v7449_v0 = vmax.f32 %v12722_v31, %v12793_v43 }
 0x993   : > { %v6842_v14 = vpop.f32.mrf.mxu2  ;;  %v7068_v38 = vadd.f32 %v12596_v42, %v6968_v39  ;;  %v5019_v26 = vadd.f32 %v4890_v53, %v14043_v48  ;;  %v14046_v48 = vld [vmem:[#allocation76_spill] sm:$0xff] }
 0x994   : > { %v12802_v5 = vpack.c.bf16 %v7449_v0, %v7448_v27  ;;  %v6436_v27 = vld [vmem:[#allocation2 + $0x33a] sm:$0xff] }
 0x995   : > { %v7164_v4 = vrot.slane %v7068_v38, 1  ;;  %v5669_v54 = vadd.f32 %v12632_v55, %v5019_v26  ;;  %v12817_v8 = vpop.f32.mrf.mxu1 }
 0x996   : > { %v12823_v9 = vpop.f32.mrf.mxu0 }
 0x997   : > { %v6319_v62 = vadd.f32 %v12710_v3, %v5669_v54  ;;  %v7212_v31 = vsel %vm7189_vm4, %v7163_v37, %v7164_v4  ;;  %v9385_v54 = vld [vmem:[%s13571_s5 + $0x34] sm:$0xf] }
 0x998   : > { %9088 = vmatmul.msk.bf16.gmra.mxu2 %vm1228_vm3, %v6483_v33  ;;  %v12811_v6 = vmax.f32 %v7067_v59, %v7212_v31  ;;  %v14045_v59 = vld [vmem:[#allocation75_spill] sm:$0xff] }
 0x999   : > { %v6969_v47 = vadd.f32 %v6840_v63, %v6319_v62  ;;  %v6435_v63 = vld [vmem:[#allocation2 + $0x332] sm:$0xff] }
 0x99a   : > { %v4892_v17 = vpop.f32.mrf.mxu3  ;;  %v7450_v10 = vmax.f32 %v12740_v28, %v12811_v6  ;;  %v6484_v46 = vpack.c.bf16 %v6436_v27, %v6435_v63  ;;  %v14048_v27 = vld [vmem:[#allocation156_spill] sm:$0xff] }
 0x99b   : > { %v6845_v61 = vpop.f32.mrf.mxu2  ;;  %v7069_v52 = vadd.f32 %v12596_v42, %v6969_v47  ;;  %v5020_v55 = vadd.f32 %v4892_v17, %v14044_v2  ;;  %v14047_v2 = vld [vmem:[#allocation155_spill] sm:$0xff] }
 0x99d   : > { %v7165_v3 = vrot.slane %v7069_v52, 1  ;;  %v5670_v51 = vadd.f32 %v12649_v34, %v5020_v55  ;;  %v9097_v34 = vor.u32 %v9379_v11, %v9094_v35  ;;  %v12842_v32 = vpop.f32.mrf.mxu1  ;;  %v9382_v35 = vld [vmem:[%s13571_s5 + $0x14] sm:$0xf0] }
 0x99f   : > { %v6320_v7 = vadd.f32 %v12728_v30, %v5670_v51  ;;  %8920 = vmatmul.msk.bf16.gmra.mxu3 %vm1228_vm3, %v12731_v1  ;;  %v7211_v28 = vsel %vm7189_vm4, %v7164_v4, %v7165_v3  ;;  %7912 = vmatmul.bf16.vlgmr.msrb.gmra.mxu0 %v9097_v34 }
 0x9a0   : > { %v12833_v15 = vmax.f32 %v7068_v38, %v7211_v28 }
 0x9a1   : > { %v6970_v41 = vadd.f32 %v6842_v14, %v6320_v7  ;;  %v12850_v14 = vpop.f32.mrf.mxu0 }
 0x9a2   : > { %v4895_v40 = vpop.f32.mrf.mxu3  ;;  %v7451_v30 = vmax.f32 %v12755_v36, %v12833_v15 }
 0x9a3   : > { %v6847_v12 = vpop.f32.mrf.mxu2  ;;  %v7070_v1 = vadd.f32 %v12596_v42, %v6970_v41  ;;  %v5021_v60 = vadd.f32 %v4895_v40, %v14045_v59 }
 0x9a4   : > { %v12839_v19 = vpack.c.bf16 %v7451_v30, %v7450_v10 }
 0x9a5   : > { %v7166_v37 = vrot.slane %v7070_v1, 1  ;;  %v5671_v56 = vadd.f32 %v12676_v57, %v5021_v60 }
 0x9a7   : > { %v6321_v39 = vadd.f32 %v12748_v22, %v5671_v56  ;;  %v7210_v36 = vsel %vm7189_vm4, %v7165_v3, %v7166_v37  ;;  %v9391_v56 = vld [vmem:[%s13571_s5 + $0x64] sm:$0xf] }
 0x9a8   : > { %9089 = vmatmul.msk.bf16.gmra.mxu2 %vm1228_vm3, %v6484_v46  ;;  %v12848_v53 = vmax.f32 %v7069_v52, %v7210_v36 }
 0x9a9   : > { %v6971_v50 = vadd.f32 %v6845_v61, %v6321_v39  ;;  %v9142_v39 = vld [vmem:[%s13571_s5 + $0x78] sm:$0xf0] }
 0x9aa   : > { %v4897_v16 = vpop.f32.mrf.mxu3  ;;  %v7452_v57 = vmax.f32 %v12775_v13, %v12848_v53  ;;  %v9118_v13 = vld [vmem:[%s13571_s5 + $0x48] sm:$0xf0] }
 0x9ab   : > { %v6850_v0 = vpop.f32.mrf.mxu2  ;;  %v7071_v38 = vadd.f32 %v12596_v42, %v6971_v50  ;;  %v5022_v26 = vadd.f32 %v4897_v16, %v14046_v48  ;;  %v9121_v47 = vor.u32 %v9385_v54, %v9118_v13  ;;  %v9145_v50 = vor.u32 %v9391_v56, %v9142_v39 }
 0x9ad   : > { %v7167_v22 = vrot.slane %v7071_v38, 1  ;;  %v5672_v4 = vadd.f32 %v12694_v18, %v5022_v26  ;;  %v12870_v18 = vpop.f32.mrf.mxu1 }
 0x9af   : > { %v6322_v33 = vadd.f32 %v12777_v45, %v5672_v4  ;;  %8921 = vmatmul.msk.bf16.gmra.mxu3 %vm1228_vm3, %v12767_v29  ;;  %v7209_v62 = vsel %vm7189_vm4, %v7166_v37, %v7167_v22  ;;  %7917 = vmatmul.bf16.gmra.mxu0 %v9121_v47  ;;  %v12874_v29 = vpop.f32.mrf.mxu0 }
 0x9b0   : > { %v12868_v31 = vmax.f32 %v7070_v1, %v7209_v62 }
 0x9b1   : > { %v6972_v17 = vadd.f32 %v6847_v12, %v6322_v33 }
 0x9b2   : > { %v4900_v61 = vpop.f32.mrf.mxu3  ;;  %v7453_v45 = vmax.f32 %v12793_v43, %v12868_v31  ;;  %v9092_v43 = vld [vmem:[%s13571_s5] sm:$0xf] }
 0x9b3   : > { %v6852_v10 = vpop.f32.mrf.mxu2  ;;  %v7072_v52 = vadd.f32 %v12596_v42, %v6972_v17  ;;  %v5023_v55 = vadd.f32 %v4900_v61, %v14047_v2  ;;  %v9093_v1 = vor.u32 %v9382_v35, %v9092_v43  ;;  %v9388_v17 = vld [vmem:[%s13571_s5 + $0x44] sm:$0xf0] }
 0x9b4   : > { %v12878_v3 = vpack.c.bf16 %v7453_v45, %v7452_v57 }
 0x9b5   : > { %v7168_v51 = vrot.slane %v7072_v52, 1  ;;  %v5673_v11 = vadd.f32 %v12714_v25, %v5023_v55 }
 0x9b7   : > { %v6323_v7 = vadd.f32 %v12798_v23, %v5673_v11  ;;  %v7208_v28 = vsel %vm7189_vm4, %v7167_v22, %v7168_v51  ;;  %v6210_v23 = vpop.f32.mrf.mxu1  ;;  %v12896_v59 = vpop.f32.mrf.mxu0 }
 0x9b8   : > { %v12890_v34 = vmax.f32 %v7071_v38, %v7208_v28  ;;  %v14049_v38 = vld [vmem:[#allocation79_spill] sm:$0xff] }
 0x9b9   : > { %v6973_v41 = vadd.f32 %v6850_v0, %v6323_v7  ;;  %v9397_v7 = vld [vmem:[%s13571_s5 + $0x94] sm:$0xf] }
 0x9ba   : > { %v4902_v40 = vpop.f32.mrf.mxu3  ;;  %v7454_v25 = vmax.f32 %v12811_v6, %v12890_v34 }
 0x9bb   : > { %v6855_v12 = vpop.f32.mrf.mxu2  ;;  %v7073_v63 = vadd.f32 %v12596_v42, %v6973_v41  ;;  %v5024_v30 = vadd.f32 %v4902_v40, %v14048_v27 }
 0x9bd   : > { %v7169_v60 = vrot.slane %v7073_v63, 1  ;;  %v5674_v37 = vadd.f32 %v12733_v24, %v5024_v30  ;;  %v14051_v30 = vld [vmem:[#allocation81_spill] sm:$0xff] }
 0x9bf   : > { %v6324_v46 = vadd.f32 %v12817_v8, %v5674_v37  ;;  %7858 = vmatmul.bf16.vlgmr.msra.gmra.mxu3 %v9093_v1  ;;  %v7207_v6 = vsel %vm7189_vm4, %v7168_v51, %v7169_v60  ;;  %7922 = vmatmul.bf16.gmra.mxu0 %v9145_v50  ;;  %v6212_v22 = vpop.f32.mrf.mxu1  ;;  %v12917_v33 = vpop.f32.mrf.mxu0  ;;  %v9394_v50 = vld [vmem:[%s13571_s5 + $0x74] sm:$0xf0] }
 0x9c0   : > { %v12908_v36 = vmax.f32 %v7072_v52, %v7207_v6  ;;  %v14050_v52 = vld [vmem:[#allocation80_spill] sm:$0xff] }
 0x9c1   : > { %v6974_v16 = vadd.f32 %v6852_v10, %v6324_v46 }
 0x9c2   : > { %v4905_v0 = vpop.f32.mrf.mxu3  ;;  %v7455_v57 = vmax.f32 %v12833_v15, %v12908_v36  ;;  %v9116_v15 = vld [vmem:[%s13571_s5 + $0x30] sm:$0xf] }
 0x9c3   : > { %v6857_v24 = vpop.f32.mrf.mxu2  ;;  %v7074_v8 = vadd.f32 %v12596_v42, %v6974_v16  ;;  %v5025_v48 = vadd.f32 %v4905_v0, %v14049_v38  ;;  %v9117_v55 = vor.u32 %v9388_v17, %v9116_v15  ;;  %v14052_v38 = vld [vmem:[#allocation82_spill] sm:$0xff] }
 0x9c4   : > { %v12914_v26 = vpack.c.bf16 %v7455_v57, %v7454_v25 }
 0x9c5   : > { %v7170_v4 = vrot.slane %v7074_v8, 1  ;;  %v5675_v54 = vadd.f32 %v12757_v49, %v5025_v48 }
 0x9c7   : > { %v6325_v62 = vadd.f32 %v12842_v32, %v5675_v54  ;;  %v7206_v13 = vsel %vm7189_vm4, %v7169_v60, %v7170_v4  ;;  %v6215_v28 = vpop.f32.mrf.mxu1 }
 0x9c8   : > { %v12922_v47 = vmax.f32 %v7073_v63, %v7206_v13  ;;  %v9403_v13 = vld [vmem:[%s13571_s5 + $0xc4] sm:$0xf] }
 0x9c9   : > { %v6975_v61 = vadd.f32 %v6855_v12, %v6325_v62  ;;  %v12946_v12 = vpop.f32.mrf.mxu0 }
 0x9ca   : > { %v4907_v10 = vpop.f32.mrf.mxu3  ;;  %v7456_v45 = vmax.f32 %v12848_v53, %v12922_v47  ;;  %v9166_v53 = vld [vmem:[%s13571_s5 + $0xa8] sm:$0xf0] }
 0x9cb   : > { %v6860_v49 = vpop.f32.mrf.mxu2  ;;  %v7075_v32 = vadd.f32 %v12596_v42, %v6975_v61  ;;  %v5026_v2 = vadd.f32 %v4907_v10, %v14050_v52  ;;  %v9169_v40 = vor.u32 %v9397_v7, %v9166_v53  ;;  %v14053_v52 = vld [vmem:[#allocation83_spill] sm:$0xff] }
 0x9cd   : > { %v7171_v51 = vrot.slane %v7075_v32, 1  ;;  %v5676_v11 = vadd.f32 %v12782_v21, %v5026_v2 }
 0x9cf   : > { %v6326_v43 = vadd.f32 %v12870_v18, %v5676_v11  ;;  %v7205_v35 = vsel %vm7189_vm4, %v7170_v4, %v7171_v51  ;;  %7863 = vmatmul.bf16.gmra.mxu3 %v9117_v55  ;;  %7927 = vmatmul.bf16.gmra.mxu0 %v9169_v40  ;;  %v6217_v16 = vpop.f32.mrf.mxu1 }
 0x9d0   : > { %v12944_v41 = vmax.f32 %v7074_v8, %v7205_v35 }
 0x9d1   : > { %v6976_v21 = vadd.f32 %v6857_v24, %v6326_v43 }
 0x9d2   : > { %v4910_v25 = vpop.f32.mrf.mxu3  ;;  %v7457_v27 = vmax.f32 %v12868_v31, %v12944_v41  ;;  %v9140_v31 = vld [vmem:[%s13571_s5 + $0x60] sm:$0xf] }
 0x9d3   : > { %v6862_v63 = vpop.f32.mrf.mxu2  ;;  %v7076_v18 = vadd.f32 %v12596_v42, %v6976_v21  ;;  %v5027_v1 = vadd.f32 %v4910_v25, %v14051_v30  ;;  %v9141_v4 = vor.u32 %v9394_v50, %v9140_v31  ;;  %v9400_v21 = vld [vmem:[%s13571_s5 + $0xa4] sm:$0xf0] }
 0x9d4   : > { %v12952_v60 = vpack.c.bf16 %v7457_v27, %v7456_v45 }
 0x9d5   : > { %v7172_v37 = vrot.slane %v7076_v18, 1  ;;  %v5677_v56 = vadd.f32 %v12804_v20, %v5027_v1 }
 0x9d7   : > { %v6327_v46 = vadd.f32 %v6210_v23, %v5677_v56  ;;  %v7204_v6 = vsel %vm7189_vm4, %v7171_v51, %v7172_v37  ;;  %v12967_v23 = vpop.f32.mrf.mxu0  ;;  %v6220_v55 = vpop.f32.mrf.mxu1 }
 0x9d8   : > { %v12957_v39 = vmax.f32 %v7075_v32, %v7204_v6  ;;  %v9409_v6 = vld [vmem:[%s13571_s5 + $0xf4] sm:$0xf] }
 0x9d9   : > { %v6977_v0 = vadd.f32 %v6860_v49, %v6327_v46 }
 0x9da   : > { %v4912_v24 = vpop.f32.mrf.mxu3  ;;  %v7458_v20 = vmax.f32 %v12890_v34, %v12957_v39  ;;  %v9190_v34 = vld [vmem:[%s13571_s5 + $0xd8] sm:$0xf0] }
 0x9db   : > { %v6865_v57 = vpop.f32.mrf.mxu2  ;;  %v7077_v8 = vadd.f32 %v12596_v42, %v6977_v0  ;;  %v5028_v48 = vadd.f32 %v4912_v24, %v14052_v38  ;;  %v9193_v10 = vor.u32 %v9403_v13, %v9190_v34 }
 0x9dd   : > { %v7173_v54 = vrot.slane %v7077_v8, 1  ;;  %v5678_v62 = vadd.f32 %v12823_v9, %v5028_v48  ;;  %v14055_v48 = vld [vmem:[#allocation85_spill] sm:$0xff] }
 0x9df   : > { %v6328_v15 = vadd.f32 %v6212_v22, %v5678_v62  ;;  %v7203_v17 = vsel %vm7189_vm4, %v7172_v37, %v7173_v54  ;;  %7868 = vmatmul.bf16.gmra.mxu3 %v9141_v4  ;;  %7932 = vmatmul.bf16.gmra.mxu0 %v9193_v10  ;;  %v12986_v11 = vpop.f32.mrf.mxu0  ;;  %v6222_v46 = vpop.f32.mrf.mxu1 }
 0x9e0   : > { %v12980_v61 = vmax.f32 %v7076_v18, %v7203_v17  ;;  %v14054_v18 = vld [vmem:[#allocation84_spill] sm:$0xff] }
 0x9e1   : > { %v6978_v49 = vadd.f32 %v6862_v63, %v6328_v15 }
 0x9e2   : > { %v4915_v45 = vpop.f32.mrf.mxu3  ;;  %v7459_v9 = vmax.f32 %v12908_v36, %v12980_v61  ;;  %v9164_v36 = vld [vmem:[%s13571_s5 + $0x90] sm:$0xf] }
 0x9e3   : > { %v6867_v32 = vpop.f32.mrf.mxu2  ;;  %v7078_v22 = vadd.f32 %v12596_v42, %v6978_v49  ;;  %v5029_v2 = vadd.f32 %v4915_v45, %v14053_v52  ;;  %v9165_v1 = vor.u32 %v9400_v21, %v9164_v36  ;;  %v9406_v49 = vld [vmem:[%s13571_s5 + $0xd4] sm:$0xf0] }
 0x9e4   : > { %v7570_v51 = vpack.c.bf16 %v7459_v9, %v7458_v20 }
 0x9e5   : > { %v7174_v7 = vrot.slane %v7078_v22, 1  ;;  %v5679_v43 = vadd.f32 %v12850_v14, %v5029_v2  ;;  %v14056_v2 = vld [vmem:[#allocation86_spill] sm:$0xff] }
 0x9e7   : > { %v6329_v35 = vadd.f32 %v6215_v28, %v5679_v43  ;;  %v7202_v53 = vsel %vm7189_vm4, %v7173_v54, %v7174_v7  ;;  %v13007_v31 = vpop.f32.mrf.mxu0  ;;  %v6225_v34 = vpop.f32.mrf.mxu1 }
 0x9e8   : > { %v12991_v40 = vmax.f32 %v7077_v8, %v7202_v53  ;;  %v9415_v53 = vld [vmem:[%s13571_s5 + $0x124] sm:$0xf] }
 0x9e9   : > { %v6979_v25 = vadd.f32 %v6865_v57, %v6329_v35 }
 0x9ea   : > { %v4917_v63 = vpop.f32.mrf.mxu3  ;;  %v7460_v14 = vmax.f32 %v12922_v47, %v12991_v40  ;;  %v9214_v47 = vld [vmem:[%s13571_s5 + $0x108] sm:$0xf0] }
 0x9eb   : > { %v6870_v27 = vpop.f32.mrf.mxu2  ;;  %v7079_v28 = vadd.f32 %v12596_v42, %v6979_v25  ;;  %v5030_v30 = vadd.f32 %v4917_v63, %v14054_v18  ;;  %v9217_v57 = vor.u32 %v9409_v6, %v9214_v47  ;;  %v14057_v18 = vld [vmem:[#allocation87_spill] sm:$0xff] }
 0x9ed   : > { %v7175_v37 = vrot.slane %v7079_v28, 1  ;;  %v5680_v56 = vadd.f32 %v12874_v29, %v5030_v30 }
 0x9ef   : > { %v6330_v50 = vadd.f32 %v6217_v16, %v5680_v56  ;;  %v7201_v0 = vsel %vm7189_vm4, %v7174_v7, %v7175_v37  ;;  %7873 = vmatmul.bf16.gmra.mxu3 %v9165_v1  ;;  %7937 = vmatmul.bf16.gmra.mxu0 %v9217_v57  ;;  %v13031_v45 = vpop.f32.mrf.mxu0 }
 0x9f0   : > { %v13014_v24 = vmax.f32 %v7078_v22, %v7201_v0  ;;  %v9412_v0 = vld [vmem:[%s13571_s5 + $0x104] sm:$0xf0] }
 0x9f1   : > { %v6980_v29 = vadd.f32 %v6867_v32, %v6330_v50  ;;  %v9212_v50 = vld [vmem:[%s13571_s5 + $0xf0] sm:$0xf] }
 0x9f2   : > { %v4920_v20 = vpop.f32.mrf.mxu3  ;;  %v7461_v38 = vmax.f32 %v12944_v41, %v13014_v24  ;;  %v9188_v41 = vld [vmem:[%s13571_s5 + $0xc0] sm:$0xf] }
 0x9f3   : > { %v6872_v8 = vpop.f32.mrf.mxu2  ;;  %v7080_v16 = vadd.f32 %v12596_v42, %v6980_v29  ;;  %v5031_v4 = vadd.f32 %v4920_v20, %v14055_v48  ;;  %v9189_v7 = vor.u32 %v9406_v49, %v9188_v41  ;;  %v14058_v29 = vld [vmem:[#allocation88_spill] sm:$0xff]  ;;  %v14059_v49 = vld [vmem:[#allocation89_spill] sm:$0xff] }
 0x9f4   : > { %v7571_v54 = vpack.c.bf16 %v7461_v38, %v7460_v14 }
 0x9f5   : > { %v7176_v62 = vrot.slane %v7080_v16, 1  ;;  %v5681_v13 = vadd.f32 %v12896_v59, %v5031_v4 }
 0x9f6   : > { %8066 = vmatpush.bf16.msra.mxu3 %v7571_v54 }
 0x9f7   : > { %v6331_v15 = vadd.f32 %v6220_v55, %v5681_v13  ;;  %v7200_v17 = vsel %vm7189_vm4, %v7175_v37, %v7176_v62  ;;  %v13052_v14 = vpop.f32.mrf.mxu0  ;;  %v9262_v13 = vld [vmem:[%s13571_s5 + $0x168] sm:$0xf0] }
 0x9f8   : > { %v13023_v10 = vmax.f32 %v7079_v28, %v7200_v17 }
 0x9f9   : > { %v6981_v32 = vadd.f32 %v6870_v27, %v6331_v15 }
 0x9fa   : > { %v4922_v59 = vpop.f32.mrf.mxu3  ;;  %8067 = vmatpush.bf16.msra.mxu3 %v7570_v51  ;;  %v7462_v22 = vmax.f32 %v12957_v39, %v13023_v10  ;;  %v9238_v39 = vld [vmem:[%s13571_s5 + $0x138] sm:$0xf0] }
 0x9fb   : > { %v6875_v9 = vpop.f32.mrf.mxu2  ;;  %v7081_v52 = vadd.f32 %v12596_v42, %v6981_v32  ;;  %v5032_v55 = vadd.f32 %v4922_v59, %v14056_v2  ;;  %v9241_v25 = vor.u32 %v9415_v53, %v9238_v39  ;;  %v14060_v39 = vld [vmem:[#allocation90_spill] sm:$0xff] }
 0x9fd   : > { %v7177_v43 = vrot.slane %v7081_v52, 1  ;;  %v5682_v35 = vadd.f32 %v12917_v33, %v5032_v55  ;;  %v6227_v33 = vpop.f32.mrf.mxu1 }
 0x9fe   : > { %8068 = vmatpush.bf16.msra.mxu3 %v12952_v60 }
 0x9ff   : > { %v6332_v36 = vadd.f32 %v6222_v46, %v5682_v35  ;;  %v7199_v51 = vsel %vm7189_vm4, %v7176_v62, %v7177_v43  ;;  %7878 = vmatmul.bf16.gmra.mxu3 %v9189_v7  ;;  %7942 = vmatmul.bf16.gmra.mxu0 %v9241_v25  ;;  %v9418_v35 = vld [vmem:[%s13571_s5 + $0x134] sm:$0xf0] }
 0xa00   : > { %v13047_v21 = vmax.f32 %v7080_v16, %v7199_v51  ;;  %v13075_v16 = vpop.f32.mrf.mxu0 }
 0xa01   : > { %v6982_v63 = vadd.f32 %v6872_v8, %v6332_v36  ;;  %v9213_v8 = vor.u32 %v9412_v0, %v9212_v50 }
 0xa02   : > { %v4925_v27 = vpop.f32.mrf.mxu3  ;;  %8069 = vmatpush.bf16.msra.mxu3 %v12914_v26  ;;  %v7463_v60 = vmax.f32 %v12980_v61, %v13047_v21 }
 0xa03   : > { %v7082_v28 = vadd.f32 %v12596_v42, %v6982_v63  ;;  %v5033_v30 = vadd.f32 %v4925_v27, %v14057_v18  ;;  %v6877_v1 = vpop.f32.mrf.mxu2 }
 0xa04   : > { %v13056_v37 = vpack.c.bf16 %v7463_v60, %v7462_v22  ;;  %v9427_v60 = vld [vmem:[%s13571_s5 + $0x184] sm:$0xf] }
 0xa05   : > { %v7178_v56 = vrot.slane %v7082_v28, 1  ;;  %v5683_v46 = vadd.f32 %v12946_v12, %v5033_v30  ;;  %v6230_v38 = vpop.f32.mrf.mxu1 }
 0xa06   : > { %8070 = vmatpush.bf16.msra.mxu3 %v12878_v3 }
 0xa07   : > { %v6333_v6 = vadd.f32 %v6225_v34, %v5683_v46  ;;  %v7198_v26 = vsel %vm7189_vm4, %v7177_v43, %v7178_v56 }
 0xa08   : > { %v13062_v61 = vmax.f32 %v7081_v52, %v7198_v26  ;;  %v13097_v2 = vpop.f32.mrf.mxu0 }
 0xa09   : > { %v6983_v47 = vadd.f32 %v6875_v9, %v6333_v6 }
 0xa0a   : > { %v4927_v57 = vpop.f32.mrf.mxu3  ;;  %8071 = vmatpush.bf16.msra.mxu3 %v12839_v19  ;;  %v7464_v3 = vmax.f32 %v12991_v40, %v13062_v61  ;;  %v9421_v19 = vld [vmem:[%s13571_s5 + $0x154] sm:$0xf] }
 0xa0b   : > { %v7083_v12 = vadd.f32 %v12596_v42, %v6983_v47  ;;  %v5034_v20 = vadd.f32 %v4927_v57, %v14058_v29  ;;  %v6880_v54 = vpop.f32.mrf.mxu2  ;;  %v9265_v17 = vor.u32 %v9421_v19, %v9262_v13  ;;  %v14061_v47 = vld [vmem:[#allocation93_spill] sm:$0xff]  ;;  %v14062_v13 = vld [vmem:[#allocation95_spill] sm:$0xff] }
 0xa0d   : > { %v7179_v48 = vrot.slane %v7083_v12, 1  ;;  %v5684_v4 = vadd.f32 %v12967_v23, %v5034_v20  ;;  %v6232_v52 = vpop.f32.mrf.mxu1 }
 0xa0e   : > { %8072 = vmatpush.bf16.msra.mxu3 %v12802_v5 }
 0xa0f   : > { %v6334_v62 = vadd.f32 %v6227_v33, %v5684_v4  ;;  %v7197_v40 = vsel %vm7189_vm4, %v7178_v56, %v7179_v48  ;;  %7883 = vmatmul.bf16.gmra.mxu3 %v9213_v8  ;;  %7947 = vmatmul.bf16.gmra.mxu0 %v9265_v17 }
 0xa10   : > { %v13087_v15 = vmax.f32 %v7082_v28, %v7197_v40 }
 0xa11   : > { %v6984_v23 = vadd.f32 %v6877_v1, %v6334_v62  ;;  %v9499_v62 = vld [vmem:[#allocation8] ss:$0 sm:$0xff] }
 0xa12   : > { %v4930_v34 = vpop.f32.mrf.mxu3  ;;  %8073 = vmatpush.bf16.msra.mxu3 %v12764_v44  ;;  %v7465_v5 = vmax.f32 %v13014_v24, %v13087_v15  ;;  %v9236_v24 = vld [vmem:[%s13571_s5 + $0x120] sm:$0xf] }
 0xa13   : > { %v7084_v41 = vadd.f32 %v12596_v42, %v6984_v23  ;;  %v5035_v32 = vadd.f32 %v4930_v34, %v14059_v49  ;;  %v6882_v7 = vpop.f32.mrf.mxu2  ;;  %v9237_v63 = vor.u32 %v9418_v35, %v9236_v24  ;;  %v9380_v49 = vld [vmem:[%s13571_s5 + $0xc] sm:$0xf] }
 0xa14   : > { %v13094_v59 = vpack.c.bf16 %v7465_v5, %v7464_v3  ;;  %v14063_v35 = vld [vmem:[#allocation98_spill] sm:$0xff] }
 0xa15   : > { %v7180_v9 = vrot.slane %v7084_v41, 1  ;;  %v5685_v22 = vadd.f32 %v12986_v11, %v5035_v32  ;;  %v6235_v1 = vpop.f32.mrf.mxu1 }
 0xa17   : > { %v6335_v55 = vadd.f32 %v6230_v38, %v5685_v22  ;;  %v7196_v44 = vsel %vm7189_vm4, %v7179_v48, %v7180_v9 }
 0xa18   : > { %v13101_v43 = vmax.f32 %v7083_v12, %v7196_v44 }
 0xa19   : > { %v6985_v53 = vadd.f32 %v6880_v54, %v6335_v55 }
 0xa1a   : > { %v4932_v11 = vpop.f32.mrf.mxu3  ;;  %v7466_v36 = vmax.f32 %v13023_v10, %v13101_v43  ;;  %v9286_v10 = vld [vmem:[%s13571_s5 + $0x198] sm:$0xf0] }
 0xa1b   : > { %v7085_v51 = vadd.f32 %v12596_v42, %v6985_v53  ;;  %v5036_v25 = vadd.f32 %v4932_v11, %v14060_v39  ;;  %v9289_v46 = vor.u32 %v9427_v60, %v9286_v10  ;;  %v6885_v6 = vpop.f32.mrf.mxu2 }
 0xa1c   : > { %v13119_v30 = vpop.f32.mrf.mxu0 }
 0xa1d   : > { %v7181_v33 = vrot.slane %v7085_v51, 1  ;;  %v5686_v27 = vadd.f32 %v13007_v31, %v5036_v25  ;;  %v6237_v54 = vpop.f32.mrf.mxu1 }
 0xa1f   : > { %v6336_v28 = vadd.f32 %v6232_v52, %v5686_v27  ;;  %v7195_v18 = vsel %vm7189_vm4, %v7180_v9, %v7181_v33  ;;  %7888 = vmatmul.bf16.gmra.mxu3 %v9237_v63  ;;  %7952 = vmatmul.bf16.gmra.mxu0 %v9289_v46  ;;  %v14064_v46 = vld [vmem:[#allocation100_spill] sm:$0xff] }
 0xa20   : > { %v13124_v56 = vmax.f32 %v7084_v41, %v7195_v18 }
 0xa21   : > { %v6986_v31 = vadd.f32 %v6882_v7, %v6336_v28  ;;  %v9430_v28 = vld [vmem:[%s13571_s5 + $0x194] sm:$0xf0] }
 0xa22   : > { %v4935_v26 = vpop.f32.mrf.mxu3  ;;  %v7467_v50 = vmax.f32 %v13047_v21, %v13124_v56  ;;  %v9260_v21 = vld [vmem:[%s13571_s5 + $0x150] sm:$0xf] }
 0xa23   : > { %v7086_v0 = vadd.f32 %v12596_v42, %v6986_v31  ;;  %v5037_v57 = vadd.f32 %v4935_v26, %v14061_v47  ;;  %v9424_v42 = vld [vmem:[%s13571_s5 + $0x164] sm:$0xf0]  ;;  %v6887_v34 = vpop.f32.mrf.mxu2  ;;  %v9386_v47 = vld [vmem:[%s13571_s5 + $0x3c] sm:$0xf] }
 0xa24   : > { %v13130_v3 = vpack.c.bf16 %v7467_v50, %v7466_v36  ;;  %v13135_v38 = vpop.f32.mrf.mxu0  ;;  %v9261_v23 = vor.u32 %v9424_v42, %v9260_v21 }
 0xa25   : > { %v7182_v12 = vrot.slane %v7086_v0, 1  ;;  %v5687_v29 = vadd.f32 %v13031_v45, %v5037_v57  ;;  %v6240_v11 = vpop.f32.mrf.mxu1 }
 0xa27   : > { %v6337_v20 = vadd.f32 %v6235_v1, %v5687_v29  ;;  %v7194_v8 = vsel %vm7189_vm4, %v7181_v33, %v7182_v12 }
 0xa28   : > { %v13137_v48 = vmax.f32 %v7085_v51, %v7194_v8 }
 0xa29   : > { %v6987_v4 = vadd.f32 %v6885_v6, %v6337_v20 }
 0xa2a   : > { %v4937_v19 = vpop.f32.mrf.mxu3  ;;  %v7468_v45 = vmax.f32 %v13062_v61, %v13137_v48  ;;  %v9102_v61 = vld [vmem:[%s13571_s5 + $0x20] sm:$0xf0] }
 0xa2b   : > { %v7087_v40 = vadd.f32 %v9499_v62, %v6987_v4  ;;  %v5038_v17 = vadd.f32 %v4937_v19, %v14062_v13  ;;  %v9105_v55 = vor.u32 %v9380_v49, %v9102_v61  ;;  %v6890_v25 = vpop.f32.mrf.mxu2  ;;  %v14067_v49 = vld [vmem:[#allocation159_spill] sm:$0xff] }
 0xa2c   : > { %v13154_v22 = vpop.f32.mrf.mxu0 }
 0xa2d   : > { %v7183_v5 = vrot.slane %v7087_v40, 1  ;;  %v5688_v41 = vadd.f32 %v13052_v14, %v5038_v17 }
 0xa2f   : > { %v6338_v32 = vadd.f32 %v6237_v54, %v5688_v41  ;;  %v7193_v9 = vsel %vm7189_vm4, %v7182_v12, %v7183_v5  ;;  %7893 = vmatmul.bf16.gmra.mxu3 %v9261_v23  ;;  %8020 = vmatmul.bf16.vlgmr.msra.gmra.mxu0 %v9105_v55  ;;  %v14066_v54 = vld [vmem:[#allocation161_spill] sm:$0xff] }
 0xa30   : > { %v13159_v52 = vmax.f32 %v7086_v0, %v7193_v9  ;;  %v6242_v0 = vpop.f32.mrf.mxu1 }
 0xa31   : > { %v6988_v44 = vadd.f32 %v6887_v34, %v6338_v32  ;;  %v14068_v32 = vrot.slane %v14067_v49, 1  ;;  %v9407_v49 = vld [vmem:[%s13571_s5 + $0xdc] sm:$0xf0] }
 0xa32   : > { %v4940_v14 = vpop.f32.mrf.mxu3  ;;  %v7469_v7 = vmax.f32 %v13087_v15, %v13159_v52  ;;  %v9284_v15 = vld [vmem:[%s13571_s5 + $0x180] sm:$0xf] }
 0xa33   : > { %v7088_v24 = vadd.f32 %v9499_v62, %v6988_v44  ;;  %v5039_v53 = vadd.f32 %v4940_v14, %v14063_v35  ;;  %v9285_v6 = vor.u32 %v9430_v28, %v9284_v15  ;;  %v6892_v20 = vpop.f32.mrf.mxu2  ;;  %v14069_v44 = vld [vmem:[#allocation162_spill] sm:$0xff]  ;;  %v9124_v28 = vld [vmem:[%s13571_s5 + $0x38] sm:$0xf] }
 0xa34   : > { %v13164_v36 = vpack.c.bf16 %v7469_v7, %v7468_v45  ;;  %v13169_v27 = vpop.f32.mrf.mxu0  ;;  %v14070_v7 = vld [vmem:[#allocation163_spill] sm:$0xff] }
 0xa35   : > { %v7184_v51 = vrot.slane %v7088_v24, 1  ;;  %v5689_v39 = vadd.f32 %v13075_v16, %v5039_v53 }
 0xa37   : > { %v6339_v63 = vadd.f32 %v6240_v11, %v5689_v39  ;;  %v7192_v33 = vsel %vm7189_vm4, %v7183_v5, %v7184_v51 }
 0xa38   : > { %v7378_v60 = vmax.f32 %v7087_v40, %v7192_v33  ;;  %v9150_v33 = vld [vmem:[%s13571_s5 + $0x80] sm:$0xf0] }
 0xa39   : > { %v6989_v18 = vadd.f32 %v6890_v25, %v6339_v63  ;;  %v9392_v63 = vld [vmem:[%s13571_s5 + $0x6c] sm:$0xf] }
 0xa3a   : > { %v4942_v10 = vpop.f32.mrf.mxu3  ;;  %v7470_v16 = vmax.f32 %v13101_v43, %v7378_v60  ;;  %v9126_v43 = vld [vmem:[%s13571_s5 + $0x50] sm:$0xf0] }
 0xa3b   : > { %v7089_v1 = vadd.f32 %v9499_v62, %v6989_v18  ;;  %v5040_v31 = vadd.f32 %v4942_v10, %v14064_v46  ;;  %v9129_v21 = vor.u32 %v9386_v47, %v9126_v43  ;;  %v9389_v18 = vld [vmem:[%s13571_s5 + $0x4c] sm:$0xf0]  ;;  %v9174_v46 = vld [vmem:[%s13571_s5 + $0xb0] sm:$0xf0] }
 0xa3c   : > { %v7923_v29 = vpop.f32.mrf.mxu0 }
 0xa3d   : > { %v7185_v26 = vrot.slane %v7089_v1, 1  ;;  %v5690_v50 = vadd.f32 %v13097_v2, %v5040_v31  ;;  %v14065_v2 = vld [vmem:[#allocation160_spill] sm:$0xff] }
 0xa3e   : > { %v7474_v4 = vmax.f32 %v7378_v60, %v14065_v2  ;;  %v9153_v60 = vor.u32 %v9392_v63, %v9150_v33 }
 0xa3f   : > { %v6340_v57 = vadd.f32 %v6242_v0, %v5690_v50  ;;  %v7191_v12 = vsel %vm7189_vm4, %v7184_v51, %v7185_v26  ;;  %7898 = vmatmul.bf16.gmra.mxu3 %v9285_v6  ;;  %8025 = vmatmul.bf16.gmra.mxu0 %v9129_v21  ;;  %v9395_v0 = vld [vmem:[%s13571_s5 + $0x7c] sm:$0xf0]  ;;  %v9172_v21 = vld [vmem:[%s13571_s5 + $0x98] sm:$0xf] }
 0xa40   : > { %v7379_v8 = vmax.f32 %v7088_v24, %v7191_v12  ;;  %v9404_v12 = vld [vmem:[%s13571_s5 + $0xcc] sm:$0xf] }
 0xa41   : > { %v6990_v42 = vadd.f32 %v6892_v20, %v6340_v57 }
 0xa42   : > { %v7475_v19 = vmax.f32 %v7379_v8, %v14066_v54  ;;  %v7471_v45 = vmax.f32 %v13124_v56, %v7379_v8  ;;  %v7859_v40 = vpop.f32.mrf.mxu3 }
 0xa43   : > { %v7090_v13 = vadd.f32 %v9499_v62, %v6990_v42  ;;  %v13192_v17 = vadd.f32 %v13119_v30, %v7859_v40  ;;  %v9100_v62 = vld [vmem:[%s13571_s5 + $0x8] sm:$0xf]  ;;  %v9383_v30 = vld [vmem:[%s13571_s5 + $0x1c] sm:$0xf0]  ;;  %v9401_v42 = vld [vmem:[%s13571_s5 + $0xac] sm:$0xf0] }
 0xa44   : > { %v7578_v23 = vpack.c.bf16 %v7475_v19, %v7474_v4  ;;  %v7576_v34 = vpack.c.bf16 %v7471_v45, %v7470_v16  ;;  %v7925_v61 = vpop.f32.mrf.mxu0  ;;  %v9101_v51 = vor.u32 %v9383_v30, %v9100_v62  ;;  %v9173_v54 = vor.u32 %v9401_v42, %v9172_v21  ;;  %v9410_v19 = vld [vmem:[%s13571_s5 + $0xfc] sm:$0xf]  ;;  %v9222_v45 = vld [vmem:[%s13571_s5 + $0x110] sm:$0xf0] }
 0xa45   : > { %v7186_v5 = vrot.slane %v7090_v13, 1 }
 0xa47   : > { %v7190_v41 = vsel %vm7189_vm4, %v7185_v26, %v7186_v5  ;;  %v7285_v9 = vsel %vm7189_vm4, %v7186_v5, %v14068_v32 }
 0xa48   : > { %v7380_v55 = vmax.f32 %v7089_v1, %v7190_v41  ;;  %v7381_v56 = vmax.f32 %v7090_v13, %v7285_v9  ;;  %v9125_v1 = vor.u32 %v9389_v18, %v9124_v28  ;;  %v9225_v13 = vor.u32 %v9410_v19, %v9222_v45  ;;  %v9196_v41 = vld [vmem:[%s13571_s5 + $0xc8] sm:$0xf]  ;;  %v9419_v28 = vld [vmem:[%s13571_s5 + $0x13c] sm:$0xf0] }
 0xa49   : > { %v9431_v19 = vld [vmem:[%s13571_s5 + $0x19c] sm:$0xf0] }
 0xa4a   : > { %v7476_v14 = vmax.f32 %v7380_v55, %v14069_v44  ;;  %v7477_v24 = vmax.f32 %v7381_v56, %v14070_v7  ;;  %v7472_v35 = vmax.f32 %v13137_v48, %v7380_v55  ;;  %v7473_v58 = vmax.f32 %v13159_v52, %v7381_v56  ;;  %v7861_v53 = vpop.f32.mrf.mxu3  ;;  %v9416_v55 = vld [vmem:[%s13571_s5 + $0x12c] sm:$0xf]  ;;  %v9246_v56 = vld [vmem:[%s13571_s5 + $0x140] sm:$0xf0] }
 0xa4b   : > { %v13211_v11 = vadd.f32 %v13135_v38, %v7861_v53  ;;  %v9249_v30 = vor.u32 %v9416_v55, %v9246_v56  ;;  %v9108_v56 = vld [vmem:[%s13571_s5 + $0x10] sm:$0xf] }
 0xa4c   : > { %v7579_v39 = vpack.c.bf16 %v7477_v24, %v7476_v14  ;;  %v7577_v25 = vpack.c.bf16 %v7473_v58, %v7472_v35  ;;  %v7928_v48 = vpop.f32.mrf.mxu0  ;;  %v9220_v24 = vld [vmem:[%s13571_s5 + $0xf8] sm:$0xf]  ;;  %v9413_v35 = vld [vmem:[%s13571_s5 + $0x10c] sm:$0xf0] }
 0xa4e   : > { %8120 = vmatpush.bf16.msrb.mxu0 %v7579_v39  ;;  %v9422_v39 = vld [vmem:[%s13571_s5 + $0x15c] sm:$0xf] }
 0xa4f   : > { %7966 = vmatmul.bf16.vlgmr.msrb.gmra.mxu3 %v9101_v51  ;;  %8030 = vmatmul.bf16.gmra.mxu0 %v9153_v60  ;;  %v9221_v51 = vor.u32 %v9413_v35, %v9220_v24 }
 0xa52   : > { %8121 = vmatpush.bf16.msrb.mxu0 %v7578_v23  ;;  %v7864_v52 = vpop.f32.mrf.mxu3 }
 0xa53   : > { %v13220_v38 = vadd.f32 %v13154_v22, %v7864_v52  ;;  %v9398_v22 = vld [vmem:[%s13571_s5 + $0x9c] sm:$0xf] }
 0xa54   : > { %v7930_v15 = vpop.f32.mrf.mxu0  ;;  %v9177_v6 = vor.u32 %v9398_v22, %v9174_v46  ;;  %v9428_v22 = vld [vmem:[%s13571_s5 + $0x18c] sm:$0xf]  ;;  %v9294_v46 = vld [vmem:[%s13571_s5 + $0x1a0] sm:$0xf0] }
 0xa56   : > { %8122 = vmatpush.bf16.msrb.mxu0 %v7577_v25  ;;  %v9270_v25 = vld [vmem:[%s13571_s5 + $0x170] sm:$0xf0] }
 0xa57   : > { %v9273_v33 = vor.u32 %v9422_v39, %v9270_v25 }
 0xa5a   : > { %8123 = vmatpush.bf16.msrb.mxu0 %v7576_v34  ;;  %v7866_v10 = vpop.f32.mrf.mxu3 }
 0xa5b   : > { %v13229_v16 = vadd.f32 %v13169_v27, %v7866_v10  ;;  %v9148_v27 = vld [vmem:[%s13571_s5 + $0x68] sm:$0xf] }
 0xa5c   : > { %v7933_v31 = vpop.f32.mrf.mxu0 }
 0xa5e   : > { %8124 = vmatpush.bf16.msrb.mxu0 %v13164_v36 }
 0xa5f   : > { %7971 = vmatmul.bf16.gmra.mxu3 %v9125_v1  ;;  %8035 = vmatmul.bf16.gmra.mxu0 %v9177_v6  ;;  %v9297_v6 = vor.u32 %v9428_v22, %v9294_v46  ;;  %v9182_v22 = vld [vmem:[%s13571_s5 + $0xb8] sm:$0xf0] }
 0xa62   : > { %8125 = vmatpush.bf16.msrb.mxu0 %v13130_v3  ;;  %v7869_v26 = vpop.f32.mrf.mxu3  ;;  %v9149_v3 = vor.u32 %v9395_v0, %v9148_v27  ;;  %v9268_v0 = vld [vmem:[%s13571_s5 + $0x158] sm:$0xf] }
 0xa63   : > { %v13239_v50 = vadd.f32 %v7923_v29, %v7869_v26 }
 0xa64   : > { %v7935_v36 = vpop.f32.mrf.mxu0 }
 0xa66   : > { %8126 = vmatpush.bf16.msrb.mxu0 %v13094_v59  ;;  %v9198_v59 = vld [vmem:[%s13571_s5 + $0xe0] sm:$0xf0] }
 0xa67   : > { %v9201_v43 = vor.u32 %v9404_v12, %v9198_v59 }
 0xa6a   : > { %8127 = vmatpush.bf16.msrb.mxu0 %v13056_v37  ;;  %v7871_v47 = vpop.f32.mrf.mxu3 }
 0xa6b   : > { %v13249_v57 = vadd.f32 %v7925_v61, %v7871_v47  ;;  %v9197_v61 = vor.u32 %v9407_v49, %v9196_v41  ;;  %v9425_v47 = vld [vmem:[%s13571_s5 + $0x16c] sm:$0xf0] }
 0xa6c   : > { %v7938_v29 = vpop.f32.mrf.mxu0  ;;  %v9269_v59 = vor.u32 %v9425_v47, %v9268_v0  ;;  %v9396_v0 = vld [vmem:[%s13571_s5 + $0x84] sm:$0xf0] }
 0xa6f   : > { %7976 = vmatmul.bf16.gmra.mxu3 %v9149_v3  ;;  %8040 = vmatmul.bf16.gmra.mxu0 %v9201_v43  ;;  %v9110_v43 = vld [vmem:[%s13571_s5 + $0x28] sm:$0xf0] }
 0xa72   : > { %v7874_v20 = vpop.f32.mrf.mxu3 }
 0xa73   : > { %v13257_v8 = vadd.f32 %v7928_v48, %v7874_v20 }
 0xa74   : > { %v7940_v37 = vpop.f32.mrf.mxu0 }
 0xa7a   : > { %v7876_v2 = vpop.f32.mrf.mxu3 }
 0xa7b   : > { %v13265_v4 = vadd.f32 %v7930_v15, %v7876_v2  ;;  %v9244_v15 = vld [vmem:[%s13571_s5 + $0x128] sm:$0xf] }
 0xa7c   : > { %v7943_v40 = vpop.f32.mrf.mxu0  ;;  %v9245_v1 = vor.u32 %v9419_v28, %v9244_v15 }
 0xa7f   : > { %7981 = vmatmul.bf16.gmra.mxu3 %v9173_v54  ;;  %8045 = vmatmul.bf16.gmra.mxu0 %v9225_v13  ;;  %v9292_v54 = vld [vmem:[%s13571_s5 + $0x188] sm:$0xf] }
 0xa80   : > { %v9293_v13 = vor.u32 %v9431_v19, %v9292_v54 }
 0xa82   : > { %v7879_v23 = vpop.f32.mrf.mxu3 }
 0xa83   : > { %v13273_v34 = vadd.f32 %v7933_v31, %v7879_v23  ;;  %v9387_v23 = vld [vmem:[%s13571_s5 + $0x44] sm:$0xf] }
 0xa84   : > { %v7945_v5 = vpop.f32.mrf.mxu0 }
 0xa8a   : > { %v7881_v32 = vpop.f32.mrf.mxu3 }
 0xa8b   : > { %v13281_v9 = vadd.f32 %v7935_v36, %v7881_v32 }
 0xa8c   : > { %v7948_v62 = vpop.f32.mrf.mxu0 }
 0xa8f   : > { %7986 = vmatmul.bf16.gmra.mxu3 %v9197_v61  ;;  %8050 = vmatmul.bf16.gmra.mxu0 %v9249_v30 }
 0xa92   : > { %v7884_v44 = vpop.f32.mrf.mxu3 }
 0xa93   : > { %v13289_v14 = vadd.f32 %v7938_v29, %v7884_v44  ;;  %v9381_v29 = vld [vmem:[%s13571_s5 + $0x14] sm:$0xf] }
 0xa94   : > { %v7950_v7 = vpop.f32.mrf.mxu0 }
 0xa9a   : > { %v7886_v58 = vpop.f32.mrf.mxu3 }
 0xa9b   : > { %v13297_v53 = vadd.f32 %v7940_v37, %v7886_v58  ;;  %v9113_v37 = vor.u32 %v9381_v29, %v9110_v43  ;;  %v9158_v58 = vld [vmem:[%s13571_s5 + $0x88] sm:$0xf0] }
 0xa9c   : > { %v7953_v63 = vpop.f32.mrf.mxu0 }
 0xa9f   : > { %7991 = vmatmul.bf16.gmra.mxu3 %v9221_v51  ;;  %8055 = vmatmul.bf16.gmra.mxu0 %v9273_v33 }
 0xaa2   : > { %v7889_v48 = vpop.f32.mrf.mxu3 }
 0xaa3   : > { %v13305_v60 = vadd.f32 %v7943_v40, %v7889_v48  ;;  %v9390_v48 = vld [vmem:[%s13571_s5 + $0x54] sm:$0xf0] }
 0xaa4   : > { %v7955_v52 = vpop.f32.mrf.mxu0 }
 0xaaa   : > { %v7891_v18 = vpop.f32.mrf.mxu3 }
 0xaab   : > { %v13313_v10 = vadd.f32 %v7945_v5, %v7891_v18  ;;  %v9134_v5 = vld [vmem:[%s13571_s5 + $0x58] sm:$0xf0] }
 0xaac   : > { %v8021_v31 = vpop.f32.mrf.mxu0  ;;  %v9137_v41 = vor.u32 %v9387_v23, %v9134_v5 }
 0xaaf   : > { %7996 = vmatmul.bf16.gmra.mxu3 %v9245_v1  ;;  %8060 = vmatmul.bf16.gmra.mxu0 %v9297_v6 }
 0xab2   : > { %v7894_v26 = vpop.f32.mrf.mxu3 }
 0xab3   : > { %v13321_v36 = vadd.f32 %v7948_v62, %v7894_v26  ;;  %v9384_v62 = vld [vmem:[%s13571_s5 + $0x24] sm:$0xf0] }
 0xab4   : > { %v8023_v27 = vpop.f32.mrf.mxu0  ;;  %v9109_v24 = vor.u32 %v9384_v62, %v9108_v56 }
 0xaba   : > { %v7896_v3 = vpop.f32.mrf.mxu3 }
 0xabb   : > { %v13329_v12 = vadd.f32 %v7950_v7, %v7896_v3 }
 0xabc   : > { %v8026_v20 = vpop.f32.mrf.mxu0 }
 0xabf   : > { %8001 = vmatmul.bf16.gmra.mxu3 %v9269_v59  ;;  %8128 = vmatmul.bf16.vlgmr.msrb.gmra.mxu0 %v9113_v37 }
 0xac2   : > { %v7899_v21 = vpop.f32.mrf.mxu3 }
 0xac3   : > { %v13337_v42 = vadd.f32 %v7953_v63, %v7899_v21 }
 0xac4   : > { %v8028_v2 = vpop.f32.mrf.mxu0 }
 0xaca   : > { %v7901_v45 = vpop.f32.mrf.mxu3 }
 0xacb   : > { %v13345_v40 = vadd.f32 %v7955_v52, %v7901_v45  ;;  %v9402_v45 = vld [vmem:[%s13571_s5 + $0xb4] sm:$0xf0] }
 0xacc   : > { %v8031_v49 = vpop.f32.mrf.mxu0 }
 0xacf   : > { %8006 = vmatmul.bf16.gmra.mxu3 %v9293_v13  ;;  %8133 = vmatmul.bf16.gmra.mxu0 %v9137_v41 }
 0xad2   : > { %v7967_v32 = vpop.f32.mrf.mxu3 }
 0xad3   : > { %v7968_v61 = vadd.f32 %v7967_v32, %v13192_v17  ;;  %v9393_v17 = vld [vmem:[%s13571_s5 + $0x74] sm:$0xf]  ;;  %v9230_v32 = vld [vmem:[%s13571_s5 + $0x118] sm:$0xf0] }
 0xad4   : > { %v8033_v30 = vpop.f32.mrf.mxu0  ;;  %v9161_v51 = vor.u32 %v9393_v17, %v9158_v58 }
 0xad5   : > { %v13354_v55 = vadd.f32 %v8021_v31, %v7968_v61 }
 0xada   : > { %v7969_v44 = vpop.f32.mrf.mxu3 }
 0xadb   : > { %v7970_v7 = vadd.f32 %v7969_v44, %v13211_v11  ;;  %v9132_v11 = vld [vmem:[%s13571_s5 + $0x40] sm:$0xf] }
 0xadc   : > { %v8036_v39 = vpop.f32.mrf.mxu0  ;;  %v9133_v18 = vor.u32 %v9390_v48, %v9132_v11 }
 0xadd   : > { %v13363_v35 = vadd.f32 %v8023_v27, %v7970_v7  ;;  %v9408_v7 = vld [vmem:[%s13571_s5 + $0xe4] sm:$0xf0] }
 0xadf   : > { %8074 = vmatmul.bf16.vlgmr.msra.gmra.mxu3 %v9109_v24  ;;  %8138 = vmatmul.bf16.gmra.mxu0 %v9161_v51 }
 0xae2   : > { %v7972_v25 = vpop.f32.mrf.mxu3 }
 0xae3   : > { %v7973_v63 = vadd.f32 %v7972_v25, %v13220_v38  ;;  %v9399_v38 = vld [vmem:[%s13571_s5 + $0xa4] sm:$0xf]  ;;  %v9254_v25 = vld [vmem:[%s13571_s5 + $0x148] sm:$0xf0] }
 0xae4   : > { %v8038_v52 = vpop.f32.mrf.mxu0  ;;  %v9185_v46 = vor.u32 %v9399_v38, %v9182_v22 }
 0xae5   : > { %v13372_v33 = vadd.f32 %v8026_v20, %v7973_v63  ;;  %v9206_v20 = vld [vmem:[%s13571_s5 + $0xe8] sm:$0xf0] }
 0xaea   : > { %v7974_v15 = vpop.f32.mrf.mxu3 }
 0xaeb   : > { %v7975_v28 = vadd.f32 %v7974_v15, %v13229_v16  ;;  %v9156_v16 = vld [vmem:[%s13571_s5 + $0x70] sm:$0xf] }
 0xaec   : > { %v8041_v31 = vpop.f32.mrf.mxu0  ;;  %v9157_v29 = vor.u32 %v9396_v0, %v9156_v16 }
 0xaed   : > { %v13381_v1 = vadd.f32 %v8028_v2, %v7975_v28  ;;  %v9414_v28 = vld [vmem:[%s13571_s5 + $0x114] sm:$0xf0] }
 0xaef   : > { %8079 = vmatmul.bf16.gmra.mxu3 %v9133_v18  ;;  %8143 = vmatmul.bf16.gmra.mxu0 %v9185_v46 }
 0xaf2   : > { %v7977_v6 = vpop.f32.mrf.mxu3 }
 0xaf3   : > { %v7978_v26 = vadd.f32 %v7977_v6, %v13239_v50  ;;  %v9405_v50 = vld [vmem:[%s13571_s5 + $0xd4] sm:$0xf]  ;;  %v9278_v6 = vld [vmem:[%s13571_s5 + $0x178] sm:$0xf0] }
 0xaf4   : > { %v8043_v47 = vpop.f32.mrf.mxu0  ;;  %v9209_v37 = vor.u32 %v9405_v50, %v9206_v20 }
 0xaf5   : > { %v13390_v27 = vadd.f32 %v8031_v49, %v7978_v26 }
 0xafa   : > { %v7979_v3 = vpop.f32.mrf.mxu3 }
 0xafb   : > { %v7980_v59 = vadd.f32 %v7979_v3, %v13249_v57  ;;  %v9180_v57 = vld [vmem:[%s13571_s5 + $0xa0] sm:$0xf] }
 0xafc   : > { %v8046_v21 = vpop.f32.mrf.mxu0  ;;  %v9181_v41 = vor.u32 %v9402_v45, %v9180_v57 }
 0xafd   : > { %v13399_v43 = vadd.f32 %v8033_v30, %v7980_v59  ;;  %v9420_v59 = vld [vmem:[%s13571_s5 + $0x144] sm:$0xf0] }
 0xaff   : > { %8084 = vmatmul.bf16.gmra.mxu3 %v9157_v29  ;;  %8148 = vmatmul.bf16.gmra.mxu0 %v9209_v37 }
 0xb02   : > { %v7982_v2 = vpop.f32.mrf.mxu3 }
 0xb03   : > { %v7983_v54 = vadd.f32 %v7982_v2, %v13257_v8  ;;  %v9411_v8 = vld [vmem:[%s13571_s5 + $0x104] sm:$0xf]  ;;  %v9302_v2 = vld [vmem:[%s13571_s5 + $0x1a8] sm:$0xf0] }
 0xb04   : > { %v8048_v13 = vpop.f32.mrf.mxu0  ;;  %v9233_v61 = vor.u32 %v9411_v8, %v9230_v32 }
 0xb05   : > { %v13408_v19 = vadd.f32 %v8036_v39, %v7983_v54 }
 0xb0a   : > { %v7984_v23 = vpop.f32.mrf.mxu3 }
 0xb0b   : > { %v7985_v5 = vadd.f32 %v7984_v23, %v13265_v4  ;;  %v9204_v4 = vld [vmem:[%s13571_s5 + $0xd0] sm:$0xf] }
 0xb0c   : > { %v8051_v56 = vpop.f32.mrf.mxu0  ;;  %v9205_v51 = vor.u32 %v9408_v7, %v9204_v4  ;;  %v9300_v7 = vld [vmem:[%s13571_s5 + $0x190] sm:$0xf] }
 0xb0d   : > { %v13417_v49 = vadd.f32 %v8038_v52, %v7985_v5  ;;  %v9426_v5 = vld [vmem:[%s13571_s5 + $0x174] sm:$0xf0] }
 0xb0f   : > { %8089 = vmatmul.bf16.gmra.mxu3 %v9181_v41  ;;  %8153 = vmatmul.bf16.gmra.mxu0 %v9233_v61 }
 0xb12   : > { %v7987_v62 = vpop.f32.mrf.mxu3 }
 0xb13   : > { %v7988_v30 = vadd.f32 %v7987_v62, %v13273_v34  ;;  %v9417_v34 = vld [vmem:[%s13571_s5 + $0x134] sm:$0xf] }
 0xb14   : > { %v8053_v24 = vpop.f32.mrf.mxu0  ;;  %v9257_v63 = vor.u32 %v9417_v34, %v9254_v25 }
 0xb15   : > { %v13426_v44 = vadd.f32 %v8041_v31, %v7988_v30 }
 0xb1a   : > { %v7989_v17 = vpop.f32.mrf.mxu3 }
 0xb1b   : > { %v7990_v58 = vadd.f32 %v7989_v17, %v13281_v9  ;;  %v9228_v9 = vld [vmem:[%s13571_s5 + $0x100] sm:$0xf] }
 0xb1c   : > { %v8056_v11 = vpop.f32.mrf.mxu0  ;;  %v9229_v46 = vor.u32 %v9414_v28, %v9228_v9 }
 0xb1d   : > { %v13435_v39 = vadd.f32 %v8043_v47, %v7990_v58 }
 0xb1f   : > { %8094 = vmatmul.bf16.gmra.mxu3 %v9205_v51  ;;  %8158 = vmatmul.bf16.gmra.mxu0 %v9257_v63 }
 0xb22   : > { %v7992_v48 = vpop.f32.mrf.mxu3 }
 0xb23   : > { %v7993_v52 = vadd.f32 %v7992_v48, %v13289_v14  ;;  %v9423_v14 = vld [vmem:[%s13571_s5 + $0x164] sm:$0xf] }
 0xb24   : > { %v8058_v18 = vpop.f32.mrf.mxu0  ;;  %v9281_v26 = vor.u32 %v9423_v14, %v9278_v6 }
 0xb25   : > { %v13444_v15 = vadd.f32 %v8046_v21, %v7993_v52 }
 0xb2a   : > { %v7994_v38 = vpop.f32.mrf.mxu3 }
 0xb2b   : > { %v7995_v22 = vadd.f32 %v7994_v38, %v13297_v53  ;;  %v9252_v53 = vld [vmem:[%s13571_s5 + $0x130] sm:$0xf] }
 0xb2c   : > { %v8061_v16 = vpop.f32.mrf.mxu0  ;;  %v9253_v37 = vor.u32 %v9420_v59, %v9252_v53 }
 0xb2d   : > { %v13453_v31 = vadd.f32 %v8048_v13, %v7995_v22 }
 0xb2f   : > { %8099 = vmatmul.bf16.gmra.mxu3 %v9229_v46  ;;  %8163 = vmatmul.bf16.gmra.mxu0 %v9281_v26 }
 0xb32   : > { %v7997_v0 = vpop.f32.mrf.mxu3 }
 0xb33   : > { %v7998_v47 = vadd.f32 %v7997_v0, %v13305_v60  ;;  %v9429_v60 = vld [vmem:[%s13571_s5 + $0x194] sm:$0xf] }
 0xb34   : > { %v8063_v29 = vpop.f32.mrf.mxu0  ;;  %v9305_v54 = vor.u32 %v9429_v60, %v9302_v2 }
 0xb35   : > { %v13462_v3 = vadd.f32 %v8051_v56, %v7998_v47 }
 0xb3a   : > { %v7999_v50 = vpop.f32.mrf.mxu3 }
 0xb3b   : > { %v8000_v20 = vadd.f32 %v7999_v50, %v13313_v10  ;;  %v9276_v10 = vld [vmem:[%s13571_s5 + $0x160] sm:$0xf] }
 0xb3c   : > { %v8129_v45 = vpop.f32.mrf.mxu0  ;;  %v9277_v32 = vor.u32 %v9426_v5, %v9276_v10 }
 0xb3d   : > { %v13471_v21 = vadd.f32 %v8053_v24, %v8000_v20 }
 0xb3f   : > { %8104 = vmatmul.bf16.gmra.mxu3 %v9253_v37  ;;  %8168 = vmatmul.bf16.gmra.mxu0 %v9305_v54 }
 0xb42   : > { %v8002_v57 = vpop.f32.mrf.mxu3 }
 0xb43   : > { %v8003_v13 = vadd.f32 %v8002_v57, %v13321_v36 }
 0xb44   : > { %v8131_v61 = vpop.f32.mrf.mxu0 }
 0xb45   : > { %v13480_v23 = vadd.f32 %v8056_v11, %v8003_v13 }
 0xb4a   : > { %v8004_v41 = vpop.f32.mrf.mxu3 }
 0xb4b   : > { %v8005_v8 = vadd.f32 %v8004_v41, %v13329_v12  ;;  %v9432_v12 = vld [vmem:[%s13571_s5 + $0x1a4] sm:$0xf0] }
 0xb4c   : > { %v8134_v4 = vpop.f32.mrf.mxu0  ;;  %v9301_v58 = vor.u32 %v9432_v12, %v9300_v7 }
 0xb4d   : > { %v13489_v56 = vadd.f32 %v8058_v18, %v8005_v8 }
 0xb4f   : > { %8109 = vmatmul.bf16.gmra.mxu3 %v9277_v32 }
 0xb52   : > { %v8007_v36 = vpop.f32.mrf.mxu3 }
 0xb53   : > { %v8008_v62 = vadd.f32 %v8007_v36, %v13337_v42 }
 0xb54   : > { %v8136_v34 = vpop.f32.mrf.mxu0 }
 0xb55   : > { %v13492_v30 = vadd.f32 %v8061_v16, %v8008_v62 }
 0xb5a   : > { %v8009_v24 = vpop.f32.mrf.mxu3 }
 0xb5b   : > { %v8010_v17 = vadd.f32 %v8009_v24, %v13345_v40 }
 0xb5c   : > { %v8139_v48 = vpop.f32.mrf.mxu0 }
 0xb5d   : > { %v13501_v51 = vadd.f32 %v8063_v29, %v8010_v17 }
 0xb5f   : > { %8114 = vmatmul.bf16.gmra.mxu3 %v9301_v58 }
 0xb62   : > { %v8075_v42 = vpop.f32.mrf.mxu3 }
 0xb63   : > { %v8076_v25 = vadd.f32 %v8075_v42, %v13354_v55 }
 0xb64   : > { %v8141_v38 = vpop.f32.mrf.mxu0 }
 0xb65   : > { %v8130_v63 = vadd.f32 %v8129_v45, %v8076_v25 }
 0xb67   : > { %v8174_v40 = vpack.c.bf16 %v8130_v63, %v8130_v63 }
 0xb69   : > { %8193 = vst.msk [vmem:[%s13508_s28] sm:$0xf] %vm8192_vm5, %v8174_v40 }
 0xb6a   : > { %v8077_v11 = vpop.f32.mrf.mxu3 }
 0xb6b   : > { %v8078_v52 = vadd.f32 %v8077_v11, %v13363_v35 }
 0xb6c   : > { %v8144_v16 = vpop.f32.mrf.mxu0 }
 0xb6d   : > { %v8132_v9 = vadd.f32 %v8131_v61, %v8078_v52 }
 0xb6f   : > { %v8175_v55 = vpack.c.bf16 %v8132_v9, %v8132_v9 }
 0xb71   : > { %8194 = vst.msk [vmem:[%s13508_s28 + $0x4] sm:$0xf] %vm8192_vm5, %v8175_v55 }
 0xb72   : > { %v8080_v28 = vpop.f32.mrf.mxu3 }
 0xb73   : > { %v8081_v18 = vadd.f32 %v8080_v28, %v13372_v33 }
 0xb74   : > { %v8146_v59 = vpop.f32.mrf.mxu0 }
 0xb75   : > { %v8135_v22 = vadd.f32 %v8134_v4, %v8081_v18 }
 0xb77   : > { %v8176_v46 = vpack.c.bf16 %v8135_v22, %v8135_v22 }
 0xb79   : > { %8195 = vst.msk [vmem:[%s13508_s28 + $0x8] sm:$0xf] %vm8192_vm5, %v8176_v46 }
 0xb7a   : > { %v8082_v14 = vpop.f32.mrf.mxu3 }
 0xb7b   : > { %v8083_v6 = vadd.f32 %v8082_v14, %v13381_v1 }
 0xb7c   : > { %v8149_v60 = vpop.f32.mrf.mxu0 }
 0xb7d   : > { %v8137_v26 = vadd.f32 %v8136_v34, %v8083_v6 }
 0xb7f   : > { %v8177_v35 = vpack.c.bf16 %v8137_v26, %v8137_v26 }
 0xb81   : > { %8196 = vst.msk [vmem:[%s13508_s28 + $0xc] sm:$0xf] %vm8192_vm5, %v8177_v35 }
 0xb82   : > { %v8085_v0 = vpop.f32.mrf.mxu3 }
 0xb83   : > { %v8086_v47 = vadd.f32 %v8085_v0, %v13390_v27 }
 0xb84   : > { %v8151_v13 = vpop.f32.mrf.mxu0 }
 0xb85   : > { %v8140_v33 = vadd.f32 %v8139_v48, %v8086_v47 }
 0xb87   : > { %v8178_v53 = vpack.c.bf16 %v8140_v33, %v8140_v33 }
 0xb89   : > { %8197 = vst.msk [vmem:[%s13508_s28 + $0x10] sm:$0xf] %vm8192_vm5, %v8178_v53 }
 0xb8a   : > { %v8087_v29 = vpop.f32.mrf.mxu3 }
 0xb8b   : > { %v8088_v50 = vadd.f32 %v8087_v29, %v13399_v43 }
 0xb8c   : > { %v8154_v32 = vpop.f32.mrf.mxu0 }
 0xb8d   : > { %v8142_v20 = vadd.f32 %v8141_v38, %v8088_v50 }
 0xb8f   : > { %v8179_v1 = vpack.c.bf16 %v8142_v20, %v8142_v20 }
 0xb91   : > { %8198 = vst.msk [vmem:[%s13508_s28 + $0x14] sm:$0xf] %vm8192_vm5, %v8179_v1 }
 0xb92   : > { %v8090_v37 = vpop.f32.mrf.mxu3 }
 0xb93   : > { %v8091_v2 = vadd.f32 %v8090_v37, %v13408_v19 }
 0xb94   : > { %v8156_v4 = vpop.f32.mrf.mxu0 }
 0xb95   : > { %v8145_v54 = vadd.f32 %v8144_v16, %v8091_v2 }
 0xb97   : > { %v8180_v27 = vpack.c.bf16 %v8145_v54, %v8145_v54 }
 0xb99   : > { %8199 = vst.msk [vmem:[%s13508_s28 + $0x18] sm:$0xf] %vm8192_vm5, %v8180_v27 }
 0xb9a   : > { %v8092_v57 = vpop.f32.mrf.mxu3 }
 0xb9b   : > { %v8093_v45 = vadd.f32 %v8092_v57, %v13417_v49 }
 0xb9c   : > { %v8159_v58 = vpop.f32.mrf.mxu0 }
 0xb9d   : > { %v8147_v10 = vadd.f32 %v8146_v59, %v8093_v45 }
 0xb9f   : > { %v8181_v43 = vpack.c.bf16 %v8147_v10, %v8147_v10 }
 0xba1   : > { %8200 = vst.msk [vmem:[%s13508_s28 + $0x1c] sm:$0xf] %vm8192_vm5, %v8181_v43 }
 0xba2   : > { %v8095_v5 = vpop.f32.mrf.mxu3 }
 0xba3   : > { %v8096_v41 = vadd.f32 %v8095_v5, %v13426_v44 }
 0xba4   : > { %v8161_v40 = vpop.f32.mrf.mxu0 }
 0xba5   : > { %v8150_v8 = vadd.f32 %v8149_v60, %v8096_v41 }
 0xba7   : > { %v8182_v19 = vpack.c.bf16 %v8150_v8, %v8150_v8 }
 0xba9   : > { %8201 = vst.msk [vmem:[%s13508_s28 + $0x20] sm:$0xf] %vm8192_vm5, %v8182_v19 }
 0xbaa   : > { %v8097_v61 = vpop.f32.mrf.mxu3 }
 0xbab   : > { %v8098_v36 = vadd.f32 %v8097_v61, %v13435_v39 }
 0xbac   : > { %v8164_v55 = vpop.f32.mrf.mxu0 }
 0xbad   : > { %v8152_v49 = vadd.f32 %v8151_v13, %v8098_v36 }
 0xbaf   : > { %v8183_v62 = vpack.c.bf16 %v8152_v49, %v8152_v49 }
 0xbb1   : > { %8202 = vst.msk [vmem:[%s13508_s28 + $0x24] sm:$0xf] %vm8192_vm5, %v8183_v62 }
 0xbb2   : > { %v8100_v7 = vpop.f32.mrf.mxu3 }
 0xbb3   : > { %v8101_v12 = vadd.f32 %v8100_v7, %v13444_v15 }
 0xbb4   : > { %v8166_v22 = vpop.f32.mrf.mxu0 }
 0xbb5   : > { %v8155_v24 = vadd.f32 %v8154_v32, %v8101_v12 }
 0xbb7   : > { %v8184_v44 = vpack.c.bf16 %v8155_v24, %v8155_v24 }
 0xbb9   : > { %8203 = vst.msk [vmem:[%s13508_s28 + $0x28] sm:$0xf] %vm8192_vm5, %v8184_v44 }
 0xbba   : > { %v8102_v17 = vpop.f32.mrf.mxu3 }
 0xbbb   : > { %v8103_v34 = vadd.f32 %v8102_v17, %v13453_v31 }
 0xbbc   : > { %v8169_v16 = vpop.f32.mrf.mxu0 }
 0xbbd   : > { %v8157_v42 = vadd.f32 %v8156_v4, %v8103_v34 }
 0xbbf   : > { %v8185_v39 = vpack.c.bf16 %v8157_v42, %v8157_v42 }
 0xbc1   : > { %8204 = vst.msk [vmem:[%s13508_s28 + $0x2c] sm:$0xf] %vm8192_vm5, %v8185_v39 }
 0xbc2   : > { %v8105_v25 = vpop.f32.mrf.mxu3 }
 0xbc3   : > { %v8106_v63 = vadd.f32 %v8105_v25, %v13462_v3 }
 0xbc4   : > { %v8171_v53 = vpop.f32.mrf.mxu0 }
 0xbc5   : > { %v8160_v11 = vadd.f32 %v8159_v58, %v8106_v63 }
 0xbc7   : > { %v8186_v15 = vpack.c.bf16 %v8160_v11, %v8160_v11 }
 0xbc9   : > { %8205 = vst.msk [vmem:[%s13508_s28 + $0x30] sm:$0xf] %vm8192_vm5, %v8186_v15 }
 0xbca   : > { %v8107_v48 = vpop.f32.mrf.mxu3 }
 0xbcb   : > { %v8108_v52 = vadd.f32 %v8107_v48, %v13471_v21 }
 0xbcd   : > { %v8162_v9 = vadd.f32 %v8161_v40, %v8108_v52 }
 0xbcf   : > { %v8187_v31 = vpack.c.bf16 %v8162_v9, %v8162_v9 }
 0xbd1   : > { %8206 = vst.msk [vmem:[%s13508_s28 + $0x34] sm:$0xf] %vm8192_vm5, %v8187_v31 }
 0xbd2   : > { %v8110_v28 = vpop.f32.mrf.mxu3 }
 0xbd3   : > { %v8111_v18 = vadd.f32 %v8110_v28, %v13480_v23 }
 0xbd5   : > { %v8165_v3 = vadd.f32 %v8164_v55, %v8111_v18 }
 0xbd7   : > { %v8188_v38 = vpack.c.bf16 %v8165_v3, %v8165_v3 }
 0xbd9   : > { %8207 = vst.msk [vmem:[%s13508_s28 + $0x38] sm:$0xf] %vm8192_vm5, %v8188_v38 }
 0xbda   : > { %v8112_v46 = vpop.f32.mrf.mxu3 }
 0xbdb   : > { %v8113_v14 = vadd.f32 %v8112_v46, %v13489_v56 }
 0xbdd   : > { %v8167_v6 = vadd.f32 %v8166_v22, %v8113_v14 }
 0xbdf   : > { %v8189_v21 = vpack.c.bf16 %v8167_v6, %v8167_v6 }
 0xbe1   : > { %8208 = vst.msk [vmem:[%s13508_s28 + $0x3c] sm:$0xf] %vm8192_vm5, %v8189_v21 }
 0xbe2   : > { %v8115_v26 = vpop.f32.mrf.mxu3 }
 0xbe3   : > { %v8116_v35 = vadd.f32 %v8115_v26, %v13492_v30 }
 0xbe5   : > { %v8170_v0 = vadd.f32 %v8169_v16, %v8116_v35 }
 0xbe7   : > { %v8190_v47 = vpack.c.bf16 %v8170_v0, %v8170_v0 }
 0xbe9   : > { %8209 = vst.msk [vmem:[%s13508_s28 + $0x40] sm:$0xf] %vm8192_vm5, %v8190_v47 }
 0xbea   : > { %v8117_v23 = vpop.f32.mrf.mxu3 }
 0xbeb   : > { %v8118_v33 = vadd.f32 %v8117_v23, %v13501_v51 }
 0xbed   : > { %v8172_v59 = vadd.f32 %v8171_v53, %v8118_v33 }
 0xbef   : > { %v8191_v29 = vpack.c.bf16 %v8172_v59, %v8172_v59 }
 0xbf1   : > { %8210 = vst.msk [vmem:[%s13508_s28 + $0x44] sm:$0xf] %vm8192_vm5, %v8191_v29 }
 0xbf2 PF: > { %s19_s21 = sadd.s32 1, %s9638_s21  }
 0xbf3   : > { %p16_p7 = scmp.ge.s32.totalorder %s19_s21, 4  }
 0xbf5   :  { %18 = sbr.rel (!%p16_p7) target bundleno = 3 (0x3), region = 99 }
 0xbfa   :  { %8232 = vsyncpa [#allocation4], 1 }
 0xbfb   :  { %8234 = vsyncpa [#allocation4 + $0x1], 1 }
 0xbfc   :  { %8235 = vsyncpa [#allocation6], 1 }
 0xbfd   :  { %8236 = vsyncpa [#allocation9], 1 }

// kernel: net_forward.3
= control target key start
LH: loop header
LB: loop body
LE: loop exit
PB: predicated region body
PF: predicated region fallthrough
CT: control target
= control target key end

     0   :  { %10 = vsyncpa [#allocation3], 0  ;;  %s9228_s0 = inlined_call_operand.vmem [shape: bf16[8,9216], index: 0, kind: input, shape index: {}]   ;;  %s9229_s1 = inlined_call_operand.hbm [shape: bf16[9216,128], index: 1, kind: input, shape index: {}]   ;;  %s9230_s2 = inlined_call_operand.hbm [shape: f32[1,128], index: 2, kind: input, shape index: {}]   ;;  %s9231_s3 = inlined_call_operand.vmem [shape: bf16[128,10], index: 3, kind: input, shape index: {}]   ;;  %s9232_s4 = inlined_call_operand.hbm [shape: f32[1,10], index: 4, kind: input, shape index: {}]   ;;  %s9233_s5 = inlined_call_operand.vmem [shape: f32[8,10], index: 5, kind: output, shape index: {}]  }
   0x1   :  { %11 = vsyncpa [#allocation5], 0  ;;  %s32_s20 = sshll.u32 %s9230_s2, 4  ;;  %s9010_s21 = smov [#allocation4]   ;;  %s33_s20 = int_to_ptr.hbm [resolvable:$true] %s32_s20 }
   0x2   :  { %s34_s22 = sshll.u32 %s9010_s21, 4  ;;  %s18_s25 = sshll.u32 %s9229_s1, 4  ;;  %s35_s22 = int_to_ptr.vmem [resolvable:$true] %s34_s22  ;;  %s19_s25 = int_to_ptr.hbm [resolvable:$true] %s18_s25 }
   0x3   :  { %37 = dma.hbm_to_vmem [thread:$0]  %s33_s20, 16, %s35_s22, [#allocation5]  }
   0x4   :  { %s9011_s26 = smov [#allocation2]   ;;  %s9012_s28 = smov 64  }
   0x5   :  { %s20_s27 = sshll.u32 %s9011_s26, 4  ;;  %s9013_s29 = smov 4   ;;  %s21_s27 = int_to_ptr.vmem [resolvable:$true] %s20_s27 }
   0x6   :  { %26 = dma.hbm_to_vmem [thread:$0]  %s19_s25, 73728, %s21_s27, [#allocation3], %s9012_s28, %s9012_s28, %s9013_s29  }
   0x7   :  { %s45_s2 = sshll.u32 %s9232_s4, 4  ;;  %s9014_s7 = smov [#allocation6]   ;;  %s46_s2 = int_to_ptr.hbm [resolvable:$true] %s45_s2 }
   0x8   :  { %s47_s8 = sshll.u32 %s9014_s7, 4  ;;  %s48_s8 = int_to_ptr.vmem [resolvable:$true] %s47_s8 }
   0x9   :  { %50 = dma.hbm_to_vmem [thread:$0]  %s46_s2, 16, %s48_s8, [#allocation5]  }
   0xa   :  { %9006 = dma.done.wait [#allocation3], 73728  }
   0xb   :  { %9007 = vsyncadd [#allocation3], 4294893568 }
   0xc   :  { %9008 = dma.done.wait [#allocation5], 32  }
   0xd   :  { %9009 = vsyncadd [#allocation5], 4294967264  ;;  %v8346_v0 = vld [vmem:[#allocation2 + $0x38] sm:$0xff]  ;;  %v8345_v4 = vld [vmem:[#allocation2 + $0x30] sm:$0xff]  ;;  %vm5982_vm0 = vcmask 80896  }
   0xe   :  { %v8354_v1 = vld [vmem:[#allocation2 + $0x78] sm:$0xff]  ;;  %4963 = vmatpush.bf16.msra.mxu0 %v8346_v0  ;;  %v8353_v5 = vld [vmem:[#allocation2 + $0x70] sm:$0xff]  ;;  %v8344_v8 = vld [vmem:[#allocation2 + $0x28] sm:$0xff] }
   0xf   :  { %v8362_v2 = vld [vmem:[#allocation2 + $0xb8] sm:$0xff]  ;;  %4976 = vmatpush.bf16.msra.mxu1 %v8354_v1  ;;  %v8361_v6 = vld [vmem:[#allocation2 + $0xb0] sm:$0xff]  ;;  %v8352_v9 = vld [vmem:[#allocation2 + $0x68] sm:$0xff] }
  0x10   :  { %v8370_v3 = vld [vmem:[#allocation2 + $0xf8] sm:$0xff]  ;;  %4989 = vmatpush.bf16.msra.mxu2 %v8362_v2  ;;  %v8369_v7 = vld [vmem:[#allocation2 + $0xf0] sm:$0xff]  ;;  %v8360_v10 = vld [vmem:[#allocation2 + $0xa8] sm:$0xff] }
  0x11   :  { %5002 = vmatpush.bf16.msra.mxu3 %v8370_v3  ;;  %v8368_v11 = vld [vmem:[#allocation2 + $0xe8] sm:$0xff]  ;;  %v8343_v12 = vld [vmem:[#allocation2 + $0x20] sm:$0xff]  ;;  %v8342_v16 = vld [vmem:[#allocation2 + $0x18] sm:$0xff] }
  0x12   :  { %4964 = vmatpush.bf16.msra.mxu0 %v8345_v4  ;;  %v8351_v13 = vld [vmem:[#allocation2 + $0x60] sm:$0xff]  ;;  %v8350_v17 = vld [vmem:[#allocation2 + $0x58] sm:$0xff]  ;;  %v8341_v20 = vld [vmem:[#allocation2 + $0x10] sm:$0xff] }
  0x13   :  { %4977 = vmatpush.bf16.msra.mxu1 %v8353_v5  ;;  %v8359_v14 = vld [vmem:[#allocation2 + $0xa0] sm:$0xff]  ;;  %v8358_v18 = vld [vmem:[#allocation2 + $0x98] sm:$0xff]  ;;  %v8349_v21 = vld [vmem:[#allocation2 + $0x50] sm:$0xff] }
  0x14   :  { %4990 = vmatpush.bf16.msra.mxu2 %v8361_v6  ;;  %v8367_v15 = vld [vmem:[#allocation2 + $0xe0] sm:$0xff]  ;;  %v8366_v19 = vld [vmem:[#allocation2 + $0xd8] sm:$0xff]  ;;  %v8357_v22 = vld [vmem:[#allocation2 + $0x90] sm:$0xff] }
  0x15   :  { %5003 = vmatpush.bf16.msra.mxu3 %v8369_v7  ;;  %v8365_v23 = vld [vmem:[#allocation2 + $0xd0] sm:$0xff]  ;;  %v8340_v24 = vld [vmem:[#allocation2 + $0x8] sm:$0xff]  ;;  %v63_v29 = vld [vmem:[%s9228_s0] sm:$0xff] }
  0x16   :  { %4965 = vmatpush.bf16.msra.mxu0 %v8344_v8  ;;  %v8348_v25 = vld [vmem:[#allocation2 + $0x48] sm:$0xff]  ;;  %v8339_v30 = vld [vmem:[#allocation2] sm:$0xff]  ;;  %v1291_v33 = vunpack.c.l.b16 %v63_v29  ;;  %v1292_v37 = vunpack.c.h.b16 %v63_v29  ;;  %v8378_v38 = vld [vmem:[#allocation2 + $0x138] sm:$0xff] }
  0x17   :  { %4978 = vmatpush.bf16.msra.mxu1 %v8352_v9  ;;  %v8356_v26 = vld [vmem:[#allocation2 + $0x88] sm:$0xff]  ;;  %v8347_v31 = vld [vmem:[#allocation2 + $0x40] sm:$0xff]  ;;  %v8386_v39 = vld [vmem:[#allocation2 + $0x178] sm:$0xff] }
  0x18   :  { %4991 = vmatpush.bf16.msra.mxu2 %v8360_v10  ;;  %v8364_v27 = vld [vmem:[#allocation2 + $0xc8] sm:$0xff]  ;;  %v8355_v34 = vld [vmem:[#allocation2 + $0x80] sm:$0xff]  ;;  %v8394_v40 = vld [vmem:[#allocation2 + $0x1b8] sm:$0xff]  ;;  %v1363_v43 = vpack.c.b16 %v1291_v33, %v1291_v33  ;;  %v1364_v45 = vpack.c.b16 %v1292_v37, %v1292_v37 }
  0x19   :  { %5004 = vmatpush.bf16.msra.mxu3 %v8368_v11  ;;  %v64_v28 = vld [vmem:[%s9228_s0 + $0x8] sm:$0xff]  ;;  %v8363_v35 = vld [vmem:[#allocation2 + $0xc0] sm:$0xff]  ;;  %v8402_v41 = vld [vmem:[#allocation2 + $0x1f8] sm:$0xff] }
  0x1a   :  { %4966 = vmatpush.bf16.msra.mxu0 %v8343_v12  ;;  %v1293_v32 = vunpack.c.l.b16 %v64_v28  ;;  %v1294_v36 = vunpack.c.h.b16 %v64_v28  ;;  %v8377_v46 = vld [vmem:[#allocation2 + $0x130] sm:$0xff]  ;;  %v8376_v50 = vld [vmem:[#allocation2 + $0x128] sm:$0xff]  ;;  %v8375_v54 = vld [vmem:[#allocation2 + $0x120] sm:$0xff] }
  0x1b   :  { %4979 = vmatpush.bf16.msra.mxu1 %v8351_v13  ;;  %v8385_v47 = vld [vmem:[#allocation2 + $0x170] sm:$0xff]  ;;  %v8384_v51 = vld [vmem:[#allocation2 + $0x168] sm:$0xff]  ;;  %v8383_v55 = vld [vmem:[#allocation2 + $0x160] sm:$0xff] }
  0x1c   :  { %4992 = vmatpush.bf16.msra.mxu2 %v8359_v14  ;;  %v1365_v42 = vpack.c.b16 %v1293_v32, %v1293_v32  ;;  %v1366_v44 = vpack.c.b16 %v1294_v36, %v1294_v36  ;;  %v8393_v48 = vld [vmem:[#allocation2 + $0x1b0] sm:$0xff]  ;;  %v8392_v52 = vld [vmem:[#allocation2 + $0x1a8] sm:$0xff]  ;;  %v8391_v56 = vld [vmem:[#allocation2 + $0x1a0] sm:$0xff] }
  0x1d   :  { %5005 = vmatpush.bf16.msra.mxu3 %v8367_v15  ;;  %v8401_v49 = vld [vmem:[#allocation2 + $0x1f0] sm:$0xff]  ;;  %v8400_v53 = vld [vmem:[#allocation2 + $0x1e8] sm:$0xff]  ;;  %v8399_v57 = vld [vmem:[#allocation2 + $0x1e0] sm:$0xff] }
  0x1e   :  { %4967 = vmatpush.bf16.msra.mxu0 %v8342_v16  ;;  %v8374_v58 = vld [vmem:[#allocation2 + $0x118] sm:$0xff]  ;;  %v8373_v62 = vld [vmem:[#allocation2 + $0x110] sm:$0xff]  ;;  %v8372_v2 = vld [vmem:[#allocation2 + $0x108] sm:$0xff] }
  0x1f   :  { %4980 = vmatpush.bf16.msra.mxu1 %v8350_v17  ;;  %v8382_v59 = vld [vmem:[#allocation2 + $0x158] sm:$0xff]  ;;  %v8381_v63 = vld [vmem:[#allocation2 + $0x150] sm:$0xff]  ;;  %v8380_v3 = vld [vmem:[#allocation2 + $0x148] sm:$0xff] }
  0x20   :  { %4993 = vmatpush.bf16.msra.mxu2 %v8358_v18  ;;  %v8390_v60 = vld [vmem:[#allocation2 + $0x198] sm:$0xff]  ;;  %v8389_v0 = vld [vmem:[#allocation2 + $0x190] sm:$0xff]  ;;  %v8388_v4 = vld [vmem:[#allocation2 + $0x188] sm:$0xff] }
  0x21   :  { %5006 = vmatpush.bf16.msra.mxu3 %v8366_v19  ;;  %v8398_v61 = vld [vmem:[#allocation2 + $0x1d8] sm:$0xff]  ;;  %v8397_v1 = vld [vmem:[#allocation2 + $0x1d0] sm:$0xff]  ;;  %v8396_v5 = vld [vmem:[#allocation2 + $0x1c8] sm:$0xff] }
  0x22   :  { %4968 = vmatpush.bf16.msra.mxu0 %v8341_v20  ;;  %v66_v6 = vld [vmem:[%s9228_s0 + $0x18] sm:$0xff]  ;;  %v65_v7 = vld [vmem:[%s9228_s0 + $0x10] sm:$0xff]  ;;  %v8371_v8 = vld [vmem:[#allocation2 + $0x100] sm:$0xff] }
  0x23   :  { %4981 = vmatpush.bf16.msra.mxu1 %v8349_v21  ;;  %v8379_v9 = vld [vmem:[#allocation2 + $0x140] sm:$0xff]  ;;  %v1297_v10 = vunpack.c.l.b16 %v66_v6  ;;  %v1295_v11 = vunpack.c.l.b16 %v65_v7  ;;  %v1298_v14 = vunpack.c.h.b16 %v66_v6  ;;  %v1296_v15 = vunpack.c.h.b16 %v65_v7  ;;  %v8410_v16 = vld [vmem:[#allocation2 + $0x238] sm:$0xff]  ;;  %v8408_v28 = vld [vmem:[#allocation2 + $0x228] sm:$0xff] }
  0x24   :  { %4994 = vmatpush.bf16.msra.mxu2 %v8357_v22  ;;  %v8387_v12 = vld [vmem:[#allocation2 + $0x180] sm:$0xff]  ;;  %v8418_v17 = vld [vmem:[#allocation2 + $0x278] sm:$0xff]  ;;  %v8416_v29 = vld [vmem:[#allocation2 + $0x268] sm:$0xff] }
  0x25   :  { %5007 = vmatpush.bf16.msra.mxu3 %v8365_v23  ;;  %v8395_v13 = vld [vmem:[#allocation2 + $0x1c0] sm:$0xff]  ;;  %v8426_v18 = vld [vmem:[#allocation2 + $0x2b8] sm:$0xff]  ;;  %v1369_v20 = vpack.c.b16 %v1297_v10, %v1297_v10  ;;  %v1367_v21 = vpack.c.b16 %v1295_v11, %v1295_v11  ;;  %v1370_v22 = vpack.c.b16 %v1298_v14, %v1298_v14  ;;  %v1368_v23 = vpack.c.b16 %v1296_v15, %v1296_v15  ;;  %v8440_v6 = vld [vmem:[#allocation2 + $0x328] sm:$0xff] }
  0x26   :  { %4969 = vmatpush.bf16.msra.mxu0 %v8340_v24  ;;  %v8434_v19 = vld [vmem:[#allocation2 + $0x2f8] sm:$0xff]  ;;  %v8409_v24 = vld [vmem:[#allocation2 + $0x230] sm:$0xff]  ;;  %v8407_v32 = vld [vmem:[#allocation2 + $0x220] sm:$0xff] }
  0x27   :  { %4982 = vmatpush.bf16.msra.mxu1 %v8348_v25  ;;  %v8417_v25 = vld [vmem:[#allocation2 + $0x270] sm:$0xff]  ;;  %v8415_v33 = vld [vmem:[#allocation2 + $0x260] sm:$0xff]  ;;  %v8406_v36 = vld [vmem:[#allocation2 + $0x218] sm:$0xff] }
  0x28   :  { %4995 = vmatpush.bf16.msra.mxu2 %v8356_v26  ;;  %v8425_v26 = vld [vmem:[#allocation2 + $0x2b0] sm:$0xff]  ;;  %v8414_v37 = vld [vmem:[#allocation2 + $0x258] sm:$0xff]  ;;  %v8448_v7 = vld [vmem:[#allocation2 + $0x368] sm:$0xff] }
  0x29   :  { %5008 = vmatpush.bf16.msra.mxu3 %v8364_v27  ;;  %v8433_v27 = vld [vmem:[#allocation2 + $0x2f0] sm:$0xff]  ;;  %v8439_v10 = vld [vmem:[#allocation2 + $0x320] sm:$0xff]  ;;  %v8438_v14 = vld [vmem:[#allocation2 + $0x318] sm:$0xff] }
  0x2a   :  { %4970 = vmatpush.bf16.msra.mxu0 %v8339_v30  ;;  %v8424_v30 = vld [vmem:[#allocation2 + $0x2a8] sm:$0xff]  ;;  %v8447_v11 = vld [vmem:[#allocation2 + $0x360] sm:$0xff]  ;;  %v8446_v15 = vld [vmem:[#allocation2 + $0x358] sm:$0xff] }
  0x2b   :  { %4983 = vmatpush.bf16.msra.mxu1 %v8347_v31  ;;  %v8432_v31 = vld [vmem:[#allocation2 + $0x2e8] sm:$0xff] }
  0x2c   :  { %4996 = vmatpush.bf16.msra.mxu2 %v8355_v34  ;;  %v8423_v34 = vld [vmem:[#allocation2 + $0x2a0] sm:$0xff] }
  0x2d   :  { %5009 = vmatpush.bf16.msra.mxu3 %v8363_v35  ;;  %4971 = vmatmul.bf16.vlgmr.msra.gmra.mxu0 %v1363_v43  ;;  %v8431_v35 = vld [vmem:[#allocation2 + $0x2e0] sm:$0xff]  ;;  %v8429_v43 = vld [vmem:[#allocation2 + $0x2d0] sm:$0xff] }
  0x2e   :  { %5015 = vmatpush.bf16.msrb.mxu0 %v8378_v38  ;;  %4984 = vmatmul.bf16.vlgmr.msra.gmra.mxu1 %v1364_v45  ;;  %v8422_v38 = vld [vmem:[#allocation2 + $0x298] sm:$0xff]  ;;  %v8412_v45 = vld [vmem:[#allocation2 + $0x248] sm:$0xff] }
  0x2f   :  { %5028 = vmatpush.bf16.msrb.mxu1 %v8386_v39  ;;  %4997 = vmatmul.bf16.vlgmr.msra.gmra.mxu2 %v1365_v42  ;;  %v8430_v39 = vld [vmem:[#allocation2 + $0x2d8] sm:$0xff]  ;;  %v8421_v42 = vld [vmem:[#allocation2 + $0x290] sm:$0xff] }
  0x30   :  { %5041 = vmatpush.bf16.msrb.mxu2 %v8394_v40  ;;  %5010 = vmatmul.bf16.vlgmr.msra.gmra.mxu3 %v1366_v44  ;;  %v8405_v40 = vld [vmem:[#allocation2 + $0x210] sm:$0xff]  ;;  %v8404_v44 = vld [vmem:[#allocation2 + $0x208] sm:$0xff] }
  0x31   :  { %5054 = vmatpush.bf16.msrb.mxu3 %v8402_v41  ;;  %v8413_v41 = vld [vmem:[#allocation2 + $0x250] sm:$0xff] }
  0x32   :  { %5016 = vmatpush.bf16.msrb.mxu0 %v8377_v46  ;;  %v8420_v46 = vld [vmem:[#allocation2 + $0x288] sm:$0xff] }
  0x33   :  { %5029 = vmatpush.bf16.msrb.mxu1 %v8385_v47  ;;  %v8428_v47 = vld [vmem:[#allocation2 + $0x2c8] sm:$0xff] }
  0x34   :  { %5042 = vmatpush.bf16.msrb.mxu2 %v8393_v48  ;;  %v67_v48 = vld [vmem:[%s9228_s0 + $0x20] sm:$0xff] }
  0x35   :  { %5055 = vmatpush.bf16.msrb.mxu3 %v8401_v49  ;;  %v68_v49 = vld [vmem:[%s9228_s0 + $0x28] sm:$0xff] }
  0x36   :  { %5017 = vmatpush.bf16.msrb.mxu0 %v8376_v50  ;;  %v8403_v50 = vld [vmem:[#allocation2 + $0x200] sm:$0xff] }
  0x37   :  { %5030 = vmatpush.bf16.msrb.mxu1 %v8384_v51  ;;  %v8411_v51 = vld [vmem:[#allocation2 + $0x240] sm:$0xff] }
  0x38   :  { %5043 = vmatpush.bf16.msrb.mxu2 %v8392_v52  ;;  %v1299_v52 = vunpack.c.l.b16 %v67_v48 }
  0x39   :  { %5056 = vmatpush.bf16.msrb.mxu3 %v8400_v53  ;;  %v1301_v53 = vunpack.c.l.b16 %v68_v49 }
  0x3a   :  { %5018 = vmatpush.bf16.msrb.mxu0 %v8375_v54  ;;  %v8419_v54 = vld [vmem:[#allocation2 + $0x280] sm:$0xff] }
  0x3b   :  { %5031 = vmatpush.bf16.msrb.mxu1 %v8383_v55  ;;  %v8427_v55 = vld [vmem:[#allocation2 + $0x2c0] sm:$0xff] }
  0x3c   :  { %5044 = vmatpush.bf16.msrb.mxu2 %v8391_v56  ;;  %v1300_v56 = vunpack.c.h.b16 %v67_v48  ;;  %v8472_v48 = vld [vmem:[#allocation2 + $0x428] sm:$0xff] }
  0x3d   :  { %5057 = vmatpush.bf16.msrb.mxu3 %v8399_v57  ;;  %v1302_v57 = vunpack.c.h.b16 %v68_v49  ;;  %v8480_v49 = vld [vmem:[#allocation2 + $0x468] sm:$0xff] }
  0x3e   :  { %5019 = vmatpush.bf16.msrb.mxu0 %v8374_v58  ;;  %v8442_v58 = vld [vmem:[#allocation2 + $0x338] sm:$0xff] }
  0x3f   :  { %5032 = vmatpush.bf16.msrb.mxu1 %v8382_v59  ;;  %v8450_v59 = vld [vmem:[#allocation2 + $0x378] sm:$0xff] }
  0x40   :  { %5045 = vmatpush.bf16.msrb.mxu2 %v8390_v60  ;;  %v8458_v60 = vld [vmem:[#allocation2 + $0x3b8] sm:$0xff] }
  0x41   :  { %5058 = vmatpush.bf16.msrb.mxu3 %v8398_v61  ;;  %v8466_v61 = vld [vmem:[#allocation2 + $0x3f8] sm:$0xff] }
  0x42   :  { %5020 = vmatpush.bf16.msrb.mxu0 %v8373_v62  ;;  %v1371_v62 = vpack.c.b16 %v1299_v52, %v1299_v52  ;;  %v8471_v52 = vld [vmem:[#allocation2 + $0x420] sm:$0xff] }
  0x43   :  { %5033 = vmatpush.bf16.msrb.mxu1 %v8381_v63  ;;  %v1373_v63 = vpack.c.b16 %v1301_v53, %v1301_v53  ;;  %v8479_v53 = vld [vmem:[#allocation2 + $0x460] sm:$0xff] }
  0x44   :  { %5046 = vmatpush.bf16.msrb.mxu2 %v8389_v0  ;;  %v1372_v0 = vpack.c.b16 %v1300_v56, %v1300_v56  ;;  %v8470_v56 = vld [vmem:[#allocation2 + $0x418] sm:$0xff] }
  0x45   :  { %5059 = vmatpush.bf16.msrb.mxu3 %v8397_v1  ;;  %v1374_v1 = vpack.c.b16 %v1302_v57, %v1302_v57  ;;  %v8478_v57 = vld [vmem:[#allocation2 + $0x458] sm:$0xff] }
  0x46   :  { %5021 = vmatpush.bf16.msrb.mxu0 %v8372_v2  ;;  %v8441_v2 = vld [vmem:[#allocation2 + $0x330] sm:$0xff] }
  0x47   :  { %5034 = vmatpush.bf16.msrb.mxu1 %v8380_v3  ;;  %v8449_v3 = vld [vmem:[#allocation2 + $0x370] sm:$0xff] }
  0x48   :  { %5047 = vmatpush.bf16.msrb.mxu2 %v8388_v4  ;;  %v8457_v4 = vld [vmem:[#allocation2 + $0x3b0] sm:$0xff] }
  0x49   :  { %5060 = vmatpush.bf16.msrb.mxu3 %v8396_v5  ;;  %v8465_v5 = vld [vmem:[#allocation2 + $0x3f0] sm:$0xff] }
  0x4a   :  { %5022 = vmatpush.bf16.msrb.mxu0 %v8371_v8  ;;  %v8456_v8 = vld [vmem:[#allocation2 + $0x3a8] sm:$0xff] }
  0x4b   :  { %5035 = vmatpush.bf16.msrb.mxu1 %v8379_v9  ;;  %v8464_v9 = vld [vmem:[#allocation2 + $0x3e8] sm:$0xff] }
  0x4c   :  { %5048 = vmatpush.bf16.msrb.mxu2 %v8387_v12  ;;  %v8455_v12 = vld [vmem:[#allocation2 + $0x3a0] sm:$0xff] }
  0x4d   :  { %5061 = vmatpush.bf16.msrb.mxu3 %v8395_v13  ;;  %5023 = vmatmul.bf16.vlgmr.msrb.gmra.mxu0 %v1367_v21  ;;  %v8463_v13 = vld [vmem:[#allocation2 + $0x3e0] sm:$0xff]  ;;  %v8461_v21 = vld [vmem:[#allocation2 + $0x3d0] sm:$0xff] }
  0x4e   :  { %5067 = vmatpush.bf16.msra.mxu0 %v8410_v16  ;;  %5036 = vmatmul.bf16.vlgmr.msrb.gmra.mxu1 %v1368_v23  ;;  %v8454_v16 = vld [vmem:[#allocation2 + $0x398] sm:$0xff]  ;;  %v8444_v23 = vld [vmem:[#allocation2 + $0x348] sm:$0xff] }
  0x4f   :  { %5080 = vmatpush.bf16.msra.mxu1 %v8418_v17  ;;  %5049 = vmatmul.bf16.vlgmr.msrb.gmra.mxu2 %v1369_v20  ;;  %v8462_v17 = vld [vmem:[#allocation2 + $0x3d8] sm:$0xff]  ;;  %v8453_v20 = vld [vmem:[#allocation2 + $0x390] sm:$0xff] }
  0x50   :  { %5093 = vmatpush.bf16.msra.mxu2 %v8426_v18  ;;  %5062 = vmatmul.bf16.vlgmr.msrb.gmra.mxu3 %v1370_v22  ;;  %v8437_v18 = vld [vmem:[#allocation2 + $0x310] sm:$0xff]  ;;  %v8436_v22 = vld [vmem:[#allocation2 + $0x308] sm:$0xff] }
  0x51   :  { %5106 = vmatpush.bf16.msra.mxu3 %v8434_v19  ;;  %v8445_v19 = vld [vmem:[#allocation2 + $0x350] sm:$0xff] }
  0x52   :  { %5068 = vmatpush.bf16.msra.mxu0 %v8409_v24  ;;  %v8452_v24 = vld [vmem:[#allocation2 + $0x388] sm:$0xff] }
  0x53   :  { %5081 = vmatpush.bf16.msra.mxu1 %v8417_v25  ;;  %v8460_v25 = vld [vmem:[#allocation2 + $0x3c8] sm:$0xff] }
  0x54   :  { %5094 = vmatpush.bf16.msra.mxu2 %v8425_v26  ;;  %v69_v26 = vld [vmem:[%s9228_s0 + $0x30] sm:$0xff] }
  0x55   :  { %5107 = vmatpush.bf16.msra.mxu3 %v8433_v27  ;;  %v70_v27 = vld [vmem:[%s9228_s0 + $0x38] sm:$0xff] }
  0x56   :  { %5069 = vmatpush.bf16.msra.mxu0 %v8408_v28  ;;  %v8435_v28 = vld [vmem:[#allocation2 + $0x300] sm:$0xff] }
  0x57   :  { %5082 = vmatpush.bf16.msra.mxu1 %v8416_v29  ;;  %v8443_v29 = vld [vmem:[#allocation2 + $0x340] sm:$0xff] }
  0x58   :  { %5095 = vmatpush.bf16.msra.mxu2 %v8424_v30  ;;  %v1303_v30 = vunpack.c.l.b16 %v69_v26 }
  0x59   :  { %5108 = vmatpush.bf16.msra.mxu3 %v8432_v31  ;;  %v1305_v31 = vunpack.c.l.b16 %v70_v27 }
  0x5a   :  { %5070 = vmatpush.bf16.msra.mxu0 %v8407_v32  ;;  %v8451_v32 = vld [vmem:[#allocation2 + $0x380] sm:$0xff] }
  0x5b   :  { %5083 = vmatpush.bf16.msra.mxu1 %v8415_v33  ;;  %v8459_v33 = vld [vmem:[#allocation2 + $0x3c0] sm:$0xff] }
  0x5c   :  { %5096 = vmatpush.bf16.msra.mxu2 %v8423_v34  ;;  %v1304_v34 = vunpack.c.h.b16 %v69_v26  ;;  %v8504_v26 = vld [vmem:[#allocation2 + $0x528] sm:$0xff] }
  0x5d   :  { %5109 = vmatpush.bf16.msra.mxu3 %v8431_v35  ;;  %v1306_v35 = vunpack.c.h.b16 %v70_v27  ;;  %v8512_v27 = vld [vmem:[#allocation2 + $0x568] sm:$0xff] }
  0x5e   :  { %5071 = vmatpush.bf16.msra.mxu0 %v8406_v36  ;;  %v8474_v36 = vld [vmem:[#allocation2 + $0x438] sm:$0xff] }
  0x5f   :  { %5084 = vmatpush.bf16.msra.mxu1 %v8414_v37  ;;  %v8482_v37 = vld [vmem:[#allocation2 + $0x478] sm:$0xff] }
  0x60   :  { %5097 = vmatpush.bf16.msra.mxu2 %v8422_v38  ;;  %v8490_v38 = vld [vmem:[#allocation2 + $0x4b8] sm:$0xff] }
  0x61   :  { %5110 = vmatpush.bf16.msra.mxu3 %v8430_v39  ;;  %v8498_v39 = vld [vmem:[#allocation2 + $0x4f8] sm:$0xff] }
  0x62   :  { %5072 = vmatpush.bf16.msra.mxu0 %v8405_v40  ;;  %v1375_v40 = vpack.c.b16 %v1303_v30, %v1303_v30  ;;  %v8528_v30 = vld [vmem:[#allocation2 + $0x5e8] sm:$0xff] }
  0x63   :  { %5085 = vmatpush.bf16.msra.mxu1 %v8413_v41  ;;  %v1377_v41 = vpack.c.b16 %v1305_v31, %v1305_v31 }
  0x64   :  { %5098 = vmatpush.bf16.msra.mxu2 %v8421_v42  ;;  %v1376_v42 = vpack.c.b16 %v1304_v34, %v1304_v34 }
  0x65   :  { %5111 = vmatpush.bf16.msra.mxu3 %v8429_v43  ;;  %v1378_v43 = vpack.c.b16 %v1306_v35, %v1306_v35 }
  0x66   :  { %5073 = vmatpush.bf16.msra.mxu0 %v8404_v44  ;;  %v8473_v44 = vld [vmem:[#allocation2 + $0x430] sm:$0xff] }
  0x67   :  { %5086 = vmatpush.bf16.msra.mxu1 %v8412_v45  ;;  %v8481_v45 = vld [vmem:[#allocation2 + $0x470] sm:$0xff] }
  0x68   :  { %5099 = vmatpush.bf16.msra.mxu2 %v8420_v46  ;;  %v8489_v46 = vld [vmem:[#allocation2 + $0x4b0] sm:$0xff] }
  0x69   :  { %5112 = vmatpush.bf16.msra.mxu3 %v8428_v47  ;;  %v8497_v47 = vld [vmem:[#allocation2 + $0x4f0] sm:$0xff] }
  0x6a   :  { %5074 = vmatpush.bf16.msra.mxu0 %v8403_v50  ;;  %v8488_v50 = vld [vmem:[#allocation2 + $0x4a8] sm:$0xff] }
  0x6b   :  { %5087 = vmatpush.bf16.msra.mxu1 %v8411_v51  ;;  %v8496_v51 = vld [vmem:[#allocation2 + $0x4e8] sm:$0xff] }
  0x6c   :  { %5100 = vmatpush.bf16.msra.mxu2 %v8419_v54  ;;  %v8487_v54 = vld [vmem:[#allocation2 + $0x4a0] sm:$0xff] }
  0x6d   :  { %5113 = vmatpush.bf16.msra.mxu3 %v8427_v55  ;;  %5075 = vmatmul.bf16.vlgmr.msra.gmra.mxu0 %v1371_v62  ;;  %v8495_v55 = vld [vmem:[#allocation2 + $0x4e0] sm:$0xff]  ;;  %v8485_v62 = vld [vmem:[#allocation2 + $0x490] sm:$0xff] }
  0x6e   :  { %5119 = vmatpush.bf16.msrb.mxu0 %v8442_v58  ;;  %5088 = vmatmul.bf16.vlgmr.msra.gmra.mxu1 %v1372_v0  ;;  %v8486_v58 = vld [vmem:[#allocation2 + $0x498] sm:$0xff]  ;;  %v8468_v0 = vld [vmem:[#allocation2 + $0x408] sm:$0xff] }
  0x6f   :  { %5132 = vmatpush.bf16.msrb.mxu1 %v8450_v59  ;;  %5101 = vmatmul.bf16.vlgmr.msra.gmra.mxu2 %v1373_v63  ;;  %v8494_v59 = vld [vmem:[#allocation2 + $0x4d8] sm:$0xff]  ;;  %v8493_v63 = vld [vmem:[#allocation2 + $0x4d0] sm:$0xff] }
  0x70   :  { %5145 = vmatpush.bf16.msrb.mxu2 %v8458_v60  ;;  %5114 = vmatmul.bf16.vlgmr.msra.gmra.mxu3 %v1374_v1  ;;  %v8469_v60 = vld [vmem:[#allocation2 + $0x410] sm:$0xff]  ;;  %v8476_v1 = vld [vmem:[#allocation2 + $0x448] sm:$0xff] }
  0x71   :  { %5158 = vmatpush.bf16.msrb.mxu3 %v8466_v61  ;;  %v8477_v61 = vld [vmem:[#allocation2 + $0x450] sm:$0xff] }
  0x72   :  { %5120 = vmatpush.bf16.msrb.mxu0 %v8441_v2  ;;  %v8484_v2 = vld [vmem:[#allocation2 + $0x488] sm:$0xff] }
  0x73   :  { %5133 = vmatpush.bf16.msrb.mxu1 %v8449_v3  ;;  %v8492_v3 = vld [vmem:[#allocation2 + $0x4c8] sm:$0xff] }
  0x74   :  { %5146 = vmatpush.bf16.msrb.mxu2 %v8457_v4  ;;  %v71_v4 = vld [vmem:[%s9228_s0 + $0x40] sm:$0xff] }
  0x75   :  { %5159 = vmatpush.bf16.msrb.mxu3 %v8465_v5  ;;  %v72_v5 = vld [vmem:[%s9228_s0 + $0x48] sm:$0xff] }
  0x76   :  { %5121 = vmatpush.bf16.msrb.mxu0 %v8440_v6  ;;  %v8467_v6 = vld [vmem:[#allocation2 + $0x400] sm:$0xff] }
  0x77   :  { %5134 = vmatpush.bf16.msrb.mxu1 %v8448_v7  ;;  %v8475_v7 = vld [vmem:[#allocation2 + $0x440] sm:$0xff] }
  0x78   :  { %5147 = vmatpush.bf16.msrb.mxu2 %v8456_v8  ;;  %v1307_v8 = vunpack.c.l.b16 %v71_v4 }
  0x79   :  { %5160 = vmatpush.bf16.msrb.mxu3 %v8464_v9  ;;  %v1309_v9 = vunpack.c.l.b16 %v72_v5 }
  0x7a   :  { %5122 = vmatpush.bf16.msrb.mxu0 %v8439_v10  ;;  %v8483_v10 = vld [vmem:[#allocation2 + $0x480] sm:$0xff] }
  0x7b   :  { %5135 = vmatpush.bf16.msrb.mxu1 %v8447_v11  ;;  %v8491_v11 = vld [vmem:[#allocation2 + $0x4c0] sm:$0xff] }
  0x7c   :  { %5148 = vmatpush.bf16.msrb.mxu2 %v8455_v12  ;;  %v1308_v12 = vunpack.c.h.b16 %v71_v4 }
  0x7d   :  { %5161 = vmatpush.bf16.msrb.mxu3 %v8463_v13  ;;  %v1310_v13 = vunpack.c.h.b16 %v72_v5  ;;  %v8538_v5 = vld [vmem:[#allocation2 + $0x638] sm:$0xff] }
  0x7e   :  { %5123 = vmatpush.bf16.msrb.mxu0 %v8438_v14  ;;  %v8506_v14 = vld [vmem:[#allocation2 + $0x538] sm:$0xff] }
  0x7f   :  { %5136 = vmatpush.bf16.msrb.mxu1 %v8446_v15  ;;  %v8514_v15 = vld [vmem:[#allocation2 + $0x578] sm:$0xff] }
  0x80   :  { %5149 = vmatpush.bf16.msrb.mxu2 %v8454_v16  ;;  %v8522_v16 = vld [vmem:[#allocation2 + $0x5b8] sm:$0xff] }
  0x81   :  { %5162 = vmatpush.bf16.msrb.mxu3 %v8462_v17  ;;  %v8530_v17 = vld [vmem:[#allocation2 + $0x5f8] sm:$0xff] }
  0x82   :  { %5124 = vmatpush.bf16.msrb.mxu0 %v8437_v18  ;;  %v1379_v18 = vpack.c.b16 %v1307_v8, %v1307_v8  ;;  %v8562_v8 = vld [vmem:[#allocation2 + $0x6f8] sm:$0xff] }
  0x83   :  { %5137 = vmatpush.bf16.msrb.mxu1 %v8445_v19  ;;  %v1381_v19 = vpack.c.b16 %v1309_v9, %v1309_v9 }
  0x84   :  { %5150 = vmatpush.bf16.msrb.mxu2 %v8453_v20  ;;  %v1380_v20 = vpack.c.b16 %v1308_v12, %v1308_v12 }
  0x85   :  { %5163 = vmatpush.bf16.msrb.mxu3 %v8461_v21  ;;  %v1382_v21 = vpack.c.b16 %v1310_v13, %v1310_v13  ;;  %v8537_v13 = vld [vmem:[#allocation2 + $0x630] sm:$0xff] }
  0x86   :  { %5125 = vmatpush.bf16.msrb.mxu0 %v8436_v22  ;;  %v8505_v22 = vld [vmem:[#allocation2 + $0x530] sm:$0xff] }
  0x87   :  { %5138 = vmatpush.bf16.msrb.mxu1 %v8444_v23  ;;  %v8513_v23 = vld [vmem:[#allocation2 + $0x570] sm:$0xff] }
  0x88   :  { %5151 = vmatpush.bf16.msrb.mxu2 %v8452_v24  ;;  %v8521_v24 = vld [vmem:[#allocation2 + $0x5b0] sm:$0xff] }
  0x89   :  { %5164 = vmatpush.bf16.msrb.mxu3 %v8460_v25  ;;  %v8529_v25 = vld [vmem:[#allocation2 + $0x5f0] sm:$0xff] }
  0x8a   :  { %5126 = vmatpush.bf16.msrb.mxu0 %v8435_v28  ;;  %v8928_v28 = vld [vmem:[#allocation4] ss:$0 sm:$0xff] }
  0x8b   :  { %5139 = vmatpush.bf16.msrb.mxu1 %v8443_v29  ;;  %v8520_v29 = vld [vmem:[#allocation2 + $0x5a8] sm:$0xff] }
  0x8c   :  { %5152 = vmatpush.bf16.msrb.mxu2 %v8451_v32  ;;  %v8503_v32 = vld [vmem:[#allocation2 + $0x520] sm:$0xff] }
  0x8d   :  { %5165 = vmatpush.bf16.msrb.mxu3 %v8459_v33  ;;  %5127 = vmatmul.bf16.vlgmr.msrb.gmra.mxu0 %v1375_v40  ;;  %v8511_v33 = vld [vmem:[#allocation2 + $0x560] sm:$0xff]  ;;  %v8510_v40 = vld [vmem:[#allocation2 + $0x558] sm:$0xff] }
  0x8e   :  { %5171 = vmatpush.bf16.msra.mxu0 %v8474_v36  ;;  %5140 = vmatmul.bf16.vlgmr.msrb.gmra.mxu1 %v1376_v42  ;;  %v8519_v36 = vld [vmem:[#allocation2 + $0x5a0] sm:$0xff]  ;;  %v8526_v42 = vld [vmem:[#allocation2 + $0x5d8] sm:$0xff] }
  0x8f   :  { %5184 = vmatpush.bf16.msra.mxu1 %v8482_v37  ;;  %5153 = vmatmul.bf16.vlgmr.msrb.gmra.mxu2 %v1377_v41  ;;  %v8527_v37 = vld [vmem:[#allocation2 + $0x5e0] sm:$0xff]  ;;  %v8518_v41 = vld [vmem:[#allocation2 + $0x598] sm:$0xff] }
  0x90   :  { %5197 = vmatpush.bf16.msra.mxu2 %v8490_v38  ;;  %5166 = vmatmul.bf16.vlgmr.msrb.gmra.mxu3 %v1378_v43 }
  0x91   :  { %5210 = vmatpush.bf16.msra.mxu3 %v8498_v39  ;;  %v8502_v39 = vld [vmem:[#allocation2 + $0x518] sm:$0xff] }
  0x92   :  { %5172 = vmatpush.bf16.msra.mxu0 %v8473_v44 }
  0x93   :  { %5185 = vmatpush.bf16.msra.mxu1 %v8481_v45 }
  0x94   :  { %5198 = vmatpush.bf16.msra.mxu2 %v8489_v46 }
  0x95   :  { %5211 = vmatpush.bf16.msra.mxu3 %v8497_v47  ;;  %v8501_v47 = vld [vmem:[#allocation2 + $0x510] sm:$0xff] }
  0x96   :  { %5173 = vmatpush.bf16.msra.mxu0 %v8472_v48  ;;  %v8509_v48 = vld [vmem:[#allocation2 + $0x550] sm:$0xff] }
  0x97   :  { %5186 = vmatpush.bf16.msra.mxu1 %v8480_v49 }
  0x98   :  { %5199 = vmatpush.bf16.msra.mxu2 %v8488_v50 }
  0x99   :  { %5212 = vmatpush.bf16.msra.mxu3 %v8496_v51  ;;  %v8517_v51 = vld [vmem:[#allocation2 + $0x590] sm:$0xff] }
  0x9a   :  { %5174 = vmatpush.bf16.msra.mxu0 %v8471_v52  ;;  %v8525_v52 = vld [vmem:[#allocation2 + $0x5d0] sm:$0xff] }
  0x9b   :  { %5187 = vmatpush.bf16.msra.mxu1 %v8479_v53  ;;  %v8500_v53 = vld [vmem:[#allocation2 + $0x508] sm:$0xff] }
  0x9c   :  { %5200 = vmatpush.bf16.msra.mxu2 %v8487_v54  ;;  %v8508_v54 = vld [vmem:[#allocation2 + $0x548] sm:$0xff] }
  0x9d   :  { %5213 = vmatpush.bf16.msra.mxu3 %v8495_v55  ;;  %v8516_v55 = vld [vmem:[#allocation2 + $0x588] sm:$0xff] }
  0x9e   :  { %5175 = vmatpush.bf16.msra.mxu0 %v8470_v56  ;;  %v8524_v56 = vld [vmem:[#allocation2 + $0x5c8] sm:$0xff] }
  0x9f   :  { %5188 = vmatpush.bf16.msra.mxu1 %v8478_v57  ;;  %v73_v57 = vld [vmem:[%s9228_s0 + $0x50] sm:$0xff] }
  0xa0   :  { %5201 = vmatpush.bf16.msra.mxu2 %v8486_v58  ;;  %v74_v58 = vld [vmem:[%s9228_s0 + $0x58] sm:$0xff] }
  0xa1   :  { %5214 = vmatpush.bf16.msra.mxu3 %v8494_v59  ;;  %v1314_v4 = vunpack.c.h.b16 %v74_v58 }
  0xa2   :  { %5176 = vmatpush.bf16.msra.mxu0 %v8469_v60 }
  0xa3   :  { %5189 = vmatpush.bf16.msra.mxu1 %v8477_v61  ;;  %v8499_v61 = vld [vmem:[#allocation2 + $0x500] sm:$0xff]  ;;  %v1386_v12 = vpack.c.b16 %v1314_v4, %v1314_v4  ;;  %v8577_v4 = vld [vmem:[#allocation2 + $0x770] sm:$0xff] }
  0xa4   :  { %5202 = vmatpush.bf16.msra.mxu2 %v8485_v62  ;;  %v8507_v62 = vld [vmem:[#allocation2 + $0x540] sm:$0xff] }
  0xa5   :  { %5215 = vmatpush.bf16.msra.mxu3 %v8493_v63  ;;  %v1311_v63 = vunpack.c.l.b16 %v73_v57 }
  0xa6   :  { %5177 = vmatpush.bf16.msra.mxu0 %v8468_v0  ;;  %v1313_v0 = vunpack.c.l.b16 %v74_v58 }
  0xa7   :  { %5190 = vmatpush.bf16.msra.mxu1 %v8476_v1  ;;  %v8515_v1 = vld [vmem:[#allocation2 + $0x580] sm:$0xff]  ;;  %v1383_v9 = vpack.c.b16 %v1311_v63, %v1311_v63 }
  0xa8   :  { %5203 = vmatpush.bf16.msra.mxu2 %v8484_v2  ;;  %v8523_v2 = vld [vmem:[#allocation2 + $0x5c0] sm:$0xff] }
  0xa9   :  { %5216 = vmatpush.bf16.msra.mxu3 %v8492_v3  ;;  %v1312_v3 = vunpack.c.h.b16 %v73_v57 }
  0xaa   :  { %5178 = vmatpush.bf16.msra.mxu0 %v8467_v6  ;;  %v4972_v31 = vpop.f32.mrf.mxu0  ;;  %v8546_v6 = vld [vmem:[#allocation2 + $0x678] sm:$0xff] }
  0xab   :  { %5191 = vmatpush.bf16.msra.mxu1 %v8475_v7  ;;  %v4973_v34 = vadd.f32 %v8928_v28, %v4972_v31  ;;  %v4985_v35 = vpop.f32.mrf.mxu1  ;;  %v8554_v7 = vld [vmem:[#allocation2 + $0x6b8] sm:$0xff] }
  0xac   :  { %5204 = vmatpush.bf16.msra.mxu2 %v8483_v10  ;;  %v1385_v10 = vpack.c.b16 %v1313_v0, %v1313_v0  ;;  %v8550_v31 = vld [vmem:[#allocation2 + $0x698] sm:$0xff] }
  0xad   :  { %5217 = vmatpush.bf16.msra.mxu3 %v8491_v11  ;;  %5179 = vmatmul.bf16.vlgmr.msra.gmra.mxu0 %v1379_v18  ;;  %v4986_v38 = vadd.f32 %v4985_v35, %v4973_v34  ;;  %v1384_v11 = vpack.c.b16 %v1312_v3, %v1312_v3  ;;  %v8544_v18 = vld [vmem:[#allocation2 + $0x668] sm:$0xff]  ;;  %v8569_v3 = vld [vmem:[#allocation2 + $0x730] sm:$0xff] }
  0xae   :  { %5223 = vmatpush.bf16.msrb.mxu0 %v8506_v14  ;;  %5192 = vmatmul.bf16.vlgmr.msra.gmra.mxu1 %v1380_v20  ;;  %v8545_v14 = vld [vmem:[#allocation2 + $0x670] sm:$0xff]  ;;  %v8560_v20 = vld [vmem:[#allocation2 + $0x6e8] sm:$0xff] }
  0xaf   :  { %5236 = vmatpush.bf16.msrb.mxu1 %v8514_v15  ;;  %5205 = vmatmul.bf16.vlgmr.msra.gmra.mxu2 %v1381_v19  ;;  %v8553_v15 = vld [vmem:[#allocation2 + $0x6b0] sm:$0xff]  ;;  %v8552_v19 = vld [vmem:[#allocation2 + $0x6a8] sm:$0xff] }
  0xb0   :  { %5249 = vmatpush.bf16.msrb.mxu2 %v8522_v16  ;;  %5218 = vmatmul.bf16.vlgmr.msra.gmra.mxu3 %v1382_v21  ;;  %v8561_v16 = vld [vmem:[#allocation2 + $0x6f0] sm:$0xff] }
  0xb1   :  { %5262 = vmatpush.bf16.msrb.mxu3 %v8530_v17  ;;  %v8536_v17 = vld [vmem:[#allocation2 + $0x628] sm:$0xff] }
  0xb2   :  { %5224 = vmatpush.bf16.msrb.mxu0 %v8505_v22  ;;  %v4998_v43 = vpop.f32.mrf.mxu2  ;;  %v4974_v46 = vpop.f32.mrf.mxu0  ;;  %v8535_v22 = vld [vmem:[#allocation2 + $0x620] sm:$0xff] }
  0xb3   :  { %5237 = vmatpush.bf16.msrb.mxu1 %v8513_v23  ;;  %v4999_v44 = vadd.f32 %v4998_v43, %v4986_v38  ;;  %v5011_v45 = vpop.f32.mrf.mxu3  ;;  %v4987_v50 = vpop.f32.mrf.mxu1  ;;  %v8543_v23 = vld [vmem:[#allocation2 + $0x660] sm:$0xff]  ;;  %v8541_v38 = vld [vmem:[#allocation2 + $0x650] sm:$0xff]  ;;  %v8532_v43 = vld [vmem:[#allocation2 + $0x608] sm:$0xff] }
  0xb4   :  { %5250 = vmatpush.bf16.msrb.mxu2 %v8521_v24  ;;  %v8556_v46 = vld [vmem:[#allocation2 + $0x6c8] sm:$0xff] }
  0xb5   :  { %5263 = vmatpush.bf16.msrb.mxu3 %v8529_v25  ;;  %v9084_v49 = vadd.f32 %v5011_v45, %v4999_v44  ;;  %v8540_v44 = vld [vmem:[#allocation2 + $0x648] sm:$0xff] }
  0xb6   :  { %5225 = vmatpush.bf16.msrb.mxu0 %v8504_v26  ;;  %v8551_v26 = vld [vmem:[#allocation2 + $0x6a0] sm:$0xff]  ;;  %v8548_v45 = vld [vmem:[#allocation2 + $0x688] sm:$0xff] }
  0xb7   :  { %5238 = vmatpush.bf16.msrb.mxu1 %v8512_v27  ;;  %v8559_v27 = vld [vmem:[#allocation2 + $0x6e0] sm:$0xff] }
  0xb8   :  { %5251 = vmatpush.bf16.msrb.mxu2 %v8520_v29  ;;  %v8534_v29 = vld [vmem:[#allocation2 + $0x618] sm:$0xff] }
  0xb9   :  { %5264 = vmatpush.bf16.msrb.mxu3 %v8528_v30  ;;  %v8542_v30 = vld [vmem:[#allocation2 + $0x658] sm:$0xff] }
  0xba   :  { %5226 = vmatpush.bf16.msrb.mxu0 %v8503_v32  ;;  %v5000_v59 = vpop.f32.mrf.mxu2  ;;  %v8558_v32 = vld [vmem:[#allocation2 + $0x6d8] sm:$0xff] }
  0xbb   :  { %5239 = vmatpush.bf16.msrb.mxu1 %v8511_v33  ;;  %v5013_v60 = vpop.f32.mrf.mxu3  ;;  %v8570_v59 = vld [vmem:[#allocation2 + $0x738] sm:$0xff] }
  0xbc   :  { %5252 = vmatpush.bf16.msrb.mxu2 %v8519_v36  ;;  %v8578_v60 = vld [vmem:[#allocation2 + $0x778] sm:$0xff] }
  0xbd   :  { %5265 = vmatpush.bf16.msrb.mxu3 %v8527_v37  ;;  %v8533_v37 = vld [vmem:[#allocation2 + $0x610] sm:$0xff] }
  0xbe   :  { %5227 = vmatpush.bf16.msrb.mxu0 %v8502_v39 }
  0xbf   :  { %5240 = vmatpush.bf16.msrb.mxu1 %v8510_v40 }
  0xc0   :  { %5253 = vmatpush.bf16.msrb.mxu2 %v8518_v41  ;;  %v8549_v41 = vld [vmem:[#allocation2 + $0x690] sm:$0xff] }
  0xc1   :  { %5266 = vmatpush.bf16.msrb.mxu3 %v8526_v42  ;;  %v8557_v42 = vld [vmem:[#allocation2 + $0x6d0] sm:$0xff] }
  0xc2   :  { %5228 = vmatpush.bf16.msrb.mxu0 %v8501_v47  ;;  %v75_v47 = vld [vmem:[%s9228_s0 + $0x60] sm:$0xff] }
  0xc3   :  { %5241 = vmatpush.bf16.msrb.mxu1 %v8509_v48  ;;  %v76_v48 = vld [vmem:[%s9228_s0 + $0x68] sm:$0xff]  ;;  %v1316_v57 = vunpack.c.h.b16 %v75_v47 }
  0xc4   :  { %5254 = vmatpush.bf16.msrb.mxu2 %v8517_v51  ;;  %v8531_v51 = vld [vmem:[#allocation2 + $0x600] sm:$0xff]  ;;  %v1318_v58 = vunpack.c.h.b16 %v76_v48 }
  0xc5   :  { %5267 = vmatpush.bf16.msrb.mxu3 %v8525_v52  ;;  %v8539_v52 = vld [vmem:[#allocation2 + $0x640] sm:$0xff] }
  0xc6   :  { %5229 = vmatpush.bf16.msrb.mxu0 %v8500_v53  ;;  %v1315_v53 = vunpack.c.l.b16 %v75_v47 }
  0xc7   :  { %5242 = vmatpush.bf16.msrb.mxu1 %v8508_v54  ;;  %v1317_v54 = vunpack.c.l.b16 %v76_v48 }
  0xc8   :  { %5255 = vmatpush.bf16.msrb.mxu2 %v8516_v55  ;;  %v8547_v55 = vld [vmem:[#allocation2 + $0x680] sm:$0xff]  ;;  %v1387_v63 = vpack.c.b16 %v1315_v53, %v1315_v53 }
  0xc9   :  { %5268 = vmatpush.bf16.msrb.mxu3 %v8524_v56  ;;  %v8555_v56 = vld [vmem:[#allocation2 + $0x6c0] sm:$0xff]  ;;  %v1389_v0 = vpack.c.b16 %v1317_v54, %v1317_v54 }
  0xca   :  { %5230 = vmatpush.bf16.msrb.mxu0 %v8499_v61  ;;  %v5024_v21 = vpop.f32.mrf.mxu0  ;;  %v8586_v61 = vld [vmem:[#allocation2 + $0x7b8] sm:$0xff] }
  0xcb   :  { %5243 = vmatpush.bf16.msrb.mxu1 %v8507_v62  ;;  %v5025_v24 = vadd.f32 %v5024_v21, %v9084_v49  ;;  %v5037_v25 = vpop.f32.mrf.mxu1  ;;  %v8594_v62 = vld [vmem:[#allocation2 + $0x7f8] sm:$0xff] }
  0xcc   :  { %5256 = vmatpush.bf16.msrb.mxu2 %v8515_v1  ;;  %v1388_v1 = vpack.c.b16 %v1316_v57, %v1316_v57  ;;  %v8582_v21 = vld [vmem:[#allocation2 + $0x798] sm:$0xff]  ;;  %v8601_v57 = vld [vmem:[#allocation2 + $0x830] sm:$0xff] }
  0xcd   :  { %5269 = vmatpush.bf16.msrb.mxu3 %v8523_v2  ;;  %5231 = vmatmul.bf16.vlgmr.msrb.gmra.mxu0 %v1383_v9  ;;  %v5038_v28 = vadd.f32 %v5037_v25, %v5025_v24  ;;  %v1390_v2 = vpack.c.b16 %v1318_v58, %v1318_v58  ;;  %v8584_v9 = vld [vmem:[#allocation2 + $0x7a8] sm:$0xff]  ;;  %v8609_v58 = vld [vmem:[#allocation2 + $0x870] sm:$0xff] }
  0xce   :  { %5275 = vmatpush.bf16.msra.mxu0 %v8538_v5  ;;  %5244 = vmatmul.bf16.vlgmr.msrb.gmra.mxu1 %v1384_v11  ;;  %v8585_v5 = vld [vmem:[#allocation2 + $0x7b0] sm:$0xff] }
  0xcf   :  { %5288 = vmatpush.bf16.msra.mxu1 %v8546_v6  ;;  %5257 = vmatmul.bf16.vlgmr.msrb.gmra.mxu2 %v1385_v10  ;;  %v8593_v6 = vld [vmem:[#allocation2 + $0x7f0] sm:$0xff]  ;;  %v8592_v10 = vld [vmem:[#allocation2 + $0x7e8] sm:$0xff] }
  0xd0   :  { %5301 = vmatpush.bf16.msra.mxu2 %v8554_v7  ;;  %5270 = vmatmul.bf16.vlgmr.msrb.gmra.mxu3 %v1386_v12  ;;  %v8568_v7 = vld [vmem:[#allocation2 + $0x728] sm:$0xff] }
  0xd1   :  { %5314 = vmatpush.bf16.msra.mxu3 %v8562_v8  ;;  %v8576_v8 = vld [vmem:[#allocation2 + $0x768] sm:$0xff] }
  0xd2   :  { %5276 = vmatpush.bf16.msra.mxu0 %v8537_v13  ;;  %v5050_v33 = vpop.f32.mrf.mxu2  ;;  %v5026_v36 = vpop.f32.mrf.mxu0  ;;  %v8567_v13 = vld [vmem:[#allocation2 + $0x720] sm:$0xff] }
  0xd3   :  { %5289 = vmatpush.bf16.msra.mxu1 %v8545_v14  ;;  %v5051_v34 = vadd.f32 %v5050_v33, %v5038_v28  ;;  %v5063_v35 = vpop.f32.mrf.mxu3  ;;  %v5039_v40 = vpop.f32.mrf.mxu1  ;;  %v8575_v14 = vld [vmem:[#allocation2 + $0x760] sm:$0xff]  ;;  %v8565_v28 = vld [vmem:[#allocation2 + $0x710] sm:$0xff]  ;;  %v8564_v33 = vld [vmem:[#allocation2 + $0x708] sm:$0xff] }
  0xd4   :  { %5302 = vmatpush.bf16.msra.mxu2 %v8553_v15  ;;  %v8588_v36 = vld [vmem:[#allocation2 + $0x7c8] sm:$0xff] }
  0xd5   :  { %5315 = vmatpush.bf16.msra.mxu3 %v8561_v16  ;;  %v9093_v39 = vadd.f32 %v5063_v35, %v5051_v34  ;;  %v8583_v16 = vld [vmem:[#allocation2 + $0x7a0] sm:$0xff]  ;;  %v8572_v34 = vld [vmem:[#allocation2 + $0x748] sm:$0xff] }
  0xd6   :  { %5277 = vmatpush.bf16.msra.mxu0 %v8536_v17  ;;  %v8591_v17 = vld [vmem:[#allocation2 + $0x7e0] sm:$0xff]  ;;  %v8580_v35 = vld [vmem:[#allocation2 + $0x788] sm:$0xff] }
  0xd7   :  { %5290 = vmatpush.bf16.msra.mxu1 %v8544_v18 }
  0xd8   :  { %5303 = vmatpush.bf16.msra.mxu2 %v8552_v19  ;;  %v8566_v19 = vld [vmem:[#allocation2 + $0x718] sm:$0xff] }
  0xd9   :  { %5316 = vmatpush.bf16.msra.mxu3 %v8560_v20  ;;  %v8574_v20 = vld [vmem:[#allocation2 + $0x758] sm:$0xff] }
  0xda   :  { %5278 = vmatpush.bf16.msra.mxu0 %v8535_v22  ;;  %v5052_v49 = vpop.f32.mrf.mxu2  ;;  %v8590_v22 = vld [vmem:[#allocation2 + $0x7d8] sm:$0xff] }
  0xdb   :  { %5291 = vmatpush.bf16.msra.mxu1 %v8543_v23  ;;  %v5065_v50 = vpop.f32.mrf.mxu3  ;;  %v8602_v49 = vld [vmem:[#allocation2 + $0x838] sm:$0xff] }
  0xdc   :  { %5304 = vmatpush.bf16.msra.mxu2 %v8551_v26  ;;  %v8610_v50 = vld [vmem:[#allocation2 + $0x878] sm:$0xff] }
  0xdd   :  { %5317 = vmatpush.bf16.msra.mxu3 %v8559_v27 }
  0xde   :  { %5279 = vmatpush.bf16.msra.mxu0 %v8534_v29  ;;  %v8573_v29 = vld [vmem:[#allocation2 + $0x750] sm:$0xff] }
  0xdf   :  { %5292 = vmatpush.bf16.msra.mxu1 %v8542_v30 }
  0xe0   :  { %5305 = vmatpush.bf16.msra.mxu2 %v8550_v31  ;;  %v8581_v31 = vld [vmem:[#allocation2 + $0x790] sm:$0xff] }
  0xe1   :  { %5318 = vmatpush.bf16.msra.mxu3 %v8558_v32  ;;  %v8589_v32 = vld [vmem:[#allocation2 + $0x7d0] sm:$0xff] }
  0xe2   :  { %5280 = vmatpush.bf16.msra.mxu0 %v8533_v37  ;;  %v77_v37 = vld [vmem:[%s9228_s0 + $0x70] sm:$0xff] }
  0xe3   :  { %5293 = vmatpush.bf16.msra.mxu1 %v8541_v38  ;;  %v78_v38 = vld [vmem:[%s9228_s0 + $0x78] sm:$0xff]  ;;  %v1320_v47 = vunpack.c.h.b16 %v77_v37 }
  0xe4   :  { %5306 = vmatpush.bf16.msra.mxu2 %v8549_v41  ;;  %v8563_v41 = vld [vmem:[#allocation2 + $0x700] sm:$0xff]  ;;  %v1322_v48 = vunpack.c.h.b16 %v78_v38 }
  0xe5   :  { %5319 = vmatpush.bf16.msra.mxu3 %v8557_v42  ;;  %v8571_v42 = vld [vmem:[#allocation2 + $0x740] sm:$0xff] }
  0xe6   :  { %5281 = vmatpush.bf16.msra.mxu0 %v8532_v43  ;;  %v1319_v43 = vunpack.c.l.b16 %v77_v37 }
  0xe7   :  { %5294 = vmatpush.bf16.msra.mxu1 %v8540_v44  ;;  %v1321_v44 = vunpack.c.l.b16 %v78_v38 }
  0xe8   :  { %5307 = vmatpush.bf16.msra.mxu2 %v8548_v45  ;;  %v8579_v45 = vld [vmem:[#allocation2 + $0x780] sm:$0xff]  ;;  %v1391_v53 = vpack.c.b16 %v1319_v43, %v1319_v43 }
  0xe9   :  { %5320 = vmatpush.bf16.msra.mxu3 %v8556_v46  ;;  %v8587_v46 = vld [vmem:[#allocation2 + $0x7c0] sm:$0xff]  ;;  %v1393_v54 = vpack.c.b16 %v1321_v44, %v1321_v44 }
  0xea   :  { %5282 = vmatpush.bf16.msra.mxu0 %v8531_v51  ;;  %v5076_v11 = vpop.f32.mrf.mxu0  ;;  %v8618_v51 = vld [vmem:[#allocation2 + $0x8b8] sm:$0xff] }
  0xeb   :  { %5295 = vmatpush.bf16.msra.mxu1 %v8539_v52  ;;  %v5077_v12 = vadd.f32 %v5076_v11, %v9093_v39  ;;  %v5089_v15 = vpop.f32.mrf.mxu1  ;;  %v8626_v52 = vld [vmem:[#allocation2 + $0x8f8] sm:$0xff] }
  0xec   :  { %5308 = vmatpush.bf16.msra.mxu2 %v8547_v55  ;;  %v1392_v55 = vpack.c.b16 %v1320_v47, %v1320_v47  ;;  %v8614_v11 = vld [vmem:[#allocation2 + $0x898] sm:$0xff]  ;;  %v8633_v47 = vld [vmem:[#allocation2 + $0x930] sm:$0xff] }
  0xed   :  { %5321 = vmatpush.bf16.msra.mxu3 %v8555_v56  ;;  %5283 = vmatmul.bf16.vlgmr.msra.gmra.mxu0 %v1387_v63  ;;  %v5090_v18 = vadd.f32 %v5089_v15, %v5077_v12  ;;  %v1394_v56 = vpack.c.b16 %v1322_v48, %v1322_v48  ;;  %v8616_v63 = vld [vmem:[#allocation2 + $0x8a8] sm:$0xff]  ;;  %v8622_v12 = vld [vmem:[#allocation2 + $0x8d8] sm:$0xff]  ;;  %v8641_v48 = vld [vmem:[#allocation2 + $0x970] sm:$0xff] }
  0xee   :  { %5327 = vmatpush.bf16.msrb.mxu0 %v8570_v59  ;;  %5296 = vmatmul.bf16.vlgmr.msra.gmra.mxu1 %v1388_v1  ;;  %v8617_v59 = vld [vmem:[#allocation2 + $0x8b0] sm:$0xff] }
  0xef   :  { %5340 = vmatpush.bf16.msrb.mxu1 %v8578_v60  ;;  %5309 = vmatmul.bf16.vlgmr.msra.gmra.mxu2 %v1389_v0  ;;  %v8625_v60 = vld [vmem:[#allocation2 + $0x8f0] sm:$0xff]  ;;  %v8624_v0 = vld [vmem:[#allocation2 + $0x8e8] sm:$0xff] }
  0xf0   :  { %5353 = vmatpush.bf16.msrb.mxu2 %v8586_v61  ;;  %5322 = vmatmul.bf16.vlgmr.msra.gmra.mxu3 %v1390_v2  ;;  %v8600_v61 = vld [vmem:[#allocation2 + $0x828] sm:$0xff] }
  0xf1   :  { %5366 = vmatpush.bf16.msrb.mxu3 %v8594_v62  ;;  %v8608_v62 = vld [vmem:[#allocation2 + $0x868] sm:$0xff] }
  0xf2   :  { %5328 = vmatpush.bf16.msrb.mxu0 %v8569_v3  ;;  %v5102_v23 = vpop.f32.mrf.mxu2  ;;  %v5078_v26 = vpop.f32.mrf.mxu0  ;;  %v8599_v3 = vld [vmem:[#allocation2 + $0x820] sm:$0xff] }
  0xf3   :  { %5341 = vmatpush.bf16.msrb.mxu1 %v8577_v4  ;;  %v5103_v24 = vadd.f32 %v5102_v23, %v5090_v18  ;;  %v5115_v25 = vpop.f32.mrf.mxu3  ;;  %v5091_v30 = vpop.f32.mrf.mxu1  ;;  %v8607_v4 = vld [vmem:[#allocation2 + $0x860] sm:$0xff]  ;;  %v8597_v18 = vld [vmem:[#allocation2 + $0x810] sm:$0xff]  ;;  %v8596_v23 = vld [vmem:[#allocation2 + $0x808] sm:$0xff] }
  0xf4   :  { %5354 = vmatpush.bf16.msrb.mxu2 %v8585_v5  ;;  %v8620_v26 = vld [vmem:[#allocation2 + $0x8c8] sm:$0xff] }
  0xf5   :  { %5367 = vmatpush.bf16.msrb.mxu3 %v8593_v6  ;;  %v9102_v27 = vadd.f32 %v5115_v25, %v5103_v24  ;;  %v8615_v6 = vld [vmem:[#allocation2 + $0x8a0] sm:$0xff]  ;;  %v8604_v24 = vld [vmem:[#allocation2 + $0x848] sm:$0xff] }
  0xf6   :  { %5329 = vmatpush.bf16.msrb.mxu0 %v8568_v7  ;;  %v8623_v7 = vld [vmem:[#allocation2 + $0x8e0] sm:$0xff]  ;;  %v8612_v25 = vld [vmem:[#allocation2 + $0x888] sm:$0xff] }
  0xf7   :  { %5342 = vmatpush.bf16.msrb.mxu1 %v8576_v8 }
  0xf8   :  { %5355 = vmatpush.bf16.msrb.mxu2 %v8584_v9  ;;  %v8598_v9 = vld [vmem:[#allocation2 + $0x818] sm:$0xff] }
  0xf9   :  { %5368 = vmatpush.bf16.msrb.mxu3 %v8592_v10  ;;  %v8606_v10 = vld [vmem:[#allocation2 + $0x858] sm:$0xff] }
  0xfa   :  { %5330 = vmatpush.bf16.msrb.mxu0 %v8567_v13  ;;  %v5104_v39 = vpop.f32.mrf.mxu2 }
  0xfb   :  { %5343 = vmatpush.bf16.msrb.mxu1 %v8575_v14  ;;  %v5117_v40 = vpop.f32.mrf.mxu3  ;;  %v8634_v39 = vld [vmem:[#allocation2 + $0x938] sm:$0xff] }
  0xfc   :  { %5356 = vmatpush.bf16.msrb.mxu2 %v8583_v16  ;;  %v8642_v40 = vld [vmem:[#allocation2 + $0x978] sm:$0xff] }
  0xfd   :  { %5369 = vmatpush.bf16.msrb.mxu3 %v8591_v17 }
  0xfe   :  { %5331 = vmatpush.bf16.msrb.mxu0 %v8566_v19  ;;  %v8605_v19 = vld [vmem:[#allocation2 + $0x850] sm:$0xff] }
  0xff   :  { %5344 = vmatpush.bf16.msrb.mxu1 %v8574_v20 }
 0x100   :  { %5357 = vmatpush.bf16.msrb.mxu2 %v8582_v21  ;;  %v8613_v21 = vld [vmem:[#allocation2 + $0x890] sm:$0xff] }
 0x101   :  { %5370 = vmatpush.bf16.msrb.mxu3 %v8590_v22  ;;  %v8621_v22 = vld [vmem:[#allocation2 + $0x8d0] sm:$0xff] }
 0x102   :  { %5332 = vmatpush.bf16.msrb.mxu0 %v8565_v28  ;;  %v80_v28 = vld [vmem:[%s9228_s0 + $0x88] sm:$0xff] }
 0x103   :  { %5345 = vmatpush.bf16.msrb.mxu1 %v8573_v29  ;;  %v1326_v38 = vunpack.c.h.b16 %v80_v28 }
 0x104   :  { %5358 = vmatpush.bf16.msrb.mxu2 %v8581_v31  ;;  %v8595_v31 = vld [vmem:[#allocation2 + $0x800] sm:$0xff] }
 0x105   :  { %5371 = vmatpush.bf16.msrb.mxu3 %v8589_v32  ;;  %v8603_v32 = vld [vmem:[#allocation2 + $0x840] sm:$0xff] }
 0x106   :  { %5333 = vmatpush.bf16.msrb.mxu0 %v8564_v33 }
 0x107   :  { %5346 = vmatpush.bf16.msrb.mxu1 %v8572_v34  ;;  %v1325_v34 = vunpack.c.l.b16 %v80_v28 }
 0x108   :  { %5359 = vmatpush.bf16.msrb.mxu2 %v8580_v35  ;;  %v8611_v35 = vld [vmem:[#allocation2 + $0x880] sm:$0xff] }
 0x109   :  { %5372 = vmatpush.bf16.msrb.mxu3 %v8588_v36  ;;  %v8619_v36 = vld [vmem:[#allocation2 + $0x8c0] sm:$0xff]  ;;  %v1397_v44 = vpack.c.b16 %v1325_v34, %v1325_v34 }
 0x10a   :  { %5334 = vmatpush.bf16.msrb.mxu0 %v8563_v41  ;;  %v5128_v1 = vpop.f32.mrf.mxu0  ;;  %v8650_v41 = vld [vmem:[#allocation2 + $0x9b8] sm:$0xff] }
 0x10b   :  { %5347 = vmatpush.bf16.msrb.mxu1 %v8571_v42  ;;  %v5129_v2 = vadd.f32 %v5128_v1, %v9102_v27  ;;  %v5141_v5 = vpop.f32.mrf.mxu1  ;;  %v79_v27 = vld [vmem:[%s9228_s0 + $0x80] sm:$0xff]  ;;  %v8658_v42 = vld [vmem:[#allocation2 + $0x9f8] sm:$0xff] }
 0x10c   :  { %5360 = vmatpush.bf16.msrb.mxu2 %v8579_v45  ;;  %v1323_v33 = vunpack.c.l.b16 %v79_v27  ;;  %v1324_v37 = vunpack.c.h.b16 %v79_v27  ;;  %v8646_v1 = vld [vmem:[#allocation2 + $0x998] sm:$0xff] }
 0x10d   :  { %5373 = vmatpush.bf16.msrb.mxu3 %v8587_v46  ;;  %5335 = vmatmul.bf16.vlgmr.msrb.gmra.mxu0 %v1391_v53  ;;  %v5142_v8 = vadd.f32 %v5141_v5, %v5129_v2  ;;  %v1398_v46 = vpack.c.b16 %v1326_v38, %v1326_v38  ;;  %v8648_v53 = vld [vmem:[#allocation2 + $0x9a8] sm:$0xff]  ;;  %v8654_v2 = vld [vmem:[#allocation2 + $0x9d8] sm:$0xff]  ;;  %v8673_v38 = vld [vmem:[#allocation2 + $0xa70] sm:$0xff] }
 0x10e   :  { %5379 = vmatpush.bf16.msra.mxu0 %v8602_v49  ;;  %5348 = vmatmul.bf16.vlgmr.msrb.gmra.mxu1 %v1392_v55  ;;  %v1395_v43 = vpack.c.b16 %v1323_v33, %v1323_v33  ;;  %v1396_v45 = vpack.c.b16 %v1324_v37, %v1324_v37  ;;  %v8649_v49 = vld [vmem:[#allocation2 + $0x9b0] sm:$0xff] }
 0x10f   :  { %5392 = vmatpush.bf16.msra.mxu1 %v8610_v50  ;;  %5361 = vmatmul.bf16.vlgmr.msrb.gmra.mxu2 %v1393_v54  ;;  %v8657_v50 = vld [vmem:[#allocation2 + $0x9f0] sm:$0xff]  ;;  %v8656_v54 = vld [vmem:[#allocation2 + $0x9e8] sm:$0xff] }
 0x110   :  { %5405 = vmatpush.bf16.msra.mxu2 %v8618_v51  ;;  %5374 = vmatmul.bf16.vlgmr.msrb.gmra.mxu3 %v1394_v56  ;;  %v8632_v51 = vld [vmem:[#allocation2 + $0x928] sm:$0xff]  ;;  %v8665_v37 = vld [vmem:[#allocation2 + $0xa30] sm:$0xff] }
 0x111   :  { %5418 = vmatpush.bf16.msra.mxu3 %v8626_v52  ;;  %v8640_v52 = vld [vmem:[#allocation2 + $0x968] sm:$0xff] }
 0x112   :  { %5380 = vmatpush.bf16.msra.mxu0 %v8601_v57  ;;  %v5154_v13 = vpop.f32.mrf.mxu2  ;;  %v5130_v16 = vpop.f32.mrf.mxu0  ;;  %v8631_v57 = vld [vmem:[#allocation2 + $0x920] sm:$0xff] }
 0x113   :  { %5393 = vmatpush.bf16.msra.mxu1 %v8609_v58  ;;  %v5155_v14 = vadd.f32 %v5154_v13, %v5142_v8  ;;  %v5167_v15 = vpop.f32.mrf.mxu3  ;;  %v5143_v20 = vpop.f32.mrf.mxu1  ;;  %v8639_v58 = vld [vmem:[#allocation2 + $0x960] sm:$0xff]  ;;  %v8629_v8 = vld [vmem:[#allocation2 + $0x910] sm:$0xff]  ;;  %v8628_v13 = vld [vmem:[#allocation2 + $0x908] sm:$0xff] }
 0x114   :  { %5406 = vmatpush.bf16.msra.mxu2 %v8617_v59  ;;  %v8652_v16 = vld [vmem:[#allocation2 + $0x9c8] sm:$0xff] }
 0x115   :  { %5419 = vmatpush.bf16.msra.mxu3 %v8625_v60  ;;  %v9111_v17 = vadd.f32 %v5167_v15, %v5155_v14  ;;  %v8647_v60 = vld [vmem:[#allocation2 + $0x9a0] sm:$0xff]  ;;  %v8636_v14 = vld [vmem:[#allocation2 + $0x948] sm:$0xff] }
 0x116   :  { %5381 = vmatpush.bf16.msra.mxu0 %v8600_v61  ;;  %v8655_v61 = vld [vmem:[#allocation2 + $0x9e0] sm:$0xff]  ;;  %v8644_v15 = vld [vmem:[#allocation2 + $0x988] sm:$0xff] }
 0x117   :  { %5394 = vmatpush.bf16.msra.mxu1 %v8608_v62 }
 0x118   :  { %5407 = vmatpush.bf16.msra.mxu2 %v8616_v63  ;;  %v8630_v63 = vld [vmem:[#allocation2 + $0x918] sm:$0xff] }
 0x119   :  { %5420 = vmatpush.bf16.msra.mxu3 %v8624_v0  ;;  %v8638_v0 = vld [vmem:[#allocation2 + $0x958] sm:$0xff] }
 0x11a   :  { %5382 = vmatpush.bf16.msra.mxu0 %v8599_v3  ;;  %v5156_v29 = vpop.f32.mrf.mxu2 }
 0x11b   :  { %5395 = vmatpush.bf16.msra.mxu1 %v8607_v4  ;;  %v5169_v30 = vpop.f32.mrf.mxu3  ;;  %v8666_v29 = vld [vmem:[#allocation2 + $0xa38] sm:$0xff] }
 0x11c   :  { %5408 = vmatpush.bf16.msra.mxu2 %v8615_v6  ;;  %v8674_v30 = vld [vmem:[#allocation2 + $0xa78] sm:$0xff] }
 0x11d   :  { %5421 = vmatpush.bf16.msra.mxu3 %v8623_v7 }
 0x11e   :  { %5383 = vmatpush.bf16.msra.mxu0 %v8598_v9  ;;  %v8637_v9 = vld [vmem:[#allocation2 + $0x950] sm:$0xff] }
 0x11f   :  { %5396 = vmatpush.bf16.msra.mxu1 %v8606_v10 }
 0x120   :  { %5409 = vmatpush.bf16.msra.mxu2 %v8614_v11  ;;  %v8645_v11 = vld [vmem:[#allocation2 + $0x990] sm:$0xff] }
 0x121   :  { %5422 = vmatpush.bf16.msra.mxu3 %v8622_v12  ;;  %v8653_v12 = vld [vmem:[#allocation2 + $0x9d0] sm:$0xff] }
 0x122   :  { %5384 = vmatpush.bf16.msra.mxu0 %v8597_v18  ;;  %v82_v18 = vld [vmem:[%s9228_s0 + $0x98] sm:$0xff] }
 0x123   :  { %5397 = vmatpush.bf16.msra.mxu1 %v8605_v19  ;;  %v1330_v28 = vunpack.c.h.b16 %v82_v18 }
 0x124   :  { %5410 = vmatpush.bf16.msra.mxu2 %v8613_v21  ;;  %v8627_v21 = vld [vmem:[#allocation2 + $0x900] sm:$0xff] }
 0x125   :  { %5423 = vmatpush.bf16.msra.mxu3 %v8621_v22  ;;  %v8635_v22 = vld [vmem:[#allocation2 + $0x940] sm:$0xff] }
 0x126   :  { %5385 = vmatpush.bf16.msra.mxu0 %v8596_v23 }
 0x127   :  { %5398 = vmatpush.bf16.msra.mxu1 %v8604_v24  ;;  %v1329_v24 = vunpack.c.l.b16 %v82_v18 }
 0x128   :  { %5411 = vmatpush.bf16.msra.mxu2 %v8612_v25  ;;  %v8643_v25 = vld [vmem:[#allocation2 + $0x980] sm:$0xff] }
 0x129   :  { %5424 = vmatpush.bf16.msra.mxu3 %v8620_v26  ;;  %v8651_v26 = vld [vmem:[#allocation2 + $0x9c0] sm:$0xff]  ;;  %v1401_v34 = vpack.c.b16 %v1329_v24, %v1329_v24 }
 0x12a   :  { %5386 = vmatpush.bf16.msra.mxu0 %v8595_v31  ;;  %v5180_v55 = vpop.f32.mrf.mxu0  ;;  %v8682_v31 = vld [vmem:[#allocation2 + $0xab8] sm:$0xff] }
 0x12b   :  { %5399 = vmatpush.bf16.msra.mxu1 %v8603_v32  ;;  %v5181_v56 = vadd.f32 %v5180_v55, %v9111_v17  ;;  %v5193_v59 = vpop.f32.mrf.mxu1  ;;  %v81_v17 = vld [vmem:[%s9228_s0 + $0x90] sm:$0xff]  ;;  %v8690_v32 = vld [vmem:[#allocation2 + $0xaf8] sm:$0xff] }
 0x12c   :  { %5412 = vmatpush.bf16.msra.mxu2 %v8611_v35  ;;  %v1327_v23 = vunpack.c.l.b16 %v81_v17  ;;  %v1328_v27 = vunpack.c.h.b16 %v81_v17  ;;  %v8678_v55 = vld [vmem:[#allocation2 + $0xa98] sm:$0xff] }
 0x12d   :  { %5425 = vmatpush.bf16.msra.mxu3 %v8619_v36  ;;  %5387 = vmatmul.bf16.vlgmr.msra.gmra.mxu0 %v1395_v43  ;;  %v5194_v62 = vadd.f32 %v5193_v59, %v5181_v56  ;;  %v1402_v36 = vpack.c.b16 %v1330_v28, %v1330_v28  ;;  %v8680_v43 = vld [vmem:[#allocation2 + $0xaa8] sm:$0xff]  ;;  %v8686_v56 = vld [vmem:[#allocation2 + $0xad8] sm:$0xff]  ;;  %v8705_v28 = vld [vmem:[#allocation2 + $0xb70] sm:$0xff] }
 0x12e   :  { %5431 = vmatpush.bf16.msrb.mxu0 %v8634_v39  ;;  %5400 = vmatmul.bf16.vlgmr.msra.gmra.mxu1 %v1396_v45  ;;  %v1399_v33 = vpack.c.b16 %v1327_v23, %v1327_v23  ;;  %v1400_v35 = vpack.c.b16 %v1328_v27, %v1328_v27  ;;  %v8681_v39 = vld [vmem:[#allocation2 + $0xab0] sm:$0xff] }
 0x12f   :  { %5444 = vmatpush.bf16.msrb.mxu1 %v8642_v40  ;;  %5413 = vmatmul.bf16.vlgmr.msra.gmra.mxu2 %v1397_v44  ;;  %v8689_v40 = vld [vmem:[#allocation2 + $0xaf0] sm:$0xff]  ;;  %v8688_v44 = vld [vmem:[#allocation2 + $0xae8] sm:$0xff] }
 0x130   :  { %5457 = vmatpush.bf16.msrb.mxu2 %v8650_v41  ;;  %5426 = vmatmul.bf16.vlgmr.msra.gmra.mxu3 %v1398_v46  ;;  %v8664_v41 = vld [vmem:[#allocation2 + $0xa28] sm:$0xff]  ;;  %v8697_v27 = vld [vmem:[#allocation2 + $0xb30] sm:$0xff] }
 0x131   :  { %5470 = vmatpush.bf16.msrb.mxu3 %v8658_v42  ;;  %v8672_v42 = vld [vmem:[#allocation2 + $0xa68] sm:$0xff] }
 0x132   :  { %5432 = vmatpush.bf16.msrb.mxu0 %v8633_v47  ;;  %v5206_v3 = vpop.f32.mrf.mxu2  ;;  %v5182_v6 = vpop.f32.mrf.mxu0  ;;  %v8663_v47 = vld [vmem:[#allocation2 + $0xa20] sm:$0xff] }
 0x133   :  { %5445 = vmatpush.bf16.msrb.mxu1 %v8641_v48  ;;  %v5207_v4 = vadd.f32 %v5206_v3, %v5194_v62  ;;  %v5219_v5 = vpop.f32.mrf.mxu3  ;;  %v5195_v10 = vpop.f32.mrf.mxu1  ;;  %v8671_v48 = vld [vmem:[#allocation2 + $0xa60] sm:$0xff]  ;;  %v8661_v62 = vld [vmem:[#allocation2 + $0xa10] sm:$0xff]  ;;  %v8660_v3 = vld [vmem:[#allocation2 + $0xa08] sm:$0xff] }
 0x134   :  { %5458 = vmatpush.bf16.msrb.mxu2 %v8649_v49  ;;  %v8684_v6 = vld [vmem:[#allocation2 + $0xac8] sm:$0xff] }
 0x135   :  { %5471 = vmatpush.bf16.msrb.mxu3 %v8657_v50  ;;  %v9120_v7 = vadd.f32 %v5219_v5, %v5207_v4  ;;  %v8679_v50 = vld [vmem:[#allocation2 + $0xaa0] sm:$0xff]  ;;  %v8668_v4 = vld [vmem:[#allocation2 + $0xa48] sm:$0xff] }
 0x136   :  { %5433 = vmatpush.bf16.msrb.mxu0 %v8632_v51  ;;  %v8687_v51 = vld [vmem:[#allocation2 + $0xae0] sm:$0xff]  ;;  %v8676_v5 = vld [vmem:[#allocation2 + $0xa88] sm:$0xff] }
 0x137   :  { %5446 = vmatpush.bf16.msrb.mxu1 %v8640_v52 }
 0x138   :  { %5459 = vmatpush.bf16.msrb.mxu2 %v8648_v53  ;;  %v8662_v53 = vld [vmem:[#allocation2 + $0xa18] sm:$0xff] }
 0x139   :  { %5472 = vmatpush.bf16.msrb.mxu3 %v8656_v54  ;;  %v8670_v54 = vld [vmem:[#allocation2 + $0xa58] sm:$0xff] }
 0x13a   :  { %5434 = vmatpush.bf16.msrb.mxu0 %v8631_v57  ;;  %v5208_v19 = vpop.f32.mrf.mxu2 }
 0x13b   :  { %5447 = vmatpush.bf16.msrb.mxu1 %v8639_v58  ;;  %v5221_v20 = vpop.f32.mrf.mxu3  ;;  %v8698_v19 = vld [vmem:[#allocation2 + $0xb38] sm:$0xff] }
 0x13c   :  { %5460 = vmatpush.bf16.msrb.mxu2 %v8647_v60  ;;  %v8706_v20 = vld [vmem:[#allocation2 + $0xb78] sm:$0xff] }
 0x13d   :  { %5473 = vmatpush.bf16.msrb.mxu3 %v8655_v61 }
 0x13e   :  { %5435 = vmatpush.bf16.msrb.mxu0 %v8630_v63  ;;  %v8669_v63 = vld [vmem:[#allocation2 + $0xa50] sm:$0xff] }
 0x13f   :  { %5448 = vmatpush.bf16.msrb.mxu1 %v8638_v0 }
 0x140   :  { %5461 = vmatpush.bf16.msrb.mxu2 %v8646_v1  ;;  %v8677_v1 = vld [vmem:[#allocation2 + $0xa90] sm:$0xff] }
 0x141   :  { %5474 = vmatpush.bf16.msrb.mxu3 %v8654_v2  ;;  %v8685_v2 = vld [vmem:[#allocation2 + $0xad0] sm:$0xff] }
 0x142   :  { %5436 = vmatpush.bf16.msrb.mxu0 %v8629_v8  ;;  %v84_v8 = vld [vmem:[%s9228_s0 + $0xa8] sm:$0xff] }
 0x143   :  { %5449 = vmatpush.bf16.msrb.mxu1 %v8637_v9  ;;  %v1334_v18 = vunpack.c.h.b16 %v84_v8 }
 0x144   :  { %5462 = vmatpush.bf16.msrb.mxu2 %v8645_v11  ;;  %v8659_v11 = vld [vmem:[#allocation2 + $0xa00] sm:$0xff] }
 0x145   :  { %5475 = vmatpush.bf16.msrb.mxu3 %v8653_v12  ;;  %v8667_v12 = vld [vmem:[#allocation2 + $0xa40] sm:$0xff] }
 0x146   :  { %5437 = vmatpush.bf16.msrb.mxu0 %v8628_v13 }
 0x147   :  { %5450 = vmatpush.bf16.msrb.mxu1 %v8636_v14  ;;  %v1333_v14 = vunpack.c.l.b16 %v84_v8 }
 0x148   :  { %5463 = vmatpush.bf16.msrb.mxu2 %v8644_v15  ;;  %v8675_v15 = vld [vmem:[#allocation2 + $0xa80] sm:$0xff] }
 0x149   :  { %5476 = vmatpush.bf16.msrb.mxu3 %v8652_v16  ;;  %v8683_v16 = vld [vmem:[#allocation2 + $0xac0] sm:$0xff]  ;;  %v1405_v24 = vpack.c.b16 %v1333_v14, %v1333_v14 }
 0x14a   :  { %5438 = vmatpush.bf16.msrb.mxu0 %v8627_v21  ;;  %v5232_v45 = vpop.f32.mrf.mxu0  ;;  %v8714_v21 = vld [vmem:[#allocation2 + $0xbb8] sm:$0xff] }
 0x14b   :  { %5451 = vmatpush.bf16.msrb.mxu1 %v8635_v22  ;;  %v5233_v46 = vadd.f32 %v5232_v45, %v9120_v7  ;;  %v5245_v49 = vpop.f32.mrf.mxu1  ;;  %v83_v7 = vld [vmem:[%s9228_s0 + $0xa0] sm:$0xff]  ;;  %v8722_v22 = vld [vmem:[#allocation2 + $0xbf8] sm:$0xff] }
 0x14c   :  { %5464 = vmatpush.bf16.msrb.mxu2 %v8643_v25  ;;  %v1331_v13 = vunpack.c.l.b16 %v83_v7  ;;  %v1332_v17 = vunpack.c.h.b16 %v83_v7  ;;  %v8710_v45 = vld [vmem:[#allocation2 + $0xb98] sm:$0xff] }
 0x14d   :  { %5477 = vmatpush.bf16.msrb.mxu3 %v8651_v26  ;;  %5439 = vmatmul.bf16.vlgmr.msrb.gmra.mxu0 %v1399_v33  ;;  %v5246_v52 = vadd.f32 %v5245_v49, %v5233_v46  ;;  %v1406_v26 = vpack.c.b16 %v1334_v18, %v1334_v18  ;;  %v8712_v33 = vld [vmem:[#allocation2 + $0xba8] sm:$0xff]  ;;  %v8718_v46 = vld [vmem:[#allocation2 + $0xbd8] sm:$0xff]  ;;  %v8737_v18 = vld [vmem:[#allocation2 + $0xc70] sm:$0xff] }
 0x14e   :  { %5483 = vmatpush.bf16.msra.mxu0 %v8666_v29  ;;  %5452 = vmatmul.bf16.vlgmr.msrb.gmra.mxu1 %v1400_v35  ;;  %v1403_v23 = vpack.c.b16 %v1331_v13, %v1331_v13  ;;  %v1404_v25 = vpack.c.b16 %v1332_v17, %v1332_v17  ;;  %v8713_v29 = vld [vmem:[#allocation2 + $0xbb0] sm:$0xff] }
 0x14f   :  { %5496 = vmatpush.bf16.msra.mxu1 %v8674_v30  ;;  %5465 = vmatmul.bf16.vlgmr.msrb.gmra.mxu2 %v1401_v34  ;;  %v8721_v30 = vld [vmem:[#allocation2 + $0xbf0] sm:$0xff]  ;;  %v8720_v34 = vld [vmem:[#allocation2 + $0xbe8] sm:$0xff] }
 0x150   :  { %5509 = vmatpush.bf16.msra.mxu2 %v8682_v31  ;;  %5478 = vmatmul.bf16.vlgmr.msrb.gmra.mxu3 %v1402_v36  ;;  %v8696_v31 = vld [vmem:[#allocation2 + $0xb28] sm:$0xff]  ;;  %v8729_v17 = vld [vmem:[#allocation2 + $0xc30] sm:$0xff] }
 0x151   :  { %5522 = vmatpush.bf16.msra.mxu3 %v8690_v32  ;;  %v8704_v32 = vld [vmem:[#allocation2 + $0xb68] sm:$0xff] }
 0x152   :  { %5484 = vmatpush.bf16.msra.mxu0 %v8665_v37  ;;  %v5258_v57 = vpop.f32.mrf.mxu2  ;;  %v5234_v60 = vpop.f32.mrf.mxu0  ;;  %v8695_v37 = vld [vmem:[#allocation2 + $0xb20] sm:$0xff] }
 0x153   :  { %5497 = vmatpush.bf16.msra.mxu1 %v8673_v38  ;;  %v5259_v58 = vadd.f32 %v5258_v57, %v5246_v52  ;;  %v5271_v59 = vpop.f32.mrf.mxu3  ;;  %v5247_v0 = vpop.f32.mrf.mxu1  ;;  %v8703_v38 = vld [vmem:[#allocation2 + $0xb60] sm:$0xff]  ;;  %v8693_v52 = vld [vmem:[#allocation2 + $0xb10] sm:$0xff]  ;;  %v8692_v57 = vld [vmem:[#allocation2 + $0xb08] sm:$0xff] }
 0x154   :  { %5510 = vmatpush.bf16.msra.mxu2 %v8681_v39  ;;  %v8716_v60 = vld [vmem:[#allocation2 + $0xbc8] sm:$0xff] }
 0x155   :  { %5523 = vmatpush.bf16.msra.mxu3 %v8689_v40  ;;  %v9129_v61 = vadd.f32 %v5271_v59, %v5259_v58  ;;  %v8711_v40 = vld [vmem:[#allocation2 + $0xba0] sm:$0xff]  ;;  %v8700_v58 = vld [vmem:[#allocation2 + $0xb48] sm:$0xff] }
 0x156   :  { %5485 = vmatpush.bf16.msra.mxu0 %v8664_v41  ;;  %v8719_v41 = vld [vmem:[#allocation2 + $0xbe0] sm:$0xff]  ;;  %v8708_v59 = vld [vmem:[#allocation2 + $0xb88] sm:$0xff] }
 0x157   :  { %5498 = vmatpush.bf16.msra.mxu1 %v8672_v42 }
 0x158   :  { %5511 = vmatpush.bf16.msra.mxu2 %v8680_v43  ;;  %v8694_v43 = vld [vmem:[#allocation2 + $0xb18] sm:$0xff] }
 0x159   :  { %5524 = vmatpush.bf16.msra.mxu3 %v8688_v44  ;;  %v8702_v44 = vld [vmem:[#allocation2 + $0xb58] sm:$0xff] }
 0x15a   :  { %5486 = vmatpush.bf16.msra.mxu0 %v8663_v47  ;;  %v5260_v9 = vpop.f32.mrf.mxu2 }
 0x15b   :  { %5499 = vmatpush.bf16.msra.mxu1 %v8671_v48  ;;  %v5273_v10 = vpop.f32.mrf.mxu3  ;;  %v8730_v9 = vld [vmem:[#allocation2 + $0xc38] sm:$0xff] }
 0x15c   :  { %5512 = vmatpush.bf16.msra.mxu2 %v8679_v50  ;;  %v8738_v10 = vld [vmem:[#allocation2 + $0xc78] sm:$0xff] }
 0x15d   :  { %5525 = vmatpush.bf16.msra.mxu3 %v8687_v51 }
 0x15e   :  { %5487 = vmatpush.bf16.msra.mxu0 %v8662_v53  ;;  %v8701_v53 = vld [vmem:[#allocation2 + $0xb50] sm:$0xff] }
 0x15f   :  { %5500 = vmatpush.bf16.msra.mxu1 %v8670_v54 }
 0x160   :  { %5513 = vmatpush.bf16.msra.mxu2 %v8678_v55  ;;  %v8709_v55 = vld [vmem:[#allocation2 + $0xb90] sm:$0xff] }
 0x161   :  { %5526 = vmatpush.bf16.msra.mxu3 %v8686_v56  ;;  %v8717_v56 = vld [vmem:[#allocation2 + $0xbd0] sm:$0xff] }
 0x162   :  { %5488 = vmatpush.bf16.msra.mxu0 %v8661_v62  ;;  %v86_v62 = vld [vmem:[%s9228_s0 + $0xb8] sm:$0xff] }
 0x163   :  { %5501 = vmatpush.bf16.msra.mxu1 %v8669_v63  ;;  %v1338_v8 = vunpack.c.h.b16 %v86_v62 }
 0x164   :  { %5514 = vmatpush.bf16.msra.mxu2 %v8677_v1  ;;  %v8691_v1 = vld [vmem:[#allocation2 + $0xb00] sm:$0xff] }
 0x165   :  { %5527 = vmatpush.bf16.msra.mxu3 %v8685_v2  ;;  %v8699_v2 = vld [vmem:[#allocation2 + $0xb40] sm:$0xff] }
 0x166   :  { %5489 = vmatpush.bf16.msra.mxu0 %v8660_v3 }
 0x167   :  { %5502 = vmatpush.bf16.msra.mxu1 %v8668_v4  ;;  %v1337_v4 = vunpack.c.l.b16 %v86_v62 }
 0x168   :  { %5515 = vmatpush.bf16.msra.mxu2 %v8676_v5  ;;  %v8707_v5 = vld [vmem:[#allocation2 + $0xb80] sm:$0xff] }
 0x169   :  { %5528 = vmatpush.bf16.msra.mxu3 %v8684_v6  ;;  %v8715_v6 = vld [vmem:[#allocation2 + $0xbc0] sm:$0xff]  ;;  %v1409_v14 = vpack.c.b16 %v1337_v4, %v1337_v4 }
 0x16a   :  { %5490 = vmatpush.bf16.msra.mxu0 %v8659_v11  ;;  %v5284_v35 = vpop.f32.mrf.mxu0  ;;  %v8746_v11 = vld [vmem:[#allocation2 + $0xcb8] sm:$0xff] }
 0x16b   :  { %5503 = vmatpush.bf16.msra.mxu1 %v8667_v12  ;;  %v5285_v36 = vadd.f32 %v5284_v35, %v9129_v61  ;;  %v5297_v39 = vpop.f32.mrf.mxu1  ;;  %v85_v61 = vld [vmem:[%s9228_s0 + $0xb0] sm:$0xff]  ;;  %v8754_v12 = vld [vmem:[#allocation2 + $0xcf8] sm:$0xff] }
 0x16c   :  { %5516 = vmatpush.bf16.msra.mxu2 %v8675_v15  ;;  %v1335_v3 = vunpack.c.l.b16 %v85_v61  ;;  %v1336_v7 = vunpack.c.h.b16 %v85_v61  ;;  %v8742_v35 = vld [vmem:[#allocation2 + $0xc98] sm:$0xff] }
 0x16d   :  { %5529 = vmatpush.bf16.msra.mxu3 %v8683_v16  ;;  %5491 = vmatmul.bf16.vlgmr.msra.gmra.mxu0 %v1403_v23  ;;  %v5298_v42 = vadd.f32 %v5297_v39, %v5285_v36  ;;  %v1410_v16 = vpack.c.b16 %v1338_v8, %v1338_v8  ;;  %v8744_v23 = vld [vmem:[#allocation2 + $0xca8] sm:$0xff]  ;;  %v8750_v36 = vld [vmem:[#allocation2 + $0xcd8] sm:$0xff]  ;;  %v8769_v8 = vld [vmem:[#allocation2 + $0xd70] sm:$0xff] }
 0x16e   :  { %5535 = vmatpush.bf16.msrb.mxu0 %v8698_v19  ;;  %5504 = vmatmul.bf16.vlgmr.msra.gmra.mxu1 %v1404_v25  ;;  %v1407_v13 = vpack.c.b16 %v1335_v3, %v1335_v3  ;;  %v1408_v15 = vpack.c.b16 %v1336_v7, %v1336_v7  ;;  %v8745_v19 = vld [vmem:[#allocation2 + $0xcb0] sm:$0xff] }
 0x16f   :  { %5548 = vmatpush.bf16.msrb.mxu1 %v8706_v20  ;;  %5517 = vmatmul.bf16.vlgmr.msra.gmra.mxu2 %v1405_v24  ;;  %v8753_v20 = vld [vmem:[#allocation2 + $0xcf0] sm:$0xff]  ;;  %v8752_v24 = vld [vmem:[#allocation2 + $0xce8] sm:$0xff] }
 0x170   :  { %5561 = vmatpush.bf16.msrb.mxu2 %v8714_v21  ;;  %5530 = vmatmul.bf16.vlgmr.msra.gmra.mxu3 %v1406_v26  ;;  %v8728_v21 = vld [vmem:[#allocation2 + $0xc28] sm:$0xff]  ;;  %v8761_v7 = vld [vmem:[#allocation2 + $0xd30] sm:$0xff] }
 0x171   :  { %5574 = vmatpush.bf16.msrb.mxu3 %v8722_v22  ;;  %v8736_v22 = vld [vmem:[#allocation2 + $0xc68] sm:$0xff] }
 0x172   :  { %5536 = vmatpush.bf16.msrb.mxu0 %v8697_v27  ;;  %v5310_v47 = vpop.f32.mrf.mxu2  ;;  %v5286_v50 = vpop.f32.mrf.mxu0  ;;  %v8727_v27 = vld [vmem:[#allocation2 + $0xc20] sm:$0xff] }
 0x173   :  { %5549 = vmatpush.bf16.msrb.mxu1 %v8705_v28  ;;  %v5311_v48 = vadd.f32 %v5310_v47, %v5298_v42  ;;  %v5323_v49 = vpop.f32.mrf.mxu3  ;;  %v5299_v54 = vpop.f32.mrf.mxu1  ;;  %v8735_v28 = vld [vmem:[#allocation2 + $0xc60] sm:$0xff]  ;;  %v8725_v42 = vld [vmem:[#allocation2 + $0xc10] sm:$0xff]  ;;  %v8724_v47 = vld [vmem:[#allocation2 + $0xc08] sm:$0xff] }
 0x174   :  { %5562 = vmatpush.bf16.msrb.mxu2 %v8713_v29  ;;  %v8748_v50 = vld [vmem:[#allocation2 + $0xcc8] sm:$0xff] }
 0x175   :  { %5575 = vmatpush.bf16.msrb.mxu3 %v8721_v30  ;;  %v9138_v51 = vadd.f32 %v5323_v49, %v5311_v48  ;;  %v8743_v30 = vld [vmem:[#allocation2 + $0xca0] sm:$0xff]  ;;  %v8732_v48 = vld [vmem:[#allocation2 + $0xc48] sm:$0xff] }
 0x176   :  { %5537 = vmatpush.bf16.msrb.mxu0 %v8696_v31  ;;  %v8751_v31 = vld [vmem:[#allocation2 + $0xce0] sm:$0xff]  ;;  %v8740_v49 = vld [vmem:[#allocation2 + $0xc88] sm:$0xff] }
 0x177   :  { %5550 = vmatpush.bf16.msrb.mxu1 %v8704_v32 }
 0x178   :  { %5563 = vmatpush.bf16.msrb.mxu2 %v8712_v33  ;;  %v8726_v33 = vld [vmem:[#allocation2 + $0xc18] sm:$0xff] }
 0x179   :  { %5576 = vmatpush.bf16.msrb.mxu3 %v8720_v34  ;;  %v8734_v34 = vld [vmem:[#allocation2 + $0xc58] sm:$0xff] }
 0x17a   :  { %5538 = vmatpush.bf16.msrb.mxu0 %v8695_v37  ;;  %v5312_v63 = vpop.f32.mrf.mxu2 }
 0x17b   :  { %5551 = vmatpush.bf16.msrb.mxu1 %v8703_v38  ;;  %v5325_v0 = vpop.f32.mrf.mxu3  ;;  %v8762_v63 = vld [vmem:[#allocation2 + $0xd38] sm:$0xff] }
 0x17c   :  { %5564 = vmatpush.bf16.msrb.mxu2 %v8711_v40  ;;  %v8770_v0 = vld [vmem:[#allocation2 + $0xd78] sm:$0xff] }
 0x17d   :  { %5577 = vmatpush.bf16.msrb.mxu3 %v8719_v41 }
 0x17e   :  { %5539 = vmatpush.bf16.msrb.mxu0 %v8694_v43  ;;  %v8733_v43 = vld [vmem:[#allocation2 + $0xc50] sm:$0xff] }
 0x17f   :  { %5552 = vmatpush.bf16.msrb.mxu1 %v8702_v44 }
 0x180   :  { %5565 = vmatpush.bf16.msrb.mxu2 %v8710_v45  ;;  %v8741_v45 = vld [vmem:[#allocation2 + $0xc90] sm:$0xff] }
 0x181   :  { %5578 = vmatpush.bf16.msrb.mxu3 %v8718_v46  ;;  %v8749_v46 = vld [vmem:[#allocation2 + $0xcd0] sm:$0xff] }
 0x182   :  { %5540 = vmatpush.bf16.msrb.mxu0 %v8693_v52  ;;  %v88_v52 = vld [vmem:[%s9228_s0 + $0xc8] sm:$0xff] }
 0x183   :  { %5553 = vmatpush.bf16.msrb.mxu1 %v8701_v53  ;;  %v1342_v62 = vunpack.c.h.b16 %v88_v52 }
 0x184   :  { %5566 = vmatpush.bf16.msrb.mxu2 %v8709_v55  ;;  %v8723_v55 = vld [vmem:[#allocation2 + $0xc00] sm:$0xff] }
 0x185   :  { %5579 = vmatpush.bf16.msrb.mxu3 %v8717_v56  ;;  %v8731_v56 = vld [vmem:[#allocation2 + $0xc40] sm:$0xff] }
 0x186   :  { %5541 = vmatpush.bf16.msrb.mxu0 %v8692_v57 }
 0x187   :  { %5554 = vmatpush.bf16.msrb.mxu1 %v8700_v58  ;;  %v1341_v58 = vunpack.c.l.b16 %v88_v52 }
 0x188   :  { %5567 = vmatpush.bf16.msrb.mxu2 %v8708_v59  ;;  %v8739_v59 = vld [vmem:[#allocation2 + $0xc80] sm:$0xff] }
 0x189   :  { %5580 = vmatpush.bf16.msrb.mxu3 %v8716_v60  ;;  %v8747_v60 = vld [vmem:[#allocation2 + $0xcc0] sm:$0xff]  ;;  %v1413_v4 = vpack.c.b16 %v1341_v58, %v1341_v58 }
 0x18a   :  { %5542 = vmatpush.bf16.msrb.mxu0 %v8691_v1  ;;  %v5336_v25 = vpop.f32.mrf.mxu0  ;;  %v8778_v1 = vld [vmem:[#allocation2 + $0xdb8] sm:$0xff] }
 0x18b   :  { %5555 = vmatpush.bf16.msrb.mxu1 %v8699_v2  ;;  %v5337_v26 = vadd.f32 %v5336_v25, %v9138_v51  ;;  %v5349_v29 = vpop.f32.mrf.mxu1  ;;  %v87_v51 = vld [vmem:[%s9228_s0 + $0xc0] sm:$0xff]  ;;  %v8786_v2 = vld [vmem:[#allocation2 + $0xdf8] sm:$0xff] }
 0x18c   :  { %5568 = vmatpush.bf16.msrb.mxu2 %v8707_v5  ;;  %v1339_v57 = vunpack.c.l.b16 %v87_v51  ;;  %v1340_v61 = vunpack.c.h.b16 %v87_v51  ;;  %v8774_v25 = vld [vmem:[#allocation2 + $0xd98] sm:$0xff] }
 0x18d   :  { %5581 = vmatpush.bf16.msrb.mxu3 %v8715_v6  ;;  %5543 = vmatmul.bf16.vlgmr.msrb.gmra.mxu0 %v1407_v13  ;;  %v5350_v32 = vadd.f32 %v5349_v29, %v5337_v26  ;;  %v1414_v6 = vpack.c.b16 %v1342_v62, %v1342_v62  ;;  %v8776_v13 = vld [vmem:[#allocation2 + $0xda8] sm:$0xff]  ;;  %v8782_v26 = vld [vmem:[#allocation2 + $0xdd8] sm:$0xff]  ;;  %v8801_v62 = vld [vmem:[#allocation2 + $0xe70] sm:$0xff] }
 0x18e   :  { %5587 = vmatpush.bf16.msra.mxu0 %v8730_v9  ;;  %5556 = vmatmul.bf16.vlgmr.msrb.gmra.mxu1 %v1408_v15  ;;  %v1411_v3 = vpack.c.b16 %v1339_v57, %v1339_v57  ;;  %v1412_v5 = vpack.c.b16 %v1340_v61, %v1340_v61  ;;  %v8777_v9 = vld [vmem:[#allocation2 + $0xdb0] sm:$0xff] }
 0x18f   :  { %5600 = vmatpush.bf16.msra.mxu1 %v8738_v10  ;;  %5569 = vmatmul.bf16.vlgmr.msrb.gmra.mxu2 %v1409_v14  ;;  %v8785_v10 = vld [vmem:[#allocation2 + $0xdf0] sm:$0xff]  ;;  %v8784_v14 = vld [vmem:[#allocation2 + $0xde8] sm:$0xff] }
 0x190   :  { %5613 = vmatpush.bf16.msra.mxu2 %v8746_v11  ;;  %5582 = vmatmul.bf16.vlgmr.msrb.gmra.mxu3 %v1410_v16  ;;  %v8760_v11 = vld [vmem:[#allocation2 + $0xd28] sm:$0xff]  ;;  %v8793_v61 = vld [vmem:[#allocation2 + $0xe30] sm:$0xff] }
 0x191   :  { %5626 = vmatpush.bf16.msra.mxu3 %v8754_v12  ;;  %v8768_v12 = vld [vmem:[#allocation2 + $0xd68] sm:$0xff] }
 0x192   :  { %5588 = vmatpush.bf16.msra.mxu0 %v8729_v17  ;;  %v5362_v37 = vpop.f32.mrf.mxu2  ;;  %v5338_v40 = vpop.f32.mrf.mxu0  ;;  %v8759_v17 = vld [vmem:[#allocation2 + $0xd20] sm:$0xff] }
 0x193   :  { %5601 = vmatpush.bf16.msra.mxu1 %v8737_v18  ;;  %v5363_v38 = vadd.f32 %v5362_v37, %v5350_v32  ;;  %v5375_v39 = vpop.f32.mrf.mxu3  ;;  %v5351_v44 = vpop.f32.mrf.mxu1  ;;  %v8767_v18 = vld [vmem:[#allocation2 + $0xd60] sm:$0xff]  ;;  %v8757_v32 = vld [vmem:[#allocation2 + $0xd10] sm:$0xff]  ;;  %v8756_v37 = vld [vmem:[#allocation2 + $0xd08] sm:$0xff] }
 0x194   :  { %5614 = vmatpush.bf16.msra.mxu2 %v8745_v19  ;;  %v8780_v40 = vld [vmem:[#allocation2 + $0xdc8] sm:$0xff] }
 0x195   :  { %5627 = vmatpush.bf16.msra.mxu3 %v8753_v20  ;;  %v9147_v41 = vadd.f32 %v5375_v39, %v5363_v38  ;;  %v8775_v20 = vld [vmem:[#allocation2 + $0xda0] sm:$0xff]  ;;  %v8764_v38 = vld [vmem:[#allocation2 + $0xd48] sm:$0xff] }
 0x196   :  { %5589 = vmatpush.bf16.msra.mxu0 %v8728_v21  ;;  %v8783_v21 = vld [vmem:[#allocation2 + $0xde0] sm:$0xff]  ;;  %v8772_v39 = vld [vmem:[#allocation2 + $0xd88] sm:$0xff] }
 0x197   :  { %5602 = vmatpush.bf16.msra.mxu1 %v8736_v22 }
 0x198   :  { %5615 = vmatpush.bf16.msra.mxu2 %v8744_v23  ;;  %v8758_v23 = vld [vmem:[#allocation2 + $0xd18] sm:$0xff] }
 0x199   :  { %5628 = vmatpush.bf16.msra.mxu3 %v8752_v24  ;;  %v8766_v24 = vld [vmem:[#allocation2 + $0xd58] sm:$0xff] }
 0x19a   :  { %5590 = vmatpush.bf16.msra.mxu0 %v8727_v27  ;;  %v5364_v53 = vpop.f32.mrf.mxu2 }
 0x19b   :  { %5603 = vmatpush.bf16.msra.mxu1 %v8735_v28  ;;  %v5377_v54 = vpop.f32.mrf.mxu3  ;;  %v8794_v53 = vld [vmem:[#allocation2 + $0xe38] sm:$0xff] }
 0x19c   :  { %5616 = vmatpush.bf16.msra.mxu2 %v8743_v30  ;;  %v8802_v54 = vld [vmem:[#allocation2 + $0xe78] sm:$0xff] }
 0x19d   :  { %5629 = vmatpush.bf16.msra.mxu3 %v8751_v31 }
 0x19e   :  { %5591 = vmatpush.bf16.msra.mxu0 %v8726_v33  ;;  %v8765_v33 = vld [vmem:[#allocation2 + $0xd50] sm:$0xff] }
 0x19f   :  { %5604 = vmatpush.bf16.msra.mxu1 %v8734_v34 }
 0x1a0   :  { %5617 = vmatpush.bf16.msra.mxu2 %v8742_v35  ;;  %v8773_v35 = vld [vmem:[#allocation2 + $0xd90] sm:$0xff] }
 0x1a1   :  { %5630 = vmatpush.bf16.msra.mxu3 %v8750_v36  ;;  %v8781_v36 = vld [vmem:[#allocation2 + $0xdd0] sm:$0xff] }
 0x1a2   :  { %5592 = vmatpush.bf16.msra.mxu0 %v8725_v42  ;;  %v90_v42 = vld [vmem:[%s9228_s0 + $0xd8] sm:$0xff] }
 0x1a3   :  { %5605 = vmatpush.bf16.msra.mxu1 %v8733_v43  ;;  %v1346_v52 = vunpack.c.h.b16 %v90_v42 }
 0x1a4   :  { %5618 = vmatpush.bf16.msra.mxu2 %v8741_v45  ;;  %v8755_v45 = vld [vmem:[#allocation2 + $0xd00] sm:$0xff] }
 0x1a5   :  { %5631 = vmatpush.bf16.msra.mxu3 %v8749_v46  ;;  %v8763_v46 = vld [vmem:[#allocation2 + $0xd40] sm:$0xff] }
 0x1a6   :  { %5593 = vmatpush.bf16.msra.mxu0 %v8724_v47 }
 0x1a7   :  { %5606 = vmatpush.bf16.msra.mxu1 %v8732_v48  ;;  %v1345_v48 = vunpack.c.l.b16 %v90_v42 }
 0x1a8   :  { %5619 = vmatpush.bf16.msra.mxu2 %v8740_v49  ;;  %v8771_v49 = vld [vmem:[#allocation2 + $0xd80] sm:$0xff] }
 0x1a9   :  { %5632 = vmatpush.bf16.msra.mxu3 %v8748_v50  ;;  %v8779_v50 = vld [vmem:[#allocation2 + $0xdc0] sm:$0xff]  ;;  %v1417_v58 = vpack.c.b16 %v1345_v48, %v1345_v48 }
 0x1aa   :  { %5594 = vmatpush.bf16.msra.mxu0 %v8723_v55  ;;  %v5388_v15 = vpop.f32.mrf.mxu0  ;;  %v8810_v55 = vld [vmem:[#allocation2 + $0xeb8] sm:$0xff] }
 0x1ab   :  { %5607 = vmatpush.bf16.msra.mxu1 %v8731_v56  ;;  %v5389_v16 = vadd.f32 %v5388_v15, %v9147_v41  ;;  %v5401_v19 = vpop.f32.mrf.mxu1  ;;  %v89_v41 = vld [vmem:[%s9228_s0 + $0xd0] sm:$0xff]  ;;  %v8818_v56 = vld [vmem:[#allocation2 + $0xef8] sm:$0xff] }
 0x1ac   :  { %5620 = vmatpush.bf16.msra.mxu2 %v8739_v59  ;;  %v1343_v47 = vunpack.c.l.b16 %v89_v41  ;;  %v1344_v51 = vunpack.c.h.b16 %v89_v41  ;;  %v8806_v15 = vld [vmem:[#allocation2 + $0xe98] sm:$0xff] }
 0x1ad   :  { %5633 = vmatpush.bf16.msra.mxu3 %v8747_v60  ;;  %5595 = vmatmul.bf16.vlgmr.msra.gmra.mxu0 %v1411_v3  ;;  %v5402_v22 = vadd.f32 %v5401_v19, %v5389_v16  ;;  %v1418_v60 = vpack.c.b16 %v1346_v52, %v1346_v52  ;;  %v8808_v3 = vld [vmem:[#allocation2 + $0xea8] sm:$0xff]  ;;  %v8814_v16 = vld [vmem:[#allocation2 + $0xed8] sm:$0xff]  ;;  %v8833_v52 = vld [vmem:[#allocation2 + $0xf70] sm:$0xff] }
 0x1ae   :  { %5639 = vmatpush.bf16.msrb.mxu0 %v8762_v63  ;;  %5608 = vmatmul.bf16.vlgmr.msra.gmra.mxu1 %v1412_v5  ;;  %v1415_v57 = vpack.c.b16 %v1343_v47, %v1343_v47  ;;  %v1416_v59 = vpack.c.b16 %v1344_v51, %v1344_v51  ;;  %v8809_v63 = vld [vmem:[#allocation2 + $0xeb0] sm:$0xff] }
 0x1af   :  { %5652 = vmatpush.bf16.msrb.mxu1 %v8770_v0  ;;  %5621 = vmatmul.bf16.vlgmr.msra.gmra.mxu2 %v1413_v4  ;;  %v8817_v0 = vld [vmem:[#allocation2 + $0xef0] sm:$0xff]  ;;  %v8816_v4 = vld [vmem:[#allocation2 + $0xee8] sm:$0xff] }
 0x1b0   :  { %5665 = vmatpush.bf16.msrb.mxu2 %v8778_v1  ;;  %5634 = vmatmul.bf16.vlgmr.msra.gmra.mxu3 %v1414_v6  ;;  %v8792_v1 = vld [vmem:[#allocation2 + $0xe28] sm:$0xff]  ;;  %v8825_v51 = vld [vmem:[#allocation2 + $0xf30] sm:$0xff] }
 0x1b1   :  { %5678 = vmatpush.bf16.msrb.mxu3 %v8786_v2  ;;  %v8800_v2 = vld [vmem:[#allocation2 + $0xe68] sm:$0xff] }
 0x1b2   :  { %5640 = vmatpush.bf16.msrb.mxu0 %v8761_v7  ;;  %v5414_v27 = vpop.f32.mrf.mxu2  ;;  %v5390_v30 = vpop.f32.mrf.mxu0  ;;  %v8791_v7 = vld [vmem:[#allocation2 + $0xe20] sm:$0xff] }
 0x1b3   :  { %5653 = vmatpush.bf16.msrb.mxu1 %v8769_v8  ;;  %v5415_v28 = vadd.f32 %v5414_v27, %v5402_v22  ;;  %v5427_v29 = vpop.f32.mrf.mxu3  ;;  %v5403_v34 = vpop.f32.mrf.mxu1  ;;  %v8799_v8 = vld [vmem:[#allocation2 + $0xe60] sm:$0xff]  ;;  %v8789_v22 = vld [vmem:[#allocation2 + $0xe10] sm:$0xff]  ;;  %v8788_v27 = vld [vmem:[#allocation2 + $0xe08] sm:$0xff] }
 0x1b4   :  { %5666 = vmatpush.bf16.msrb.mxu2 %v8777_v9  ;;  %v8812_v30 = vld [vmem:[#allocation2 + $0xec8] sm:$0xff] }
 0x1b5   :  { %5679 = vmatpush.bf16.msrb.mxu3 %v8785_v10  ;;  %v9156_v31 = vadd.f32 %v5427_v29, %v5415_v28  ;;  %v8807_v10 = vld [vmem:[#allocation2 + $0xea0] sm:$0xff]  ;;  %v8796_v28 = vld [vmem:[#allocation2 + $0xe48] sm:$0xff] }
 0x1b6   :  { %5641 = vmatpush.bf16.msrb.mxu0 %v8760_v11  ;;  %v8815_v11 = vld [vmem:[#allocation2 + $0xee0] sm:$0xff]  ;;  %v8804_v29 = vld [vmem:[#allocation2 + $0xe88] sm:$0xff] }
 0x1b7   :  { %5654 = vmatpush.bf16.msrb.mxu1 %v8768_v12 }
 0x1b8   :  { %5667 = vmatpush.bf16.msrb.mxu2 %v8776_v13  ;;  %v8790_v13 = vld [vmem:[#allocation2 + $0xe18] sm:$0xff] }
 0x1b9   :  { %5680 = vmatpush.bf16.msrb.mxu3 %v8784_v14  ;;  %v8798_v14 = vld [vmem:[#allocation2 + $0xe58] sm:$0xff] }
 0x1ba   :  { %5642 = vmatpush.bf16.msrb.mxu0 %v8759_v17  ;;  %v5416_v43 = vpop.f32.mrf.mxu2 }
 0x1bb   :  { %5655 = vmatpush.bf16.msrb.mxu1 %v8767_v18  ;;  %v5429_v44 = vpop.f32.mrf.mxu3  ;;  %v8826_v43 = vld [vmem:[#allocation2 + $0xf38] sm:$0xff] }
 0x1bc   :  { %5668 = vmatpush.bf16.msrb.mxu2 %v8775_v20  ;;  %v8834_v44 = vld [vmem:[#allocation2 + $0xf78] sm:$0xff] }
 0x1bd   :  { %5681 = vmatpush.bf16.msrb.mxu3 %v8783_v21 }
 0x1be   :  { %5643 = vmatpush.bf16.msrb.mxu0 %v8758_v23  ;;  %v8797_v23 = vld [vmem:[#allocation2 + $0xe50] sm:$0xff] }
 0x1bf   :  { %5656 = vmatpush.bf16.msrb.mxu1 %v8766_v24 }
 0x1c0   :  { %5669 = vmatpush.bf16.msrb.mxu2 %v8774_v25  ;;  %v8805_v25 = vld [vmem:[#allocation2 + $0xe90] sm:$0xff] }
 0x1c1   :  { %5682 = vmatpush.bf16.msrb.mxu3 %v8782_v26  ;;  %v8813_v26 = vld [vmem:[#allocation2 + $0xed0] sm:$0xff] }
 0x1c2   :  { %5644 = vmatpush.bf16.msrb.mxu0 %v8757_v32  ;;  %v92_v32 = vld [vmem:[%s9228_s0 + $0xe8] sm:$0xff] }
 0x1c3   :  { %5657 = vmatpush.bf16.msrb.mxu1 %v8765_v33  ;;  %v1350_v42 = vunpack.c.h.b16 %v92_v32 }
 0x1c4   :  { %5670 = vmatpush.bf16.msrb.mxu2 %v8773_v35  ;;  %v8787_v35 = vld [vmem:[#allocation2 + $0xe00] sm:$0xff] }
 0x1c5   :  { %5683 = vmatpush.bf16.msrb.mxu3 %v8781_v36  ;;  %v8795_v36 = vld [vmem:[#allocation2 + $0xe40] sm:$0xff] }
 0x1c6   :  { %5645 = vmatpush.bf16.msrb.mxu0 %v8756_v37 }
 0x1c7   :  { %5658 = vmatpush.bf16.msrb.mxu1 %v8764_v38  ;;  %v1349_v38 = vunpack.c.l.b16 %v92_v32 }
 0x1c8   :  { %5671 = vmatpush.bf16.msrb.mxu2 %v8772_v39  ;;  %v8803_v39 = vld [vmem:[#allocation2 + $0xe80] sm:$0xff] }
 0x1c9   :  { %5684 = vmatpush.bf16.msrb.mxu3 %v8780_v40  ;;  %v8811_v40 = vld [vmem:[#allocation2 + $0xec0] sm:$0xff]  ;;  %v1421_v48 = vpack.c.b16 %v1349_v38, %v1349_v38 }
 0x1ca   :  { %5646 = vmatpush.bf16.msrb.mxu0 %v8755_v45  ;;  %v5440_v5 = vpop.f32.mrf.mxu0  ;;  %v8842_v45 = vld [vmem:[#allocation2 + $0xfb8] sm:$0xff] }
 0x1cb   :  { %5659 = vmatpush.bf16.msrb.mxu1 %v8763_v46  ;;  %v5441_v6 = vadd.f32 %v5440_v5, %v9156_v31  ;;  %v5453_v9 = vpop.f32.mrf.mxu1  ;;  %v91_v31 = vld [vmem:[%s9228_s0 + $0xe0] sm:$0xff]  ;;  %v8850_v46 = vld [vmem:[#allocation2 + $0xff8] sm:$0xff] }
 0x1cc   :  { %5672 = vmatpush.bf16.msrb.mxu2 %v8771_v49  ;;  %v1347_v37 = vunpack.c.l.b16 %v91_v31  ;;  %v1348_v41 = vunpack.c.h.b16 %v91_v31  ;;  %v8838_v5 = vld [vmem:[#allocation2 + $0xf98] sm:$0xff] }
 0x1cd   :  { %5685 = vmatpush.bf16.msrb.mxu3 %v8779_v50  ;;  %5647 = vmatmul.bf16.vlgmr.msrb.gmra.mxu0 %v1415_v57  ;;  %v5454_v12 = vadd.f32 %v5453_v9, %v5441_v6  ;;  %v1422_v50 = vpack.c.b16 %v1350_v42, %v1350_v42  ;;  %v8840_v57 = vld [vmem:[#allocation2 + $0xfa8] sm:$0xff]  ;;  %v8846_v6 = vld [vmem:[#allocation2 + $0xfd8] sm:$0xff]  ;;  %v8865_v42 = vld [vmem:[#allocation2 + $0x1070] sm:$0xff] }
 0x1ce   :  { %5691 = vmatpush.bf16.msra.mxu0 %v8794_v53  ;;  %5660 = vmatmul.bf16.vlgmr.msrb.gmra.mxu1 %v1416_v59  ;;  %v1419_v47 = vpack.c.b16 %v1347_v37, %v1347_v37  ;;  %v1420_v49 = vpack.c.b16 %v1348_v41, %v1348_v41  ;;  %v8841_v53 = vld [vmem:[#allocation2 + $0xfb0] sm:$0xff] }
 0x1cf   :  { %5704 = vmatpush.bf16.msra.mxu1 %v8802_v54  ;;  %5673 = vmatmul.bf16.vlgmr.msrb.gmra.mxu2 %v1417_v58  ;;  %v8849_v54 = vld [vmem:[#allocation2 + $0xff0] sm:$0xff]  ;;  %v8848_v58 = vld [vmem:[#allocation2 + $0xfe8] sm:$0xff] }
 0x1d0   :  { %5717 = vmatpush.bf16.msra.mxu2 %v8810_v55  ;;  %5686 = vmatmul.bf16.vlgmr.msrb.gmra.mxu3 %v1418_v60  ;;  %v8824_v55 = vld [vmem:[#allocation2 + $0xf28] sm:$0xff]  ;;  %v8857_v41 = vld [vmem:[#allocation2 + $0x1030] sm:$0xff] }
 0x1d1   :  { %5730 = vmatpush.bf16.msra.mxu3 %v8818_v56  ;;  %v8832_v56 = vld [vmem:[#allocation2 + $0xf68] sm:$0xff] }
 0x1d2   :  { %5692 = vmatpush.bf16.msra.mxu0 %v8793_v61  ;;  %v5466_v17 = vpop.f32.mrf.mxu2  ;;  %v5442_v20 = vpop.f32.mrf.mxu0  ;;  %v8823_v61 = vld [vmem:[#allocation2 + $0xf20] sm:$0xff] }
 0x1d3   :  { %5705 = vmatpush.bf16.msra.mxu1 %v8801_v62  ;;  %v5467_v18 = vadd.f32 %v5466_v17, %v5454_v12  ;;  %v5479_v19 = vpop.f32.mrf.mxu3  ;;  %v5455_v24 = vpop.f32.mrf.mxu1  ;;  %v8831_v62 = vld [vmem:[#allocation2 + $0xf60] sm:$0xff]  ;;  %v8821_v12 = vld [vmem:[#allocation2 + $0xf10] sm:$0xff]  ;;  %v8820_v17 = vld [vmem:[#allocation2 + $0xf08] sm:$0xff] }
 0x1d4   :  { %5718 = vmatpush.bf16.msra.mxu2 %v8809_v63  ;;  %v8844_v20 = vld [vmem:[#allocation2 + $0xfc8] sm:$0xff] }
 0x1d5   :  { %5731 = vmatpush.bf16.msra.mxu3 %v8817_v0  ;;  %v9165_v21 = vadd.f32 %v5479_v19, %v5467_v18  ;;  %v8839_v0 = vld [vmem:[#allocation2 + $0xfa0] sm:$0xff]  ;;  %v8828_v18 = vld [vmem:[#allocation2 + $0xf48] sm:$0xff] }
 0x1d6   :  { %5693 = vmatpush.bf16.msra.mxu0 %v8792_v1  ;;  %v8847_v1 = vld [vmem:[#allocation2 + $0xfe0] sm:$0xff]  ;;  %v8836_v19 = vld [vmem:[#allocation2 + $0xf88] sm:$0xff] }
 0x1d7   :  { %5706 = vmatpush.bf16.msra.mxu1 %v8800_v2 }
 0x1d8   :  { %5719 = vmatpush.bf16.msra.mxu2 %v8808_v3  ;;  %v8822_v3 = vld [vmem:[#allocation2 + $0xf18] sm:$0xff] }
 0x1d9   :  { %5732 = vmatpush.bf16.msra.mxu3 %v8816_v4  ;;  %v8830_v4 = vld [vmem:[#allocation2 + $0xf58] sm:$0xff] }
 0x1da   :  { %5694 = vmatpush.bf16.msra.mxu0 %v8791_v7  ;;  %v5468_v33 = vpop.f32.mrf.mxu2 }
 0x1db   :  { %5707 = vmatpush.bf16.msra.mxu1 %v8799_v8  ;;  %v5481_v34 = vpop.f32.mrf.mxu3  ;;  %v8858_v33 = vld [vmem:[#allocation2 + $0x1038] sm:$0xff] }
 0x1dc   :  { %5720 = vmatpush.bf16.msra.mxu2 %v8807_v10  ;;  %v8866_v34 = vld [vmem:[#allocation2 + $0x1078] sm:$0xff] }
 0x1dd   :  { %5733 = vmatpush.bf16.msra.mxu3 %v8815_v11 }
 0x1de   :  { %5695 = vmatpush.bf16.msra.mxu0 %v8790_v13  ;;  %v8829_v13 = vld [vmem:[#allocation2 + $0xf50] sm:$0xff] }
 0x1df   :  { %5708 = vmatpush.bf16.msra.mxu1 %v8798_v14 }
 0x1e0   :  { %5721 = vmatpush.bf16.msra.mxu2 %v8806_v15  ;;  %v8837_v15 = vld [vmem:[#allocation2 + $0xf90] sm:$0xff] }
 0x1e1   :  { %5734 = vmatpush.bf16.msra.mxu3 %v8814_v16  ;;  %v8845_v16 = vld [vmem:[#allocation2 + $0xfd0] sm:$0xff] }
 0x1e2   :  { %5696 = vmatpush.bf16.msra.mxu0 %v8789_v22  ;;  %v94_v22 = vld [vmem:[%s9228_s0 + $0xf8] sm:$0xff] }
 0x1e3   :  { %5709 = vmatpush.bf16.msra.mxu1 %v8797_v23  ;;  %v1354_v32 = vunpack.c.h.b16 %v94_v22 }
 0x1e4   :  { %5722 = vmatpush.bf16.msra.mxu2 %v8805_v25  ;;  %v8819_v25 = vld [vmem:[#allocation2 + $0xf00] sm:$0xff] }
 0x1e5   :  { %5735 = vmatpush.bf16.msra.mxu3 %v8813_v26  ;;  %v8827_v26 = vld [vmem:[#allocation2 + $0xf40] sm:$0xff] }
 0x1e6   :  { %5697 = vmatpush.bf16.msra.mxu0 %v8788_v27 }
 0x1e7   :  { %5710 = vmatpush.bf16.msra.mxu1 %v8796_v28  ;;  %v1353_v28 = vunpack.c.l.b16 %v94_v22 }
 0x1e8   :  { %5723 = vmatpush.bf16.msra.mxu2 %v8804_v29  ;;  %v8835_v29 = vld [vmem:[#allocation2 + $0xf80] sm:$0xff] }
 0x1e9   :  { %5736 = vmatpush.bf16.msra.mxu3 %v8812_v30  ;;  %v8843_v30 = vld [vmem:[#allocation2 + $0xfc0] sm:$0xff]  ;;  %v1425_v38 = vpack.c.b16 %v1353_v28, %v1353_v28 }
 0x1ea   :  { %5698 = vmatpush.bf16.msra.mxu0 %v8787_v35  ;;  %v5492_v59 = vpop.f32.mrf.mxu0  ;;  %v8874_v35 = vld [vmem:[#allocation2 + $0x10b8] sm:$0xff] }
 0x1eb   :  { %5711 = vmatpush.bf16.msra.mxu1 %v8795_v36  ;;  %v5493_v60 = vadd.f32 %v5492_v59, %v9165_v21  ;;  %v5505_v63 = vpop.f32.mrf.mxu1  ;;  %v93_v21 = vld [vmem:[%s9228_s0 + $0xf0] sm:$0xff]  ;;  %v8882_v36 = vld [vmem:[#allocation2 + $0x10f8] sm:$0xff] }
 0x1ec   :  { %5724 = vmatpush.bf16.msra.mxu2 %v8803_v39  ;;  %v1351_v27 = vunpack.c.l.b16 %v93_v21  ;;  %v1352_v31 = vunpack.c.h.b16 %v93_v21  ;;  %v8870_v59 = vld [vmem:[#allocation2 + $0x1098] sm:$0xff] }
 0x1ed   :  { %5737 = vmatpush.bf16.msra.mxu3 %v8811_v40  ;;  %5699 = vmatmul.bf16.vlgmr.msra.gmra.mxu0 %v1419_v47  ;;  %v5506_v2 = vadd.f32 %v5505_v63, %v5493_v60  ;;  %v1426_v40 = vpack.c.b16 %v1354_v32, %v1354_v32  ;;  %v8872_v47 = vld [vmem:[#allocation2 + $0x10a8] sm:$0xff]  ;;  %v8878_v60 = vld [vmem:[#allocation2 + $0x10d8] sm:$0xff]  ;;  %v8897_v32 = vld [vmem:[#allocation2 + $0x1170] sm:$0xff] }
 0x1ee   :  { %5743 = vmatpush.bf16.msrb.mxu0 %v8826_v43  ;;  %5712 = vmatmul.bf16.vlgmr.msra.gmra.mxu1 %v1420_v49  ;;  %v1423_v37 = vpack.c.b16 %v1351_v27, %v1351_v27  ;;  %v1424_v39 = vpack.c.b16 %v1352_v31, %v1352_v31  ;;  %v8873_v43 = vld [vmem:[#allocation2 + $0x10b0] sm:$0xff] }
 0x1ef   :  { %5756 = vmatpush.bf16.msrb.mxu1 %v8834_v44  ;;  %5725 = vmatmul.bf16.vlgmr.msra.gmra.mxu2 %v1421_v48  ;;  %v8881_v44 = vld [vmem:[#allocation2 + $0x10f0] sm:$0xff]  ;;  %v8880_v48 = vld [vmem:[#allocation2 + $0x10e8] sm:$0xff] }
 0x1f0   :  { %5769 = vmatpush.bf16.msrb.mxu2 %v8842_v45  ;;  %5738 = vmatmul.bf16.vlgmr.msra.gmra.mxu3 %v1422_v50  ;;  %v8856_v45 = vld [vmem:[#allocation2 + $0x1028] sm:$0xff]  ;;  %v8889_v31 = vld [vmem:[#allocation2 + $0x1130] sm:$0xff] }
 0x1f1   :  { %5782 = vmatpush.bf16.msrb.mxu3 %v8850_v46  ;;  %v8864_v46 = vld [vmem:[#allocation2 + $0x1068] sm:$0xff] }
 0x1f2   :  { %5744 = vmatpush.bf16.msrb.mxu0 %v8825_v51  ;;  %v5518_v7 = vpop.f32.mrf.mxu2  ;;  %v5494_v10 = vpop.f32.mrf.mxu0  ;;  %v8855_v51 = vld [vmem:[#allocation2 + $0x1020] sm:$0xff] }
 0x1f3   :  { %5757 = vmatpush.bf16.msrb.mxu1 %v8833_v52  ;;  %v5519_v8 = vadd.f32 %v5518_v7, %v5506_v2  ;;  %v5531_v9 = vpop.f32.mrf.mxu3  ;;  %v5507_v14 = vpop.f32.mrf.mxu1  ;;  %v8863_v52 = vld [vmem:[#allocation2 + $0x1060] sm:$0xff]  ;;  %v8853_v2 = vld [vmem:[#allocation2 + $0x1010] sm:$0xff]  ;;  %v8852_v7 = vld [vmem:[#allocation2 + $0x1008] sm:$0xff] }
 0x1f4   :  { %5770 = vmatpush.bf16.msrb.mxu2 %v8841_v53  ;;  %v8876_v10 = vld [vmem:[#allocation2 + $0x10c8] sm:$0xff] }
 0x1f5   :  { %5783 = vmatpush.bf16.msrb.mxu3 %v8849_v54  ;;  %v9174_v11 = vadd.f32 %v5531_v9, %v5519_v8  ;;  %v8871_v54 = vld [vmem:[#allocation2 + $0x10a0] sm:$0xff]  ;;  %v8860_v8 = vld [vmem:[#allocation2 + $0x1048] sm:$0xff] }
 0x1f6   :  { %5745 = vmatpush.bf16.msrb.mxu0 %v8824_v55  ;;  %v8879_v55 = vld [vmem:[#allocation2 + $0x10e0] sm:$0xff]  ;;  %v8868_v9 = vld [vmem:[#allocation2 + $0x1088] sm:$0xff] }
 0x1f7   :  { %5758 = vmatpush.bf16.msrb.mxu1 %v8832_v56 }
 0x1f8   :  { %5771 = vmatpush.bf16.msrb.mxu2 %v8840_v57  ;;  %v8854_v57 = vld [vmem:[#allocation2 + $0x1018] sm:$0xff] }
 0x1f9   :  { %5784 = vmatpush.bf16.msrb.mxu3 %v8848_v58  ;;  %v8862_v58 = vld [vmem:[#allocation2 + $0x1058] sm:$0xff] }
 0x1fa   :  { %5746 = vmatpush.bf16.msrb.mxu0 %v8823_v61  ;;  %v5520_v23 = vpop.f32.mrf.mxu2 }
 0x1fb   :  { %5759 = vmatpush.bf16.msrb.mxu1 %v8831_v62  ;;  %v5533_v24 = vpop.f32.mrf.mxu3  ;;  %v8890_v23 = vld [vmem:[#allocation2 + $0x1138] sm:$0xff] }
 0x1fc   :  { %5772 = vmatpush.bf16.msrb.mxu2 %v8839_v0  ;;  %v8898_v24 = vld [vmem:[#allocation2 + $0x1178] sm:$0xff] }
 0x1fd   :  { %5785 = vmatpush.bf16.msrb.mxu3 %v8847_v1 }
 0x1fe   :  { %5747 = vmatpush.bf16.msrb.mxu0 %v8822_v3  ;;  %v8861_v3 = vld [vmem:[#allocation2 + $0x1050] sm:$0xff] }
 0x1ff   :  { %5760 = vmatpush.bf16.msrb.mxu1 %v8830_v4 }
 0x200   :  { %5773 = vmatpush.bf16.msrb.mxu2 %v8838_v5  ;;  %v8869_v5 = vld [vmem:[#allocation2 + $0x1090] sm:$0xff] }
 0x201   :  { %5786 = vmatpush.bf16.msrb.mxu3 %v8846_v6  ;;  %v8877_v6 = vld [vmem:[#allocation2 + $0x10d0] sm:$0xff] }
 0x202   :  { %5748 = vmatpush.bf16.msrb.mxu0 %v8821_v12  ;;  %v96_v12 = vld [vmem:[%s9228_s0 + $0x108] sm:$0xff] }
 0x203   :  { %5761 = vmatpush.bf16.msrb.mxu1 %v8829_v13  ;;  %v1358_v22 = vunpack.c.h.b16 %v96_v12 }
 0x204   :  { %5774 = vmatpush.bf16.msrb.mxu2 %v8837_v15  ;;  %v8851_v15 = vld [vmem:[#allocation2 + $0x1000] sm:$0xff] }
 0x205   :  { %5787 = vmatpush.bf16.msrb.mxu3 %v8845_v16  ;;  %v8859_v16 = vld [vmem:[#allocation2 + $0x1040] sm:$0xff] }
 0x206   :  { %5749 = vmatpush.bf16.msrb.mxu0 %v8820_v17 }
 0x207   :  { %5762 = vmatpush.bf16.msrb.mxu1 %v8828_v18  ;;  %v1357_v18 = vunpack.c.l.b16 %v96_v12  ;;  %v8907_v12 = vld [vmem:[#allocation2 + $0x11c0] sm:$0xff] }
 0x208   :  { %5775 = vmatpush.bf16.msrb.mxu2 %v8836_v19  ;;  %v8867_v19 = vld [vmem:[#allocation2 + $0x1080] sm:$0xff] }
 0x209   :  { %5788 = vmatpush.bf16.msrb.mxu3 %v8844_v20  ;;  %v8875_v20 = vld [vmem:[#allocation2 + $0x10c0] sm:$0xff]  ;;  %v1429_v28 = vpack.c.b16 %v1357_v18, %v1357_v18 }
 0x20a   :  { %5750 = vmatpush.bf16.msrb.mxu0 %v8819_v25  ;;  %v5544_v49 = vpop.f32.mrf.mxu0  ;;  %v8906_v25 = vld [vmem:[#allocation2 + $0x11b8] sm:$0xff] }
 0x20b   :  { %5763 = vmatpush.bf16.msrb.mxu1 %v8827_v26  ;;  %v5545_v50 = vadd.f32 %v5544_v49, %v9174_v11  ;;  %v5557_v53 = vpop.f32.mrf.mxu1  ;;  %v95_v11 = vld [vmem:[%s9228_s0 + $0x100] sm:$0xff]  ;;  %v8914_v26 = vld [vmem:[#allocation2 + $0x11f8] sm:$0xff] }
 0x20c   :  { %5776 = vmatpush.bf16.msrb.mxu2 %v8835_v29  ;;  %v1355_v17 = vunpack.c.l.b16 %v95_v11  ;;  %v1356_v21 = vunpack.c.h.b16 %v95_v11  ;;  %v8902_v49 = vld [vmem:[#allocation2 + $0x1198] sm:$0xff]  ;;  %v8899_v11 = vld [vmem:[#allocation2 + $0x1180] sm:$0xff] }
 0x20d   :  { %5789 = vmatpush.bf16.msrb.mxu3 %v8843_v30  ;;  %5751 = vmatmul.bf16.vlgmr.msrb.gmra.mxu0 %v1423_v37  ;;  %v5558_v56 = vadd.f32 %v5557_v53, %v5545_v50  ;;  %v1430_v30 = vpack.c.b16 %v1358_v22, %v1358_v22  ;;  %v8904_v37 = vld [vmem:[#allocation2 + $0x11a8] sm:$0xff]  ;;  %v8910_v50 = vld [vmem:[#allocation2 + $0x11d8] sm:$0xff] }
 0x20e   :  { %5795 = vmatpush.bf16.msra.mxu0 %v8858_v33  ;;  %5764 = vmatmul.bf16.vlgmr.msrb.gmra.mxu1 %v1424_v39  ;;  %v1427_v27 = vpack.c.b16 %v1355_v17, %v1355_v17  ;;  %v1428_v29 = vpack.c.b16 %v1356_v21, %v1356_v21  ;;  %v8905_v33 = vld [vmem:[#allocation2 + $0x11b0] sm:$0xff] }
 0x20f   :  { %5808 = vmatpush.bf16.msra.mxu1 %v8866_v34  ;;  %5777 = vmatmul.bf16.vlgmr.msrb.gmra.mxu2 %v1425_v38  ;;  %v8913_v34 = vld [vmem:[#allocation2 + $0x11f0] sm:$0xff]  ;;  %v8912_v38 = vld [vmem:[#allocation2 + $0x11e8] sm:$0xff] }
 0x210   :  { %5821 = vmatpush.bf16.msra.mxu2 %v8874_v35  ;;  %5790 = vmatmul.bf16.vlgmr.msrb.gmra.mxu3 %v1426_v40  ;;  %v8888_v35 = vld [vmem:[#allocation2 + $0x1128] sm:$0xff] }
 0x211   :  { %5834 = vmatpush.bf16.msra.mxu3 %v8882_v36  ;;  %v8896_v36 = vld [vmem:[#allocation2 + $0x1168] sm:$0xff] }
 0x212   :  { %5796 = vmatpush.bf16.msra.mxu0 %v8857_v41  ;;  %v5570_v61 = vpop.f32.mrf.mxu2  ;;  %v5546_v0 = vpop.f32.mrf.mxu0  ;;  %v8887_v41 = vld [vmem:[#allocation2 + $0x1120] sm:$0xff] }
 0x213   :  { %5809 = vmatpush.bf16.msra.mxu1 %v8865_v42  ;;  %v5571_v62 = vadd.f32 %v5570_v61, %v5558_v56  ;;  %v5583_v63 = vpop.f32.mrf.mxu3  ;;  %v5559_v4 = vpop.f32.mrf.mxu1  ;;  %v8895_v42 = vld [vmem:[#allocation2 + $0x1160] sm:$0xff]  ;;  %v8885_v56 = vld [vmem:[#allocation2 + $0x1110] sm:$0xff]  ;;  %v8884_v61 = vld [vmem:[#allocation2 + $0x1108] sm:$0xff] }
 0x214   :  { %5822 = vmatpush.bf16.msra.mxu2 %v8873_v43  ;;  %v8900_v0 = vld [vmem:[#allocation2 + $0x1188] sm:$0xff] }
 0x215   :  { %5835 = vmatpush.bf16.msra.mxu3 %v8881_v44  ;;  %v9183_v1 = vadd.f32 %v5583_v63, %v5571_v62  ;;  %v8903_v44 = vld [vmem:[#allocation2 + $0x11a0] sm:$0xff]  ;;  %v8892_v62 = vld [vmem:[#allocation2 + $0x1148] sm:$0xff]  ;;  %v97_v63 = vld [vmem:[%s9228_s0 + $0x110] sm:$0xff] }
 0x216   :  { %5797 = vmatpush.bf16.msra.mxu0 %v8856_v45  ;;  %v8911_v45 = vld [vmem:[#allocation2 + $0x11e0] sm:$0xff] }
 0x217   :  { %5810 = vmatpush.bf16.msra.mxu1 %v8864_v46 }
 0x218   :  { %5823 = vmatpush.bf16.msra.mxu2 %v8872_v47  ;;  %v8886_v47 = vld [vmem:[#allocation2 + $0x1118] sm:$0xff] }
 0x219   :  { %5836 = vmatpush.bf16.msra.mxu3 %v8880_v48  ;;  %v8894_v48 = vld [vmem:[#allocation2 + $0x1158] sm:$0xff] }
 0x21a   :  { %5798 = vmatpush.bf16.msra.mxu0 %v8855_v51  ;;  %v5572_v13 = vpop.f32.mrf.mxu2 }
 0x21b   :  { %5811 = vmatpush.bf16.msra.mxu1 %v8863_v52  ;;  %v5585_v14 = vpop.f32.mrf.mxu3 }
 0x21c   :  { %5824 = vmatpush.bf16.msra.mxu2 %v8871_v54 }
 0x21d   :  { %5837 = vmatpush.bf16.msra.mxu3 %v8879_v55 }
 0x21e   :  { %5799 = vmatpush.bf16.msra.mxu0 %v8854_v57  ;;  %v8893_v57 = vld [vmem:[#allocation2 + $0x1150] sm:$0xff] }
 0x21f   :  { %5812 = vmatpush.bf16.msra.mxu1 %v8862_v58 }
 0x220   :  { %5825 = vmatpush.bf16.msra.mxu2 %v8870_v59  ;;  %v8901_v59 = vld [vmem:[#allocation2 + $0x1190] sm:$0xff] }
 0x221   :  { %5838 = vmatpush.bf16.msra.mxu3 %v8878_v60  ;;  %v8909_v60 = vld [vmem:[#allocation2 + $0x11d0] sm:$0xff] }
 0x222   :  { %5800 = vmatpush.bf16.msra.mxu0 %v8853_v2  ;;  %v98_v2 = vld [vmem:[%s9228_s0 + $0x118] sm:$0xff] }
 0x223   :  { %5813 = vmatpush.bf16.msra.mxu1 %v8861_v3 }
 0x224   :  { %5826 = vmatpush.bf16.msra.mxu2 %v8869_v5  ;;  %v1359_v5 = vunpack.c.l.b16 %v97_v63 }
 0x225   :  { %5839 = vmatpush.bf16.msra.mxu3 %v8877_v6  ;;  %v1360_v6 = vunpack.c.h.b16 %v97_v63 }
 0x226   :  { %5801 = vmatpush.bf16.msra.mxu0 %v8852_v7  ;;  %v8883_v7 = vld [vmem:[#allocation2 + $0x1100] sm:$0xff]  ;;  %v1431_v13 = vpack.c.b16 %v1359_v5, %v1359_v5 }
 0x227   :  { %5814 = vmatpush.bf16.msra.mxu1 %v8860_v8  ;;  %v8891_v8 = vld [vmem:[#allocation2 + $0x1140] sm:$0xff]  ;;  %v1432_v14 = vpack.c.b16 %v1360_v6, %v1360_v6 }
 0x228   :  { %5827 = vmatpush.bf16.msra.mxu2 %v8868_v9  ;;  %v1361_v9 = vunpack.c.l.b16 %v98_v2 }
 0x229   :  { %5840 = vmatpush.bf16.msra.mxu3 %v8876_v10  ;;  %v1362_v10 = vunpack.c.h.b16 %v98_v2 }
 0x22a   :  { %5802 = vmatpush.bf16.msra.mxu0 %v8851_v15  ;;  %v5596_v39 = vpop.f32.mrf.mxu0  ;;  %v1433_v15 = vpack.c.b16 %v1361_v9, %v1361_v9 }
 0x22b   :  { %5815 = vmatpush.bf16.msra.mxu1 %v8859_v16  ;;  %v5597_v40 = vadd.f32 %v5596_v39, %v9183_v1  ;;  %v5609_v43 = vpop.f32.mrf.mxu1  ;;  %v8908_v1 = vld [vmem:[#allocation2 + $0x11c8] sm:$0xff]  ;;  %v1434_v16 = vpack.c.b16 %v1362_v10, %v1362_v10 }
 0x22c   :  { %5828 = vmatpush.bf16.msra.mxu2 %v8867_v19 }
 0x22d   :  { %5841 = vmatpush.bf16.msra.mxu3 %v8875_v20  ;;  %5803 = vmatmul.bf16.vlgmr.msra.gmra.mxu0 %v1427_v27  ;;  %v5610_v46 = vadd.f32 %v5609_v43, %v5597_v40 }
 0x22e   :  { %5847 = vmatpush.bf16.msrb.mxu0 %v8890_v23  ;;  %5816 = vmatmul.bf16.vlgmr.msra.gmra.mxu1 %v1428_v29 }
 0x22f   :  { %5860 = vmatpush.bf16.msrb.mxu1 %v8898_v24  ;;  %5829 = vmatmul.bf16.vlgmr.msra.gmra.mxu2 %v1429_v28 }
 0x230   :  { %5873 = vmatpush.bf16.msrb.mxu2 %v8906_v25  ;;  %5842 = vmatmul.bf16.vlgmr.msra.gmra.mxu3 %v1430_v30 }
 0x231   :  { %5886 = vmatpush.bf16.msrb.mxu3 %v8914_v26 }
 0x232   :  { %5848 = vmatpush.bf16.msrb.mxu0 %v8889_v31  ;;  %v5622_v51 = vpop.f32.mrf.mxu2  ;;  %v5598_v54 = vpop.f32.mrf.mxu0 }
 0x233   :  { %5861 = vmatpush.bf16.msrb.mxu1 %v8897_v32  ;;  %v5623_v52 = vadd.f32 %v5622_v51, %v5610_v46  ;;  %v5635_v53 = vpop.f32.mrf.mxu3  ;;  %v5611_v58 = vpop.f32.mrf.mxu1 }
 0x234   :  { %5874 = vmatpush.bf16.msrb.mxu2 %v8905_v33 }
 0x235   :  { %5887 = vmatpush.bf16.msrb.mxu3 %v8913_v34  ;;  %v5636_v55 = vadd.f32 %v5635_v53, %v5623_v52  ;;  %v8919_v52 = vld [vmem:[%s9231_s3 + $0x20] sm:$0xff]  ;;  %v8918_v53 = vld [vmem:[%s9231_s3 + $0x18] sm:$0xff] }
 0x236   :  { %5849 = vmatpush.bf16.msrb.mxu0 %v8888_v35 }
 0x237   :  { %5862 = vmatpush.bf16.msrb.mxu1 %v8896_v36 }
 0x238   :  { %5875 = vmatpush.bf16.msrb.mxu2 %v8904_v37 }
 0x239   :  { %5888 = vmatpush.bf16.msrb.mxu3 %v8912_v38 }
 0x23a   :  { %5850 = vmatpush.bf16.msrb.mxu0 %v8887_v41  ;;  %v5624_v3 = vpop.f32.mrf.mxu2 }
 0x23b   :  { %5863 = vmatpush.bf16.msrb.mxu1 %v8895_v42  ;;  %v5637_v4 = vpop.f32.mrf.mxu3 }
 0x23c   :  { %5876 = vmatpush.bf16.msrb.mxu2 %v8903_v44 }
 0x23d   :  { %5889 = vmatpush.bf16.msrb.mxu3 %v8911_v45  ;;  %v8922_v45 = vld [vmem:[%s9231_s3 + $0x38] sm:$0xff] }
 0x23e   :  { %5851 = vmatpush.bf16.msrb.mxu0 %v8886_v47 }
 0x23f   :  { %5864 = vmatpush.bf16.msrb.mxu1 %v8894_v48  ;;  %v8921_v48 = vld [vmem:[%s9231_s3 + $0x30] sm:$0xff] }
 0x240   :  { %5877 = vmatpush.bf16.msrb.mxu2 %v8902_v49  ;;  %v8920_v49 = vld [vmem:[%s9231_s3 + $0x28] sm:$0xff] }
 0x241   :  { %5890 = vmatpush.bf16.msrb.mxu3 %v8910_v50 }
 0x242   :  { %5852 = vmatpush.bf16.msrb.mxu0 %v8885_v56 }
 0x243   :  { %5865 = vmatpush.bf16.msrb.mxu1 %v8893_v57  ;;  %v8916_v57 = vld [vmem:[%s9231_s3 + $0x8] sm:$0xff] }
 0x244   :  { %5878 = vmatpush.bf16.msrb.mxu2 %v8901_v59 }
 0x245   :  { %5891 = vmatpush.bf16.msrb.mxu3 %v8909_v60 }
 0x246   :  { %5853 = vmatpush.bf16.msrb.mxu0 %v8884_v61 }
 0x247   :  { %5866 = vmatpush.bf16.msrb.mxu1 %v8892_v62  ;;  %v8915_v62 = vld [vmem:[%s9231_s3] sm:$0xff] }
 0x248   :  { %5879 = vmatpush.bf16.msrb.mxu2 %v8900_v0 }
 0x249   :  { %5892 = vmatpush.bf16.msrb.mxu3 %v8908_v1 }
 0x24a   :  { %5854 = vmatpush.bf16.msrb.mxu0 %v8883_v7  ;;  %v5648_v17 = vpop.f32.mrf.mxu0 }
 0x24b   :  { %5867 = vmatpush.bf16.msrb.mxu1 %v8891_v8  ;;  %v5649_v18 = vadd.f32 %v5648_v17, %v5636_v55  ;;  %v5661_v19 = vpop.f32.mrf.mxu1  ;;  %v8917_v55 = vld [vmem:[%s9231_s3 + $0x10] sm:$0xff] }
 0x24c   :  { %5880 = vmatpush.bf16.msrb.mxu2 %v8899_v11 }
 0x24d   :  { %5893 = vmatpush.bf16.msrb.mxu3 %v8907_v12  ;;  %5855 = vmatmul.bf16.vlgmr.msrb.gmra.mxu0 %v1431_v13  ;;  %v5662_v20 = vadd.f32 %v5661_v19, %v5649_v18 }
 0x24e   :  { %5868 = vmatmul.bf16.vlgmr.msrb.gmra.mxu1 %v1432_v14  ;;  %5969 = vmatpush.bf16.msra.mxu0 %v8922_v45 }
 0x24f   :  { %5881 = vmatmul.bf16.vlgmr.msrb.gmra.mxu2 %v1433_v15 }
 0x250   :  { %5894 = vmatmul.bf16.vlgmr.msrb.gmra.mxu3 %v1434_v16 }
 0x252   :  { %v5674_v21 = vpop.f32.mrf.mxu2  ;;  %v5650_v24 = vpop.f32.mrf.mxu0  ;;  %5970 = vmatpush.bf16.msra.mxu0 %v8921_v48 }
 0x253   :  { %v5675_v22 = vadd.f32 %v5674_v21, %v5662_v20  ;;  %v5687_v23 = vpop.f32.mrf.mxu3  ;;  %v5663_v26 = vpop.f32.mrf.mxu1 }
 0x255   :  { %v5688_v25 = vadd.f32 %v5687_v23, %v5675_v22  ;;  %v8929_v23 = vld [vmem:[#allocation6] ss:$0 sm:$0xff] }
 0x256   :  { %5971 = vmatpush.bf16.msra.mxu0 %v8920_v49 }
 0x25a   :  { %v5676_v27 = vpop.f32.mrf.mxu2  ;;  %5972 = vmatpush.bf16.msra.mxu0 %v8919_v52 }
 0x25b   :  { %v5689_v28 = vpop.f32.mrf.mxu3 }
 0x25e   :  { %5973 = vmatpush.bf16.msra.mxu0 %v8918_v53 }
 0x262   :  { %5974 = vmatpush.bf16.msra.mxu0 %v8917_v55 }
 0x266   :  { %5975 = vmatpush.bf16.msra.mxu0 %v8916_v57 }
 0x26a   :  { %v5700_v29 = vpop.f32.mrf.mxu0  ;;  %5976 = vmatpush.bf16.msra.mxu0 %v8915_v62 }
 0x26b   :  { %v5701_v30 = vadd.f32 %v5700_v29, %v5688_v25  ;;  %v5713_v31 = vpop.f32.mrf.mxu1 }
 0x26d   :  { %v5714_v32 = vadd.f32 %v5713_v31, %v5701_v30 }
 0x272   :  { %v5726_v33 = vpop.f32.mrf.mxu2  ;;  %v5702_v36 = vpop.f32.mrf.mxu0 }
 0x273   :  { %v5727_v34 = vadd.f32 %v5726_v33, %v5714_v32  ;;  %v5739_v35 = vpop.f32.mrf.mxu3  ;;  %v5715_v38 = vpop.f32.mrf.mxu1 }
 0x275   :  { %v5740_v37 = vadd.f32 %v5739_v35, %v5727_v34 }
 0x27a   :  { %v5728_v39 = vpop.f32.mrf.mxu2 }
 0x27b   :  { %v5741_v40 = vpop.f32.mrf.mxu3 }
 0x28a   :  { %v5752_v41 = vpop.f32.mrf.mxu0 }
 0x28b   :  { %v5765_v42 = vpop.f32.mrf.mxu1  ;;  %v5753_v59 = vadd.f32 %v5752_v41, %v5740_v37 }
 0x28d   :  { %v5766_v0 = vadd.f32 %v5765_v42, %v5753_v59 }
 0x292   :  { %v5778_v43 = vpop.f32.mrf.mxu2  ;;  %v5754_v46 = vpop.f32.mrf.mxu0 }
 0x293   :  { %v5791_v44 = vpop.f32.mrf.mxu3  ;;  %v5767_v47 = vpop.f32.mrf.mxu1  ;;  %v5779_v1 = vadd.f32 %v5778_v43, %v5766_v0 }
 0x295   :  { %v5792_v4 = vadd.f32 %v5791_v44, %v5779_v1 }
 0x29a   :  { %v5780_v50 = vpop.f32.mrf.mxu2 }
 0x29b   :  { %v5793_v51 = vpop.f32.mrf.mxu3 }
 0x2aa   :  { %v5804_v54 = vpop.f32.mrf.mxu0 }
 0x2ab   :  { %v5817_v56 = vpop.f32.mrf.mxu1  ;;  %v5805_v5 = vadd.f32 %v5804_v54, %v5792_v4 }
 0x2ad   :  { %v5818_v6 = vadd.f32 %v5817_v56, %v5805_v5 }
 0x2b2   :  { %v5830_v58 = vpop.f32.mrf.mxu2  ;;  %v5806_v61 = vpop.f32.mrf.mxu0 }
 0x2b3   :  { %v5843_v60 = vpop.f32.mrf.mxu3  ;;  %v5819_v63 = vpop.f32.mrf.mxu1  ;;  %v5831_v7 = vadd.f32 %v5830_v58, %v5818_v6 }
 0x2b5   :  { %v5844_v8 = vadd.f32 %v5843_v60, %v5831_v7 }
 0x2ba   :  { %v5832_v2 = vpop.f32.mrf.mxu2 }
 0x2bb   :  { %v5845_v3 = vpop.f32.mrf.mxu3 }
 0x2ca   :  { %v5856_v9 = vpop.f32.mrf.mxu0 }
 0x2cb   :  { %v5869_v10 = vpop.f32.mrf.mxu1  ;;  %v5857_v11 = vadd.f32 %v5856_v9, %v5844_v8 }
 0x2cd   :  { %v5870_v12 = vadd.f32 %v5869_v10, %v5857_v11 }
 0x2d2   :  { %v5882_v13 = vpop.f32.mrf.mxu2  ;;  %v5858_v16 = vpop.f32.mrf.mxu0 }
 0x2d3   :  { %v5895_v14 = vpop.f32.mrf.mxu3  ;;  %v5883_v15 = vadd.f32 %v5882_v13, %v5870_v12  ;;  %v5871_v17 = vpop.f32.mrf.mxu1 }
 0x2d5   :  { %v5896_v18 = vadd.f32 %v5895_v14, %v5883_v15 }
 0x2d7   :  { %v5899_v19 = vmax.f32 %v5896_v18, 0.0 }
 0x2d9   :  { %v5900_v20 = vpack.c.bf16 %v5899_v19, %v5899_v19 }
 0x2da   :  { %v5884_v21 = vpop.f32.mrf.mxu2 }
 0x2db   :  { %v5897_v22 = vpop.f32.mrf.mxu3  ;;  %5977 = vmatmul.bf16.vlgmr.msra.gmra.mxu0 %v5900_v20 }
 0x358   :  { %v5978_v24 = vpop.f32.mrf.mxu0 }
 0x359   :  { %v5979_v25 = vadd.f32 %v8929_v23, %v5978_v24 }
 0x35b   :  { %v5983_v26 = vsel %vm5982_vm0, %v5979_v25, -inf }
 0x35c   :  { %5984 = vmax.xlane.f32.xlu0 %v5983_v26 }
 0x360   :  { %v5980_v27 = vpop.f32.mrf.mxu0 }
 0x3cf   :  { %v5985_v28 = vpop.xlane.xlu0 %5984 }
 0x3d0   :  { %v5986_v29 = vsub.f32 %v5979_v25, %v5985_v28 }
 0x3d2   :  { %v5987_v30 = vmul.f32 1.442695, %v5986_v29 }
 0x3d4   :  { %8930 = vpow2.f32 %v5987_v30 }
 0x3da   :  { %v8931_v31 = vpop.eup %8930 }
 0x3db   :  { %v5989_v32 = vsel %vm5982_vm0, %v8931_v31, 0.0 }
 0x3dc   :  { %5990 = vadd.xlane.f32.xlu0 %v5989_v32 }
 0x44f   :  { %v5991_v33 = vpop.xlane.xlu0 %5990 }
 0x450   :  { %8932 = vlog2.f32 %v5991_v33 }
 0x456   :  { %v8933_v34 = vpop.eup %8932 }
 0x457   :  { %v5993_v35 = vmul.f32 0.6931472, %v8933_v34 }
 0x459   :  { %v5994_v36 = vadd.f32 %v5993_v35, %v5985_v28 }
 0x45b   :  { %v5995_v37 = vsub.f32 %v5979_v25, %v5994_v36 }
 0x45d   :  { %5996 = vst.msk [vmem:[%s9233_s5] sm:$0xff] %vm5982_vm0, %v5995_v37 }
 0x45e   :  { %6001 = vsyncpa [#allocation3], 1 }
 0x45f   :  { %6002 = vsyncpa [#allocation5], 1 }

</bundles_post_ra>
